<compile_context>
chip_gen: v7x
topology: tpu7x:2x2x1
jax: 0.10.0
libtpu: 0.0.40
codegen_flags: <defaults>
</compile_context>

<pallas_src>
import functools

import jax
import jax.numpy as jnp
from jax.experimental import pallas as pl
from jax.experimental.pallas import tpu as pltpu


# ----------------------------------------------------------------------------
# Generation-aware tiling configuration
# ----------------------------------------------------------------------------
def _tpu_tile_config():
    try:
        kind = jax.devices()[0].device_kind.lower()
    except Exception:  # pragma: no cover - defensive
        kind = ""
    if "v5 lite" in kind or "v5e" in kind or "v5lite" in kind:
        # v5e: 4x(128x128) MXU, lowest HBM BW -> 512x128 tiles.
        return 512, 128
    # v6e / v7x: 2x(256x256) MXU.  1024-row tiles stay far below even v7x's
    # 64 MiB VMEM when double-buffered.
    return 1024, 256


_TM_MAX, _TN_MAX = _tpu_tile_config()
# Safe on every generation (v5e/v6e have 128 MiB physical, v7x has 64 MiB).
_VMEM_LIMIT = 48 * 1024 * 1024
# Row-chunk processed per inner iteration of the implicit 3x3 kernel.
_ROW_CHUNK = 512


def _round_up(x, m):
    return (x + m - 1) // m * m


def _choose_m_tile(m, tm_max):
    tm = min(tm_max, _round_up(m, 8))
    return tm, _round_up(m, tm)


def _choose_n_tile(cout, tn_max):
    # Always pad Cout to a multiple of 128 lanes (unmasked vst, full MXU cols).
    cpad = _round_up(max(cout, 128), 128)
    tn = min(tn_max, cpad)
    while cpad % tn:
        tn -= 128
    return tn, cpad


def _pad2(x, d0, d1):
    p0, p1 = d0 - x.shape[0], d1 - x.shape[1]
    if p0 or p1:
        x = jnp.pad(x, ((0, p0), (0, p1)))
    return x


# ----------------------------------------------------------------------------
# Pallas kernels
# ----------------------------------------------------------------------------
def _gemm_bias_kernel(a_ref, w_ref, b_ref, out_ref, *, relu):
    # Single-K-block GEMM: a [tm, Kp] bf16, w [Kp, tn] bf16 (BN folded),
    # bias [1, tn] f32.  f32 accumulation, bf16 store.
    r = jnp.dot(a_ref[...], w_ref[...], preferred_element_type=jnp.float32)
    r = r + b_ref[...]
    if relu:
        r = jnp.maximum(r, 0.0)
    out_ref[...] = r.astype(out_ref.dtype)


def _implicit3x3_body(x_ref, w_ref, b_ref, res_ref, out_ref, Wp, M, CK):
    # x_ref:   [1, Hp*Wp, Cin]  zero-padded image, flattened rows (bf16)
    # w_ref:   [9, Cin, Coutp]  per-tap weights, BN scale folded (bf16)
    # b_ref:   [1, Coutp]       f32 bias
    # res_ref: [1, M, Coutp]    optional bf16 residual (padded/flattened)
    # out_ref: [1, M, Coutp]    bf16 output over M = H*Wp positions
    #
    # For output position p and tap (di, dj) the needed input row is simply
    # p + di*Wp + dj, so each tap is a contiguous row slab of x_ref (the two
    # wrap-around columns per row are garbage and sliced away by the wrapper).
    bias = b_ref[...]
    nck = (M + CK - 1) // CK
    for c in range(nck):
        c0 = c * CK
        csz = min(CK, M - c0)
        acc = None
        for di in range(3):
            for dj in range(3):
                a = x_ref[0, pl.ds(di * Wp + dj + c0, csz), :]
                d = jnp.dot(a, w_ref[3 * di + dj],
                            preferred_element_type=jnp.float32)
                acc = d if acc is None else acc + d
        r = acc + bias
        if res_ref is not None:
            r = r + res_ref[0, pl.ds(c0, csz), :].astype(jnp.float32)
        r = jnp.maximum(r, 0.0)
        out_ref[0, pl.ds(c0, csz), :] = r.astype(out_ref.dtype)


def _implicit3x3_kernel(x_ref, w_ref, b_ref, out_ref, *, Wp, M, CK):
    _implicit3x3_body(x_ref, w_ref, b_ref, None, out_ref, Wp, M, CK)


def _implicit3x3_res_kernel(x_ref, w_ref, b_ref, res_ref, out_ref, *, Wp, M, CK):
    _implicit3x3_body(x_ref, w_ref, b_ref, res_ref, out_ref, Wp, M, CK)


# ----------------------------------------------------------------------------
# Tiled single-K GEMM wrapper (stem / stride-2 conv / 1x1 downsample)
# ----------------------------------------------------------------------------
def _gemm_bias_act(a, wmat, bias, *, relu):
    """a: [M, K] (any float dtype), wmat: [K, Cout] f32, bias: [Cout] f32.
    Returns [M, Cout] bf16."""
    m, k = a.shape
    cout = wmat.shape[1]

    tm, mpad = _choose_m_tile(m, _TM_MAX)
    tn, cpad = _choose_n_tile(cout, _TN_MAX)
    kpad = _round_up(k, 128)

    a = _pad2(a.astype(jnp.bfloat16), mpad, kpad)
    wmat = _pad2(wmat.astype(jnp.bfloat16), kpad, cpad)
    b2 = _pad2(bias.reshape(1, cout).astype(jnp.float32), 1, cpad)

    grid = (mpad // tm, cpad // tn)
    cost = pl.CostEstimate(
        flops=2 * mpad * kpad * cpad,
        transcendentals=0,
        bytes_accessed=mpad * kpad * 2 + grid[0] * kpad * cpad * 2
        + mpad * cpad * 2,
    )

    out = pl.pallas_call(
        functools.partial(_gemm_bias_kernel, relu=relu),
        out_shape=jax.ShapeDtypeStruct((mpad, cpad), jnp.bfloat16),
        grid=grid,
        in_specs=[
            pl.BlockSpec((tm, kpad), lambda i, j: (i, 0)),
            pl.BlockSpec((kpad, tn), lambda i, j: (0, j)),
            pl.BlockSpec((1, tn), lambda i, j: (0, j)),
        ],
        out_specs=pl.BlockSpec((tm, tn), lambda i, j: (i, j)),
        compiler_params=pltpu.CompilerParams(
            dimension_semantics=("parallel", "parallel"),
            vmem_limit_bytes=_VMEM_LIMIT),
        cost_estimate=cost,
    )(a, wmat, b2)
    return out[:m, :cout]


# ----------------------------------------------------------------------------
# Conv flavours
# ----------------------------------------------------------------------------
def _im2col(x, kh, kw, stride, pad):
    """x: [N, H, W, C] (bf16) -> patches [N*Ho*Wo, kh*kw*C] in (kh, kw, c) order."""
    n, h, w, c = x.shape
    xp = jnp.pad(x, ((0, 0), (pad, pad), (pad, pad), (0, 0)))
    ho = (h + 2 * pad - kh) // stride + 1
    wo = (w + 2 * pad - kw) // stride + 1
    cols = []
    for i in range(kh):
        for j in range(kw):
            cols.append(xp[:, i:i + stride * ho:stride, j:j + stride * wo:stride, :])
    patches = jnp.concatenate(cols, axis=-1)  # [N, Ho, Wo, kh*kw*C]
    return patches.reshape(n * ho * wo, kh * kw * c), ho, wo


def conv_im2col_bn_act(x, w, scale, bias, *, stride, pad, relu):
    """General conv via im2col + GEMM (used only for the 7x7 stem and the one
    3x3 stride-2 conv)."""
    kh, kw, cin, cout = w.shape
    n = x.shape[0]
    patches, ho, wo = _im2col(x.astype(jnp.bfloat16), kh, kw, stride, pad)
    wmat = w.reshape(kh * kw * cin, cout) * scale[None, :]
    out = _gemm_bias_act(patches, wmat, bias, relu=relu)
    return out.reshape(n, ho, wo, cout)


def conv1x1_bn(x, w, scale, bias, *, stride):
    """1x1 conv + BN (downsample path): plain GEMM, no patch extraction."""
    cin, cout = w.shape[2], w.shape[3]
    if stride > 1:
        x = x[:, ::stride, ::stride, :]
    n, ho, wo, _ = x.shape
    a = x.reshape(n * ho * wo, cin)
    wmat = w.reshape(cin, cout) * scale[None, :]
    out = _gemm_bias_act(a, wmat, bias, relu=False)
    return out.reshape(n, ho, wo, cout)


def conv3x3_s1_bn_relu(x, w, scale, bias, *, residual=None):
    """3x3 stride-1 pad-1 conv + BN (+residual) + ReLU via implicit GEMM
    (no im2col in HBM)."""
    n, h, wd, cin = x.shape
    cout = w.shape[-1]
    coutp = _round_up(max(cout, 128), 128)
    wp_ = wd + 2          # padded width
    hp_ = h + 3           # 1 top pad, 2 bottom pad rows (slab overrun room)
    m = h * wp_           # output positions computed per image (2 garbage/row)

    xp = jnp.pad(x.astype(jnp.bfloat16), ((0, 0), (1, 2), (1, 1), (0, 0)))
    xpf = xp.reshape(n, hp_ * wp_, cin)

    wmat = (w.reshape(9, cin, cout) * scale[None, None, :]).astype(jnp.bfloat16)
    if coutp != cout:
        wmat = jnp.pad(wmat, ((0, 0), (0, 0), (0, coutp - cout)))
    b2 = _pad2(bias.reshape(1, cout).astype(jnp.float32), 1, coutp)

    in_specs = [
        pl.BlockSpec((1, hp_ * wp_, cin), lambda i: (i, 0, 0)),
        pl.BlockSpec((9, cin, coutp), lambda i: (0, 0, 0)),
        pl.BlockSpec((1, coutp), lambda i: (0, 0)),
    ]
    args = [xpf, wmat, b2]
    if residual is None:
        kernel = functools.partial(_implicit3x3_kernel, Wp=wp_, M=m, CK=_ROW_CHUNK)
        res_bytes = 0
    else:
        resf = jnp.pad(residual.astype(jnp.bfloat16),
                       ((0, 0), (0, 0), (0, 2), (0, coutp - cout)))
        resf = resf.reshape(n, m, coutp)
        in_specs.append(pl.BlockSpec((1, m, coutp), lambda i: (i, 0, 0)))
        args.append(resf)
        kernel = functools.partial(_implicit3x3_res_kernel, Wp=wp_, M=m, CK=_ROW_CHUNK)
        res_bytes = n * m * coutp * 2

    cost = pl.CostEstimate(
        flops=2 * n * m * cin * coutp * 9,
        transcendentals=0,
        bytes_accessed=n * hp_ * wp_ * cin * 2 + 9 * cin * coutp * 2
        + n * m * coutp * 2 + res_bytes,
    )

    out = pl.pallas_call(
        kernel,
        out_shape=jax.ShapeDtypeStruct((n, m, coutp), jnp.bfloat16),
        grid=(n,),
        in_specs=in_specs,
        out_specs=pl.BlockSpec((1, m, coutp), lambda i: (i, 0, 0)),
        compiler_params=pltpu.CompilerParams(
            dimension_semantics=("parallel",),
            vmem_limit_bytes=_VMEM_LIMIT),
        cost_estimate=cost,
    )(*args)

    out = out.reshape(n, h, wp_, coutp)[:, :, :wd, :cout]
    return out


# ----------------------------------------------------------------------------
# MaxPool 3x3 stride 2 pad 1 (fused maximum tree over strided slices, bf16)
# ----------------------------------------------------------------------------
def maxpool_3x3_s2_p1(x):
    n, h, w, c = x.shape
    xp = jnp.pad(x, ((0, 0), (1, 1), (1, 1), (0, 0)), constant_values=-jnp.inf)
    ho = (h - 1) // 2 + 1
    wo = (w - 1) // 2 + 1
    out = None
    for i in range(3):
        for j in range(3):
            tap = xp[:, i:i + 2 * ho - 1:2, j:j + 2 * wo - 1:2, :]
            out = tap if out is None else jnp.maximum(out, tap)
    return out


# ----------------------------------------------------------------------------
# Deterministic parameter initialization (synthetic weights, no checkpoint)
# ----------------------------------------------------------------------------
def _init_conv(key, kh, kw, cin, cout):
    fan_in = kh * kw * cin
    return jax.random.normal(key, (kh, kw, cin, cout), jnp.float32) * (2.0 / fan_in) ** 0.5


def _init_bn(key, c):
    k1, k2, k3, k4 = jax.random.split(key, 4)
    gamma = 1.0 + 0.05 * jax.random.normal(k1, (c,), jnp.float32)
    beta = 0.05 * jax.random.normal(k2, (c,), jnp.float32)
    mean = 0.05 * jax.random.normal(k3, (c,), jnp.float32)
    var = 1.0 + 0.05 * jax.random.uniform(k4, (c,), jnp.float32)
    eps = 1e-5
    scale = gamma / jnp.sqrt(var + eps)
    bias = beta - mean * scale
    return scale, bias


def init_params(key):
    keys = iter(jax.random.split(key, 256))

    def block(cin, cout, downsample):
        p = {
            "w1": _init_conv(next(keys), 3, 3, cin, cout),
            "bn1": _init_bn(next(keys), cout),
            "w2": _init_conv(next(keys), 3, 3, cout, cout),
            "bn2": _init_bn(next(keys), cout),
        }
        if downsample:
            p["wd"] = _init_conv(next(keys), 1, 1, cin, cout)
            p["bnd"] = _init_bn(next(keys), cout)
        return p

    params = {
        "stem_w": _init_conv(next(keys), 7, 7, 3, 64),
        "stem_bn": _init_bn(next(keys), 64),
        # resnet34.layer1: 3 BasicBlocks, 64 -> 64, stride 1
        "layer1": [block(64, 64, False) for _ in range(3)],
        # resnet34.layer2: 4 BasicBlocks, 64 -> 128, first has stride 2 + downsample
        "layer2": [block(64, 128, True)] + [block(128, 128, False) for _ in range(3)],
        # resnet34.layer3: 6 BasicBlocks, 128 -> 256, first has downsample;
        # stride modified to (1, 1) by _ModifyBlock in the SSD backbone
        "layer3": [block(128, 256, True)] + [block(256, 256, False) for _ in range(5)],
    }
    return params


# ----------------------------------------------------------------------------
# Forward pass (matches ResNet34.forward of the PyTorch module)
# ----------------------------------------------------------------------------
def _basic_block(x, p, stride):
    s1, b1 = p["bn1"]
    s2, b2 = p["bn2"]
    if stride == 1:
        out = conv3x3_s1_bn_relu(x, p["w1"], s1, b1)
    else:
        out = conv_im2col_bn_act(x, p["w1"], s1, b1, stride=stride, pad=1, relu=True)
    if "wd" in p:
        sd, bd = p["bnd"]
        identity = conv1x1_bn(x, p["wd"], sd, bd, stride=stride)
    else:
        identity = x
    # conv2 + bn2 + residual add + ReLU fused in one implicit-GEMM Pallas kernel
    return conv3x3_s1_bn_relu(out, p["w2"], s2, b2, residual=identity)


def resnet34_ssd_forward(x_nchw, params):
    x = jnp.transpose(x_nchw, (0, 2, 3, 1)).astype(jnp.bfloat16)  # NCHW -> NHWC bf16

    # self.layer1 = [conv1, bn1, relu, maxpool, resnet.layer1, resnet.layer2]
    s0, b0 = params["stem_bn"]
    x = conv_im2col_bn_act(x, params["stem_w"], s0, b0, stride=2, pad=3, relu=True)
    x = maxpool_3x3_s2_p1(x)
    for p in params["layer1"]:
        x = _basic_block(x, p, stride=1)
    for i, p in enumerate(params["layer2"]):
        x = _basic_block(x, p, stride=2 if i == 0 else 1)

    # self.layer2 = resnet.layer3 with first block's conv1 + downsample stride
    # forced to (1, 1) by _ModifyBlock(stride=(1, 1))
    for p in params["layer3"]:
        x = _basic_block(x, p, stride=1)

    # back to NCHW float32, list like PyTorch
    return [jnp.transpose(x, (0, 3, 1, 2)).astype(jnp.float32)]


if __name__ == "__main__":
    key = jax.random.PRNGKey(0)
    kp, kx = jax.random.split(key)
    params = init_params(kp)
    x = jax.random.normal(kx, (2, 3, 16, 16), jnp.float32)  # NCHW like PyTorch

    fwd = jax.jit(resnet34_ssd_forward)
    out = fwd(x, params)
    out0 = jax.block_until_ready(out[0])

    # 16 -> conv(s2) 8 -> maxpool(s2) 4 -> layer2(s2) 2 -> modified layer3(s1) 2
    assert out0.shape == (2, 256, 2, 2), out0.shape
    assert jnp.all(jnp.isfinite(out0))
    print("KERNEL_OK")
</pallas_src>

<mosaic_0001>
module attributes {stable_mosaic.version = 11 : i64} {
  func.func @_gemm_bias_kernel(%arg0: i32, %arg1: i32, %arg2: memref<128x256xbf16, #tpu.memory_space<vmem>>, %arg3: memref<256x128xbf16, #tpu.memory_space<vmem>>, %arg4: memref<1x128xf32, #tpu.memory_space<vmem>>, %arg5: memref<128x128xbf16, #tpu.memory_space<vmem>>) attributes {dimension_semantics = [#tpu.dimension_semantics<parallel>, #tpu.dimension_semantics<parallel>], iteration_bounds = array<i64: 1, 1>, scalar_prefetch = 0 : i64, scratch_operands = 0 : i64, tpu.core_type = #tpu.core_type<tc>, window_params = [{transform_indices = @transform_0, window_bounds = array<i64: 128, 256>}, {transform_indices = @transform_1, window_bounds = array<i64: 256, 128>}, {transform_indices = @transform_2, window_bounds = array<i64: 1, 128>}, {transform_indices = @transform_3, window_bounds = array<i64: 128, 128>}]} {
    %c0 = arith.constant 0 : index
    %c0_0 = arith.constant 0 : index
    %0 = vector.load %arg2[%c0, %c0_0] : memref<128x256xbf16, #tpu.memory_space<vmem>>, vector<128x256xbf16>
    %c0_1 = arith.constant 0 : index
    %c0_2 = arith.constant 0 : index
    %1 = vector.load %arg3[%c0_1, %c0_2] : memref<256x128xbf16, #tpu.memory_space<vmem>>, vector<256x128xbf16>
    %cst = arith.constant dense<0.000000e+00> : vector<128x128xf32>
    %2 = tpu.matmul %0, %1, %cst {dimension_numbers = #tpu.dot_dimension_numbers<[1], [0], [0], [1], [0, 0, 1, 1], [], []>} : vector<128x256xbf16>, vector<256x128xbf16>, vector<128x128xf32> -> vector<128x128xf32>
    %c0_3 = arith.constant 0 : index
    %c0_4 = arith.constant 0 : index
    %3 = vector.load %arg4[%c0_3, %c0_4] : memref<1x128xf32, #tpu.memory_space<vmem>>, vector<1x128xf32>
    %4 = vector.broadcast %3 : vector<1x128xf32> to vector<128x128xf32>
    %5 = arith.addf %2, %4 : vector<128x128xf32>
    %cst_5 = arith.constant 0.000000e+00 : f32
    %6 = vector.broadcast %cst_5 : f32 to vector<128x128xf32>
    %7 = arith.maximumf %5, %6 : vector<128x128xf32>
    %8 = arith.truncf %7 : vector<128x128xf32> to vector<128x128xbf16>
    %c0_6 = arith.constant 0 : index
    %c0_7 = arith.constant 0 : index
    %9 = vector.load %arg5[%c0_6, %c0_7] : memref<128x128xbf16, #tpu.memory_space<vmem>>, vector<128x128xbf16>
    tpu.vector_store %arg5[%c0_6, %c0_7], %8 {strides = array<i32>} : memref<128x128xbf16, #tpu.memory_space<vmem>>, vector<128x128xbf16>,
    return
  }
  func.func @transform_0(%arg0: i32, %arg1: i32) -> (i32, i32) {
    %c0_i32 = arith.constant 0 : i32
    %c0_i32_0 = arith.constant 0 : i32
    return %arg0, %c0_i32 : i32, i32
  }
  func.func @transform_1(%arg0: i32, %arg1: i32) -> (i32, i32) {
    %c0_i32 = arith.constant 0 : i32
    %c0_i32_0 = arith.constant 0 : i32
    return %c0_i32, %arg1 : i32, i32
  }
  func.func @transform_2(%arg0: i32, %arg1: i32) -> (i32, i32) {
    %c0_i32 = arith.constant 0 : i32
    %c0_i32_0 = arith.constant 0 : i32
    return %c0_i32, %arg1 : i32, i32
  }
  func.func @transform_3(%arg0: i32, %arg1: i32) -> (i32, i32) {
    %c0_i32 = arith.constant 0 : i32
    return %arg0, %arg1 : i32, i32
  }
}

module attributes {stable_mosaic.version = 11 : i64} {
  func.func @_implicit3x3_kernel(%arg0: i32, %arg1: memref<1x42x64xbf16, #tpu.memory_space<vmem>>, %arg2: memref<9x64x128xbf16, #tpu.memory_space<vmem>>, %arg3: memref<1x128xf32, #tpu.memory_space<vmem>>, %arg4: memref<1x24x128xbf16, #tpu.memory_space<vmem>>) attributes {dimension_semantics = [#tpu.dimension_semantics<parallel>], iteration_bounds = array<i64: 2>, scalar_prefetch = 0 : i64, scratch_operands = 0 : i64, tpu.core_type = #tpu.core_type<tc>, window_params = [{transform_indices = @transform_0, window_bounds = array<i64: 1, 42, 64>}, {pipeline_mode = #tpu.pipeline_mode<synchronous>, transform_indices = @transform_1, window_bounds = array<i64: 9, 64, 128>}, {pipeline_mode = #tpu.pipeline_mode<synchronous>, transform_indices = @transform_2, window_bounds = array<i64: 1, 128>}, {transform_indices = @transform_3, window_bounds = array<i64: 1, 24, 128>}]} {
    %c0 = arith.constant 0 : index
    %c0_0 = arith.constant 0 : index
    %0 = vector.load %arg3[%c0, %c0_0] : memref<1x128xf32, #tpu.memory_space<vmem>>, vector<1x128xf32>
    %c0_1 = arith.constant 0 : index
    %c0_2 = arith.constant 0 : index
    %c0_3 = arith.constant 0 : index
    %1 = vector.load %arg1[%c0_1, %c0_2, %c0_3] : memref<1x42x64xbf16, #tpu.memory_space<vmem>>, vector<1x24x64xbf16>
    %2 = vector.shape_cast %1 : vector<1x24x64xbf16> to vector<24x64xbf16>
    %c0_4 = arith.constant 0 : index
    %c0_5 = arith.constant 0 : index
    %c0_6 = arith.constant 0 : index
    %3 = vector.load %arg2[%c0_4, %c0_5, %c0_6] : memref<9x64x128xbf16, #tpu.memory_space<vmem>>, vector<1x64x128xbf16>
    %4 = vector.shape_cast %3 : vector<1x64x128xbf16> to vector<64x128xbf16>
    %cst = arith.constant dense<0.000000e+00> : vector<24x128xf32>
    %5 = tpu.matmul %2, %4, %cst {dimension_numbers = #tpu.dot_dimension_numbers<[1], [0], [0], [1], [0, 0, 1, 1], [], []>} : vector<24x64xbf16>, vector<64x128xbf16>, vector<24x128xf32> -> vector<24x128xf32>
    %c0_7 = arith.constant 0 : index
    %c1 = arith.constant 1 : index
    %c0_8 = arith.constant 0 : index
    %6 = vector.load %arg1[%c0_7, %c1, %c0_8] : memref<1x42x64xbf16, #tpu.memory_space<vmem>>, vector<1x24x64xbf16>
    %7 = vector.shape_cast %6 : vector<1x24x64xbf16> to vector<24x64xbf16>
    %c1_9 = arith.constant 1 : index
    %c0_10 = arith.constant 0 : index
    %c0_11 = arith.constant 0 : index
    %8 = vector.load %arg2[%c1_9, %c0_10, %c0_11] : memref<9x64x128xbf16, #tpu.memory_space<vmem>>, vector<1x64x128xbf16>
    %9 = vector.shape_cast %8 : vector<1x64x128xbf16> to vector<64x128xbf16>
    %cst_12 = arith.constant dense<0.000000e+00> : vector<24x128xf32>
    %10 = tpu.matmul %7, %9, %cst_12 {dimension_numbers = #tpu.dot_dimension_numbers<[1], [0], [0], [1], [0, 0, 1, 1], [], []>} : vector<24x64xbf16>, vector<64x128xbf16>, vector<24x128xf32> -> vector<24x128xf32>
    %11 = arith.addf %5, %10 : vector<24x128xf32>
    %c0_13 = arith.constant 0 : index
    %c2 = arith.constant 2 : index
    %c0_14 = arith.constant 0 : index
    %12 = vector.load %arg1[%c0_13, %c2, %c0_14] : memref<1x42x64xbf16, #tpu.memory_space<vmem>>, vector<1x24x64xbf16>
    %13 = vector.shape_cast %12 : vector<1x24x64xbf16> to vector<24x64xbf16>
    %c2_15 = arith.constant 2 : index
    %c0_16 = arith.constant 0 : index
    %c0_17 = arith.constant 0 : index
    %14 = vector.load %arg2[%c2_15, %c0_16, %c0_17] : memref<9x64x128xbf16, #tpu.memory_space<vmem>>, vector<1x64x128xbf16>
    %15 = vector.shape_cast %14 : vector<1x64x128xbf16> to vector<64x128xbf16>
    %cst_18 = arith.constant dense<0.000000e+00> : vector<24x128xf32>
    %16 = tpu.matmul %13, %15, %cst_18 {dimension_numbers = #tpu.dot_dimension_numbers<[1], [0], [0], [1], [0, 0, 1, 1], [], []>} : vector<24x64xbf16>, vector<64x128xbf16>, vector<24x128xf32> -> vector<24x128xf32>
    %17 = arith.addf %11, %16 : vector<24x128xf32>
    %c0_19 = arith.constant 0 : index
    %c6 = arith.constant 6 : index
    %c0_20 = arith.constant 0 : index
    %18 = vector.load %arg1[%c0_19, %c6, %c0_20] : memref<1x42x64xbf16, #tpu.memory_space<vmem>>, vector<1x24x64xbf16>
    %19 = vector.shape_cast %18 : vector<1x24x64xbf16> to vector<24x64xbf16>
    %c3 = arith.constant 3 : index
    %c0_21 = arith.constant 0 : index
    %c0_22 = arith.constant 0 : index
    %20 = vector.load %arg2[%c3, %c0_21, %c0_22] : memref<9x64x128xbf16, #tpu.memory_space<vmem>>, vector<1x64x128xbf16>
    %21 = vector.shape_cast %20 : vector<1x64x128xbf16> to vector<64x128xbf16>
    %cst_23 = arith.constant dense<0.000000e+00> : vector<24x128xf32>
    %22 = tpu.matmul %19, %21, %cst_23 {dimension_numbers = #tpu.dot_dimension_numbers<[1], [0], [0], [1], [0, 0, 1, 1], [], []>} : vector<24x64xbf16>, vector<64x128xbf16>, vector<24x128xf32> -> vector<24x128xf32>
    %23 = arith.addf %17, %22 : vector<24x128xf32>
    %c0_24 = arith.constant 0 : index
    %c7 = arith.constant 7 : index
    %c0_25 = arith.constant 0 : index
    %24 = vector.load %arg1[%c0_24, %c7, %c0_25] : memref<1x42x64xbf16, #tpu.memory_space<vmem>>, vector<1x24x64xbf16>
    %25 = vector.shape_cast %24 : vector<1x24x64xbf16> to vector<24x64xbf16>
    %c4 = arith.constant 4 : index
    %c0_26 = arith.constant 0 : index
    %c0_27 = arith.constant 0 : index
    %26 = vector.load %arg2[%c4, %c0_26, %c0_27] : memref<9x64x128xbf16, #tpu.memory_space<vmem>>, vector<1x64x128xbf16>
    %27 = vector.shape_cast %26 : vector<1x64x128xbf16> to vector<64x128xbf16>
    %cst_28 = arith.constant dense<0.000000e+00> : vector<24x128xf32>
    %28 = tpu.matmul %25, %27, %cst_28 {dimension_numbers = #tpu.dot_dimension_numbers<[1], [0], [0], [1], [0, 0, 1, 1], [], []>} : vector<24x64xbf16>, vector<64x128xbf16>, vector<24x128xf32> -> vector<24x128xf32>
    %29 = arith.addf %23, %28 : vector<24x128xf32>
    %c0_29 = arith.constant 0 : index
    %c8 = arith.constant 8 : index
    %c0_30 = arith.constant 0 : index
    %30 = vector.load %arg1[%c0_29, %c8, %c0_30] : memref<1x42x64xbf16, #tpu.memory_space<vmem>>, vector<1x24x64xbf16>
    %31 = vector.shape_cast %30 : vector<1x24x64xbf16> to vector<24x64xbf16>
    %c5 = arith.constant 5 : index
    %c0_31 = arith.constant 0 : index
    %c0_32 = arith.constant 0 : index
    %32 = vector.load %arg2[%c5, %c0_31, %c0_32] : memref<9x64x128xbf16, #tpu.memory_space<vmem>>, vector<1x64x128xbf16>
    %33 = vector.shape_cast %32 : vector<1x64x128xbf16> to vector<64x128xbf16>
    %cst_33 = arith.constant dense<0.000000e+00> : vector<24x128xf32>
    %34 = tpu.matmul %31, %33, %cst_33 {dimension_numbers = #tpu.dot_dimension_numbers<[1], [0], [0], [1], [0, 0, 1, 1], [], []>} : vector<24x64xbf16>, vector<64x128xbf16>, vector<24x128xf32> -> vector<24x128xf32>
    %35 = arith.addf %29, %34 : vector<24x128xf32>
    %c0_34 = arith.constant 0 : index
    %c12 = arith.constant 12 : index
    %c0_35 = arith.constant 0 : index
    %36 = vector.load %arg1[%c0_34, %c12, %c0_35] : memref<1x42x64xbf16, #tpu.memory_space<vmem>>, vector<1x24x64xbf16>
    %37 = vector.shape_cast %36 : vector<1x24x64xbf16> to vector<24x64xbf16>
    %c6_36 = arith.constant 6 : index
    %c0_37 = arith.constant 0 : index
    %c0_38 = arith.constant 0 : index
    %38 = vector.load %arg2[%c6_36, %c0_37, %c0_38] : memref<9x64x128xbf16, #tpu.memory_space<vmem>>, vector<1x64x128xbf16>
    %39 = vector.shape_cast %38 : vector<1x64x128xbf16> to vector<64x128xbf16>
    %cst_39 = arith.constant dense<0.000000e+00> : vector<24x128xf32>
    %40 = tpu.matmul %37, %39, %cst_39 {dimension_numbers = #tpu.dot_dimension_numbers<[1], [0], [0], [1], [0, 0, 1, 1], [], []>} : vector<24x64xbf16>, vector<64x128xbf16>, vector<24x128xf32> -> vector<24x128xf32>
    %41 = arith.addf %35, %40 : vector<24x128xf32>
    %c0_40 = arith.constant 0 : index
    %c13 = arith.constant 13 : index
    %c0_41 = arith.constant 0 : index
    %42 = vector.load %arg1[%c0_40, %c13, %c0_41] : memref<1x42x64xbf16, #tpu.memory_space<vmem>>, vector<1x24x64xbf16>
    %43 = vector.shape_cast %42 : vector<1x24x64xbf16> to vector<24x64xbf16>
    %c7_42 = arith.constant 7 : index
    %c0_43 = arith.constant 0 : index
    %c0_44 = arith.constant 0 : index
    %44 = vector.load %arg2[%c7_42, %c0_43, %c0_44] : memref<9x64x128xbf16, #tpu.memory_space<vmem>>, vector<1x64x128xbf16>
    %45 = vector.shape_cast %44 : vector<1x64x128xbf16> to vector<64x128xbf16>
    %cst_45 = arith.constant dense<0.000000e+00> : vector<24x128xf32>
    %46 = tpu.matmul %43, %45, %cst_45 {dimension_numbers = #tpu.dot_dimension_numbers<[1], [0], [0], [1], [0, 0, 1, 1], [], []>} : vector<24x64xbf16>, vector<64x128xbf16>, vector<24x128xf32> -> vector<24x128xf32>
    %47 = arith.addf %41, %46 : vector<24x128xf32>
    %c0_46 = arith.constant 0 : index
    %c14 = arith.constant 14 : index
    %c0_47 = arith.constant 0 : index
    %48 = vector.load %arg1[%c0_46, %c14, %c0_47] : memref<1x42x64xbf16, #tpu.memory_space<vmem>>, vector<1x24x64xbf16>
    %49 = vector.shape_cast %48 : vector<1x24x64xbf16> to vector<24x64xbf16>
    %c8_48 = arith.constant 8 : index
    %c0_49 = arith.constant 0 : index
    %c0_50 = arith.constant 0 : index
    %50 = vector.load %arg2[%c8_48, %c0_49, %c0_50] : memref<9x64x128xbf16, #tpu.memory_space<vmem>>, vector<1x64x128xbf16>
    %51 = vector.shape_cast %50 : vector<1x64x128xbf16> to vector<64x128xbf16>
    %cst_51 = arith.constant dense<0.000000e+00> : vector<24x128xf32>
    %52 = tpu.matmul %49, %51, %cst_51 {dimension_numbers = #tpu.dot_dimension_numbers<[1], [0], [0], [1], [0, 0, 1, 1], [], []>} : vector<24x64xbf16>, vector<64x128xbf16>, vector<24x128xf32> -> vector<24x128xf32>
    %53 = arith.addf %47, %52 : vector<24x128xf32>
    %54 = vector.broadcast %0 : vector<1x128xf32> to vector<24x128xf32>
    %55 = arith.addf %53, %54 : vector<24x128xf32>
    %cst_52 = arith.constant 0.000000e+00 : f32
    %56 = vector.broadcast %cst_52 : f32 to vector<24x128xf32>
    %57 = arith.maximumf %55, %56 : vector<24x128xf32>
    %58 = arith.truncf %57 : vector<24x128xf32> to vector<24x128xbf16>
    %c0_53 = arith.constant 0 : index
    %c0_54 = arith.constant 0 : index
    %c0_55 = arith.constant 0 : index
    %59 = vector.load %arg4[%c0_53, %c0_54, %c0_55] : memref<1x24x128xbf16, #tpu.memory_space<vmem>>, vector<1x24x128xbf16>
    %60 = vector.shape_cast %59 : vector<1x24x128xbf16> to vector<24x128xbf16>
    %61 = vector.shape_cast %58 : vector<24x128xbf16> to vector<1x24x128xbf16>
    tpu.vector_store %arg4[%c0_53, %c0_54, %c0_55], %61 {strides = array<i32>} : memref<1x24x128xbf16, #tpu.memory_space<vmem>>, vector<1x24x128xbf16>,
    return
  }
  func.func @transform_0(%arg0: i32) -> (i32, i32, i32) {
    %c0_i32 = arith.constant 0 : i32
    %c0_i32_0 = arith.constant 0 : i32
    %c0_i32_1 = arith.constant 0 : i32
    return %arg0, %c0_i32, %c0_i32_0 : i32, i32, i32
  }
  func.func @transform_1(%arg0: i32) -> (i32, i32, i32) {
    %c0_i32 = arith.constant 0 : i32
    %c0_i32_0 = arith.constant 0 : i32
    %c0_i32_1 = arith.constant 0 : i32
    %c0_i32_2 = arith.constant 0 : i32
    return %c0_i32, %c0_i32_0, %c0_i32_1 : i32, i32, i32
  }
  func.func @transform_2(%arg0: i32) -> (i32, i32) {
    %c0_i32 = arith.constant 0 : i32
    %c0_i32_0 = arith.constant 0 : i32
    %c0_i32_1 = arith.constant 0 : i32
    return %c0_i32, %c0_i32_0 : i32, i32
  }
  func.func @transform_3(%arg0: i32) -> (i32, i32, i32) {
    %c0_i32 = arith.constant 0 : i32
    %c0_i32_0 = arith.constant 0 : i32
    %c0_i32_1 = arith.constant 0 : i32
    return %arg0, %c0_i32, %c0_i32_0 : i32, i32, i32
  }
}

module attributes {stable_mosaic.version = 11 : i64} {
  func.func @_implicit3x3_res_kernel(%arg0: i32, %arg1: memref<1x42x64xbf16, #tpu.memory_space<vmem>>, %arg2: memref<9x64x128xbf16, #tpu.memory_space<vmem>>, %arg3: memref<1x128xf32, #tpu.memory_space<vmem>>, %arg4: memref<1x24x128xbf16, #tpu.memory_space<vmem>>, %arg5: memref<1x24x128xbf16, #tpu.memory_space<vmem>>) attributes {dimension_semantics = [#tpu.dimension_semantics<parallel>], iteration_bounds = array<i64: 2>, scalar_prefetch = 0 : i64, scratch_operands = 0 : i64, tpu.core_type = #tpu.core_type<tc>, window_params = [{transform_indices = @transform_0, window_bounds = array<i64: 1, 42, 64>}, {pipeline_mode = #tpu.pipeline_mode<synchronous>, transform_indices = @transform_1, window_bounds = array<i64: 9, 64, 128>}, {pipeline_mode = #tpu.pipeline_mode<synchronous>, transform_indices = @transform_2, window_bounds = array<i64: 1, 128>}, {transform_indices = @transform_3, window_bounds = array<i64: 1, 24, 128>}, {transform_indices = @transform_4, window_bounds = array<i64: 1, 24, 128>}]} {
    %c0 = arith.constant 0 : index
    %c0_0 = arith.constant 0 : index
    %0 = vector.load %arg3[%c0, %c0_0] : memref<1x128xf32, #tpu.memory_space<vmem>>, vector<1x128xf32>
    %c0_1 = arith.constant 0 : index
    %c0_2 = arith.constant 0 : index
    %c0_3 = arith.constant 0 : index
    %1 = vector.load %arg1[%c0_1, %c0_2, %c0_3] : memref<1x42x64xbf16, #tpu.memory_space<vmem>>, vector<1x24x64xbf16>
    %2 = vector.shape_cast %1 : vector<1x24x64xbf16> to vector<24x64xbf16>
    %c0_4 = arith.constant 0 : index
    %c0_5 = arith.constant 0 : index
    %c0_6 = arith.constant 0 : index
    %3 = vector.load %arg2[%c0_4, %c0_5, %c0_6] : memref<9x64x128xbf16, #tpu.memory_space<vmem>>, vector<1x64x128xbf16>
    %4 = vector.shape_cast %3 : vector<1x64x128xbf16> to vector<64x128xbf16>
    %cst = arith.constant dense<0.000000e+00> : vector<24x128xf32>
    %5 = tpu.matmul %2, %4, %cst {dimension_numbers = #tpu.dot_dimension_numbers<[1], [0], [0], [1], [0, 0, 1, 1], [], []>} : vector<24x64xbf16>, vector<64x128xbf16>, vector<24x128xf32> -> vector<24x128xf32>
    %c0_7 = arith.constant 0 : index
    %c1 = arith.constant 1 : index
    %c0_8 = arith.constant 0 : index
    %6 = vector.load %arg1[%c0_7, %c1, %c0_8] : memref<1x42x64xbf16, #tpu.memory_space<vmem>>, vector<1x24x64xbf16>
    %7 = vector.shape_cast %6 : vector<1x24x64xbf16> to vector<24x64xbf16>
    %c1_9 = arith.constant 1 : index
    %c0_10 = arith.constant 0 : index
    %c0_11 = arith.constant 0 : index
    %8 = vector.load %arg2[%c1_9, %c0_10, %c0_11] : memref<9x64x128xbf16, #tpu.memory_space<vmem>>, vector<1x64x128xbf16>
    %9 = vector.shape_cast %8 : vector<1x64x128xbf16> to vector<64x128xbf16>
    %cst_12 = arith.constant dense<0.000000e+00> : vector<24x128xf32>
    %10 = tpu.matmul %7, %9, %cst_12 {dimension_numbers = #tpu.dot_dimension_numbers<[1], [0], [0], [1], [0, 0, 1, 1], [], []>} : vector<24x64xbf16>, vector<64x128xbf16>, vector<24x128xf32> -> vector<24x128xf32>
    %11 = arith.addf %5, %10 : vector<24x128xf32>
    %c0_13 = arith.constant 0 : index
    %c2 = arith.constant 2 : index
    %c0_14 = arith.constant 0 : index
    %12 = vector.load %arg1[%c0_13, %c2, %c0_14] : memref<1x42x64xbf16, #tpu.memory_space<vmem>>, vector<1x24x64xbf16>
    %13 = vector.shape_cast %12 : vector<1x24x64xbf16> to vector<24x64xbf16>
    %c2_15 = arith.constant 2 : index
    %c0_16 = arith.constant 0 : index
    %c0_17 = arith.constant 0 : index
    %14 = vector.load %arg2[%c2_15, %c0_16, %c0_17] : memref<9x64x128xbf16, #tpu.memory_space<vmem>>, vector<1x64x128xbf16>
    %15 = vector.shape_cast %14 : vector<1x64x128xbf16> to vector<64x128xbf16>
    %cst_18 = arith.constant dense<0.000000e+00> : vector<24x128xf32>
    %16 = tpu.matmul %13, %15, %cst_18 {dimension_numbers = #tpu.dot_dimension_numbers<[1], [0], [0], [1], [0, 0, 1, 1], [], []>} : vector<24x64xbf16>, vector<64x128xbf16>, vector<24x128xf32> -> vector<24x128xf32>
    %17 = arith.addf %11, %16 : vector<24x128xf32>
    %c0_19 = arith.constant 0 : index
    %c6 = arith.constant 6 : index
    %c0_20 = arith.constant 0 : index
    %18 = vector.load %arg1[%c0_19, %c6, %c0_20] : memref<1x42x64xbf16, #tpu.memory_space<vmem>>, vector<1x24x64xbf16>
    %19 = vector.shape_cast %18 : vector<1x24x64xbf16> to vector<24x64xbf16>
    %c3 = arith.constant 3 : index
    %c0_21 = arith.constant 0 : index
    %c0_22 = arith.constant 0 : index
    %20 = vector.load %arg2[%c3, %c0_21, %c0_22] : memref<9x64x128xbf16, #tpu.memory_space<vmem>>, vector<1x64x128xbf16>
    %21 = vector.shape_cast %20 : vector<1x64x128xbf16> to vector<64x128xbf16>
    %cst_23 = arith.constant dense<0.000000e+00> : vector<24x128xf32>
    %22 = tpu.matmul %19, %21, %cst_23 {dimension_numbers = #tpu.dot_dimension_numbers<[1], [0], [0], [1], [0, 0, 1, 1], [], []>} : vector<24x64xbf16>, vector<64x128xbf16>, vector<24x128xf32> -> vector<24x128xf32>
    %23 = arith.addf %17, %22 : vector<24x128xf32>
    %c0_24 = arith.constant 0 : index
    %c7 = arith.constant 7 : index
    %c0_25 = arith.constant 0 : index
    %24 = vector.load %arg1[%c0_24, %c7, %c0_25] : memref<1x42x64xbf16, #tpu.memory_space<vmem>>, vector<1x24x64xbf16>
    %25 = vector.shape_cast %24 : vector<1x24x64xbf16> to vector<24x64xbf16>
    %c4 = arith.constant 4 : index
    %c0_26 = arith.constant 0 : index
    %c0_27 = arith.constant 0 : index
    %26 = vector.load %arg2[%c4, %c0_26, %c0_27] : memref<9x64x128xbf16, #tpu.memory_space<vmem>>, vector<1x64x128xbf16>
    %27 = vector.shape_cast %26 : vector<1x64x128xbf16> to vector<64x128xbf16>
    %cst_28 = arith.constant dense<0.000000e+00> : vector<24x128xf32>
    %28 = tpu.matmul %25, %27, %cst_28 {dimension_numbers = #tpu.dot_dimension_numbers<[1], [0], [0], [1], [0, 0, 1, 1], [], []>} : vector<24x64xbf16>, vector<64x128xbf16>, vector<24x128xf32> -> vector<24x128xf32>
    %29 = arith.addf %23, %28 : vector<24x128xf32>
    %c0_29 = arith.constant 0 : index
    %c8 = arith.constant 8 : index
    %c0_30 = arith.constant 0 : index
    %30 = vector.load %arg1[%c0_29, %c8, %c0_30] : memref<1x42x64xbf16, #tpu.memory_space<vmem>>, vector<1x24x64xbf16>
    %31 = vector.shape_cast %30 : vector<1x24x64xbf16> to vector<24x64xbf16>
    %c5 = arith.constant 5 : index
    %c0_31 = arith.constant 0 : index
    %c0_32 = arith.constant 0 : index
    %32 = vector.load %arg2[%c5, %c0_31, %c0_32] : memref<9x64x128xbf16, #tpu.memory_space<vmem>>, vector<1x64x128xbf16>
    %33 = vector.shape_cast %32 : vector<1x64x128xbf16> to vector<64x128xbf16>
    %cst_33 = arith.constant dense<0.000000e+00> : vector<24x128xf32>
    %34 = tpu.matmul %31, %33, %cst_33 {dimension_numbers = #tpu.dot_dimension_numbers<[1], [0], [0], [1], [0, 0, 1, 1], [], []>} : vector<24x64xbf16>, vector<64x128xbf16>, vector<24x128xf32> -> vector<24x128xf32>
    %35 = arith.addf %29, %34 : vector<24x128xf32>
    %c0_34 = arith.constant 0 : index
    %c12 = arith.constant 12 : index
    %c0_35 = arith.constant 0 : index
    %36 = vector.load %arg1[%c0_34, %c12, %c0_35] : memref<1x42x64xbf16, #tpu.memory_space<vmem>>, vector<1x24x64xbf16>
    %37 = vector.shape_cast %36 : vector<1x24x64xbf16> to vector<24x64xbf16>
    %c6_36 = arith.constant 6 : index
    %c0_37 = arith.constant 0 : index
    %c0_38 = arith.constant 0 : index
    %38 = vector.load %arg2[%c6_36, %c0_37, %c0_38] : memref<9x64x128xbf16, #tpu.memory_space<vmem>>, vector<1x64x128xbf16>
    %39 = vector.shape_cast %38 : vector<1x64x128xbf16> to vector<64x128xbf16>
    %cst_39 = arith.constant dense<0.000000e+00> : vector<24x128xf32>
    %40 = tpu.matmul %37, %39, %cst_39 {dimension_numbers = #tpu.dot_dimension_numbers<[1], [0], [0], [1], [0, 0, 1, 1], [], []>} : vector<24x64xbf16>, vector<64x128xbf16>, vector<24x128xf32> -> vector<24x128xf32>
    %41 = arith.addf %35, %40 : vector<24x128xf32>
    %c0_40 = arith.constant 0 : index
    %c13 = arith.constant 13 : index
    %c0_41 = arith.constant 0 : index
    %42 = vector.load %arg1[%c0_40, %c13, %c0_41] : memref<1x42x64xbf16, #tpu.memory_space<vmem>>, vector<1x24x64xbf16>
    %43 = vector.shape_cast %42 : vector<1x24x64xbf16> to vector<24x64xbf16>
    %c7_42 = arith.constant 7 : index
    %c0_43 = arith.constant 0 : index
    %c0_44 = arith.constant 0 : index
    %44 = vector.load %arg2[%c7_42, %c0_43, %c0_44] : memref<9x64x128xbf16, #tpu.memory_space<vmem>>, vector<1x64x128xbf16>
    %45 = vector.shape_cast %44 : vector<1x64x128xbf16> to vector<64x128xbf16>
    %cst_45 = arith.constant dense<0.000000e+00> : vector<24x128xf32>
    %46 = tpu.matmul %43, %45, %cst_45 {dimension_numbers = #tpu.dot_dimension_numbers<[1], [0], [0], [1], [0, 0, 1, 1], [], []>} : vector<24x64xbf16>, vector<64x128xbf16>, vector<24x128xf32> -> vector<24x128xf32>
    %47 = arith.addf %41, %46 : vector<24x128xf32>
    %c0_46 = arith.constant 0 : index
    %c14 = arith.constant 14 : index
    %c0_47 = arith.constant 0 : index
    %48 = vector.load %arg1[%c0_46, %c14, %c0_47] : memref<1x42x64xbf16, #tpu.memory_space<vmem>>, vector<1x24x64xbf16>
    %49 = vector.shape_cast %48 : vector<1x24x64xbf16> to vector<24x64xbf16>
    %c8_48 = arith.constant 8 : index
    %c0_49 = arith.constant 0 : index
    %c0_50 = arith.constant 0 : index
    %50 = vector.load %arg2[%c8_48, %c0_49, %c0_50] : memref<9x64x128xbf16, #tpu.memory_space<vmem>>, vector<1x64x128xbf16>
    %51 = vector.shape_cast %50 : vector<1x64x128xbf16> to vector<64x128xbf16>
    %cst_51 = arith.constant dense<0.000000e+00> : vector<24x128xf32>
    %52 = tpu.matmul %49, %51, %cst_51 {dimension_numbers = #tpu.dot_dimension_numbers<[1], [0], [0], [1], [0, 0, 1, 1], [], []>} : vector<24x64xbf16>, vector<64x128xbf16>, vector<24x128xf32> -> vector<24x128xf32>
    %53 = arith.addf %47, %52 : vector<24x128xf32>
    %54 = vector.broadcast %0 : vector<1x128xf32> to vector<24x128xf32>
    %55 = arith.addf %53, %54 : vector<24x128xf32>
    %c0_52 = arith.constant 0 : index
    %c0_53 = arith.constant 0 : index
    %c0_54 = arith.constant 0 : index
    %56 = vector.load %arg4[%c0_52, %c0_53, %c0_54] : memref<1x24x128xbf16, #tpu.memory_space<vmem>>, vector<1x24x128xbf16>
    %57 = vector.shape_cast %56 : vector<1x24x128xbf16> to vector<24x128xbf16>
    %58 = arith.extf %57 : vector<24x128xbf16> to vector<24x128xf32>
    %59 = arith.addf %55, %58 : vector<24x128xf32>
    %cst_55 = arith.constant 0.000000e+00 : f32
    %60 = vector.broadcast %cst_55 : f32 to vector<24x128xf32>
    %61 = arith.maximumf %59, %60 : vector<24x128xf32>
    %62 = arith.truncf %61 : vector<24x128xf32> to vector<24x128xbf16>
    %c0_56 = arith.constant 0 : index
    %c0_57 = arith.constant 0 : index
    %c0_58 = arith.constant 0 : index
    %63 = vector.load %arg5[%c0_56, %c0_57, %c0_58] : memref<1x24x128xbf16, #tpu.memory_space<vmem>>, vector<1x24x128xbf16>
    %64 = vector.shape_cast %63 : vector<1x24x128xbf16> to vector<24x128xbf16>
    %65 = vector.shape_cast %62 : vector<24x128xbf16> to vector<1x24x128xbf16>
    tpu.vector_store %arg5[%c0_56, %c0_57, %c0_58], %65 {strides = array<i32>} : memref<1x24x128xbf16, #tpu.memory_space<vmem>>, vector<1x24x128xbf16>,
    return
  }
  func.func @transform_0(%arg0: i32) -> (i32, i32, i32) {
    %c0_i32 = arith.constant 0 : i32
    %c0_i32_0 = arith.constant 0 : i32
    %c0_i32_1 = arith.constant 0 : i32
    return %arg0, %c0_i32, %c0_i32_0 : i32, i32, i32
  }
  func.func @transform_1(%arg0: i32) -> (i32, i32, i32) {
    %c0_i32 = arith.constant 0 : i32
    %c0_i32_0 = arith.constant 0 : i32
    %c0_i32_1 = arith.constant 0 : i32
    %c0_i32_2 = arith.constant 0 : i32
    return %c0_i32, %c0_i32_0, %c0_i32_1 : i32, i32, i32
  }
  func.func @transform_2(%arg0: i32) -> (i32, i32) {
    %c0_i32 = arith.constant 0 : i32
    %c0_i32_0 = arith.constant 0 : i32
    %c0_i32_1 = arith.constant 0 : i32
    return %c0_i32, %c0_i32_0 : i32, i32
  }
  func.func @transform_3(%arg0: i32) -> (i32, i32, i32) {
    %c0_i32 = arith.constant 0 : i32
    %c0_i32_0 = arith.constant 0 : i32
    %c0_i32_1 = arith.constant 0 : i32
    return %arg0, %c0_i32, %c0_i32_0 : i32, i32, i32
  }
  func.func @transform_4(%arg0: i32) -> (i32, i32, i32) {
    %c0_i32 = arith.constant 0 : i32
    %c0_i32_0 = arith.constant 0 : i32
    %c0_i32_1 = arith.constant 0 : i32
    return %arg0, %c0_i32, %c0_i32_0 : i32, i32, i32
  }
}

module attributes {stable_mosaic.version = 11 : i64} {
  func.func @_gemm_bias_kernel(%arg0: i32, %arg1: i32, %arg2: memref<8x640xbf16, #tpu.memory_space<vmem>>, %arg3: memref<640x128xbf16, #tpu.memory_space<vmem>>, %arg4: memref<1x128xf32, #tpu.memory_space<vmem>>, %arg5: memref<8x128xbf16, #tpu.memory_space<vmem>>) attributes {dimension_semantics = [#tpu.dimension_semantics<parallel>, #tpu.dimension_semantics<parallel>], iteration_bounds = array<i64: 1, 1>, scalar_prefetch = 0 : i64, scratch_operands = 0 : i64, tpu.core_type = #tpu.core_type<tc>, window_params = [{transform_indices = @transform_0, window_bounds = array<i64: 8, 640>}, {transform_indices = @transform_1, window_bounds = array<i64: 640, 128>}, {transform_indices = @transform_2, window_bounds = array<i64: 1, 128>}, {transform_indices = @transform_3, window_bounds = array<i64: 8, 128>}]} {
    %c0 = arith.constant 0 : index
    %c0_0 = arith.constant 0 : index
    %0 = vector.load %arg2[%c0, %c0_0] : memref<8x640xbf16, #tpu.memory_space<vmem>>, vector<8x640xbf16>
    %c0_1 = arith.constant 0 : index
    %c0_2 = arith.constant 0 : index
    %1 = vector.load %arg3[%c0_1, %c0_2] : memref<640x128xbf16, #tpu.memory_space<vmem>>, vector<640x128xbf16>
    %cst = arith.constant dense<0.000000e+00> : vector<8x128xf32>
    %2 = tpu.matmul %0, %1, %cst {dimension_numbers = #tpu.dot_dimension_numbers<[1], [0], [0], [1], [0, 0, 1, 1], [], []>} : vector<8x640xbf16>, vector<640x128xbf16>, vector<8x128xf32> -> vector<8x128xf32>
    %c0_3 = arith.constant 0 : index
    %c0_4 = arith.constant 0 : index
    %3 = vector.load %arg4[%c0_3, %c0_4] : memref<1x128xf32, #tpu.memory_space<vmem>>, vector<1x128xf32>
    %4 = vector.broadcast %3 : vector<1x128xf32> to vector<8x128xf32>
    %5 = arith.addf %2, %4 : vector<8x128xf32>
    %cst_5 = arith.constant 0.000000e+00 : f32
    %6 = vector.broadcast %cst_5 : f32 to vector<8x128xf32>
    %7 = arith.maximumf %5, %6 : vector<8x128xf32>
    %8 = arith.truncf %7 : vector<8x128xf32> to vector<8x128xbf16>
    %c0_6 = arith.constant 0 : index
    %c0_7 = arith.constant 0 : index
    %9 = vector.load %arg5[%c0_6, %c0_7] : memref<8x128xbf16, #tpu.memory_space<vmem>>, vector<8x128xbf16>
    tpu.vector_store %arg5[%c0_6, %c0_7], %8 {strides = array<i32>} : memref<8x128xbf16, #tpu.memory_space<vmem>>, vector<8x128xbf16>,
    return
  }
  func.func @transform_0(%arg0: i32, %arg1: i32) -> (i32, i32) {
    %c0_i32 = arith.constant 0 : i32
    %c0_i32_0 = arith.constant 0 : i32
    return %arg0, %c0_i32 : i32, i32
  }
  func.func @transform_1(%arg0: i32, %arg1: i32) -> (i32, i32) {
    %c0_i32 = arith.constant 0 : i32
    %c0_i32_0 = arith.constant 0 : i32
    return %c0_i32, %arg1 : i32, i32
  }
  func.func @transform_2(%arg0: i32, %arg1: i32) -> (i32, i32) {
    %c0_i32 = arith.constant 0 : i32
    %c0_i32_0 = arith.constant 0 : i32
    return %c0_i32, %arg1 : i32, i32
  }
  func.func @transform_3(%arg0: i32, %arg1: i32) -> (i32, i32) {
    %c0_i32 = arith.constant 0 : i32
    return %arg0, %arg1 : i32, i32
  }
}

module attributes {stable_mosaic.version = 11 : i64} {
  func.func @_gemm_bias_kernel(%arg0: i32, %arg1: i32, %arg2: memref<8x128xbf16, #tpu.memory_space<vmem>>, %arg3: memref<128x128xbf16, #tpu.memory_space<vmem>>, %arg4: memref<1x128xf32, #tpu.memory_space<vmem>>, %arg5: memref<8x128xbf16, #tpu.memory_space<vmem>>) attributes {dimension_semantics = [#tpu.dimension_semantics<parallel>, #tpu.dimension_semantics<parallel>], iteration_bounds = array<i64: 1, 1>, scalar_prefetch = 0 : i64, scratch_operands = 0 : i64, tpu.core_type = #tpu.core_type<tc>, window_params = [{transform_indices = @transform_0, window_bounds = array<i64: 8, 128>}, {transform_indices = @transform_1, window_bounds = array<i64: 128, 128>}, {transform_indices = @transform_2, window_bounds = array<i64: 1, 128>}, {transform_indices = @transform_3, window_bounds = array<i64: 8, 128>}]} {
    %c0 = arith.constant 0 : index
    %c0_0 = arith.constant 0 : index
    %0 = vector.load %arg2[%c0, %c0_0] : memref<8x128xbf16, #tpu.memory_space<vmem>>, vector<8x128xbf16>
    %c0_1 = arith.constant 0 : index
    %c0_2 = arith.constant 0 : index
    %1 = vector.load %arg3[%c0_1, %c0_2] : memref<128x128xbf16, #tpu.memory_space<vmem>>, vector<128x128xbf16>
    %cst = arith.constant dense<0.000000e+00> : vector<8x128xf32>
    %2 = tpu.matmul %0, %1, %cst {dimension_numbers = #tpu.dot_dimension_numbers<[1], [0], [0], [1], [0, 0, 1, 1], [], []>} : vector<8x128xbf16>, vector<128x128xbf16>, vector<8x128xf32> -> vector<8x128xf32>
    %c0_3 = arith.constant 0 : index
    %c0_4 = arith.constant 0 : index
    %3 = vector.load %arg4[%c0_3, %c0_4] : memref<1x128xf32, #tpu.memory_space<vmem>>, vector<1x128xf32>
    %4 = vector.broadcast %3 : vector<1x128xf32> to vector<8x128xf32>
    %5 = arith.addf %2, %4 : vector<8x128xf32>
    %6 = arith.truncf %5 : vector<8x128xf32> to vector<8x128xbf16>
    %c0_5 = arith.constant 0 : index
    %c0_6 = arith.constant 0 : index
    %7 = vector.load %arg5[%c0_5, %c0_6] : memref<8x128xbf16, #tpu.memory_space<vmem>>, vector<8x128xbf16>
    tpu.vector_store %arg5[%c0_5, %c0_6], %6 {strides = array<i32>} : memref<8x128xbf16, #tpu.memory_space<vmem>>, vector<8x128xbf16>,
    return
  }
  func.func @transform_0(%arg0: i32, %arg1: i32) -> (i32, i32) {
    %c0_i32 = arith.constant 0 : i32
    %c0_i32_0 = arith.constant 0 : i32
    return %arg0, %c0_i32 : i32, i32
  }
  func.func @transform_1(%arg0: i32, %arg1: i32) -> (i32, i32) {
    %c0_i32 = arith.constant 0 : i32
    %c0_i32_0 = arith.constant 0 : i32
    return %c0_i32, %arg1 : i32, i32
  }
  func.func @transform_2(%arg0: i32, %arg1: i32) -> (i32, i32) {
    %c0_i32 = arith.constant 0 : i32
    %c0_i32_0 = arith.constant 0 : i32
    return %c0_i32, %arg1 : i32, i32
  }
  func.func @transform_3(%arg0: i32, %arg1: i32) -> (i32, i32) {
    %c0_i32 = arith.constant 0 : i32
    return %arg0, %arg1 : i32, i32
  }
}

module attributes {stable_mosaic.version = 11 : i64} {
  func.func @_implicit3x3_res_kernel(%arg0: i32, %arg1: memref<1x20x128xbf16, #tpu.memory_space<vmem>>, %arg2: memref<9x128x128xbf16, #tpu.memory_space<vmem>>, %arg3: memref<1x128xf32, #tpu.memory_space<vmem>>, %arg4: memref<1x8x128xbf16, #tpu.memory_space<vmem>>, %arg5: memref<1x8x128xbf16, #tpu.memory_space<vmem>>) attributes {dimension_semantics = [#tpu.dimension_semantics<parallel>], iteration_bounds = array<i64: 2>, scalar_prefetch = 0 : i64, scratch_operands = 0 : i64, tpu.core_type = #tpu.core_type<tc>, window_params = [{transform_indices = @transform_0, window_bounds = array<i64: 1, 20, 128>}, {pipeline_mode = #tpu.pipeline_mode<synchronous>, transform_indices = @transform_1, window_bounds = array<i64: 9, 128, 128>}, {pipeline_mode = #tpu.pipeline_mode<synchronous>, transform_indices = @transform_2, window_bounds = array<i64: 1, 128>}, {transform_indices = @transform_3, window_bounds = array<i64: 1, 8, 128>}, {transform_indices = @transform_4, window_bounds = array<i64: 1, 8, 128>}]} {
    %c0 = arith.constant 0 : index
    %c0_0 = arith.constant 0 : index
    %0 = vector.load %arg3[%c0, %c0_0] : memref<1x128xf32, #tpu.memory_space<vmem>>, vector<1x128xf32>
    %c0_1 = arith.constant 0 : index
    %c0_2 = arith.constant 0 : index
    %c0_3 = arith.constant 0 : index
    %1 = vector.load %arg1[%c0_1, %c0_2, %c0_3] : memref<1x20x128xbf16, #tpu.memory_space<vmem>>, vector<1x8x128xbf16>
    %2 = vector.shape_cast %1 : vector<1x8x128xbf16> to vector<8x128xbf16>
    %c0_4 = arith.constant 0 : index
    %c0_5 = arith.constant 0 : index
    %c0_6 = arith.constant 0 : index
    %3 = vector.load %arg2[%c0_4, %c0_5, %c0_6] : memref<9x128x128xbf16, #tpu.memory_space<vmem>>, vector<1x128x128xbf16>
    %4 = vector.shape_cast %3 : vector<1x128x128xbf16> to vector<128x128xbf16>
    %cst = arith.constant dense<0.000000e+00> : vector<8x128xf32>
    %5 = tpu.matmul %2, %4, %cst {dimension_numbers = #tpu.dot_dimension_numbers<[1], [0], [0], [1], [0, 0, 1, 1], [], []>} : vector<8x128xbf16>, vector<128x128xbf16>, vector<8x128xf32> -> vector<8x128xf32>
    %c0_7 = arith.constant 0 : index
    %c1 = arith.constant 1 : index
    %c0_8 = arith.constant 0 : index
    %6 = vector.load %arg1[%c0_7, %c1, %c0_8] : memref<1x20x128xbf16, #tpu.memory_space<vmem>>, vector<1x8x128xbf16>
    %7 = vector.shape_cast %6 : vector<1x8x128xbf16> to vector<8x128xbf16>
    %c1_9 = arith.constant 1 : index
    %c0_10 = arith.constant 0 : index
    %c0_11 = arith.constant 0 : index
    %8 = vector.load %arg2[%c1_9, %c0_10, %c0_11] : memref<9x128x128xbf16, #tpu.memory_space<vmem>>, vector<1x128x128xbf16>
    %9 = vector.shape_cast %8 : vector<1x128x128xbf16> to vector<128x128xbf16>
    %cst_12 = arith.constant dense<0.000000e+00> : vector<8x128xf32>
    %10 = tpu.matmul %7, %9, %cst_12 {dimension_numbers = #tpu.dot_dimension_numbers<[1], [0], [0], [1], [0, 0, 1, 1], [], []>} : vector<8x128xbf16>, vector<128x128xbf16>, vector<8x128xf32> -> vector<8x128xf32>
    %11 = arith.addf %5, %10 : vector<8x128xf32>
    %c0_13 = arith.constant 0 : index
    %c2 = arith.constant 2 : index
    %c0_14 = arith.constant 0 : index
    %12 = vector.load %arg1[%c0_13, %c2, %c0_14] : memref<1x20x128xbf16, #tpu.memory_space<vmem>>, vector<1x8x128xbf16>
    %13 = vector.shape_cast %12 : vector<1x8x128xbf16> to vector<8x128xbf16>
    %c2_15 = arith.constant 2 : index
    %c0_16 = arith.constant 0 : index
    %c0_17 = arith.constant 0 : index
    %14 = vector.load %arg2[%c2_15, %c0_16, %c0_17] : memref<9x128x128xbf16, #tpu.memory_space<vmem>>, vector<1x128x128xbf16>
    %15 = vector.shape_cast %14 : vector<1x128x128xbf16> to vector<128x128xbf16>
    %cst_18 = arith.constant dense<0.000000e+00> : vector<8x128xf32>
    %16 = tpu.matmul %13, %15, %cst_18 {dimension_numbers = #tpu.dot_dimension_numbers<[1], [0], [0], [1], [0, 0, 1, 1], [], []>} : vector<8x128xbf16>, vector<128x128xbf16>, vector<8x128xf32> -> vector<8x128xf32>
    %17 = arith.addf %11, %16 : vector<8x128xf32>
    %c0_19 = arith.constant 0 : index
    %c4 = arith.constant 4 : index
    %c0_20 = arith.constant 0 : index
    %18 = vector.load %arg1[%c0_19, %c4, %c0_20] : memref<1x20x128xbf16, #tpu.memory_space<vmem>>, vector<1x8x128xbf16>
    %19 = vector.shape_cast %18 : vector<1x8x128xbf16> to vector<8x128xbf16>
    %c3 = arith.constant 3 : index
    %c0_21 = arith.constant 0 : index
    %c0_22 = arith.constant 0 : index
    %20 = vector.load %arg2[%c3, %c0_21, %c0_22] : memref<9x128x128xbf16, #tpu.memory_space<vmem>>, vector<1x128x128xbf16>
    %21 = vector.shape_cast %20 : vector<1x128x128xbf16> to vector<128x128xbf16>
    %cst_23 = arith.constant dense<0.000000e+00> : vector<8x128xf32>
    %22 = tpu.matmul %19, %21, %cst_23 {dimension_numbers = #tpu.dot_dimension_numbers<[1], [0], [0], [1], [0, 0, 1, 1], [], []>} : vector<8x128xbf16>, vector<128x128xbf16>, vector<8x128xf32> -> vector<8x128xf32>
    %23 = arith.addf %17, %22 : vector<8x128xf32>
    %c0_24 = arith.constant 0 : index
    %c5 = arith.constant 5 : index
    %c0_25 = arith.constant 0 : index
    %24 = vector.load %arg1[%c0_24, %c5, %c0_25] : memref<1x20x128xbf16, #tpu.memory_space<vmem>>, vector<1x8x128xbf16>
    %25 = vector.shape_cast %24 : vector<1x8x128xbf16> to vector<8x128xbf16>
    %c4_26 = arith.constant 4 : index
    %c0_27 = arith.constant 0 : index
    %c0_28 = arith.constant 0 : index
    %26 = vector.load %arg2[%c4_26, %c0_27, %c0_28] : memref<9x128x128xbf16, #tpu.memory_space<vmem>>, vector<1x128x128xbf16>
    %27 = vector.shape_cast %26 : vector<1x128x128xbf16> to vector<128x128xbf16>
    %cst_29 = arith.constant dense<0.000000e+00> : vector<8x128xf32>
    %28 = tpu.matmul %25, %27, %cst_29 {dimension_numbers = #tpu.dot_dimension_numbers<[1], [0], [0], [1], [0, 0, 1, 1], [], []>} : vector<8x128xbf16>, vector<128x128xbf16>, vector<8x128xf32> -> vector<8x128xf32>
    %29 = arith.addf %23, %28 : vector<8x128xf32>
    %c0_30 = arith.constant 0 : index
    %c6 = arith.constant 6 : index
    %c0_31 = arith.constant 0 : index
    %30 = vector.load %arg1[%c0_30, %c6, %c0_31] : memref<1x20x128xbf16, #tpu.memory_space<vmem>>, vector<1x8x128xbf16>
    %31 = vector.shape_cast %30 : vector<1x8x128xbf16> to vector<8x128xbf16>
    %c5_32 = arith.constant 5 : index
    %c0_33 = arith.constant 0 : index
    %c0_34 = arith.constant 0 : index
    %32 = vector.load %arg2[%c5_32, %c0_33, %c0_34] : memref<9x128x128xbf16, #tpu.memory_space<vmem>>, vector<1x128x128xbf16>
    %33 = vector.shape_cast %32 : vector<1x128x128xbf16> to vector<128x128xbf16>
    %cst_35 = arith.constant dense<0.000000e+00> : vector<8x128xf32>
    %34 = tpu.matmul %31, %33, %cst_35 {dimension_numbers = #tpu.dot_dimension_numbers<[1], [0], [0], [1], [0, 0, 1, 1], [], []>} : vector<8x128xbf16>, vector<128x128xbf16>, vector<8x128xf32> -> vector<8x128xf32>
    %35 = arith.addf %29, %34 : vector<8x128xf32>
    %c0_36 = arith.constant 0 : index
    %c8 = arith.constant 8 : index
    %c0_37 = arith.constant 0 : index
    %36 = vector.load %arg1[%c0_36, %c8, %c0_37] : memref<1x20x128xbf16, #tpu.memory_space<vmem>>, vector<1x8x128xbf16>
    %37 = vector.shape_cast %36 : vector<1x8x128xbf16> to vector<8x128xbf16>
    %c6_38 = arith.constant 6 : index
    %c0_39 = arith.constant 0 : index
    %c0_40 = arith.constant 0 : index
    %38 = vector.load %arg2[%c6_38, %c0_39, %c0_40] : memref<9x128x128xbf16, #tpu.memory_space<vmem>>, vector<1x128x128xbf16>
    %39 = vector.shape_cast %38 : vector<1x128x128xbf16> to vector<128x128xbf16>
    %cst_41 = arith.constant dense<0.000000e+00> : vector<8x128xf32>
    %40 = tpu.matmul %37, %39, %cst_41 {dimension_numbers = #tpu.dot_dimension_numbers<[1], [0], [0], [1], [0, 0, 1, 1], [], []>} : vector<8x128xbf16>, vector<128x128xbf16>, vector<8x128xf32> -> vector<8x128xf32>
    %41 = arith.addf %35, %40 : vector<8x128xf32>
    %c0_42 = arith.constant 0 : index
    %c9 = arith.constant 9 : index
    %c0_43 = arith.constant 0 : index
    %42 = vector.load %arg1[%c0_42, %c9, %c0_43] : memref<1x20x128xbf16, #tpu.memory_space<vmem>>, vector<1x8x128xbf16>
    %43 = vector.shape_cast %42 : vector<1x8x128xbf16> to vector<8x128xbf16>
    %c7 = arith.constant 7 : index
    %c0_44 = arith.constant 0 : index
    %c0_45 = arith.constant 0 : index
    %44 = vector.load %arg2[%c7, %c0_44, %c0_45] : memref<9x128x128xbf16, #tpu.memory_space<vmem>>, vector<1x128x128xbf16>
    %45 = vector.shape_cast %44 : vector<1x128x128xbf16> to vector<128x128xbf16>
    %cst_46 = arith.constant dense<0.000000e+00> : vector<8x128xf32>
    %46 = tpu.matmul %43, %45, %cst_46 {dimension_numbers = #tpu.dot_dimension_numbers<[1], [0], [0], [1], [0, 0, 1, 1], [], []>} : vector<8x128xbf16>, vector<128x128xbf16>, vector<8x128xf32> -> vector<8x128xf32>
    %47 = arith.addf %41, %46 : vector<8x128xf32>
    %c0_47 = arith.constant 0 : index
    %c10 = arith.constant 10 : index
    %c0_48 = arith.constant 0 : index
    %48 = vector.load %arg1[%c0_47, %c10, %c0_48] : memref<1x20x128xbf16, #tpu.memory_space<vmem>>, vector<1x8x128xbf16>
    %49 = vector.shape_cast %48 : vector<1x8x128xbf16> to vector<8x128xbf16>
    %c8_49 = arith.constant 8 : index
    %c0_50 = arith.constant 0 : index
    %c0_51 = arith.constant 0 : index
    %50 = vector.load %arg2[%c8_49, %c0_50, %c0_51] : memref<9x128x128xbf16, #tpu.memory_space<vmem>>, vector<1x128x128xbf16>
    %51 = vector.shape_cast %50 : vector<1x128x128xbf16> to vector<128x128xbf16>
    %cst_52 = arith.constant dense<0.000000e+00> : vector<8x128xf32>
    %52 = tpu.matmul %49, %51, %cst_52 {dimension_numbers = #tpu.dot_dimension_numbers<[1], [0], [0], [1], [0, 0, 1, 1], [], []>} : vector<8x128xbf16>, vector<128x128xbf16>, vector<8x128xf32> -> vector<8x128xf32>
    %53 = arith.addf %47, %52 : vector<8x128xf32>
    %54 = vector.broadcast %0 : vector<1x128xf32> to vector<8x128xf32>
    %55 = arith.addf %53, %54 : vector<8x128xf32>
    %c0_53 = arith.constant 0 : index
    %c0_54 = arith.constant 0 : index
    %c0_55 = arith.constant 0 : index
    %56 = vector.load %arg4[%c0_53, %c0_54, %c0_55] : memref<1x8x128xbf16, #tpu.memory_space<vmem>>, vector<1x8x128xbf16>
    %57 = vector.shape_cast %56 : vector<1x8x128xbf16> to vector<8x128xbf16>
    %58 = arith.extf %57 : vector<8x128xbf16> to vector<8x128xf32>
    %59 = arith.addf %55, %58 : vector<8x128xf32>
    %cst_56 = arith.constant 0.000000e+00 : f32
    %60 = vector.broadcast %cst_56 : f32 to vector<8x128xf32>
    %61 = arith.maximumf %59, %60 : vector<8x128xf32>
    %62 = arith.truncf %61 : vector<8x128xf32> to vector<8x128xbf16>
    %c0_57 = arith.constant 0 : index
    %c0_58 = arith.constant 0 : index
    %c0_59 = arith.constant 0 : index
    %63 = vector.load %arg5[%c0_57, %c0_58, %c0_59] : memref<1x8x128xbf16, #tpu.memory_space<vmem>>, vector<1x8x128xbf16>
    %64 = vector.shape_cast %63 : vector<1x8x128xbf16> to vector<8x128xbf16>
    %65 = vector.shape_cast %62 : vector<8x128xbf16> to vector<1x8x128xbf16>
    tpu.vector_store %arg5[%c0_57, %c0_58, %c0_59], %65 {strides = array<i32>} : memref<1x8x128xbf16, #tpu.memory_space<vmem>>, vector<1x8x128xbf16>,
    return
  }
  func.func @transform_0(%arg0: i32) -> (i32, i32, i32) {
    %c0_i32 = arith.constant 0 : i32
    %c0_i32_0 = arith.constant 0 : i32
    %c0_i32_1 = arith.constant 0 : i32
    return %arg0, %c0_i32, %c0_i32_0 : i32, i32, i32
  }
  func.func @transform_1(%arg0: i32) -> (i32, i32, i32) {
    %c0_i32 = arith.constant 0 : i32
    %c0_i32_0 = arith.constant 0 : i32
    %c0_i32_1 = arith.constant 0 : i32
    %c0_i32_2 = arith.constant 0 : i32
    return %c0_i32, %c0_i32_0, %c0_i32_1 : i32, i32, i32
  }
  func.func @transform_2(%arg0: i32) -> (i32, i32) {
    %c0_i32 = arith.constant 0 : i32
    %c0_i32_0 = arith.constant 0 : i32
    %c0_i32_1 = arith.constant 0 : i32
    return %c0_i32, %c0_i32_0 : i32, i32
  }
  func.func @transform_3(%arg0: i32) -> (i32, i32, i32) {
    %c0_i32 = arith.constant 0 : i32
    %c0_i32_0 = arith.constant 0 : i32
    %c0_i32_1 = arith.constant 0 : i32
    return %arg0, %c0_i32, %c0_i32_0 : i32, i32, i32
  }
  func.func @transform_4(%arg0: i32) -> (i32, i32, i32) {
    %c0_i32 = arith.constant 0 : i32
    %c0_i32_0 = arith.constant 0 : i32
    %c0_i32_1 = arith.constant 0 : i32
    return %arg0, %c0_i32, %c0_i32_0 : i32, i32, i32
  }
}

module attributes {stable_mosaic.version = 11 : i64} {
  func.func @_implicit3x3_kernel(%arg0: i32, %arg1: memref<1x20x128xbf16, #tpu.memory_space<vmem>>, %arg2: memref<9x128x128xbf16, #tpu.memory_space<vmem>>, %arg3: memref<1x128xf32, #tpu.memory_space<vmem>>, %arg4: memref<1x8x128xbf16, #tpu.memory_space<vmem>>) attributes {dimension_semantics = [#tpu.dimension_semantics<parallel>], iteration_bounds = array<i64: 2>, scalar_prefetch = 0 : i64, scratch_operands = 0 : i64, tpu.core_type = #tpu.core_type<tc>, window_params = [{transform_indices = @transform_0, window_bounds = array<i64: 1, 20, 128>}, {pipeline_mode = #tpu.pipeline_mode<synchronous>, transform_indices = @transform_1, window_bounds = array<i64: 9, 128, 128>}, {pipeline_mode = #tpu.pipeline_mode<synchronous>, transform_indices = @transform_2, window_bounds = array<i64: 1, 128>}, {transform_indices = @transform_3, window_bounds = array<i64: 1, 8, 128>}]} {
    %c0 = arith.constant 0 : index
    %c0_0 = arith.constant 0 : index
    %0 = vector.load %arg3[%c0, %c0_0] : memref<1x128xf32, #tpu.memory_space<vmem>>, vector<1x128xf32>
    %c0_1 = arith.constant 0 : index
    %c0_2 = arith.constant 0 : index
    %c0_3 = arith.constant 0 : index
    %1 = vector.load %arg1[%c0_1, %c0_2, %c0_3] : memref<1x20x128xbf16, #tpu.memory_space<vmem>>, vector<1x8x128xbf16>
    %2 = vector.shape_cast %1 : vector<1x8x128xbf16> to vector<8x128xbf16>
    %c0_4 = arith.constant 0 : index
    %c0_5 = arith.constant 0 : index
    %c0_6 = arith.constant 0 : index
    %3 = vector.load %arg2[%c0_4, %c0_5, %c0_6] : memref<9x128x128xbf16, #tpu.memory_space<vmem>>, vector<1x128x128xbf16>
    %4 = vector.shape_cast %3 : vector<1x128x128xbf16> to vector<128x128xbf16>
    %cst = arith.constant dense<0.000000e+00> : vector<8x128xf32>
    %5 = tpu.matmul %2, %4, %cst {dimension_numbers = #tpu.dot_dimension_numbers<[1], [0], [0], [1], [0, 0, 1, 1], [], []>} : vector<8x128xbf16>, vector<128x128xbf16>, vector<8x128xf32> -> vector<8x128xf32>
    %c0_7 = arith.constant 0 : index
    %c1 = arith.constant 1 : index
    %c0_8 = arith.constant 0 : index
    %6 = vector.load %arg1[%c0_7, %c1, %c0_8] : memref<1x20x128xbf16, #tpu.memory_space<vmem>>, vector<1x8x128xbf16>
    %7 = vector.shape_cast %6 : vector<1x8x128xbf16> to vector<8x128xbf16>
    %c1_9 = arith.constant 1 : index
    %c0_10 = arith.constant 0 : index
    %c0_11 = arith.constant 0 : index
    %8 = vector.load %arg2[%c1_9, %c0_10, %c0_11] : memref<9x128x128xbf16, #tpu.memory_space<vmem>>, vector<1x128x128xbf16>
    %9 = vector.shape_cast %8 : vector<1x128x128xbf16> to vector<128x128xbf16>
    %cst_12 = arith.constant dense<0.000000e+00> : vector<8x128xf32>
    %10 = tpu.matmul %7, %9, %cst_12 {dimension_numbers = #tpu.dot_dimension_numbers<[1], [0], [0], [1], [0, 0, 1, 1], [], []>} : vector<8x128xbf16>, vector<128x128xbf16>, vector<8x128xf32> -> vector<8x128xf32>
    %11 = arith.addf %5, %10 : vector<8x128xf32>
    %c0_13 = arith.constant 0 : index
    %c2 = arith.constant 2 : index
    %c0_14 = arith.constant 0 : index
    %12 = vector.load %arg1[%c0_13, %c2, %c0_14] : memref<1x20x128xbf16, #tpu.memory_space<vmem>>, vector<1x8x128xbf16>
    %13 = vector.shape_cast %12 : vector<1x8x128xbf16> to vector<8x128xbf16>
    %c2_15 = arith.constant 2 : index
    %c0_16 = arith.constant 0 : index
    %c0_17 = arith.constant 0 : index
    %14 = vector.load %arg2[%c2_15, %c0_16, %c0_17] : memref<9x128x128xbf16, #tpu.memory_space<vmem>>, vector<1x128x128xbf16>
    %15 = vector.shape_cast %14 : vector<1x128x128xbf16> to vector<128x128xbf16>
    %cst_18 = arith.constant dense<0.000000e+00> : vector<8x128xf32>
    %16 = tpu.matmul %13, %15, %cst_18 {dimension_numbers = #tpu.dot_dimension_numbers<[1], [0], [0], [1], [0, 0, 1, 1], [], []>} : vector<8x128xbf16>, vector<128x128xbf16>, vector<8x128xf32> -> vector<8x128xf32>
    %17 = arith.addf %11, %16 : vector<8x128xf32>
    %c0_19 = arith.constant 0 : index
    %c4 = arith.constant 4 : index
    %c0_20 = arith.constant 0 : index
    %18 = vector.load %arg1[%c0_19, %c4, %c0_20] : memref<1x20x128xbf16, #tpu.memory_space<vmem>>, vector<1x8x128xbf16>
    %19 = vector.shape_cast %18 : vector<1x8x128xbf16> to vector<8x128xbf16>
    %c3 = arith.constant 3 : index
    %c0_21 = arith.constant 0 : index
    %c0_22 = arith.constant 0 : index
    %20 = vector.load %arg2[%c3, %c0_21, %c0_22] : memref<9x128x128xbf16, #tpu.memory_space<vmem>>, vector<1x128x128xbf16>
    %21 = vector.shape_cast %20 : vector<1x128x128xbf16> to vector<128x128xbf16>
    %cst_23 = arith.constant dense<0.000000e+00> : vector<8x128xf32>
    %22 = tpu.matmul %19, %21, %cst_23 {dimension_numbers = #tpu.dot_dimension_numbers<[1], [0], [0], [1], [0, 0, 1, 1], [], []>} : vector<8x128xbf16>, vector<128x128xbf16>, vector<8x128xf32> -> vector<8x128xf32>
    %23 = arith.addf %17, %22 : vector<8x128xf32>
    %c0_24 = arith.constant 0 : index
    %c5 = arith.constant 5 : index
    %c0_25 = arith.constant 0 : index
    %24 = vector.load %arg1[%c0_24, %c5, %c0_25] : memref<1x20x128xbf16, #tpu.memory_space<vmem>>, vector<1x8x128xbf16>
    %25 = vector.shape_cast %24 : vector<1x8x128xbf16> to vector<8x128xbf16>
    %c4_26 = arith.constant 4 : index
    %c0_27 = arith.constant 0 : index
    %c0_28 = arith.constant 0 : index
    %26 = vector.load %arg2[%c4_26, %c0_27, %c0_28] : memref<9x128x128xbf16, #tpu.memory_space<vmem>>, vector<1x128x128xbf16>
    %27 = vector.shape_cast %26 : vector<1x128x128xbf16> to vector<128x128xbf16>
    %cst_29 = arith.constant dense<0.000000e+00> : vector<8x128xf32>
    %28 = tpu.matmul %25, %27, %cst_29 {dimension_numbers = #tpu.dot_dimension_numbers<[1], [0], [0], [1], [0, 0, 1, 1], [], []>} : vector<8x128xbf16>, vector<128x128xbf16>, vector<8x128xf32> -> vector<8x128xf32>
    %29 = arith.addf %23, %28 : vector<8x128xf32>
    %c0_30 = arith.constant 0 : index
    %c6 = arith.constant 6 : index
    %c0_31 = arith.constant 0 : index
    %30 = vector.load %arg1[%c0_30, %c6, %c0_31] : memref<1x20x128xbf16, #tpu.memory_space<vmem>>, vector<1x8x128xbf16>
    %31 = vector.shape_cast %30 : vector<1x8x128xbf16> to vector<8x128xbf16>
    %c5_32 = arith.constant 5 : index
    %c0_33 = arith.constant 0 : index
    %c0_34 = arith.constant 0 : index
    %32 = vector.load %arg2[%c5_32, %c0_33, %c0_34] : memref<9x128x128xbf16, #tpu.memory_space<vmem>>, vector<1x128x128xbf16>
    %33 = vector.shape_cast %32 : vector<1x128x128xbf16> to vector<128x128xbf16>
    %cst_35 = arith.constant dense<0.000000e+00> : vector<8x128xf32>
    %34 = tpu.matmul %31, %33, %cst_35 {dimension_numbers = #tpu.dot_dimension_numbers<[1], [0], [0], [1], [0, 0, 1, 1], [], []>} : vector<8x128xbf16>, vector<128x128xbf16>, vector<8x128xf32> -> vector<8x128xf32>
    %35 = arith.addf %29, %34 : vector<8x128xf32>
    %c0_36 = arith.constant 0 : index
    %c8 = arith.constant 8 : index
    %c0_37 = arith.constant 0 : index
    %36 = vector.load %arg1[%c0_36, %c8, %c0_37] : memref<1x20x128xbf16, #tpu.memory_space<vmem>>, vector<1x8x128xbf16>
    %37 = vector.shape_cast %36 : vector<1x8x128xbf16> to vector<8x128xbf16>
    %c6_38 = arith.constant 6 : index
    %c0_39 = arith.constant 0 : index
    %c0_40 = arith.constant 0 : index
    %38 = vector.load %arg2[%c6_38, %c0_39, %c0_40] : memref<9x128x128xbf16, #tpu.memory_space<vmem>>, vector<1x128x128xbf16>
    %39 = vector.shape_cast %38 : vector<1x128x128xbf16> to vector<128x128xbf16>
    %cst_41 = arith.constant dense<0.000000e+00> : vector<8x128xf32>
    %40 = tpu.matmul %37, %39, %cst_41 {dimension_numbers = #tpu.dot_dimension_numbers<[1], [0], [0], [1], [0, 0, 1, 1], [], []>} : vector<8x128xbf16>, vector<128x128xbf16>, vector<8x128xf32> -> vector<8x128xf32>
    %41 = arith.addf %35, %40 : vector<8x128xf32>
    %c0_42 = arith.constant 0 : index
    %c9 = arith.constant 9 : index
    %c0_43 = arith.constant 0 : index
    %42 = vector.load %arg1[%c0_42, %c9, %c0_43] : memref<1x20x128xbf16, #tpu.memory_space<vmem>>, vector<1x8x128xbf16>
    %43 = vector.shape_cast %42 : vector<1x8x128xbf16> to vector<8x128xbf16>
    %c7 = arith.constant 7 : index
    %c0_44 = arith.constant 0 : index
    %c0_45 = arith.constant 0 : index
    %44 = vector.load %arg2[%c7, %c0_44, %c0_45] : memref<9x128x128xbf16, #tpu.memory_space<vmem>>, vector<1x128x128xbf16>
    %45 = vector.shape_cast %44 : vector<1x128x128xbf16> to vector<128x128xbf16>
    %cst_46 = arith.constant dense<0.000000e+00> : vector<8x128xf32>
    %46 = tpu.matmul %43, %45, %cst_46 {dimension_numbers = #tpu.dot_dimension_numbers<[1], [0], [0], [1], [0, 0, 1, 1], [], []>} : vector<8x128xbf16>, vector<128x128xbf16>, vector<8x128xf32> -> vector<8x128xf32>
    %47 = arith.addf %41, %46 : vector<8x128xf32>
    %c0_47 = arith.constant 0 : index
    %c10 = arith.constant 10 : index
    %c0_48 = arith.constant 0 : index
    %48 = vector.load %arg1[%c0_47, %c10, %c0_48] : memref<1x20x128xbf16, #tpu.memory_space<vmem>>, vector<1x8x128xbf16>
    %49 = vector.shape_cast %48 : vector<1x8x128xbf16> to vector<8x128xbf16>
    %c8_49 = arith.constant 8 : index
    %c0_50 = arith.constant 0 : index
    %c0_51 = arith.constant 0 : index
    %50 = vector.load %arg2[%c8_49, %c0_50, %c0_51] : memref<9x128x128xbf16, #tpu.memory_space<vmem>>, vector<1x128x128xbf16>
    %51 = vector.shape_cast %50 : vector<1x128x128xbf16> to vector<128x128xbf16>
    %cst_52 = arith.constant dense<0.000000e+00> : vector<8x128xf32>
    %52 = tpu.matmul %49, %51, %cst_52 {dimension_numbers = #tpu.dot_dimension_numbers<[1], [0], [0], [1], [0, 0, 1, 1], [], []>} : vector<8x128xbf16>, vector<128x128xbf16>, vector<8x128xf32> -> vector<8x128xf32>
    %53 = arith.addf %47, %52 : vector<8x128xf32>
    %54 = vector.broadcast %0 : vector<1x128xf32> to vector<8x128xf32>
    %55 = arith.addf %53, %54 : vector<8x128xf32>
    %cst_53 = arith.constant 0.000000e+00 : f32
    %56 = vector.broadcast %cst_53 : f32 to vector<8x128xf32>
    %57 = arith.maximumf %55, %56 : vector<8x128xf32>
    %58 = arith.truncf %57 : vector<8x128xf32> to vector<8x128xbf16>
    %c0_54 = arith.constant 0 : index
    %c0_55 = arith.constant 0 : index
    %c0_56 = arith.constant 0 : index
    %59 = vector.load %arg4[%c0_54, %c0_55, %c0_56] : memref<1x8x128xbf16, #tpu.memory_space<vmem>>, vector<1x8x128xbf16>
    %60 = vector.shape_cast %59 : vector<1x8x128xbf16> to vector<8x128xbf16>
    %61 = vector.shape_cast %58 : vector<8x128xbf16> to vector<1x8x128xbf16>
    tpu.vector_store %arg4[%c0_54, %c0_55, %c0_56], %61 {strides = array<i32>} : memref<1x8x128xbf16, #tpu.memory_space<vmem>>, vector<1x8x128xbf16>,
    return
  }
  func.func @transform_0(%arg0: i32) -> (i32, i32, i32) {
    %c0_i32 = arith.constant 0 : i32
    %c0_i32_0 = arith.constant 0 : i32
    %c0_i32_1 = arith.constant 0 : i32
    return %arg0, %c0_i32, %c0_i32_0 : i32, i32, i32
  }
  func.func @transform_1(%arg0: i32) -> (i32, i32, i32) {
    %c0_i32 = arith.constant 0 : i32
    %c0_i32_0 = arith.constant 0 : i32
    %c0_i32_1 = arith.constant 0 : i32
    %c0_i32_2 = arith.constant 0 : i32
    return %c0_i32, %c0_i32_0, %c0_i32_1 : i32, i32, i32
  }
  func.func @transform_2(%arg0: i32) -> (i32, i32) {
    %c0_i32 = arith.constant 0 : i32
    %c0_i32_0 = arith.constant 0 : i32
    %c0_i32_1 = arith.constant 0 : i32
    return %c0_i32, %c0_i32_0 : i32, i32
  }
  func.func @transform_3(%arg0: i32) -> (i32, i32, i32) {
    %c0_i32 = arith.constant 0 : i32
    %c0_i32_0 = arith.constant 0 : i32
    %c0_i32_1 = arith.constant 0 : i32
    return %arg0, %c0_i32, %c0_i32_0 : i32, i32, i32
  }
}

module attributes {stable_mosaic.version = 11 : i64} {
  func.func @_implicit3x3_kernel(%arg0: i32, %arg1: memref<1x20x128xbf16, #tpu.memory_space<vmem>>, %arg2: memref<9x128x256xbf16, #tpu.memory_space<vmem>>, %arg3: memref<1x256xf32, #tpu.memory_space<vmem>>, %arg4: memref<1x8x256xbf16, #tpu.memory_space<vmem>>) attributes {dimension_semantics = [#tpu.dimension_semantics<parallel>], iteration_bounds = array<i64: 2>, scalar_prefetch = 0 : i64, scratch_operands = 0 : i64, tpu.core_type = #tpu.core_type<tc>, window_params = [{transform_indices = @transform_0, window_bounds = array<i64: 1, 20, 128>}, {pipeline_mode = #tpu.pipeline_mode<synchronous>, transform_indices = @transform_1, window_bounds = array<i64: 9, 128, 256>}, {pipeline_mode = #tpu.pipeline_mode<synchronous>, transform_indices = @transform_2, window_bounds = array<i64: 1, 256>}, {transform_indices = @transform_3, window_bounds = array<i64: 1, 8, 256>}]} {
    %c0 = arith.constant 0 : index
    %c0_0 = arith.constant 0 : index
    %0 = vector.load %arg3[%c0, %c0_0] : memref<1x256xf32, #tpu.memory_space<vmem>>, vector<1x256xf32>
    %c0_1 = arith.constant 0 : index
    %c0_2 = arith.constant 0 : index
    %c0_3 = arith.constant 0 : index
    %1 = vector.load %arg1[%c0_1, %c0_2, %c0_3] : memref<1x20x128xbf16, #tpu.memory_space<vmem>>, vector<1x8x128xbf16>
    %2 = vector.shape_cast %1 : vector<1x8x128xbf16> to vector<8x128xbf16>
    %c0_4 = arith.constant 0 : index
    %c0_5 = arith.constant 0 : index
    %c0_6 = arith.constant 0 : index
    %3 = vector.load %arg2[%c0_4, %c0_5, %c0_6] : memref<9x128x256xbf16, #tpu.memory_space<vmem>>, vector<1x128x256xbf16>
    %4 = vector.shape_cast %3 : vector<1x128x256xbf16> to vector<128x256xbf16>
    %cst = arith.constant dense<0.000000e+00> : vector<8x256xf32>
    %5 = tpu.matmul %2, %4, %cst {dimension_numbers = #tpu.dot_dimension_numbers<[1], [0], [0], [1], [0, 0, 1, 1], [], []>} : vector<8x128xbf16>, vector<128x256xbf16>, vector<8x256xf32> -> vector<8x256xf32>
    %c0_7 = arith.constant 0 : index
    %c1 = arith.constant 1 : index
    %c0_8 = arith.constant 0 : index
    %6 = vector.load %arg1[%c0_7, %c1, %c0_8] : memref<1x20x128xbf16, #tpu.memory_space<vmem>>, vector<1x8x128xbf16>
    %7 = vector.shape_cast %6 : vector<1x8x128xbf16> to vector<8x128xbf16>
    %c1_9 = arith.constant 1 : index
    %c0_10 = arith.constant 0 : index
    %c0_11 = arith.constant 0 : index
    %8 = vector.load %arg2[%c1_9, %c0_10, %c0_11] : memref<9x128x256xbf16, #tpu.memory_space<vmem>>, vector<1x128x256xbf16>
    %9 = vector.shape_cast %8 : vector<1x128x256xbf16> to vector<128x256xbf16>
    %cst_12 = arith.constant dense<0.000000e+00> : vector<8x256xf32>
    %10 = tpu.matmul %7, %9, %cst_12 {dimension_numbers = #tpu.dot_dimension_numbers<[1], [0], [0], [1], [0, 0, 1, 1], [], []>} : vector<8x128xbf16>, vector<128x256xbf16>, vector<8x256xf32> -> vector<8x256xf32>
    %11 = arith.addf %5, %10 : vector<8x256xf32>
    %c0_13 = arith.constant 0 : index
    %c2 = arith.constant 2 : index
    %c0_14 = arith.constant 0 : index
    %12 = vector.load %arg1[%c0_13, %c2, %c0_14] : memref<1x20x128xbf16, #tpu.memory_space<vmem>>, vector<1x8x128xbf16>
    %13 = vector.shape_cast %12 : vector<1x8x128xbf16> to vector<8x128xbf16>
    %c2_15 = arith.constant 2 : index
    %c0_16 = arith.constant 0 : index
    %c0_17 = arith.constant 0 : index
    %14 = vector.load %arg2[%c2_15, %c0_16, %c0_17] : memref<9x128x256xbf16, #tpu.memory_space<vmem>>, vector<1x128x256xbf16>
    %15 = vector.shape_cast %14 : vector<1x128x256xbf16> to vector<128x256xbf16>
    %cst_18 = arith.constant dense<0.000000e+00> : vector<8x256xf32>
    %16 = tpu.matmul %13, %15, %cst_18 {dimension_numbers = #tpu.dot_dimension_numbers<[1], [0], [0], [1], [0, 0, 1, 1], [], []>} : vector<8x128xbf16>, vector<128x256xbf16>, vector<8x256xf32> -> vector<8x256xf32>
    %17 = arith.addf %11, %16 : vector<8x256xf32>
    %c0_19 = arith.constant 0 : index
    %c4 = arith.constant 4 : index
    %c0_20 = arith.constant 0 : index
    %18 = vector.load %arg1[%c0_19, %c4, %c0_20] : memref<1x20x128xbf16, #tpu.memory_space<vmem>>, vector<1x8x128xbf16>
    %19 = vector.shape_cast %18 : vector<1x8x128xbf16> to vector<8x128xbf16>
    %c3 = arith.constant 3 : index
    %c0_21 = arith.constant 0 : index
    %c0_22 = arith.constant 0 : index
    %20 = vector.load %arg2[%c3, %c0_21, %c0_22] : memref<9x128x256xbf16, #tpu.memory_space<vmem>>, vector<1x128x256xbf16>
    %21 = vector.shape_cast %20 : vector<1x128x256xbf16> to vector<128x256xbf16>
    %cst_23 = arith.constant dense<0.000000e+00> : vector<8x256xf32>
    %22 = tpu.matmul %19, %21, %cst_23 {dimension_numbers = #tpu.dot_dimension_numbers<[1], [0], [0], [1], [0, 0, 1, 1], [], []>} : vector<8x128xbf16>, vector<128x256xbf16>, vector<8x256xf32> -> vector<8x256xf32>
    %23 = arith.addf %17, %22 : vector<8x256xf32>
    %c0_24 = arith.constant 0 : index
    %c5 = arith.constant 5 : index
    %c0_25 = arith.constant 0 : index
    %24 = vector.load %arg1[%c0_24, %c5, %c0_25] : memref<1x20x128xbf16, #tpu.memory_space<vmem>>, vector<1x8x128xbf16>
    %25 = vector.shape_cast %24 : vector<1x8x128xbf16> to vector<8x128xbf16>
    %c4_26 = arith.constant 4 : index
    %c0_27 = arith.constant 0 : index
    %c0_28 = arith.constant 0 : index
    %26 = vector.load %arg2[%c4_26, %c0_27, %c0_28] : memref<9x128x256xbf16, #tpu.memory_space<vmem>>, vector<1x128x256xbf16>
    %27 = vector.shape_cast %26 : vector<1x128x256xbf16> to vector<128x256xbf16>
    %cst_29 = arith.constant dense<0.000000e+00> : vector<8x256xf32>
    %28 = tpu.matmul %25, %27, %cst_29 {dimension_numbers = #tpu.dot_dimension_numbers<[1], [0], [0], [1], [0, 0, 1, 1], [], []>} : vector<8x128xbf16>, vector<128x256xbf16>, vector<8x256xf32> -> vector<8x256xf32>
    %29 = arith.addf %23, %28 : vector<8x256xf32>
    %c0_30 = arith.constant 0 : index
    %c6 = arith.constant 6 : index
    %c0_31 = arith.constant 0 : index
    %30 = vector.load %arg1[%c0_30, %c6, %c0_31] : memref<1x20x128xbf16, #tpu.memory_space<vmem>>, vector<1x8x128xbf16>
    %31 = vector.shape_cast %30 : vector<1x8x128xbf16> to vector<8x128xbf16>
    %c5_32 = arith.constant 5 : index
    %c0_33 = arith.constant 0 : index
    %c0_34 = arith.constant 0 : index
    %32 = vector.load %arg2[%c5_32, %c0_33, %c0_34] : memref<9x128x256xbf16, #tpu.memory_space<vmem>>, vector<1x128x256xbf16>
    %33 = vector.shape_cast %32 : vector<1x128x256xbf16> to vector<128x256xbf16>
    %cst_35 = arith.constant dense<0.000000e+00> : vector<8x256xf32>
    %34 = tpu.matmul %31, %33, %cst_35 {dimension_numbers = #tpu.dot_dimension_numbers<[1], [0], [0], [1], [0, 0, 1, 1], [], []>} : vector<8x128xbf16>, vector<128x256xbf16>, vector<8x256xf32> -> vector<8x256xf32>
    %35 = arith.addf %29, %34 : vector<8x256xf32>
    %c0_36 = arith.constant 0 : index
    %c8 = arith.constant 8 : index
    %c0_37 = arith.constant 0 : index
    %36 = vector.load %arg1[%c0_36, %c8, %c0_37] : memref<1x20x128xbf16, #tpu.memory_space<vmem>>, vector<1x8x128xbf16>
    %37 = vector.shape_cast %36 : vector<1x8x128xbf16> to vector<8x128xbf16>
    %c6_38 = arith.constant 6 : index
    %c0_39 = arith.constant 0 : index
    %c0_40 = arith.constant 0 : index
    %38 = vector.load %arg2[%c6_38, %c0_39, %c0_40] : memref<9x128x256xbf16, #tpu.memory_space<vmem>>, vector<1x128x256xbf16>
    %39 = vector.shape_cast %38 : vector<1x128x256xbf16> to vector<128x256xbf16>
    %cst_41 = arith.constant dense<0.000000e+00> : vector<8x256xf32>
    %40 = tpu.matmul %37, %39, %cst_41 {dimension_numbers = #tpu.dot_dimension_numbers<[1], [0], [0], [1], [0, 0, 1, 1], [], []>} : vector<8x128xbf16>, vector<128x256xbf16>, vector<8x256xf32> -> vector<8x256xf32>
    %41 = arith.addf %35, %40 : vector<8x256xf32>
    %c0_42 = arith.constant 0 : index
    %c9 = arith.constant 9 : index
    %c0_43 = arith.constant 0 : index
    %42 = vector.load %arg1[%c0_42, %c9, %c0_43] : memref<1x20x128xbf16, #tpu.memory_space<vmem>>, vector<1x8x128xbf16>
    %43 = vector.shape_cast %42 : vector<1x8x128xbf16> to vector<8x128xbf16>
    %c7 = arith.constant 7 : index
    %c0_44 = arith.constant 0 : index
    %c0_45 = arith.constant 0 : index
    %44 = vector.load %arg2[%c7, %c0_44, %c0_45] : memref<9x128x256xbf16, #tpu.memory_space<vmem>>, vector<1x128x256xbf16>
    %45 = vector.shape_cast %44 : vector<1x128x256xbf16> to vector<128x256xbf16>
    %cst_46 = arith.constant dense<0.000000e+00> : vector<8x256xf32>
    %46 = tpu.matmul %43, %45, %cst_46 {dimension_numbers = #tpu.dot_dimension_numbers<[1], [0], [0], [1], [0, 0, 1, 1], [], []>} : vector<8x128xbf16>, vector<128x256xbf16>, vector<8x256xf32> -> vector<8x256xf32>
    %47 = arith.addf %41, %46 : vector<8x256xf32>
    %c0_47 = arith.constant 0 : index
    %c10 = arith.constant 10 : index
    %c0_48 = arith.constant 0 : index
    %48 = vector.load %arg1[%c0_47, %c10, %c0_48] : memref<1x20x128xbf16, #tpu.memory_space<vmem>>, vector<1x8x128xbf16>
    %49 = vector.shape_cast %48 : vector<1x8x128xbf16> to vector<8x128xbf16>
    %c8_49 = arith.constant 8 : index
    %c0_50 = arith.constant 0 : index
    %c0_51 = arith.constant 0 : index
    %50 = vector.load %arg2[%c8_49, %c0_50, %c0_51] : memref<9x128x256xbf16, #tpu.memory_space<vmem>>, vector<1x128x256xbf16>
    %51 = vector.shape_cast %50 : vector<1x128x256xbf16> to vector<128x256xbf16>
    %cst_52 = arith.constant dense<0.000000e+00> : vector<8x256xf32>
    %52 = tpu.matmul %49, %51, %cst_52 {dimension_numbers = #tpu.dot_dimension_numbers<[1], [0], [0], [1], [0, 0, 1, 1], [], []>} : vector<8x128xbf16>, vector<128x256xbf16>, vector<8x256xf32> -> vector<8x256xf32>
    %53 = arith.addf %47, %52 : vector<8x256xf32>
    %54 = vector.broadcast %0 : vector<1x256xf32> to vector<8x256xf32>
    %55 = arith.addf %53, %54 : vector<8x256xf32>
    %cst_53 = arith.constant 0.000000e+00 : f32
    %56 = vector.broadcast %cst_53 : f32 to vector<8x256xf32>
    %57 = arith.maximumf %55, %56 : vector<8x256xf32>
    %58 = arith.truncf %57 : vector<8x256xf32> to vector<8x256xbf16>
    %c0_54 = arith.constant 0 : index
    %c0_55 = arith.constant 0 : index
    %c0_56 = arith.constant 0 : index
    %59 = vector.load %arg4[%c0_54, %c0_55, %c0_56] : memref<1x8x256xbf16, #tpu.memory_space<vmem>>, vector<1x8x256xbf16>
    %60 = vector.shape_cast %59 : vector<1x8x256xbf16> to vector<8x256xbf16>
    %61 = vector.shape_cast %58 : vector<8x256xbf16> to vector<1x8x256xbf16>
    tpu.vector_store %arg4[%c0_54, %c0_55, %c0_56], %61 {strides = array<i32>} : memref<1x8x256xbf16, #tpu.memory_space<vmem>>, vector<1x8x256xbf16>,
    return
  }
  func.func @transform_0(%arg0: i32) -> (i32, i32, i32) {
    %c0_i32 = arith.constant 0 : i32
    %c0_i32_0 = arith.constant 0 : i32
    %c0_i32_1 = arith.constant 0 : i32
    return %arg0, %c0_i32, %c0_i32_0 : i32, i32, i32
  }
  func.func @transform_1(%arg0: i32) -> (i32, i32, i32) {
    %c0_i32 = arith.constant 0 : i32
    %c0_i32_0 = arith.constant 0 : i32
    %c0_i32_1 = arith.constant 0 : i32
    %c0_i32_2 = arith.constant 0 : i32
    return %c0_i32, %c0_i32_0, %c0_i32_1 : i32, i32, i32
  }
  func.func @transform_2(%arg0: i32) -> (i32, i32) {
    %c0_i32 = arith.constant 0 : i32
    %c0_i32_0 = arith.constant 0 : i32
    %c0_i32_1 = arith.constant 0 : i32
    return %c0_i32, %c0_i32_0 : i32, i32
  }
  func.func @transform_3(%arg0: i32) -> (i32, i32, i32) {
    %c0_i32 = arith.constant 0 : i32
    %c0_i32_0 = arith.constant 0 : i32
    %c0_i32_1 = arith.constant 0 : i32
    return %arg0, %c0_i32, %c0_i32_0 : i32, i32, i32
  }
}

module attributes {stable_mosaic.version = 11 : i64} {
  func.func @_implicit3x3_res_kernel(%arg0: i32, %arg1: memref<1x20x256xbf16, #tpu.memory_space<vmem>>, %arg2: memref<9x256x256xbf16, #tpu.memory_space<vmem>>, %arg3: memref<1x256xf32, #tpu.memory_space<vmem>>, %arg4: memref<1x8x256xbf16, #tpu.memory_space<vmem>>, %arg5: memref<1x8x256xbf16, #tpu.memory_space<vmem>>) attributes {dimension_semantics = [#tpu.dimension_semantics<parallel>], iteration_bounds = array<i64: 2>, scalar_prefetch = 0 : i64, scratch_operands = 0 : i64, tpu.core_type = #tpu.core_type<tc>, window_params = [{transform_indices = @transform_0, window_bounds = array<i64: 1, 20, 256>}, {pipeline_mode = #tpu.pipeline_mode<synchronous>, transform_indices = @transform_1, window_bounds = array<i64: 9, 256, 256>}, {pipeline_mode = #tpu.pipeline_mode<synchronous>, transform_indices = @transform_2, window_bounds = array<i64: 1, 256>}, {transform_indices = @transform_3, window_bounds = array<i64: 1, 8, 256>}, {transform_indices = @transform_4, window_bounds = array<i64: 1, 8, 256>}]} {
    %c0 = arith.constant 0 : index
    %c0_0 = arith.constant 0 : index
    %0 = vector.load %arg3[%c0, %c0_0] : memref<1x256xf32, #tpu.memory_space<vmem>>, vector<1x256xf32>
    %c0_1 = arith.constant 0 : index
    %c0_2 = arith.constant 0 : index
    %c0_3 = arith.constant 0 : index
    %1 = vector.load %arg1[%c0_1, %c0_2, %c0_3] : memref<1x20x256xbf16, #tpu.memory_space<vmem>>, vector<1x8x256xbf16>
    %2 = vector.shape_cast %1 : vector<1x8x256xbf16> to vector<8x256xbf16>
    %c0_4 = arith.constant 0 : index
    %c0_5 = arith.constant 0 : index
    %c0_6 = arith.constant 0 : index
    %3 = vector.load %arg2[%c0_4, %c0_5, %c0_6] : memref<9x256x256xbf16, #tpu.memory_space<vmem>>, vector<1x256x256xbf16>
    %4 = vector.shape_cast %3 : vector<1x256x256xbf16> to vector<256x256xbf16>
    %cst = arith.constant dense<0.000000e+00> : vector<8x256xf32>
    %5 = tpu.matmul %2, %4, %cst {dimension_numbers = #tpu.dot_dimension_numbers<[1], [0], [0], [1], [0, 0, 1, 1], [], []>} : vector<8x256xbf16>, vector<256x256xbf16>, vector<8x256xf32> -> vector<8x256xf32>
    %c0_7 = arith.constant 0 : index
    %c1 = arith.constant 1 : index
    %c0_8 = arith.constant 0 : index
    %6 = vector.load %arg1[%c0_7, %c1, %c0_8] : memref<1x20x256xbf16, #tpu.memory_space<vmem>>, vector<1x8x256xbf16>
    %7 = vector.shape_cast %6 : vector<1x8x256xbf16> to vector<8x256xbf16>
    %c1_9 = arith.constant 1 : index
    %c0_10 = arith.constant 0 : index
    %c0_11 = arith.constant 0 : index
    %8 = vector.load %arg2[%c1_9, %c0_10, %c0_11] : memref<9x256x256xbf16, #tpu.memory_space<vmem>>, vector<1x256x256xbf16>
    %9 = vector.shape_cast %8 : vector<1x256x256xbf16> to vector<256x256xbf16>
    %cst_12 = arith.constant dense<0.000000e+00> : vector<8x256xf32>
    %10 = tpu.matmul %7, %9, %cst_12 {dimension_numbers = #tpu.dot_dimension_numbers<[1], [0], [0], [1], [0, 0, 1, 1], [], []>} : vector<8x256xbf16>, vector<256x256xbf16>, vector<8x256xf32> -> vector<8x256xf32>
    %11 = arith.addf %5, %10 : vector<8x256xf32>
    %c0_13 = arith.constant 0 : index
    %c2 = arith.constant 2 : index
    %c0_14 = arith.constant 0 : index
    %12 = vector.load %arg1[%c0_13, %c2, %c0_14] : memref<1x20x256xbf16, #tpu.memory_space<vmem>>, vector<1x8x256xbf16>
    %13 = vector.shape_cast %12 : vector<1x8x256xbf16> to vector<8x256xbf16>
    %c2_15 = arith.constant 2 : index
    %c0_16 = arith.constant 0 : index
    %c0_17 = arith.constant 0 : index
    %14 = vector.load %arg2[%c2_15, %c0_16, %c0_17] : memref<9x256x256xbf16, #tpu.memory_space<vmem>>, vector<1x256x256xbf16>
    %15 = vector.shape_cast %14 : vector<1x256x256xbf16> to vector<256x256xbf16>
    %cst_18 = arith.constant dense<0.000000e+00> : vector<8x256xf32>
    %16 = tpu.matmul %13, %15, %cst_18 {dimension_numbers = #tpu.dot_dimension_numbers<[1], [0], [0], [1], [0, 0, 1, 1], [], []>} : vector<8x256xbf16>, vector<256x256xbf16>, vector<8x256xf32> -> vector<8x256xf32>
    %17 = arith.addf %11, %16 : vector<8x256xf32>
    %c0_19 = arith.constant 0 : index
    %c4 = arith.constant 4 : index
    %c0_20 = arith.constant 0 : index
    %18 = vector.load %arg1[%c0_19, %c4, %c0_20] : memref<1x20x256xbf16, #tpu.memory_space<vmem>>, vector<1x8x256xbf16>
    %19 = vector.shape_cast %18 : vector<1x8x256xbf16> to vector<8x256xbf16>
    %c3 = arith.constant 3 : index
    %c0_21 = arith.constant 0 : index
    %c0_22 = arith.constant 0 : index
    %20 = vector.load %arg2[%c3, %c0_21, %c0_22] : memref<9x256x256xbf16, #tpu.memory_space<vmem>>, vector<1x256x256xbf16>
    %21 = vector.shape_cast %20 : vector<1x256x256xbf16> to vector<256x256xbf16>
    %cst_23 = arith.constant dense<0.000000e+00> : vector<8x256xf32>
    %22 = tpu.matmul %19, %21, %cst_23 {dimension_numbers = #tpu.dot_dimension_numbers<[1], [0], [0], [1], [0, 0, 1, 1], [], []>} : vector<8x256xbf16>, vector<256x256xbf16>, vector<8x256xf32> -> vector<8x256xf32>
    %23 = arith.addf %17, %22 : vector<8x256xf32>
    %c0_24 = arith.constant 0 : index
    %c5 = arith.constant 5 : index
    %c0_25 = arith.constant 0 : index
    %24 = vector.load %arg1[%c0_24, %c5, %c0_25] : memref<1x20x256xbf16, #tpu.memory_space<vmem>>, vector<1x8x256xbf16>
    %25 = vector.shape_cast %24 : vector<1x8x256xbf16> to vector<8x256xbf16>
    %c4_26 = arith.constant 4 : index
    %c0_27 = arith.constant 0 : index
    %c0_28 = arith.constant 0 : index
    %26 = vector.load %arg2[%c4_26, %c0_27, %c0_28] : memref<9x256x256xbf16, #tpu.memory_space<vmem>>, vector<1x256x256xbf16>
    %27 = vector.shape_cast %26 : vector<1x256x256xbf16> to vector<256x256xbf16>
    %cst_29 = arith.constant dense<0.000000e+00> : vector<8x256xf32>
    %28 = tpu.matmul %25, %27, %cst_29 {dimension_numbers = #tpu.dot_dimension_numbers<[1], [0], [0], [1], [0, 0, 1, 1], [], []>} : vector<8x256xbf16>, vector<256x256xbf16>, vector<8x256xf32> -> vector<8x256xf32>
    %29 = arith.addf %23, %28 : vector<8x256xf32>
    %c0_30 = arith.constant 0 : index
    %c6 = arith.constant 6 : index
    %c0_31 = arith.constant 0 : index
    %30 = vector.load %arg1[%c0_30, %c6, %c0_31] : memref<1x20x256xbf16, #tpu.memory_space<vmem>>, vector<1x8x256xbf16>
    %31 = vector.shape_cast %30 : vector<1x8x256xbf16> to vector<8x256xbf16>
    %c5_32 = arith.constant 5 : index
    %c0_33 = arith.constant 0 : index
    %c0_34 = arith.constant 0 : index
    %32 = vector.load %arg2[%c5_32, %c0_33, %c0_34] : memref<9x256x256xbf16, #tpu.memory_space<vmem>>, vector<1x256x256xbf16>
    %33 = vector.shape_cast %32 : vector<1x256x256xbf16> to vector<256x256xbf16>
    %cst_35 = arith.constant dense<0.000000e+00> : vector<8x256xf32>
    %34 = tpu.matmul %31, %33, %cst_35 {dimension_numbers = #tpu.dot_dimension_numbers<[1], [0], [0], [1], [0, 0, 1, 1], [], []>} : vector<8x256xbf16>, vector<256x256xbf16>, vector<8x256xf32> -> vector<8x256xf32>
    %35 = arith.addf %29, %34 : vector<8x256xf32>
    %c0_36 = arith.constant 0 : index
    %c8 = arith.constant 8 : index
    %c0_37 = arith.constant 0 : index
    %36 = vector.load %arg1[%c0_36, %c8, %c0_37] : memref<1x20x256xbf16, #tpu.memory_space<vmem>>, vector<1x8x256xbf16>
    %37 = vector.shape_cast %36 : vector<1x8x256xbf16> to vector<8x256xbf16>
    %c6_38 = arith.constant 6 : index
    %c0_39 = arith.constant 0 : index
    %c0_40 = arith.constant 0 : index
    %38 = vector.load %arg2[%c6_38, %c0_39, %c0_40] : memref<9x256x256xbf16, #tpu.memory_space<vmem>>, vector<1x256x256xbf16>
    %39 = vector.shape_cast %38 : vector<1x256x256xbf16> to vector<256x256xbf16>
    %cst_41 = arith.constant dense<0.000000e+00> : vector<8x256xf32>
    %40 = tpu.matmul %37, %39, %cst_41 {dimension_numbers = #tpu.dot_dimension_numbers<[1], [0], [0], [1], [0, 0, 1, 1], [], []>} : vector<8x256xbf16>, vector<256x256xbf16>, vector<8x256xf32> -> vector<8x256xf32>
    %41 = arith.addf %35, %40 : vector<8x256xf32>
    %c0_42 = arith.constant 0 : index
    %c9 = arith.constant 9 : index
    %c0_43 = arith.constant 0 : index
    %42 = vector.load %arg1[%c0_42, %c9, %c0_43] : memref<1x20x256xbf16, #tpu.memory_space<vmem>>, vector<1x8x256xbf16>
    %43 = vector.shape_cast %42 : vector<1x8x256xbf16> to vector<8x256xbf16>
    %c7 = arith.constant 7 : index
    %c0_44 = arith.constant 0 : index
    %c0_45 = arith.constant 0 : index
    %44 = vector.load %arg2[%c7, %c0_44, %c0_45] : memref<9x256x256xbf16, #tpu.memory_space<vmem>>, vector<1x256x256xbf16>
    %45 = vector.shape_cast %44 : vector<1x256x256xbf16> to vector<256x256xbf16>
    %cst_46 = arith.constant dense<0.000000e+00> : vector<8x256xf32>
    %46 = tpu.matmul %43, %45, %cst_46 {dimension_numbers = #tpu.dot_dimension_numbers<[1], [0], [0], [1], [0, 0, 1, 1], [], []>} : vector<8x256xbf16>, vector<256x256xbf16>, vector<8x256xf32> -> vector<8x256xf32>
    %47 = arith.addf %41, %46 : vector<8x256xf32>
    %c0_47 = arith.constant 0 : index
    %c10 = arith.constant 10 : index
    %c0_48 = arith.constant 0 : index
    %48 = vector.load %arg1[%c0_47, %c10, %c0_48] : memref<1x20x256xbf16, #tpu.memory_space<vmem>>, vector<1x8x256xbf16>
    %49 = vector.shape_cast %48 : vector<1x8x256xbf16> to vector<8x256xbf16>
    %c8_49 = arith.constant 8 : index
    %c0_50 = arith.constant 0 : index
    %c0_51 = arith.constant 0 : index
    %50 = vector.load %arg2[%c8_49, %c0_50, %c0_51] : memref<9x256x256xbf16, #tpu.memory_space<vmem>>, vector<1x256x256xbf16>
    %51 = vector.shape_cast %50 : vector<1x256x256xbf16> to vector<256x256xbf16>
    %cst_52 = arith.constant dense<0.000000e+00> : vector<8x256xf32>
    %52 = tpu.matmul %49, %51, %cst_52 {dimension_numbers = #tpu.dot_dimension_numbers<[1], [0], [0], [1], [0, 0, 1, 1], [], []>} : vector<8x256xbf16>, vector<256x256xbf16>, vector<8x256xf32> -> vector<8x256xf32>
    %53 = arith.addf %47, %52 : vector<8x256xf32>
    %54 = vector.broadcast %0 : vector<1x256xf32> to vector<8x256xf32>
    %55 = arith.addf %53, %54 : vector<8x256xf32>
    %c0_53 = arith.constant 0 : index
    %c0_54 = arith.constant 0 : index
    %c0_55 = arith.constant 0 : index
    %56 = vector.load %arg4[%c0_53, %c0_54, %c0_55] : memref<1x8x256xbf16, #tpu.memory_space<vmem>>, vector<1x8x256xbf16>
    %57 = vector.shape_cast %56 : vector<1x8x256xbf16> to vector<8x256xbf16>
    %58 = arith.extf %57 : vector<8x256xbf16> to vector<8x256xf32>
    %59 = arith.addf %55, %58 : vector<8x256xf32>
    %cst_56 = arith.constant 0.000000e+00 : f32
    %60 = vector.broadcast %cst_56 : f32 to vector<8x256xf32>
    %61 = arith.maximumf %59, %60 : vector<8x256xf32>
    %62 = arith.truncf %61 : vector<8x256xf32> to vector<8x256xbf16>
    %c0_57 = arith.constant 0 : index
    %c0_58 = arith.constant 0 : index
    %c0_59 = arith.constant 0 : index
    %63 = vector.load %arg5[%c0_57, %c0_58, %c0_59] : memref<1x8x256xbf16, #tpu.memory_space<vmem>>, vector<1x8x256xbf16>
    %64 = vector.shape_cast %63 : vector<1x8x256xbf16> to vector<8x256xbf16>
    %65 = vector.shape_cast %62 : vector<8x256xbf16> to vector<1x8x256xbf16>
    tpu.vector_store %arg5[%c0_57, %c0_58, %c0_59], %65 {strides = array<i32>} : memref<1x8x256xbf16, #tpu.memory_space<vmem>>, vector<1x8x256xbf16>,
    return
  }
  func.func @transform_0(%arg0: i32) -> (i32, i32, i32) {
    %c0_i32 = arith.constant 0 : i32
    %c0_i32_0 = arith.constant 0 : i32
    %c0_i32_1 = arith.constant 0 : i32
    return %arg0, %c0_i32, %c0_i32_0 : i32, i32, i32
  }
  func.func @transform_1(%arg0: i32) -> (i32, i32, i32) {
    %c0_i32 = arith.constant 0 : i32
    %c0_i32_0 = arith.constant 0 : i32
    %c0_i32_1 = arith.constant 0 : i32
    %c0_i32_2 = arith.constant 0 : i32
    return %c0_i32, %c0_i32_0, %c0_i32_1 : i32, i32, i32
  }
  func.func @transform_2(%arg0: i32) -> (i32, i32) {
    %c0_i32 = arith.constant 0 : i32
    %c0_i32_0 = arith.constant 0 : i32
    %c0_i32_1 = arith.constant 0 : i32
    return %c0_i32, %c0_i32_0 : i32, i32
  }
  func.func @transform_3(%arg0: i32) -> (i32, i32, i32) {
    %c0_i32 = arith.constant 0 : i32
    %c0_i32_0 = arith.constant 0 : i32
    %c0_i32_1 = arith.constant 0 : i32
    return %arg0, %c0_i32, %c0_i32_0 : i32, i32, i32
  }
  func.func @transform_4(%arg0: i32) -> (i32, i32, i32) {
    %c0_i32 = arith.constant 0 : i32
    %c0_i32_0 = arith.constant 0 : i32
    %c0_i32_1 = arith.constant 0 : i32
    return %arg0, %c0_i32, %c0_i32_0 : i32, i32, i32
  }
}

module attributes {stable_mosaic.version = 11 : i64} {
  func.func @_gemm_bias_kernel(%arg0: i32, %arg1: i32, %arg2: memref<8x128xbf16, #tpu.memory_space<vmem>>, %arg3: memref<128x256xbf16, #tpu.memory_space<vmem>>, %arg4: memref<1x256xf32, #tpu.memory_space<vmem>>, %arg5: memref<8x256xbf16, #tpu.memory_space<vmem>>) attributes {dimension_semantics = [#tpu.dimension_semantics<parallel>, #tpu.dimension_semantics<parallel>], iteration_bounds = array<i64: 1, 1>, scalar_prefetch = 0 : i64, scratch_operands = 0 : i64, tpu.core_type = #tpu.core_type<tc>, window_params = [{transform_indices = @transform_0, window_bounds = array<i64: 8, 128>}, {transform_indices = @transform_1, window_bounds = array<i64: 128, 256>}, {transform_indices = @transform_2, window_bounds = array<i64: 1, 256>}, {transform_indices = @transform_3, window_bounds = array<i64: 8, 256>}]} {
    %c0 = arith.constant 0 : index
    %c0_0 = arith.constant 0 : index
    %0 = vector.load %arg2[%c0, %c0_0] : memref<8x128xbf16, #tpu.memory_space<vmem>>, vector<8x128xbf16>
    %c0_1 = arith.constant 0 : index
    %c0_2 = arith.constant 0 : index
    %1 = vector.load %arg3[%c0_1, %c0_2] : memref<128x256xbf16, #tpu.memory_space<vmem>>, vector<128x256xbf16>
    %cst = arith.constant dense<0.000000e+00> : vector<8x256xf32>
    %2 = tpu.matmul %0, %1, %cst {dimension_numbers = #tpu.dot_dimension_numbers<[1], [0], [0], [1], [0, 0, 1, 1], [], []>} : vector<8x128xbf16>, vector<128x256xbf16>, vector<8x256xf32> -> vector<8x256xf32>
    %c0_3 = arith.constant 0 : index
    %c0_4 = arith.constant 0 : index
    %3 = vector.load %arg4[%c0_3, %c0_4] : memref<1x256xf32, #tpu.memory_space<vmem>>, vector<1x256xf32>
    %4 = vector.broadcast %3 : vector<1x256xf32> to vector<8x256xf32>
    %5 = arith.addf %2, %4 : vector<8x256xf32>
    %6 = arith.truncf %5 : vector<8x256xf32> to vector<8x256xbf16>
    %c0_5 = arith.constant 0 : index
    %c0_6 = arith.constant 0 : index
    %7 = vector.load %arg5[%c0_5, %c0_6] : memref<8x256xbf16, #tpu.memory_space<vmem>>, vector<8x256xbf16>
    tpu.vector_store %arg5[%c0_5, %c0_6], %6 {strides = array<i32>} : memref<8x256xbf16, #tpu.memory_space<vmem>>, vector<8x256xbf16>,
    return
  }
  func.func @transform_0(%arg0: i32, %arg1: i32) -> (i32, i32) {
    %c0_i32 = arith.constant 0 : i32
    %c0_i32_0 = arith.constant 0 : i32
    return %arg0, %c0_i32 : i32, i32
  }
  func.func @transform_1(%arg0: i32, %arg1: i32) -> (i32, i32) {
    %c0_i32 = arith.constant 0 : i32
    %c0_i32_0 = arith.constant 0 : i32
    return %c0_i32, %arg1 : i32, i32
  }
  func.func @transform_2(%arg0: i32, %arg1: i32) -> (i32, i32) {
    %c0_i32 = arith.constant 0 : i32
    %c0_i32_0 = arith.constant 0 : i32
    return %c0_i32, %arg1 : i32, i32
  }
  func.func @transform_3(%arg0: i32, %arg1: i32) -> (i32, i32) {
    %c0_i32 = arith.constant 0 : i32
    return %arg0, %arg1 : i32, i32
  }
}

module attributes {stable_mosaic.version = 11 : i64} {
  func.func @_implicit3x3_kernel(%arg0: i32, %arg1: memref<1x20x256xbf16, #tpu.memory_space<vmem>>, %arg2: memref<9x256x256xbf16, #tpu.memory_space<vmem>>, %arg3: memref<1x256xf32, #tpu.memory_space<vmem>>, %arg4: memref<1x8x256xbf16, #tpu.memory_space<vmem>>) attributes {dimension_semantics = [#tpu.dimension_semantics<parallel>], iteration_bounds = array<i64: 2>, scalar_prefetch = 0 : i64, scratch_operands = 0 : i64, tpu.core_type = #tpu.core_type<tc>, window_params = [{transform_indices = @transform_0, window_bounds = array<i64: 1, 20, 256>}, {pipeline_mode = #tpu.pipeline_mode<synchronous>, transform_indices = @transform_1, window_bounds = array<i64: 9, 256, 256>}, {pipeline_mode = #tpu.pipeline_mode<synchronous>, transform_indices = @transform_2, window_bounds = array<i64: 1, 256>}, {transform_indices = @transform_3, window_bounds = array<i64: 1, 8, 256>}]} {
    %c0 = arith.constant 0 : index
    %c0_0 = arith.constant 0 : index
    %0 = vector.load %arg3[%c0, %c0_0] : memref<1x256xf32, #tpu.memory_space<vmem>>, vector<1x256xf32>
    %c0_1 = arith.constant 0 : index
    %c0_2 = arith.constant 0 : index
    %c0_3 = arith.constant 0 : index
    %1 = vector.load %arg1[%c0_1, %c0_2, %c0_3] : memref<1x20x256xbf16, #tpu.memory_space<vmem>>, vector<1x8x256xbf16>
    %2 = vector.shape_cast %1 : vector<1x8x256xbf16> to vector<8x256xbf16>
    %c0_4 = arith.constant 0 : index
    %c0_5 = arith.constant 0 : index
    %c0_6 = arith.constant 0 : index
    %3 = vector.load %arg2[%c0_4, %c0_5, %c0_6] : memref<9x256x256xbf16, #tpu.memory_space<vmem>>, vector<1x256x256xbf16>
    %4 = vector.shape_cast %3 : vector<1x256x256xbf16> to vector<256x256xbf16>
    %cst = arith.constant dense<0.000000e+00> : vector<8x256xf32>
    %5 = tpu.matmul %2, %4, %cst {dimension_numbers = #tpu.dot_dimension_numbers<[1], [0], [0], [1], [0, 0, 1, 1], [], []>} : vector<8x256xbf16>, vector<256x256xbf16>, vector<8x256xf32> -> vector<8x256xf32>
    %c0_7 = arith.constant 0 : index
    %c1 = arith.constant 1 : index
    %c0_8 = arith.constant 0 : index
    %6 = vector.load %arg1[%c0_7, %c1, %c0_8] : memref<1x20x256xbf16, #tpu.memory_space<vmem>>, vector<1x8x256xbf16>
    %7 = vector.shape_cast %6 : vector<1x8x256xbf16> to vector<8x256xbf16>
    %c1_9 = arith.constant 1 : index
    %c0_10 = arith.constant 0 : index
    %c0_11 = arith.constant 0 : index
    %8 = vector.load %arg2[%c1_9, %c0_10, %c0_11] : memref<9x256x256xbf16, #tpu.memory_space<vmem>>, vector<1x256x256xbf16>
    %9 = vector.shape_cast %8 : vector<1x256x256xbf16> to vector<256x256xbf16>
    %cst_12 = arith.constant dense<0.000000e+00> : vector<8x256xf32>
    %10 = tpu.matmul %7, %9, %cst_12 {dimension_numbers = #tpu.dot_dimension_numbers<[1], [0], [0], [1], [0, 0, 1, 1], [], []>} : vector<8x256xbf16>, vector<256x256xbf16>, vector<8x256xf32> -> vector<8x256xf32>
    %11 = arith.addf %5, %10 : vector<8x256xf32>
    %c0_13 = arith.constant 0 : index
    %c2 = arith.constant 2 : index
    %c0_14 = arith.constant 0 : index
    %12 = vector.load %arg1[%c0_13, %c2, %c0_14] : memref<1x20x256xbf16, #tpu.memory_space<vmem>>, vector<1x8x256xbf16>
    %13 = vector.shape_cast %12 : vector<1x8x256xbf16> to vector<8x256xbf16>
    %c2_15 = arith.constant 2 : index
    %c0_16 = arith.constant 0 : index
    %c0_17 = arith.constant 0 : index
    %14 = vector.load %arg2[%c2_15, %c0_16, %c0_17] : memref<9x256x256xbf16, #tpu.memory_space<vmem>>, vector<1x256x256xbf16>
    %15 = vector.shape_cast %14 : vector<1x256x256xbf16> to vector<256x256xbf16>
    %cst_18 = arith.constant dense<0.000000e+00> : vector<8x256xf32>
    %16 = tpu.matmul %13, %15, %cst_18 {dimension_numbers = #tpu.dot_dimension_numbers<[1], [0], [0], [1], [0, 0, 1, 1], [], []>} : vector<8x256xbf16>, vector<256x256xbf16>, vector<8x256xf32> -> vector<8x256xf32>
    %17 = arith.addf %11, %16 : vector<8x256xf32>
    %c0_19 = arith.constant 0 : index
    %c4 = arith.constant 4 : index
    %c0_20 = arith.constant 0 : index
    %18 = vector.load %arg1[%c0_19, %c4, %c0_20] : memref<1x20x256xbf16, #tpu.memory_space<vmem>>, vector<1x8x256xbf16>
    %19 = vector.shape_cast %18 : vector<1x8x256xbf16> to vector<8x256xbf16>
    %c3 = arith.constant 3 : index
    %c0_21 = arith.constant 0 : index
    %c0_22 = arith.constant 0 : index
    %20 = vector.load %arg2[%c3, %c0_21, %c0_22] : memref<9x256x256xbf16, #tpu.memory_space<vmem>>, vector<1x256x256xbf16>
    %21 = vector.shape_cast %20 : vector<1x256x256xbf16> to vector<256x256xbf16>
    %cst_23 = arith.constant dense<0.000000e+00> : vector<8x256xf32>
    %22 = tpu.matmul %19, %21, %cst_23 {dimension_numbers = #tpu.dot_dimension_numbers<[1], [0], [0], [1], [0, 0, 1, 1], [], []>} : vector<8x256xbf16>, vector<256x256xbf16>, vector<8x256xf32> -> vector<8x256xf32>
    %23 = arith.addf %17, %22 : vector<8x256xf32>
    %c0_24 = arith.constant 0 : index
    %c5 = arith.constant 5 : index
    %c0_25 = arith.constant 0 : index
    %24 = vector.load %arg1[%c0_24, %c5, %c0_25] : memref<1x20x256xbf16, #tpu.memory_space<vmem>>, vector<1x8x256xbf16>
    %25 = vector.shape_cast %24 : vector<1x8x256xbf16> to vector<8x256xbf16>
    %c4_26 = arith.constant 4 : index
    %c0_27 = arith.constant 0 : index
    %c0_28 = arith.constant 0 : index
    %26 = vector.load %arg2[%c4_26, %c0_27, %c0_28] : memref<9x256x256xbf16, #tpu.memory_space<vmem>>, vector<1x256x256xbf16>
    %27 = vector.shape_cast %26 : vector<1x256x256xbf16> to vector<256x256xbf16>
    %cst_29 = arith.constant dense<0.000000e+00> : vector<8x256xf32>
    %28 = tpu.matmul %25, %27, %cst_29 {dimension_numbers = #tpu.dot_dimension_numbers<[1], [0], [0], [1], [0, 0, 1, 1], [], []>} : vector<8x256xbf16>, vector<256x256xbf16>, vector<8x256xf32> -> vector<8x256xf32>
    %29 = arith.addf %23, %28 : vector<8x256xf32>
    %c0_30 = arith.constant 0 : index
    %c6 = arith.constant 6 : index
    %c0_31 = arith.constant 0 : index
    %30 = vector.load %arg1[%c0_30, %c6, %c0_31] : memref<1x20x256xbf16, #tpu.memory_space<vmem>>, vector<1x8x256xbf16>
    %31 = vector.shape_cast %30 : vector<1x8x256xbf16> to vector<8x256xbf16>
    %c5_32 = arith.constant 5 : index
    %c0_33 = arith.constant 0 : index
    %c0_34 = arith.constant 0 : index
    %32 = vector.load %arg2[%c5_32, %c0_33, %c0_34] : memref<9x256x256xbf16, #tpu.memory_space<vmem>>, vector<1x256x256xbf16>
    %33 = vector.shape_cast %32 : vector<1x256x256xbf16> to vector<256x256xbf16>
    %cst_35 = arith.constant dense<0.000000e+00> : vector<8x256xf32>
    %34 = tpu.matmul %31, %33, %cst_35 {dimension_numbers = #tpu.dot_dimension_numbers<[1], [0], [0], [1], [0, 0, 1, 1], [], []>} : vector<8x256xbf16>, vector<256x256xbf16>, vector<8x256xf32> -> vector<8x256xf32>
    %35 = arith.addf %29, %34 : vector<8x256xf32>
    %c0_36 = arith.constant 0 : index
    %c8 = arith.constant 8 : index
    %c0_37 = arith.constant 0 : index
    %36 = vector.load %arg1[%c0_36, %c8, %c0_37] : memref<1x20x256xbf16, #tpu.memory_space<vmem>>, vector<1x8x256xbf16>
    %37 = vector.shape_cast %36 : vector<1x8x256xbf16> to vector<8x256xbf16>
    %c6_38 = arith.constant 6 : index
    %c0_39 = arith.constant 0 : index
    %c0_40 = arith.constant 0 : index
    %38 = vector.load %arg2[%c6_38, %c0_39, %c0_40] : memref<9x256x256xbf16, #tpu.memory_space<vmem>>, vector<1x256x256xbf16>
    %39 = vector.shape_cast %38 : vector<1x256x256xbf16> to vector<256x256xbf16>
    %cst_41 = arith.constant dense<0.000000e+00> : vector<8x256xf32>
    %40 = tpu.matmul %37, %39, %cst_41 {dimension_numbers = #tpu.dot_dimension_numbers<[1], [0], [0], [1], [0, 0, 1, 1], [], []>} : vector<8x256xbf16>, vector<256x256xbf16>, vector<8x256xf32> -> vector<8x256xf32>
    %41 = arith.addf %35, %40 : vector<8x256xf32>
    %c0_42 = arith.constant 0 : index
    %c9 = arith.constant 9 : index
    %c0_43 = arith.constant 0 : index
    %42 = vector.load %arg1[%c0_42, %c9, %c0_43] : memref<1x20x256xbf16, #tpu.memory_space<vmem>>, vector<1x8x256xbf16>
    %43 = vector.shape_cast %42 : vector<1x8x256xbf16> to vector<8x256xbf16>
    %c7 = arith.constant 7 : index
    %c0_44 = arith.constant 0 : index
    %c0_45 = arith.constant 0 : index
    %44 = vector.load %arg2[%c7, %c0_44, %c0_45] : memref<9x256x256xbf16, #tpu.memory_space<vmem>>, vector<1x256x256xbf16>
    %45 = vector.shape_cast %44 : vector<1x256x256xbf16> to vector<256x256xbf16>
    %cst_46 = arith.constant dense<0.000000e+00> : vector<8x256xf32>
    %46 = tpu.matmul %43, %45, %cst_46 {dimension_numbers = #tpu.dot_dimension_numbers<[1], [0], [0], [1], [0, 0, 1, 1], [], []>} : vector<8x256xbf16>, vector<256x256xbf16>, vector<8x256xf32> -> vector<8x256xf32>
    %47 = arith.addf %41, %46 : vector<8x256xf32>
    %c0_47 = arith.constant 0 : index
    %c10 = arith.constant 10 : index
    %c0_48 = arith.constant 0 : index
    %48 = vector.load %arg1[%c0_47, %c10, %c0_48] : memref<1x20x256xbf16, #tpu.memory_space<vmem>>, vector<1x8x256xbf16>
    %49 = vector.shape_cast %48 : vector<1x8x256xbf16> to vector<8x256xbf16>
    %c8_49 = arith.constant 8 : index
    %c0_50 = arith.constant 0 : index
    %c0_51 = arith.constant 0 : index
    %50 = vector.load %arg2[%c8_49, %c0_50, %c0_51] : memref<9x256x256xbf16, #tpu.memory_space<vmem>>, vector<1x256x256xbf16>
    %51 = vector.shape_cast %50 : vector<1x256x256xbf16> to vector<256x256xbf16>
    %cst_52 = arith.constant dense<0.000000e+00> : vector<8x256xf32>
    %52 = tpu.matmul %49, %51, %cst_52 {dimension_numbers = #tpu.dot_dimension_numbers<[1], [0], [0], [1], [0, 0, 1, 1], [], []>} : vector<8x256xbf16>, vector<256x256xbf16>, vector<8x256xf32> -> vector<8x256xf32>
    %53 = arith.addf %47, %52 : vector<8x256xf32>
    %54 = vector.broadcast %0 : vector<1x256xf32> to vector<8x256xf32>
    %55 = arith.addf %53, %54 : vector<8x256xf32>
    %cst_53 = arith.constant 0.000000e+00 : f32
    %56 = vector.broadcast %cst_53 : f32 to vector<8x256xf32>
    %57 = arith.maximumf %55, %56 : vector<8x256xf32>
    %58 = arith.truncf %57 : vector<8x256xf32> to vector<8x256xbf16>
    %c0_54 = arith.constant 0 : index
    %c0_55 = arith.constant 0 : index
    %c0_56 = arith.constant 0 : index
    %59 = vector.load %arg4[%c0_54, %c0_55, %c0_56] : memref<1x8x256xbf16, #tpu.memory_space<vmem>>, vector<1x8x256xbf16>
    %60 = vector.shape_cast %59 : vector<1x8x256xbf16> to vector<8x256xbf16>
    %61 = vector.shape_cast %58 : vector<8x256xbf16> to vector<1x8x256xbf16>
    tpu.vector_store %arg4[%c0_54, %c0_55, %c0_56], %61 {strides = array<i32>} : memref<1x8x256xbf16, #tpu.memory_space<vmem>>, vector<1x8x256xbf16>,
    return
  }
  func.func @transform_0(%arg0: i32) -> (i32, i32, i32) {
    %c0_i32 = arith.constant 0 : i32
    %c0_i32_0 = arith.constant 0 : i32
    %c0_i32_1 = arith.constant 0 : i32
    return %arg0, %c0_i32, %c0_i32_0 : i32, i32, i32
  }
  func.func @transform_1(%arg0: i32) -> (i32, i32, i32) {
    %c0_i32 = arith.constant 0 : i32
    %c0_i32_0 = arith.constant 0 : i32
    %c0_i32_1 = arith.constant 0 : i32
    %c0_i32_2 = arith.constant 0 : i32
    return %c0_i32, %c0_i32_0, %c0_i32_1 : i32, i32, i32
  }
  func.func @transform_2(%arg0: i32) -> (i32, i32) {
    %c0_i32 = arith.constant 0 : i32
    %c0_i32_0 = arith.constant 0 : i32
    %c0_i32_1 = arith.constant 0 : i32
    return %c0_i32, %c0_i32_0 : i32, i32
  }
  func.func @transform_3(%arg0: i32) -> (i32, i32, i32) {
    %c0_i32 = arith.constant 0 : i32
    %c0_i32_0 = arith.constant 0 : i32
    %c0_i32_1 = arith.constant 0 : i32
    return %arg0, %c0_i32, %c0_i32_0 : i32, i32, i32
  }
}

</mosaic_0001>

<bundles_post_ra>
// kernel: resnet34_ssd_forward.29
= control target key start
LH: loop header
LB: loop body
LE: loop exit
PB: predicated region body
PF: predicated region fallthrough
CT: control target
= control target key end

     0   :  { %s836_s1 = inlined_call_operand.vmem [shape: bf16[256,128], index: 1, kind: input, shape index: {}]   ;;  %s837_s0 = inlined_call_operand.vmem [shape: bf16[128,256], index: 0, kind: input, shape index: {}]   ;;  %s838_s2 = inlined_call_operand.vmem [shape: f32[1,128], index: 2, kind: input, shape index: {}]   ;;  %s839_s3 = inlined_call_operand.vmem [shape: bf16[128,128], index: 3, kind: output, shape index: {}]  }
   0x1   :  { %v635_v0 = vld [vmem:[%s836_s1 + $0x40] sm:$0xff]   ;;  %v637_v2 = vld [vmem:[%s836_s1 + $0x48] sm:$0xff]   ;;  %v639_v4 = vld [vmem:[%s836_s1 + $0x50] sm:$0xff]  }
   0x2   :  { %v636_v1 = vld [vmem:[%s836_s1] sm:$0xff]   ;;  %555 = vmatprep.subr.bf16.mxu0 %v635_v0  ;;  %619 = vmatprep.subr.bf16.mxu1 %v635_v0  ;;  %v638_v3 = vld [vmem:[%s836_s1 + $0x8] sm:$0xff]   ;;  %v640_v5 = vld [vmem:[%s836_s1 + $0x10] sm:$0xff]  }
   0x3   :  { %556 = vmatpush3.bf16.msra.mxu0 %v636_v1  ;;  %627 = vmatpush3.bf16.msra.mxu1 %v636_v1  ;;  %v641_v6 = vld [vmem:[%s836_s1 + $0x58] sm:$0xff]   ;;  %v643_v8 = vld [vmem:[%s836_s1 + $0x60] sm:$0xff]   ;;  %v645_v10 = vld [vmem:[%s836_s1 + $0x68] sm:$0xff]  }
   0x4   :  { %557 = vmatprep.subr.bf16.mxu0 %v637_v2  ;;  %620 = vmatprep.subr.bf16.mxu1 %v637_v2  ;;  %v642_v7 = vld [vmem:[%s836_s1 + $0x18] sm:$0xff]   ;;  %v644_v9 = vld [vmem:[%s836_s1 + $0x20] sm:$0xff]   ;;  %v646_v13 = vld [vmem:[%s836_s1 + $0x28] sm:$0xff]  }
   0x5   :  { %v653_v11 = vld [vmem:[%s837_s0 + $0x4] ss:$8 sps:$4 sm:$0xff]   ;;  %v647_v14 = vld [vmem:[%s836_s1 + $0x70] sm:$0xff]   ;;  %v649_v16 = vld [vmem:[%s836_s1 + $0x78] sm:$0xff]  }
   0x6   :  { %v656_v12 = vld [vmem:[%s837_s0 + $0x44] ss:$8 sps:$4 sm:$0xff]   ;;  %278 = vmatprep.mubr.bf16.mxu0 %v653_v11  ;;  %v648_v15 = vld [vmem:[%s836_s1 + $0x30] sm:$0xff]   ;;  %v650_v17 = vld [vmem:[%s836_s1 + $0x38] sm:$0xff]  }
   0x7   :  { %558 = vmatpush3.bf16.msra.mxu0 %v638_v3  ;;  %628 = vmatpush3.bf16.msra.mxu1 %v638_v3  ;;  %v651_v18 = vld [vmem:[%s837_s0] ss:$8 sps:$4 sm:$0xff]   ;;  %v657_v20 = vld [vmem:[%s837_s0 + $0x14] ss:$8 sps:$4 sm:$0xff]   ;;  %v661_v22 = vld [vmem:[%s837_s0 + $0x10] ss:$8 sps:$4 sm:$0xff]  }
   0x8   :  { %559 = vmatprep.subr.bf16.mxu0 %v639_v4  ;;  %621 = vmatprep.subr.bf16.mxu1 %v639_v4  ;;  %v654_v19 = vld [vmem:[%s837_s0 + $0x40] ss:$8 sps:$4 sm:$0xff]   ;;  %v659_v21 = vld [vmem:[%s837_s0 + $0x54] ss:$8 sps:$4 sm:$0xff]   ;;  %v662_v23 = vld [vmem:[%s837_s0 + $0x50] ss:$8 sps:$4 sm:$0xff]  }
   0x9   :  { %310 = vmatprep.mubr.bf16.mxu1 %v656_v12  ;;  %v663_v24 = vld [vmem:[%s837_s0 + $0x24] ss:$8 sps:$4 sm:$0xff]   ;;  %v667_v26 = vld [vmem:[%s837_s0 + $0x20] ss:$8 sps:$4 sm:$0xff]   ;;  %v669_v28 = vld [vmem:[%s837_s0 + $0x34] ss:$8 sps:$4 sm:$0xff]  }
   0xa   :  { %v665_v25 = vld [vmem:[%s837_s0 + $0x64] ss:$8 sps:$4 sm:$0xff]   ;;  %v668_v27 = vld [vmem:[%s837_s0 + $0x60] ss:$8 sps:$4 sm:$0xff]   ;;  %v671_v29 = vld [vmem:[%s837_s0 + $0x74] ss:$8 sps:$4 sm:$0xff]  }
   0xb   :  { %560 = vmatpush3.bf16.msra.mxu0 %v640_v5  ;;  %629 = vmatpush3.bf16.msra.mxu1 %v640_v5  ;;  %v673_v30 = vld [vmem:[%s837_s0 + $0x30] ss:$8 sps:$4 sm:$0xff]   ;;  %v794_v34 = vld [vmem:[%s838_s2] ss:$0 sm:$0xff] }
   0xc   :  { %561 = vmatprep.subr.bf16.mxu0 %v641_v6  ;;  %622 = vmatprep.subr.bf16.mxu1 %v641_v6  ;;  %v674_v31 = vld [vmem:[%s837_s0 + $0x70] ss:$8 sps:$4 sm:$0xff]  }
   0xf   :  { %562 = vmatpush3.bf16.msra.mxu0 %v642_v7  ;;  %630 = vmatpush3.bf16.msra.mxu1 %v642_v7 }
  0x10   :  { %563 = vmatprep.subr.bf16.mxu0 %v643_v8  ;;  %623 = vmatprep.subr.bf16.mxu1 %v643_v8 }
  0x13   :  { %564 = vmatpush3.bf16.msra.mxu0 %v644_v9  ;;  %631 = vmatpush3.bf16.msra.mxu1 %v644_v9 }
  0x14   :  { %565 = vmatprep.subr.bf16.mxu0 %v645_v10  ;;  %624 = vmatprep.subr.bf16.mxu1 %v645_v10 }
  0x17   :  { %566 = vmatpush3.bf16.msra.mxu0 %v646_v13  ;;  %632 = vmatpush3.bf16.msra.mxu1 %v646_v13 }
  0x18   :  { %567 = vmatprep.subr.bf16.mxu0 %v647_v14  ;;  %625 = vmatprep.subr.bf16.mxu1 %v647_v14 }
  0x1b   :  { %568 = vmatpush3.bf16.msra.mxu0 %v648_v15  ;;  %633 = vmatpush3.bf16.msra.mxu1 %v648_v15 }
  0x1c   :  { %569 = vmatprep.subr.bf16.mxu0 %v649_v16  ;;  %626 = vmatprep.subr.bf16.mxu1 %v649_v16 }
  0x1f   :  { %570 = vmatpush3.bf16.msra.mxu0 %v650_v17  ;;  %634 = vmatpush3.bf16.msra.mxu1 %v650_v17 }
  0x22   :  { %279 = vmatmul.mubr.bf16.vlgmr.msra.gmra.mrb[0].mxu0 %v651_v18  ;;  %311 = vmatmul.mubr.bf16.vlgmr.msra.gmra.mrb[0].mxu1 %v654_v19 }
  0x23   :  { %286 = vmatprep.mubr.bf16.mxu0 %v657_v20  ;;  %318 = vmatprep.mubr.bf16.mxu1 %v659_v21 }
  0x2a   :  { %287 = vmatmul.mubr.bf16.gmra.mrb[4].mxu0 %v661_v22  ;;  %319 = vmatmul.mubr.bf16.gmra.mrb[4].mxu1 %v662_v23 }
  0x2b   :  { %294 = vmatprep.mubr.bf16.mxu0 %v663_v24  ;;  %326 = vmatprep.mubr.bf16.mxu1 %v665_v25 }
  0x32   :  { %295 = vmatmul.mubr.bf16.gmra.mrb[8].mxu0 %v667_v26  ;;  %327 = vmatmul.mubr.bf16.gmra.mrb[8].mxu1 %v668_v27 }
  0x33   :  { %302 = vmatprep.mubr.bf16.mxu0 %v669_v28  ;;  %334 = vmatprep.mubr.bf16.mxu1 %v671_v29 }
  0x3a   :  { %303 = vmatmul.mubr.bf16.gmra.mrb[12].mxu0 %v673_v30  ;;  %335 = vmatmul.mubr.bf16.gmra.mrb[12].mxu1 %v674_v31 }
  0xf5   :  { %v571_v32 = vpop.f32.mrb[0].mxu0  ;;  %v595_v33 = vpop.f32.mrb[0].mxu1 }
  0xf6   :  { %v572_v35 = vpop.f32.mrb[1].mxu0  ;;  %v596_v36 = vpop.f32.mrb[1].mxu1 }
  0xf7   :  { %v573_v37 = vadd.f32 %v572_v35, %v571_v32  ;;  %v597_v38 = vadd.f32 %v596_v36, %v595_v33  ;;  %v574_v39 = vpop.f32.mrb[2].mxu0  ;;  %v598_v40 = vpop.f32.mrb[2].mxu1 }
  0xf8   :  { %v575_v41 = vpop.f32.mrb[3].mxu0  ;;  %v599_v42 = vpop.f32.mrb[3].mxu1 }
  0xf9   :  { %v281_v43 = vadd.f32 %v573_v37, %v794_v34  ;;  %v313_v44 = vadd.f32 %v597_v38, %v794_v34  ;;  %v576_v45 = vadd.f32 %v575_v41, %v574_v39  ;;  %v600_v46 = vadd.f32 %v599_v42, %v598_v40 }
  0xfb   :  { %v284_v47 = vadd.f32 %v576_v45, %v794_v34  ;;  %v316_v48 = vadd.f32 %v600_v46, %v794_v34  ;;  %v343_v49 = vmax.f32 %v281_v43, 0.0  ;;  %v351_v50 = vmax.f32 %v313_v44, 0.0 }
  0xfd   :  { %v344_v51 = vmax.f32 %v284_v47, 0.0  ;;  %v352_v52 = vmax.f32 %v316_v48, 0.0  ;;  %v577_v53 = vpop.f32.mrb[4].mxu0  ;;  %v601_v54 = vpop.f32.mrb[4].mxu1 }
  0xfe   :  { %v578_v55 = vpop.f32.mrb[5].mxu0  ;;  %v602_v56 = vpop.f32.mrb[5].mxu1 }
  0xff   :  { %v511_v57 = vpack.c.bf16 %v344_v51, %v343_v49  ;;  %v531_v58 = vpack.c.bf16 %v352_v52, %v351_v50  ;;  %v579_v59 = vadd.f32 %v578_v55, %v577_v53  ;;  %v603_v60 = vadd.f32 %v602_v56, %v601_v54  ;;  %v580_v61 = vpop.f32.mrb[6].mxu0  ;;  %v604_v62 = vpop.f32.mrb[6].mxu1 }
 0x100   :  { %v581_v63 = vpop.f32.mrb[7].mxu0  ;;  %v605_v0 = vpop.f32.mrb[7].mxu1 }
 0x101   :  { %512 = vst [vmem:[%s839_s3] sm:$0xff] %v511_v57   ;;  %551 = vst [vmem:[%s839_s3 + $0x20] sm:$0xff] %v531_v58   ;;  %v289_v1 = vadd.f32 %v579_v59, %v794_v34  ;;  %v321_v2 = vadd.f32 %v603_v60, %v794_v34  ;;  %v582_v3 = vadd.f32 %v581_v63, %v580_v61 }
 0x102   :  { %v606_v4 = vadd.f32 %v605_v0, %v604_v62 }
 0x103   :  { %v292_v5 = vadd.f32 %v582_v3, %v794_v34  ;;  %v345_v7 = vmax.f32 %v289_v1, 0.0  ;;  %v353_v8 = vmax.f32 %v321_v2, 0.0 }
 0x104   :  { %v324_v6 = vadd.f32 %v606_v4, %v794_v34 }
 0x105   :  { %v346_v9 = vmax.f32 %v292_v5, 0.0  ;;  %v583_v11 = vpop.f32.mrb[8].mxu0  ;;  %v607_v12 = vpop.f32.mrb[8].mxu1 }
 0x106   :  { %v354_v10 = vmax.f32 %v324_v6, 0.0  ;;  %v584_v13 = vpop.f32.mrb[9].mxu0  ;;  %v608_v14 = vpop.f32.mrb[9].mxu1 }
 0x107   :  { %v516_v15 = vpack.c.bf16 %v346_v9, %v345_v7  ;;  %v585_v17 = vadd.f32 %v584_v13, %v583_v11  ;;  %v609_v18 = vadd.f32 %v608_v14, %v607_v12  ;;  %v586_v19 = vpop.f32.mrb[10].mxu0  ;;  %v610_v20 = vpop.f32.mrb[10].mxu1 }
 0x108   :  { %v536_v16 = vpack.c.bf16 %v354_v10, %v353_v8  ;;  %v587_v21 = vpop.f32.mrb[11].mxu0  ;;  %v611_v22 = vpop.f32.mrb[11].mxu1 }
 0x109   :  { %548 = vst [vmem:[%s839_s3 + $0x8] sm:$0xff] %v516_v15   ;;  %v297_v23 = vadd.f32 %v585_v17, %v794_v34  ;;  %v329_v24 = vadd.f32 %v609_v18, %v794_v34  ;;  %v588_v25 = vadd.f32 %v587_v21, %v586_v19  ;;  %v612_v26 = vadd.f32 %v611_v22, %v610_v20 }
 0x10a   :  { %552 = vst [vmem:[%s839_s3 + $0x28] sm:$0xff] %v536_v16  }
 0x10b   :  { %v300_v27 = vadd.f32 %v588_v25, %v794_v34  ;;  %v332_v28 = vadd.f32 %v612_v26, %v794_v34  ;;  %v347_v29 = vmax.f32 %v297_v23, 0.0  ;;  %v355_v30 = vmax.f32 %v329_v24, 0.0 }
 0x10d   :  { %v348_v31 = vmax.f32 %v300_v27, 0.0  ;;  %v356_v32 = vmax.f32 %v332_v28, 0.0  ;;  %v589_v33 = vpop.f32.mrb[12].mxu0  ;;  %v613_v35 = vpop.f32.mrb[12].mxu1 }
 0x10e   :  { %v590_v36 = vpop.f32.mrb[13].mxu0  ;;  %v614_v37 = vpop.f32.mrb[13].mxu1 }
 0x10f   :  { %v521_v38 = vpack.c.bf16 %v348_v31, %v347_v29  ;;  %v541_v39 = vpack.c.bf16 %v356_v32, %v355_v30  ;;  %v591_v40 = vadd.f32 %v590_v36, %v589_v33  ;;  %v615_v41 = vadd.f32 %v614_v37, %v613_v35  ;;  %v592_v42 = vpop.f32.mrb[14].mxu0  ;;  %v616_v43 = vpop.f32.mrb[14].mxu1 }
 0x110   :  { %v593_v44 = vpop.f32.mrb[15].mxu0  ;;  %v617_v45 = vpop.f32.mrb[15].mxu1 }
 0x111   :  { %549 = vst [vmem:[%s839_s3 + $0x10] sm:$0xff] %v521_v38   ;;  %553 = vst [vmem:[%s839_s3 + $0x30] sm:$0xff] %v541_v39   ;;  %v305_v46 = vadd.f32 %v591_v40, %v794_v34  ;;  %v337_v47 = vadd.f32 %v615_v41, %v794_v34  ;;  %v594_v48 = vadd.f32 %v593_v44, %v592_v42 }
 0x112   :  { %v618_v49 = vadd.f32 %v617_v45, %v616_v43 }
 0x113   :  { %v308_v50 = vadd.f32 %v594_v48, %v794_v34  ;;  %v349_v52 = vmax.f32 %v305_v46, 0.0  ;;  %v357_v53 = vmax.f32 %v337_v47, 0.0 }
 0x114   :  { %v340_v51 = vadd.f32 %v618_v49, %v794_v34 }
 0x115   :  { %v350_v54 = vmax.f32 %v308_v50, 0.0 }
 0x116   :  { %v358_v55 = vmax.f32 %v340_v51, 0.0 }
 0x117   :  { %v526_v56 = vpack.c.bf16 %v350_v54, %v349_v52 }
 0x118   :  { %v546_v57 = vpack.c.bf16 %v358_v55, %v357_v53 }
 0x119   :  { %550 = vst [vmem:[%s839_s3 + $0x18] sm:$0xff] %v526_v56  }
 0x11a   :  { %554 = vst [vmem:[%s839_s3 + $0x38] sm:$0xff] %v546_v57  }

// kernel: resnet34_ssd_forward.30
= control target key start
LH: loop header
LB: loop body
LE: loop exit
PB: predicated region body
PF: predicated region fallthrough
CT: control target
= control target key end

     0   :  { %s1582_s12 = smov 0   ;;  %s1785_s0 = inlined_call_operand.vmem [shape: bf16[2,42,64], index: 0, kind: input, shape index: {}]   ;;  %s1786_s1 = inlined_call_operand.vmem [shape: bf16[9,64,128], index: 1, kind: input, shape index: {}]   ;;  %s1787_s2 = inlined_call_operand.vmem [shape: f32[1,128], index: 2, kind: input, shape index: {}]   ;;  %s1788_s3 = inlined_call_operand.vmem [shape: bf16[2,24,128], index: 3, kind: output, shape index: {}]  }
   0x1 LB: > { %s1181_s13 = sadd.s32 4294967295, %s1560_s12   ;;  %p1185_p0 = scmp.ge.s32.totalorder %s1560_s12, 1  ;;  %s1560_s12 = sphi %s1582_s12, %s13_s12  }
   0x2   : > { %p137_p1 = scmp.lt.s32.totalorder %s1560_s12, 3 }
   0x4   : > { %p138_p2 = pnand %p1185_p0, %p137_p1 }
   0x5   : > { %v1505_v0 = vld [vmem:[%s1786_s1 + $0x20] sm:$0xff] (!%p138_p2)   ;;  %p161_p3 = scmp.lt.s32.totalorder (!%p138_p2), %s1181_s13, 1  ;;  %v1507_v2 = vld [vmem:[%s1786_s1 + $0x28] sm:$0xff] (!%p138_p2)   ;;  %v1509_v4 = vld [vmem:[%s1786_s1 + $0x30] sm:$0xff] (!%p138_p2)   ;;  %vm244_vm0 = vcmask (!%p138_p2), 523264   ;;  %vm390_vm2 = vcmask (!%p138_p2), 1046528  }
   0x6   : > { %141 = sbr.rel (%p138_p2) target bundleno = 316 (0x13c), region = 32  ;;  %v1506_v1 = vld [vmem:[%s1786_s1] sm:$0xff] (!%p138_p2)   ;;  %1387 = vmatprep.subr.bf16.mxu0 (!%p138_p2), %v1505_v0  ;;  %v1508_v3 = vld [vmem:[%s1786_s1 + $0x8] sm:$0xff] (!%p138_p2)   ;;  %v1510_v5 = vld [vmem:[%s1786_s1 + $0x10] sm:$0xff] (!%p138_p2)   ;;  %vm204_vm1 = vsmask.f32 (!%p138_p2), 7424 }
   0x7   : > { %1399 = vmatprep.subr.bf16.mxu1 (!%p138_p2), %v1506_v1  ;;  %1388 = vmatpush3.bf16.msra.mxu0 (!%p138_p2), %v1505_v0  ;;  %v1511_v6 = vld [vmem:[%s1786_s1 + $0x38] sm:$0xff] (!%p138_p2)   ;;  %v1516_v16 = vld [vmem:[%s1786_s1 + $0x40] sm:$0xff] (!%p138_p2)   ;;  %v1518_v25 = vld [vmem:[%s1786_s1 + $0x48] sm:$0xff] (!%p138_p2)   ;;  %vm492_vm3 = vcmask (!%p138_p2), 1044480   ;;  %vm590_vm4 = vsmask.f32 (!%p138_p2), 4352 }
   0x8   : > { %1400 = vmatpush3.bf16.msra.mxu1 (!%p138_p2), %v1506_v1  ;;  %1389 = vmatprep.subr.bf16.mxu0 (!%p138_p2), %v1507_v2  ;;  %v1512_v10 = vld [vmem:[%s1786_s1 + $0x18] sm:$0xff] (!%p138_p2)   ;;  %v1517_v20 = vld [vmem:[%s1786_s1 + $0x60] sm:$0xff] (!%p138_p2)   ;;  %v1519_v27 = vld [vmem:[%s1786_s1 + $0x68] sm:$0xff] (!%p138_p2)   ;;  %vm804_vm5 = vcmask (!%p138_p2), 1045504   ;;  %vm902_vm6 = vsmask.f32 (!%p138_p2), 5376 }
   0x9   : > { %1401 = vmatprep.subr.bf16.mxu1 (!%p138_p2), %v1508_v3  ;;  %v1520_v33 = vld [vmem:[%s1786_s1 + $0x50] sm:$0xff] (!%p138_p2)   ;;  %v1522_v42 = vld [vmem:[%s1786_s1 + $0x58] sm:$0xff] (!%p138_p2)   ;;  %v1525_v46 = vld [vmem:[%s1786_s1 + $0x80] sm:$0xff] (!%p138_p2)  }
   0xa   : > { %v1521_v36 = vld [vmem:[%s1786_s1 + $0x70] sm:$0xff] (!%p138_p2)   ;;  %v1523_v45 = vld [vmem:[%s1786_s1 + $0x78] sm:$0xff] (!%p138_p2)   ;;  %v1528_v51 = vld [vmem:[%s1786_s1 + $0xa0] sm:$0xff] (!%p138_p2)  }
   0xb   : > { %1390 = vmatpush3.bf16.msra.mxu0 (!%p138_p2), %v1507_v2  ;;  %v1529_v54 = vld [vmem:[%s1786_s1 + $0x88] sm:$0xff] (!%p138_p2)   ;;  %v1531_v61 = vld [vmem:[%s1786_s1 + $0x90] sm:$0xff] (!%p138_p2)  }
   0xc   : > { %1402 = vmatpush3.bf16.msra.mxu1 (!%p138_p2), %v1508_v3  ;;  %1391 = vmatprep.subr.bf16.mxu0 (!%p138_p2), %v1509_v4  ;;  %v1530_v55 = vld [vmem:[%s1786_s1 + $0xa8] sm:$0xff] (!%p138_p2)   ;;  %v1532_v63 = vld [vmem:[%s1786_s1 + $0xb0] sm:$0xff] (!%p138_p2)  }
   0xd   : > { %s1790_s13 = smov (!%p161_p3, %s1181_s13), 1  ;;  %1403 = vmatprep.subr.bf16.mxu1 %v1510_v5 }
   0xe   : > { %s1495_s24 = smul.u32 24, %s1790_s13 }
   0xf   : > { %1392 = vmatpush3.bf16.msra.mxu0 %v1509_v4  ;;  %s1496_s18 = smul.u32 12, %s1790_s13 }
  0x10   : > { %s1614_s29 = scalar_lea.vmem %s1785_s0, %s1495_s24  ;;  %1404 = vmatpush3.bf16.msra.mxu1 %v1510_v5  ;;  %1393 = vmatprep.subr.bf16.mxu0 %v1511_v6 }
  0x11   : > { %v173_v7 = vld [vmem:[%s1614_s29] sm:$0xf]  ;;  %v1621_v8 = vld [vmem:[%s1614_s29 + $0x4] sm:$0xf]  ;;  %v1624_v9 = vld [vmem:[%s1614_s29 + $0x8] sm:$0xf]  ;;  %1405 = vmatprep.subr.bf16.mxu1 %v1512_v10  ;;  %s170_s21 = scalar_lea.vmem %s1788_s3, %s1496_s18 }
  0x12   : > { %v184_v11 = vld [vmem:[%s1614_s29 + $0xc] sm:$0x1]  ;;  %v1196_v12 = vcombine.low %v173_v7, %v1621_v8  ;;  %v1204_v23 = vcombine.low %v1624_v9, %v1624_v9  ;;  %v377_v28 = vld [vmem:[%s1614_s29] sm:$0xe]  ;;  %v1265_v60 = vcombine.low %v1621_v8, %v1624_v9  ;;  %v781_v62 = vld [vmem:[%s1614_s29 + $0x4] sm:$0xc] }
  0x13   : > { %v1632_v13 = vcombine.low %v1624_v9, %v184_v11  ;;  %1394 = vmatpush3.bf16.msra.mxu0 %v1511_v6  ;;  %v1219_v29 = vcombine.low %v377_v28, %v1621_v8  ;;  %v475_v31 = vld [vmem:[%s1614_s29] sm:$0x8]  ;;  %v476_v32 = vld [vmem:[%s1614_s29 + $0xc] sm:$0x7]  ;;  %v1707_v1 = vld [vmem:[%s1614_s29 + $0x8] sm:$0xf] }
  0x14   : > { %v206_v14 = vshrl.u32 %v1196_v12, 16  ;;  %v208_v15 = vshll.u32 %v1196_v12, 16  ;;  %1407 = vmatprep.mubr.msk.bf16.mxu1 %vm244_vm0, %v1196_v12  ;;  %1406 = vmatpush3.bf16.msra.mxu1 %v1512_v10  ;;  %v1234_v34 = vcombine.low %v475_v31, %v1621_v8  ;;  %v1235_v35 = vcombine.low %v1624_v9, %v476_v32  ;;  %v1682_v47 = vld [vmem:[%s1614_s29 + $0xc] sm:$0xf]  ;;  %v889_v4 = vld [vmem:[%s1614_s29 + $0x10] sm:$0x7] }
  0x15   : > { %v213_v17 = vshll.u32 %v1632_v13, 16  ;;  %v217_v18 = vshrl.u32 %v1632_v13, 16  ;;  %1411 = vmatprep.subr.bf16.mxu0 %v1516_v16  ;;  %1423 = vmatprep.subr.bf16.mxu1 %v1517_v20  ;;  %v392_v30 = vrot.slane %v1632_v13, 1  ;;  %v391_v37 = vrot.slane %v1219_v29, 1  ;;  %v783_v2 = vld [vmem:[%s1614_s29 + $0xc] sm:$0xf] }
  0x16   : > { %v210_v19 = vrot.slane %v208_v15, 1  ;;  %v493_v38 = vrot.slane %v1234_v34, 3  ;;  %v494_v39 = vrot.slane %v1235_v35, 3  ;;  %v592_v41 = vshrl.u32 %v1234_v34, 16  ;;  %v784_v6 = vld [vmem:[%s1614_s29 + $0x10] sm:$0x3] }
  0x17   : > { %v215_v21 = vrot.slane %v213_v17, 1  ;;  %1408 = vmatmul.mubr.msk.bf16.vlgmr.msra.gmra.mrb[0].mxu1 %vm244_vm0, %v1204_v23  ;;  %v393_v40 = vsel %vm390_vm2, %v391_v37, %v392_v30  ;;  %v595_v44 = vshll.u32 %v1234_v34, 16  ;;  %v1250_v50 = vcombine.low %v1624_v9, %v1682_v47  ;;  %v1533_v11 = vld [vmem:[%s1786_s1 + $0x98] sm:$0xff]   ;;  %v1542_v29 = vld [vmem:[%s1786_s1 + $0xd0] sm:$0xff]   ;;  %v1001_v31 = vld [vmem:[%s1614_s29 + $0x4] sm:$0x8] }
  0x18   : > { %v211_v22 = vor.u32 %v210_v19, %v206_v14  ;;  %1424 = vmatpush3.bf16.msra.mxu1 %v1517_v20  ;;  %v495_v43 = vsel %vm492_vm3, %v493_v38, %v494_v39  ;;  %v594_v48 = vrot.slane %v592_v41, 3  ;;  %v1281_v3 = vcombine.low %v781_v62, %v1707_v1  ;;  %v1534_v12 = vld [vmem:[%s1786_s1 + $0xb8] sm:$0xff]   ;;  %v1539_v19 = vld [vmem:[%s1786_s1 + $0xe0] sm:$0xff]   ;;  %v1550_v38 = vld [vmem:[%s1786_s1 + $0x108] sm:$0xff]  }
  0x19   : > { %v219_v24 = vor.u32 %v217_v18, %v215_v21  ;;  %1425 = vmatprep.subr.bf16.mxu1 %v1519_v27  ;;  %1431 = vmatprep.mubr.msk.bf16.mxu1 %vm244_vm0, %v495_v43  ;;  %v597_v49 = vrot.slane %v595_v44, 4  ;;  %v600_v52 = vshrl.u32 %v1250_v50, 16  ;;  %v603_v53 = vshll.u32 %v1250_v50, 16  ;;  %v1536_v18 = vld [vmem:[%s1786_s1 + $0xc0] sm:$0xff]   ;;  %v1544_v32 = vld [vmem:[%s1786_s1 + $0xd8] sm:$0xff]  }
  0x1a   : > { %v216_v26 = vsel %vm204_vm1, %v211_v22, %v215_v21  ;;  %v1714_v5 = vcombine.low %v783_v2, %v889_v4  ;;  %v904_v7 = vshrl.u32 %v1281_v3, 16  ;;  %v907_v8 = vshll.u32 %v1281_v3, 16  ;;  %v1549_v35 = vld [vmem:[%s1786_s1 + $0x100] sm:$0xff]   ;;  %v1552_v41 = vld [vmem:[%s1786_s1 + $0x118] sm:$0xff]  }
  0x1b   : > { %1395 = vmatprep.mubr.msk.bf16.mxu0 %vm244_vm0, %v216_v26  ;;  %v598_v56 = vor.u32 %v597_v49, %v594_v48  ;;  %v602_v57 = vrot.slane %v600_v52, 3  ;;  %v605_v58 = vrot.slane %v603_v53, 4  ;;  %v1282_v13 = vcombine.low %v783_v2, %v784_v6  ;;  %v1541_v26 = vld [vmem:[%s1786_s1 + $0xe8] sm:$0xff]  }
  0x1c   : > { %1396 = vmatmul.mubr.msk.bf16.vlgmr.msra.gmra.mrb[0].mxu0 %vm244_vm0, %v219_v24  ;;  %1426 = vmatpush3.bf16.msra.mxu1 %v1519_v27  ;;  %v912_v9 = vshrl.u32 %v1714_v5, 16  ;;  %v915_v10 = vshll.u32 %v1714_v5, 16  ;;  %v906_v14 = vrot.slane %v904_v7, 2  ;;  %v909_v15 = vrot.slane %v907_v8, 3 }
  0x1d   : > { %1412 = vmatpush3.bf16.msra.mxu0 %v1516_v16  ;;  %1427 = vmatprep.subr.bf16.mxu1 %v1521_v36  ;;  %v606_v59 = vor.u32 %v605_v58, %v602_v57  ;;  %v1266_v20 = vcombine.low %v1682_v47, %v1682_v47  ;;  %v805_v21 = vrot.slane %v1281_v3, 2  ;;  %v806_v22 = vrot.slane %v1282_v13, 2 }
  0x1e   : > { %1413 = vmatprep.subr.bf16.mxu0 %v1518_v25  ;;  %1419 = vmatprep.mubr.msk.bf16.mxu0 %vm244_vm0, %v393_v40  ;;  %v914_v16 = vrot.slane %v912_v9, 2  ;;  %v917_v17 = vrot.slane %v915_v10, 3  ;;  %v910_v23 = vor.u32 %v909_v15, %v906_v14  ;;  %v1312_v34 = vcombine.low %v1001_v31, %v1707_v1  ;;  %v1551_v40 = vld [vmem:[%s1786_s1 + $0x110] sm:$0xff]   ;;  %v1319_v31 = vld [vmem:[%s1787_s2] ss:$0 sm:$0xff] }
  0x1f   : > { %v607_v0 = vsel %vm590_vm4, %v598_v56, %v606_v59  ;;  %v807_v27 = vsel %vm804_vm5, %v805_v21, %v806_v22  ;;  %v1015_v37 = vrot.slane %v1714_v5, 3 }
  0x20   : > { %1428 = vmatpush3.bf16.msra.mxu1 %v1521_v36  ;;  %v918_v24 = vor.u32 %v917_v17, %v914_v16  ;;  %v1014_v36 = vrot.slane %v1312_v34, 3 }
  0x21   : > { %1414 = vmatpush3.bf16.msra.mxu0 %v1518_v25  ;;  %1429 = vmatprep.subr.bf16.mxu1 %v1523_v45  ;;  %v1540_v25 = vld [vmem:[%s1786_s1 + $0xc8] sm:$0xff]  }
  0x22   : > { %1415 = vmatprep.subr.bf16.mxu0 %v1520_v33  ;;  %v919_v28 = vsel %vm902_vm6, %v910_v23, %v918_v24 }
  0x24   : > { %1430 = vmatpush3.bf16.msra.mxu1 %v1523_v45 }
  0x25   : > { %1416 = vmatpush3.bf16.msra.mxu0 %v1520_v33  ;;  %1447 = vmatprep.subr.bf16.mxu1 %v1528_v51  ;;  %v1545_v33 = vld [vmem:[%s1786_s1 + $0xf8] sm:$0xff]  }
  0x26   : > { %1417 = vmatprep.subr.bf16.mxu0 %v1522_v42 }
  0x27   : > { %1432 = vmatmul.mubr.msk.bf16.vlgmr.msra.gmra.mrb[4].mxu1 %vm244_vm0, %v494_v39  ;;  %v1016_v39 = vsel %vm492_vm3, %v1014_v36, %v1015_v37 }
  0x28   : > { %1448 = vmatpush3.bf16.msra.mxu1 %v1528_v51  ;;  %1455 = vmatprep.mubr.msk.bf16.mxu1 %vm244_vm0, %v1265_v60 }
  0x29   : > { %1418 = vmatpush3.bf16.msra.mxu0 %v1522_v42  ;;  %1449 = vmatprep.subr.bf16.mxu1 %v1530_v55 }
  0x2a   : > { %1435 = vmatprep.subr.bf16.mxu0 %v1525_v46 }
  0x2c   : > { %1420 = vmatmul.mubr.msk.bf16.vlgmr.msra.gmra.mrb[4].mxu0 %vm244_vm0, %v392_v30  ;;  %1450 = vmatpush3.bf16.msra.mxu1 %v1530_v55  ;;  %v1543_v30 = vld [vmem:[%s1786_s1 + $0xf0] sm:$0xff]  }
  0x2d   : > { %1436 = vmatpush3.bf16.msra.mxu0 %v1525_v46  ;;  %1443 = vmatprep.mubr.msk.bf16.mxu0 %vm244_vm0, %v607_v0 }
  0x2e   : > { %1437 = vmatprep.subr.bf16.mxu0 %v1529_v54  ;;  %1451 = vmatprep.subr.bf16.mxu1 %v1532_v63 }
  0x30   : > { %1452 = vmatpush3.bf16.msra.mxu1 %v1532_v63 }
  0x31   : > { %1438 = vmatpush3.bf16.msra.mxu0 %v1529_v54  ;;  %1453 = vmatprep.subr.bf16.mxu1 %v1534_v12 }
  0x32   : > { %1439 = vmatprep.subr.bf16.mxu0 %v1531_v61 }
  0x34   : > { %1454 = vmatpush3.bf16.msra.mxu1 %v1534_v12 }
  0x35   : > { %1440 = vmatpush3.bf16.msra.mxu0 %v1531_v61  ;;  %1471 = vmatprep.subr.bf16.mxu1 %v1539_v19 }
  0x36   : > { %1441 = vmatprep.subr.bf16.mxu0 %v1533_v11 }
  0x37   : > { %1456 = vmatmul.mubr.msk.bf16.vlgmr.msra.gmra.mrb[8].mxu1 %vm244_vm0, %v1266_v20 }
  0x38   : > { %1472 = vmatpush3.bf16.msra.mxu1 %v1539_v19  ;;  %1479 = vmatprep.mubr.msk.bf16.mxu1 %vm244_vm0, %v919_v28 }
  0x39   : > { %1442 = vmatpush3.bf16.msra.mxu0 %v1533_v11  ;;  %1473 = vmatprep.subr.bf16.mxu1 %v1541_v26 }
  0x3a   : > { %1459 = vmatprep.subr.bf16.mxu0 %v1536_v18 }
  0x3c   : > { %1444 = vmatmul.mubr.msk.bf16.vlgmr.msra.gmra.mrb[8].mxu0 %vm244_vm0, %v606_v59  ;;  %1474 = vmatpush3.bf16.msra.mxu1 %v1541_v26 }
  0x3d   : > { %1460 = vmatpush3.bf16.msra.mxu0 %v1536_v18  ;;  %1467 = vmatprep.mubr.msk.bf16.mxu0 %vm244_vm0, %v807_v27 }
  0x3e   : > { %1461 = vmatprep.subr.bf16.mxu0 %v1540_v25  ;;  %1475 = vmatprep.subr.bf16.mxu1 %v1543_v30 }
  0x40   : > { %1476 = vmatpush3.bf16.msra.mxu1 %v1543_v30 }
  0x41   : > { %1462 = vmatpush3.bf16.msra.mxu0 %v1540_v25  ;;  %1477 = vmatprep.subr.bf16.mxu1 %v1545_v33 }
  0x42   : > { %1463 = vmatprep.subr.bf16.mxu0 %v1542_v29 }
  0x44   : > { %1478 = vmatpush3.bf16.msra.mxu1 %v1545_v33 }
  0x45   : > { %1464 = vmatpush3.bf16.msra.mxu0 %v1542_v29 }
  0x46   : > { %1465 = vmatprep.subr.bf16.mxu0 %v1544_v32 }
  0x47   : > { %1480 = vmatmul.mubr.msk.bf16.vlgmr.msra.gmra.mrb[12].mxu1 %vm244_vm0, %v918_v24 }
  0x49   : > { %1466 = vmatpush3.bf16.msra.mxu0 %v1544_v32 }
  0x4a   : > { %1483 = vmatprep.subr.bf16.mxu0 %v1549_v35 }
  0x4c   : > { %1468 = vmatmul.mubr.msk.bf16.vlgmr.msra.gmra.mrb[12].mxu0 %vm244_vm0, %v806_v22 }
  0x4d   : > { %1484 = vmatpush3.bf16.msra.mxu0 %v1549_v35  ;;  %1491 = vmatprep.mubr.msk.bf16.mxu0 %vm244_vm0, %v1016_v39 }
  0x4e   : > { %1485 = vmatprep.subr.bf16.mxu0 %v1550_v38 }
  0x51   : > { %1486 = vmatpush3.bf16.msra.mxu0 %v1550_v38 }
  0x52   : > { %1487 = vmatprep.subr.bf16.mxu0 %v1551_v40 }
  0x55   : > { %1488 = vmatpush3.bf16.msra.mxu0 %v1551_v40 }
  0x56   : > { %1489 = vmatprep.subr.bf16.mxu0 %v1552_v41 }
  0x59   : > { %1490 = vmatpush3.bf16.msra.mxu0 %v1552_v41 }
  0x5c   : > { %1492 = vmatmul.mubr.msk.bf16.vlgmr.msra.gmra.mrb[16].mxu0 %vm244_vm0, %v1015_v37 }
  0xea   : > { %v1409_v43 = vpop.f32.mrb[0].mxu1 }
  0xeb   : > { %v363_v46 = vpop.f32.mrb[1].mxu1 }
  0xec   : > { %v1410_v49 = vpop.f32.mrb[2].mxu1 }
  0xed   : > { %v366_v51 = vpop.f32.mrb[3].mxu1 }
  0xef   : > { %v1397_v42 = vpop.f32.mrb[0].mxu0 }
  0xf0   : > { %v372_v44 = vadd.f32 %v1409_v43, %v1397_v42  ;;  %v285_v45 = vpop.f32.mrb[1].mxu0 }
  0xf1   : > { %v364_v47 = vadd.f32 %v363_v46, %v285_v45  ;;  %v1398_v48 = vpop.f32.mrb[2].mxu0 }
  0xf2   : > { %v288_v50 = vpop.f32.mrb[3].mxu0 }
  0xf3   : > { %v367_v52 = vadd.f32 %v366_v51, %v288_v50 }
  0xfa   : > { %v1433_v54 = vpop.f32.mrb[4].mxu1 }
  0xfb   : > { %v560_v57 = vpop.f32.mrb[5].mxu1 }
  0xfc   : > { %v1434_v60 = vpop.f32.mrb[6].mxu1 }
  0xfd   : > { %v563_v63 = vpop.f32.mrb[7].mxu1 }
  0xff   : > { %v1421_v53 = vpop.f32.mrb[4].mxu0 }
 0x100   : > { %v474_v55 = vadd.f32 %v1421_v53, %v372_v44  ;;  %v458_v56 = vpop.f32.mrb[5].mxu0 }
 0x101   : > { %v472_v58 = vadd.f32 %v458_v56, %v364_v47  ;;  %v1422_v59 = vpop.f32.mrb[6].mxu0 }
 0x102   : > { %v576_v61 = vadd.f32 %v1433_v54, %v474_v55  ;;  %v461_v62 = vpop.f32.mrb[7].mxu0 }
 0x103   : > { %v473_v0 = vadd.f32 %v461_v62, %v367_v52  ;;  %v574_v1 = vadd.f32 %v560_v57, %v472_v58 }
 0x105   : > { %v575_v2 = vadd.f32 %v563_v63, %v473_v0 }
 0x10a   : > { %v1457_v4 = vpop.f32.mrb[8].mxu1 }
 0x10b   : > { %v764_v7 = vpop.f32.mrb[9].mxu1 }
 0x10c   : > { %v1458_v10 = vpop.f32.mrb[10].mxu1 }
 0x10d   : > { %v767_v13 = vpop.f32.mrb[11].mxu1 }
 0x10f   : > { %v1445_v3 = vpop.f32.mrb[8].mxu0 }
 0x110   : > { %v688_v5 = vadd.f32 %v1445_v3, %v576_v61  ;;  %v672_v6 = vpop.f32.mrb[9].mxu0 }
 0x111   : > { %v686_v8 = vadd.f32 %v672_v6, %v574_v1  ;;  %v1446_v9 = vpop.f32.mrb[10].mxu0 }
 0x112   : > { %v780_v11 = vadd.f32 %v1457_v4, %v688_v5  ;;  %v675_v12 = vpop.f32.mrb[11].mxu0 }
 0x113   : > { %v687_v14 = vadd.f32 %v675_v12, %v575_v2  ;;  %v778_v15 = vadd.f32 %v764_v7, %v686_v8 }
 0x115   : > { %v779_v16 = vadd.f32 %v767_v13, %v687_v14 }
 0x11a   : > { %v1481_v18 = vpop.f32.mrb[12].mxu1 }
 0x11b   : > { %v984_v21 = vpop.f32.mrb[13].mxu1 }
 0x11c   : > { %v1482_v24 = vpop.f32.mrb[14].mxu1 }
 0x11d   : > { %v987_v27 = vpop.f32.mrb[15].mxu1 }
 0x11f   : > { %v1469_v17 = vpop.f32.mrb[12].mxu0 }
 0x120   : > { %v888_v19 = vadd.f32 %v1469_v17, %v780_v11  ;;  %v872_v20 = vpop.f32.mrb[13].mxu0 }
 0x121   : > { %v886_v22 = vadd.f32 %v872_v20, %v778_v15  ;;  %v1470_v23 = vpop.f32.mrb[14].mxu0 }
 0x122   : > { %v1000_v25 = vadd.f32 %v1481_v18, %v888_v19  ;;  %v875_v26 = vpop.f32.mrb[15].mxu0 }
 0x123   : > { %v887_v28 = vadd.f32 %v875_v26, %v779_v16  ;;  %v998_v29 = vadd.f32 %v984_v21, %v886_v22 }
 0x125   : > { %v999_v30 = vadd.f32 %v987_v27, %v887_v28 }
 0x12f   : > { %v1493_v32 = vpop.f32.mrb[16].mxu0 }
 0x130   : > { %v1097_v33 = vadd.f32 %v1493_v32, %v1000_v25  ;;  %v1081_v34 = vpop.f32.mrb[17].mxu0 }
 0x131   : > { %v1095_v35 = vadd.f32 %v1081_v34, %v998_v29  ;;  %v1494_v36 = vpop.f32.mrb[18].mxu0 }
 0x132   : > { %v1106_v37 = vadd.f32 %v1319_v31, %v1097_v33  ;;  %v1084_v38 = vpop.f32.mrb[19].mxu0 }
 0x133   : > { %v1104_v39 = vadd.f32 %v1319_v31, %v1095_v35  ;;  %v1096_v40 = vadd.f32 %v1084_v38, %v999_v30 }
 0x134   : > { %v1109_v41 = vmax.f32 %v1106_v37, 0.0 }
 0x135   : > { %v1105_v42 = vadd.f32 %v1319_v31, %v1096_v40  ;;  %v1107_v44 = vmax.f32 %v1104_v39, 0.0 }
 0x136   : > { %v1327_v43 = vpack.c.bf16 %v1109_v41, %v1109_v41 }
 0x137   : > { %v1108_v45 = vmax.f32 %v1105_v42, 0.0 }
 0x138   : > { %1125 = vst [vmem:[%s170_s21 + $0x8] sm:$0xf] %v1327_v43 }
 0x139   : > { %v1331_v46 = vpack.c.bf16 %v1108_v45, %v1107_v44 }
 0x13b   : > { %1332 = vst [vmem:[%s170_s21] sm:$0xff] %v1331_v46  }
 0x13c PF: > { %s13_s12 = sadd.s32 1, %s1560_s12  }
 0x13d   : > { %p10_p4 = scmp.ge.s32.totalorder %s13_s12, 4  }
 0x13f   :  { %12 = sbr.rel (!%p10_p4) target bundleno = 1 (0x1), region = 70 }

// kernel: resnet34_ssd_forward.31
= control target key start
LH: loop header
LB: loop body
LE: loop exit
PB: predicated region body
PF: predicated region fallthrough
CT: control target
= control target key end

     0   :  { %s1660_s15 = smov 0   ;;  %s1866_s0 = inlined_call_operand.vmem [shape: bf16[2,42,64], index: 0, kind: input, shape index: {}]   ;;  %s1867_s1 = inlined_call_operand.vmem [shape: bf16[9,64,128], index: 1, kind: input, shape index: {}]   ;;  %s1868_s2 = inlined_call_operand.vmem [shape: f32[1,128], index: 2, kind: input, shape index: {}]   ;;  %s1869_s3 = inlined_call_operand.vmem [shape: bf16[2,24,128], index: 3, kind: input, shape index: {}]   ;;  %s1870_s4 = inlined_call_operand.vmem [shape: bf16[2,24,128], index: 4, kind: output, shape index: {}]  }
   0x1 LB: > { %s1249_s16 = sadd.s32 4294967295, %s1633_s15   ;;  %p1253_p0 = scmp.ge.s32.totalorder %s1633_s15, 1  ;;  %s1633_s15 = sphi %s1660_s15, %s14_s15  }
   0x2   : > { %p172_p1 = scmp.lt.s32.totalorder %s1633_s15, 3 }
   0x4   : > { %p173_p2 = pnand %p1253_p0, %p172_p1 }
   0x5   : > { %v1578_v0 = vld [vmem:[%s1867_s1 + $0x20] sm:$0xff] (!%p173_p2)   ;;  %p203_p3 = scmp.lt.s32.totalorder (!%p173_p2), %s1249_s16, 1  ;;  %v1580_v2 = vld [vmem:[%s1867_s1 + $0x28] sm:$0xff] (!%p173_p2)   ;;  %v1582_v4 = vld [vmem:[%s1867_s1 + $0x30] sm:$0xff] (!%p173_p2)   ;;  %vm291_vm0 = vcmask (!%p173_p2), 523264   ;;  %vm437_vm2 = vcmask (!%p173_p2), 1046528  }
   0x6   : > { %176 = sbr.rel (%p173_p2) target bundleno = 318 (0x13e), region = 36  ;;  %v1579_v1 = vld [vmem:[%s1867_s1] sm:$0xff] (!%p173_p2)   ;;  %1460 = vmatprep.subr.bf16.mxu0 (!%p173_p2), %v1578_v0  ;;  %v1581_v3 = vld [vmem:[%s1867_s1 + $0x8] sm:$0xff] (!%p173_p2)   ;;  %v1583_v5 = vld [vmem:[%s1867_s1 + $0x10] sm:$0xff] (!%p173_p2)   ;;  %vm251_vm1 = vsmask.f32 (!%p173_p2), 7424 }
   0x7   : > { %1472 = vmatprep.subr.bf16.mxu1 (!%p173_p2), %v1579_v1  ;;  %1461 = vmatpush3.bf16.msra.mxu0 (!%p173_p2), %v1578_v0  ;;  %v1584_v6 = vld [vmem:[%s1867_s1 + $0x38] sm:$0xff] (!%p173_p2)   ;;  %v1589_v16 = vld [vmem:[%s1867_s1 + $0x40] sm:$0xff] (!%p173_p2)   ;;  %v1591_v25 = vld [vmem:[%s1867_s1 + $0x48] sm:$0xff] (!%p173_p2)   ;;  %vm539_vm3 = vcmask (!%p173_p2), 1044480   ;;  %vm637_vm4 = vsmask.f32 (!%p173_p2), 4352 }
   0x8   : > { %1473 = vmatpush3.bf16.msra.mxu1 (!%p173_p2), %v1579_v1  ;;  %1462 = vmatprep.subr.bf16.mxu0 (!%p173_p2), %v1580_v2  ;;  %v1585_v10 = vld [vmem:[%s1867_s1 + $0x18] sm:$0xff] (!%p173_p2)   ;;  %v1590_v20 = vld [vmem:[%s1867_s1 + $0x60] sm:$0xff] (!%p173_p2)   ;;  %v1592_v27 = vld [vmem:[%s1867_s1 + $0x68] sm:$0xff] (!%p173_p2)   ;;  %vm851_vm5 = vcmask (!%p173_p2), 1045504   ;;  %vm949_vm6 = vsmask.f32 (!%p173_p2), 5376 }
   0x9   : > { %1474 = vmatprep.subr.bf16.mxu1 (!%p173_p2), %v1581_v3  ;;  %v1593_v33 = vld [vmem:[%s1867_s1 + $0x50] sm:$0xff] (!%p173_p2)   ;;  %v1595_v42 = vld [vmem:[%s1867_s1 + $0x58] sm:$0xff] (!%p173_p2)   ;;  %v1598_v46 = vld [vmem:[%s1867_s1 + $0x80] sm:$0xff] (!%p173_p2)  }
   0xa   : > { %v1594_v36 = vld [vmem:[%s1867_s1 + $0x70] sm:$0xff] (!%p173_p2)   ;;  %v1596_v45 = vld [vmem:[%s1867_s1 + $0x78] sm:$0xff] (!%p173_p2)   ;;  %v1601_v51 = vld [vmem:[%s1867_s1 + $0xa0] sm:$0xff] (!%p173_p2)  }
   0xb   : > { %1463 = vmatpush3.bf16.msra.mxu0 (!%p173_p2), %v1580_v2  ;;  %v1602_v54 = vld [vmem:[%s1867_s1 + $0x88] sm:$0xff] (!%p173_p2)   ;;  %v1604_v61 = vld [vmem:[%s1867_s1 + $0x90] sm:$0xff] (!%p173_p2)  }
   0xc   : > { %1475 = vmatpush3.bf16.msra.mxu1 (!%p173_p2), %v1581_v3  ;;  %1464 = vmatprep.subr.bf16.mxu0 (!%p173_p2), %v1582_v4  ;;  %v1603_v55 = vld [vmem:[%s1867_s1 + $0xa8] sm:$0xff] (!%p173_p2)   ;;  %v1605_v63 = vld [vmem:[%s1867_s1 + $0xb0] sm:$0xff] (!%p173_p2)  }
   0xd   : > { %s1872_s16 = smov (!%p203_p3, %s1249_s16), 1  ;;  %1476 = vmatprep.subr.bf16.mxu1 %v1583_v5 }
   0xe   : > { %s1568_s27 = smul.u32 24, %s1872_s16 }
   0xf   : > { %1465 = vmatpush3.bf16.msra.mxu0 %v1582_v4  ;;  %s1569_s22 = smul.u32 12, %s1872_s16 }
  0x10   : > { %s1692_s6 = scalar_lea.vmem %s1866_s0, %s1568_s27  ;;  %1477 = vmatpush3.bf16.msra.mxu1 %v1583_v5  ;;  %1466 = vmatprep.subr.bf16.mxu0 %v1584_v6 }
  0x11   : > { %v220_v7 = vld [vmem:[%s1692_s6] sm:$0xf]  ;;  %v1699_v8 = vld [vmem:[%s1692_s6 + $0x4] sm:$0xf]  ;;  %v1702_v9 = vld [vmem:[%s1692_s6 + $0x8] sm:$0xf]  ;;  %1478 = vmatprep.subr.bf16.mxu1 %v1585_v10  ;;  %s212_s25 = scalar_lea.vmem %s1869_s3, %s1569_s22  ;;  %s217_s29 = scalar_lea.vmem %s1870_s4, %s1569_s22 }
  0x12   : > { %v231_v11 = vld [vmem:[%s1692_s6 + $0xc] sm:$0x1]  ;;  %v1265_v12 = vcombine.low %v220_v7, %v1699_v8  ;;  %v1273_v23 = vcombine.low %v1702_v9, %v1702_v9  ;;  %v424_v28 = vld [vmem:[%s1692_s6] sm:$0xe]  ;;  %v1334_v60 = vcombine.low %v1699_v8, %v1702_v9  ;;  %v828_v62 = vld [vmem:[%s1692_s6 + $0x4] sm:$0xc] }
  0x13   : > { %v1710_v13 = vcombine.low %v1702_v9, %v231_v11  ;;  %1467 = vmatpush3.bf16.msra.mxu0 %v1584_v6  ;;  %v1288_v29 = vcombine.low %v424_v28, %v1699_v8  ;;  %v522_v31 = vld [vmem:[%s1692_s6] sm:$0x8]  ;;  %v523_v32 = vld [vmem:[%s1692_s6 + $0xc] sm:$0x7]  ;;  %v1785_v1 = vld [vmem:[%s1692_s6 + $0x8] sm:$0xf] }
  0x14   : > { %v253_v14 = vshrl.u32 %v1265_v12, 16  ;;  %v255_v15 = vshll.u32 %v1265_v12, 16  ;;  %1480 = vmatprep.mubr.msk.bf16.mxu1 %vm291_vm0, %v1265_v12  ;;  %1479 = vmatpush3.bf16.msra.mxu1 %v1585_v10  ;;  %v1303_v34 = vcombine.low %v522_v31, %v1699_v8  ;;  %v1304_v35 = vcombine.low %v1702_v9, %v523_v32  ;;  %v1760_v47 = vld [vmem:[%s1692_s6 + $0xc] sm:$0xf]  ;;  %v936_v4 = vld [vmem:[%s1692_s6 + $0x10] sm:$0x7] }
  0x15   : > { %v260_v17 = vshll.u32 %v1710_v13, 16  ;;  %v264_v18 = vshrl.u32 %v1710_v13, 16  ;;  %1484 = vmatprep.subr.bf16.mxu0 %v1589_v16  ;;  %1496 = vmatprep.subr.bf16.mxu1 %v1590_v20  ;;  %v439_v30 = vrot.slane %v1710_v13, 1  ;;  %v438_v37 = vrot.slane %v1288_v29, 1  ;;  %v830_v2 = vld [vmem:[%s1692_s6 + $0xc] sm:$0xf] }
  0x16   : > { %v257_v19 = vrot.slane %v255_v15, 1  ;;  %v540_v38 = vrot.slane %v1303_v34, 3  ;;  %v541_v39 = vrot.slane %v1304_v35, 3  ;;  %v639_v41 = vshrl.u32 %v1303_v34, 16  ;;  %v831_v6 = vld [vmem:[%s1692_s6 + $0x10] sm:$0x3] }
  0x17   : > { %v262_v21 = vrot.slane %v260_v17, 1  ;;  %1481 = vmatmul.mubr.msk.bf16.vlgmr.msra.gmra.mrb[0].mxu1 %vm291_vm0, %v1273_v23  ;;  %v440_v40 = vsel %vm437_vm2, %v438_v37, %v439_v30  ;;  %v642_v44 = vshll.u32 %v1303_v34, 16  ;;  %v1319_v50 = vcombine.low %v1702_v9, %v1760_v47  ;;  %v1606_v11 = vld [vmem:[%s1867_s1 + $0x98] sm:$0xff]   ;;  %v1615_v29 = vld [vmem:[%s1867_s1 + $0xd0] sm:$0xff]   ;;  %v1048_v31 = vld [vmem:[%s1692_s6 + $0x4] sm:$0x8] }
  0x18   : > { %v258_v22 = vor.u32 %v257_v19, %v253_v14  ;;  %1497 = vmatpush3.bf16.msra.mxu1 %v1590_v20  ;;  %v542_v43 = vsel %vm539_vm3, %v540_v38, %v541_v39  ;;  %v641_v48 = vrot.slane %v639_v41, 3  ;;  %v1350_v3 = vcombine.low %v828_v62, %v1785_v1  ;;  %v1607_v12 = vld [vmem:[%s1867_s1 + $0xb8] sm:$0xff]   ;;  %v1612_v19 = vld [vmem:[%s1867_s1 + $0xe0] sm:$0xff]   ;;  %v1623_v38 = vld [vmem:[%s1867_s1 + $0x108] sm:$0xff]  }
  0x19   : > { %v266_v24 = vor.u32 %v264_v18, %v262_v21  ;;  %1498 = vmatprep.subr.bf16.mxu1 %v1592_v27  ;;  %1504 = vmatprep.mubr.msk.bf16.mxu1 %vm291_vm0, %v542_v43  ;;  %v644_v49 = vrot.slane %v642_v44, 4  ;;  %v647_v52 = vshrl.u32 %v1319_v50, 16  ;;  %v650_v53 = vshll.u32 %v1319_v50, 16  ;;  %v1609_v18 = vld [vmem:[%s1867_s1 + $0xc0] sm:$0xff]   ;;  %v1617_v32 = vld [vmem:[%s1867_s1 + $0xd8] sm:$0xff]  }
  0x1a   : > { %v263_v26 = vsel %vm251_vm1, %v258_v22, %v262_v21  ;;  %v1792_v5 = vcombine.low %v830_v2, %v936_v4  ;;  %v951_v7 = vshrl.u32 %v1350_v3, 16  ;;  %v954_v8 = vshll.u32 %v1350_v3, 16  ;;  %v1622_v35 = vld [vmem:[%s1867_s1 + $0x100] sm:$0xff]   ;;  %v1625_v41 = vld [vmem:[%s1867_s1 + $0x118] sm:$0xff]  }
  0x1b   : > { %1468 = vmatprep.mubr.msk.bf16.mxu0 %vm291_vm0, %v263_v26  ;;  %v645_v56 = vor.u32 %v644_v49, %v641_v48  ;;  %v649_v57 = vrot.slane %v647_v52, 3  ;;  %v652_v58 = vrot.slane %v650_v53, 4  ;;  %v1351_v13 = vcombine.low %v830_v2, %v831_v6  ;;  %v1614_v26 = vld [vmem:[%s1867_s1 + $0xe8] sm:$0xff]  }
  0x1c   : > { %1469 = vmatmul.mubr.msk.bf16.vlgmr.msra.gmra.mrb[0].mxu0 %vm291_vm0, %v266_v24  ;;  %1499 = vmatpush3.bf16.msra.mxu1 %v1592_v27  ;;  %v959_v9 = vshrl.u32 %v1792_v5, 16  ;;  %v962_v10 = vshll.u32 %v1792_v5, 16  ;;  %v953_v14 = vrot.slane %v951_v7, 2  ;;  %v956_v15 = vrot.slane %v954_v8, 3 }
  0x1d   : > { %1485 = vmatpush3.bf16.msra.mxu0 %v1589_v16  ;;  %1500 = vmatprep.subr.bf16.mxu1 %v1594_v36  ;;  %v653_v59 = vor.u32 %v652_v58, %v649_v57  ;;  %v1335_v20 = vcombine.low %v1760_v47, %v1760_v47  ;;  %v852_v21 = vrot.slane %v1350_v3, 2  ;;  %v853_v22 = vrot.slane %v1351_v13, 2 }
  0x1e   : > { %1486 = vmatprep.subr.bf16.mxu0 %v1591_v25  ;;  %1492 = vmatprep.mubr.msk.bf16.mxu0 %vm291_vm0, %v440_v40  ;;  %v961_v16 = vrot.slane %v959_v9, 2  ;;  %v964_v17 = vrot.slane %v962_v10, 3  ;;  %v957_v23 = vor.u32 %v956_v15, %v953_v14  ;;  %v1381_v34 = vcombine.low %v1048_v31, %v1785_v1  ;;  %v1624_v40 = vld [vmem:[%s1867_s1 + $0x110] sm:$0xff]   ;;  %v1156_v31 = vld [vmem:[%s212_s25 + $0x8] sm:$0xf] }
  0x1f   : > { %v654_v0 = vsel %vm637_vm4, %v645_v56, %v653_v59  ;;  %v854_v27 = vsel %vm851_vm5, %v852_v21, %v853_v22  ;;  %v1062_v37 = vrot.slane %v1792_v5, 3 }
  0x20   : > { %1501 = vmatpush3.bf16.msra.mxu1 %v1594_v36  ;;  %v965_v24 = vor.u32 %v964_v17, %v961_v16  ;;  %v1061_v36 = vrot.slane %v1381_v34, 3 }
  0x21   : > { %1487 = vmatpush3.bf16.msra.mxu0 %v1591_v25  ;;  %1502 = vmatprep.subr.bf16.mxu1 %v1596_v45  ;;  %v1613_v25 = vld [vmem:[%s1867_s1 + $0xc8] sm:$0xff]  }
  0x22   : > { %1488 = vmatprep.subr.bf16.mxu0 %v1593_v33  ;;  %v966_v28 = vsel %vm949_vm6, %v957_v23, %v965_v24 }
  0x24   : > { %1503 = vmatpush3.bf16.msra.mxu1 %v1596_v45 }
  0x25   : > { %1489 = vmatpush3.bf16.msra.mxu0 %v1593_v33  ;;  %1520 = vmatprep.subr.bf16.mxu1 %v1601_v51  ;;  %v1618_v33 = vld [vmem:[%s1867_s1 + $0xf8] sm:$0xff]  }
  0x26   : > { %1490 = vmatprep.subr.bf16.mxu0 %v1595_v42 }
  0x27   : > { %1505 = vmatmul.mubr.msk.bf16.vlgmr.msra.gmra.mrb[4].mxu1 %vm291_vm0, %v541_v39  ;;  %v1063_v39 = vsel %vm539_vm3, %v1061_v36, %v1062_v37  ;;  %v1159_v36 = vunpack.c.l.bf16 %v1156_v31 }
  0x28   : > { %1521 = vmatpush3.bf16.msra.mxu1 %v1601_v51  ;;  %1528 = vmatprep.mubr.msk.bf16.mxu1 %vm291_vm0, %v1334_v60 }
  0x29   : > { %1491 = vmatpush3.bf16.msra.mxu0 %v1595_v42  ;;  %1522 = vmatprep.subr.bf16.mxu1 %v1603_v55 }
  0x2a   : > { %1508 = vmatprep.subr.bf16.mxu0 %v1598_v46 }
  0x2c   : > { %1493 = vmatmul.mubr.msk.bf16.vlgmr.msra.gmra.mrb[4].mxu0 %vm291_vm0, %v439_v30  ;;  %1523 = vmatpush3.bf16.msra.mxu1 %v1603_v55  ;;  %v1616_v30 = vld [vmem:[%s1867_s1 + $0xf0] sm:$0xff]  }
  0x2d   : > { %1509 = vmatpush3.bf16.msra.mxu0 %v1598_v46  ;;  %1516 = vmatprep.mubr.msk.bf16.mxu0 %vm291_vm0, %v654_v0 }
  0x2e   : > { %1510 = vmatprep.subr.bf16.mxu0 %v1602_v54  ;;  %1524 = vmatprep.subr.bf16.mxu1 %v1605_v63 }
  0x30   : > { %1525 = vmatpush3.bf16.msra.mxu1 %v1605_v63 }
  0x31   : > { %1511 = vmatpush3.bf16.msra.mxu0 %v1602_v54  ;;  %1526 = vmatprep.subr.bf16.mxu1 %v1607_v12 }
  0x32   : > { %1512 = vmatprep.subr.bf16.mxu0 %v1604_v61 }
  0x34   : > { %1527 = vmatpush3.bf16.msra.mxu1 %v1607_v12 }
  0x35   : > { %1513 = vmatpush3.bf16.msra.mxu0 %v1604_v61  ;;  %1544 = vmatprep.subr.bf16.mxu1 %v1612_v19 }
  0x36   : > { %1514 = vmatprep.subr.bf16.mxu0 %v1606_v11 }
  0x37   : > { %1529 = vmatmul.mubr.msk.bf16.vlgmr.msra.gmra.mrb[8].mxu1 %vm291_vm0, %v1335_v20 }
  0x38   : > { %1545 = vmatpush3.bf16.msra.mxu1 %v1612_v19  ;;  %1552 = vmatprep.mubr.msk.bf16.mxu1 %vm291_vm0, %v966_v28 }
  0x39   : > { %1515 = vmatpush3.bf16.msra.mxu0 %v1606_v11  ;;  %1546 = vmatprep.subr.bf16.mxu1 %v1614_v26 }
  0x3a   : > { %1532 = vmatprep.subr.bf16.mxu0 %v1609_v18 }
  0x3c   : > { %1517 = vmatmul.mubr.msk.bf16.vlgmr.msra.gmra.mrb[8].mxu0 %vm291_vm0, %v653_v59  ;;  %1547 = vmatpush3.bf16.msra.mxu1 %v1614_v26 }
  0x3d   : > { %1533 = vmatpush3.bf16.msra.mxu0 %v1609_v18  ;;  %1540 = vmatprep.mubr.msk.bf16.mxu0 %vm291_vm0, %v854_v27 }
  0x3e   : > { %1534 = vmatprep.subr.bf16.mxu0 %v1613_v25  ;;  %1548 = vmatprep.subr.bf16.mxu1 %v1616_v30 }
  0x40   : > { %1549 = vmatpush3.bf16.msra.mxu1 %v1616_v30 }
  0x41   : > { %1535 = vmatpush3.bf16.msra.mxu0 %v1613_v25  ;;  %1550 = vmatprep.subr.bf16.mxu1 %v1618_v33 }
  0x42   : > { %1536 = vmatprep.subr.bf16.mxu0 %v1615_v29 }
  0x44   : > { %1551 = vmatpush3.bf16.msra.mxu1 %v1618_v33  ;;  %v1388_v33 = vld [vmem:[%s1868_s2] ss:$0 sm:$0xff] }
  0x45   : > { %1537 = vmatpush3.bf16.msra.mxu0 %v1615_v29 }
  0x46   : > { %1538 = vmatprep.subr.bf16.mxu0 %v1617_v32 }
  0x47   : > { %1553 = vmatmul.mubr.msk.bf16.vlgmr.msra.gmra.mrb[12].mxu1 %vm291_vm0, %v965_v24 }
  0x49   : > { %1539 = vmatpush3.bf16.msra.mxu0 %v1617_v32  ;;  %v1398_v32 = vld [vmem:[%s212_s25] sm:$0xff]  }
  0x4a   : > { %1556 = vmatprep.subr.bf16.mxu0 %v1622_v35 }
  0x4c   : > { %1541 = vmatmul.mubr.msk.bf16.vlgmr.msra.gmra.mrb[12].mxu0 %vm291_vm0, %v853_v22 }
  0x4d   : > { %1557 = vmatpush3.bf16.msra.mxu0 %v1622_v35  ;;  %1564 = vmatprep.mubr.msk.bf16.mxu0 %vm291_vm0, %v1063_v39  ;;  %v1399_v39 = vunpack.c.l.bf16 %v1398_v32 }
  0x4e   : > { %1558 = vmatprep.subr.bf16.mxu0 %v1623_v38 }
  0x51   : > { %1559 = vmatpush3.bf16.msra.mxu0 %v1623_v38 }
  0x52   : > { %1560 = vmatprep.subr.bf16.mxu0 %v1624_v40 }
  0x55   : > { %1561 = vmatpush3.bf16.msra.mxu0 %v1624_v40 }
  0x56   : > { %1562 = vmatprep.subr.bf16.mxu0 %v1625_v41 }
  0x59   : > { %1563 = vmatpush3.bf16.msra.mxu0 %v1625_v41 }
  0x5c   : > { %1565 = vmatmul.mubr.msk.bf16.vlgmr.msra.gmra.mrb[16].mxu0 %vm291_vm0, %v1062_v37 }
  0xea   : > { %v1482_v43 = vpop.f32.mrb[0].mxu1 }
  0xeb   : > { %v410_v46 = vpop.f32.mrb[1].mxu1 }
  0xec   : > { %v1483_v49 = vpop.f32.mrb[2].mxu1 }
  0xed   : > { %v413_v51 = vpop.f32.mrb[3].mxu1 }
  0xef   : > { %v1470_v42 = vpop.f32.mrb[0].mxu0 }
  0xf0   : > { %v419_v44 = vadd.f32 %v1482_v43, %v1470_v42  ;;  %v332_v45 = vpop.f32.mrb[1].mxu0 }
  0xf1   : > { %v411_v47 = vadd.f32 %v410_v46, %v332_v45  ;;  %v1471_v48 = vpop.f32.mrb[2].mxu0  ;;  %v1400_v45 = vunpack.c.h.bf16 %v1398_v32 }
  0xf2   : > { %v335_v50 = vpop.f32.mrb[3].mxu0 }
  0xf3   : > { %v414_v52 = vadd.f32 %v413_v51, %v335_v50 }
  0xfa   : > { %v1506_v54 = vpop.f32.mrb[4].mxu1 }
  0xfb   : > { %v607_v57 = vpop.f32.mrb[5].mxu1 }
  0xfc   : > { %v1507_v60 = vpop.f32.mrb[6].mxu1 }
  0xfd   : > { %v610_v63 = vpop.f32.mrb[7].mxu1 }
  0xff   : > { %v1494_v53 = vpop.f32.mrb[4].mxu0 }
 0x100   : > { %v521_v55 = vadd.f32 %v1494_v53, %v419_v44  ;;  %v505_v56 = vpop.f32.mrb[5].mxu0 }
 0x101   : > { %v519_v58 = vadd.f32 %v505_v56, %v411_v47  ;;  %v1495_v59 = vpop.f32.mrb[6].mxu0 }
 0x102   : > { %v623_v61 = vadd.f32 %v1506_v54, %v521_v55  ;;  %v508_v62 = vpop.f32.mrb[7].mxu0 }
 0x103   : > { %v520_v0 = vadd.f32 %v508_v62, %v414_v52  ;;  %v621_v1 = vadd.f32 %v607_v57, %v519_v58 }
 0x105   : > { %v622_v2 = vadd.f32 %v610_v63, %v520_v0 }
 0x10a   : > { %v1530_v4 = vpop.f32.mrb[8].mxu1 }
 0x10b   : > { %v811_v7 = vpop.f32.mrb[9].mxu1 }
 0x10c   : > { %v1531_v10 = vpop.f32.mrb[10].mxu1 }
 0x10d   : > { %v814_v13 = vpop.f32.mrb[11].mxu1 }
 0x10f   : > { %v1518_v3 = vpop.f32.mrb[8].mxu0 }
 0x110   : > { %v735_v5 = vadd.f32 %v1518_v3, %v623_v61  ;;  %v719_v6 = vpop.f32.mrb[9].mxu0 }
 0x111   : > { %v733_v8 = vadd.f32 %v719_v6, %v621_v1  ;;  %v1519_v9 = vpop.f32.mrb[10].mxu0 }
 0x112   : > { %v827_v11 = vadd.f32 %v1530_v4, %v735_v5  ;;  %v722_v12 = vpop.f32.mrb[11].mxu0 }
 0x113   : > { %v734_v14 = vadd.f32 %v722_v12, %v622_v2  ;;  %v825_v15 = vadd.f32 %v811_v7, %v733_v8 }
 0x115   : > { %v826_v16 = vadd.f32 %v814_v13, %v734_v14 }
 0x11a   : > { %v1554_v18 = vpop.f32.mrb[12].mxu1 }
 0x11b   : > { %v1031_v21 = vpop.f32.mrb[13].mxu1 }
 0x11c   : > { %v1555_v24 = vpop.f32.mrb[14].mxu1 }
 0x11d   : > { %v1034_v27 = vpop.f32.mrb[15].mxu1 }
 0x11f   : > { %v1542_v17 = vpop.f32.mrb[12].mxu0 }
 0x120   : > { %v935_v19 = vadd.f32 %v1542_v17, %v827_v11  ;;  %v919_v20 = vpop.f32.mrb[13].mxu0 }
 0x121   : > { %v933_v22 = vadd.f32 %v919_v20, %v825_v15  ;;  %v1543_v23 = vpop.f32.mrb[14].mxu0 }
 0x122   : > { %v1047_v25 = vadd.f32 %v1554_v18, %v935_v19  ;;  %v922_v26 = vpop.f32.mrb[15].mxu0 }
 0x123   : > { %v934_v28 = vadd.f32 %v922_v26, %v826_v16  ;;  %v1045_v29 = vadd.f32 %v1031_v21, %v933_v22 }
 0x125   : > { %v1046_v30 = vadd.f32 %v1034_v27, %v934_v28 }
 0x12f   : > { %v1566_v34 = vpop.f32.mrb[16].mxu0 }
 0x130   : > { %v1144_v35 = vadd.f32 %v1566_v34, %v1047_v25  ;;  %v1128_v37 = vpop.f32.mrb[17].mxu0 }
 0x131   : > { %v1142_v38 = vadd.f32 %v1128_v37, %v1045_v29  ;;  %v1567_v40 = vpop.f32.mrb[18].mxu0 }
 0x132   : > { %v1153_v41 = vadd.f32 %v1388_v33, %v1144_v35  ;;  %v1131_v42 = vpop.f32.mrb[19].mxu0 }
 0x133   : > { %v1151_v43 = vadd.f32 %v1388_v33, %v1142_v38  ;;  %v1143_v44 = vadd.f32 %v1131_v42, %v1046_v30 }
 0x134   : > { %v1162_v46 = vadd.f32 %v1159_v36, %v1153_v41 }
 0x135   : > { %v1160_v47 = vadd.f32 %v1399_v39, %v1151_v43  ;;  %v1152_v48 = vadd.f32 %v1388_v33, %v1143_v44 }
 0x136   : > { %v1165_v49 = vmax.f32 %v1162_v46, 0.0 }
 0x137   : > { %v1161_v50 = vadd.f32 %v1400_v45, %v1152_v48  ;;  %v1163_v52 = vmax.f32 %v1160_v47, 0.0 }
 0x138   : > { %v1396_v51 = vpack.c.bf16 %v1165_v49, %v1165_v49 }
 0x139   : > { %v1164_v53 = vmax.f32 %v1161_v50, 0.0 }
 0x13a   : > { %1181 = vst [vmem:[%s217_s29 + $0x8] sm:$0xf] %v1396_v51 }
 0x13b   : > { %v1404_v54 = vpack.c.bf16 %v1164_v53, %v1163_v52 }
 0x13d   : > { %1405 = vst [vmem:[%s217_s29] sm:$0xff] %v1404_v54  }
 0x13e PF: > { %s14_s15 = sadd.s32 1, %s1633_s15  }
 0x13f   : > { %p11_p4 = scmp.ge.s32.totalorder %s14_s15, 4  }
 0x141   :  { %13 = sbr.rel (!%p11_p4) target bundleno = 1 (0x1), region = 77 }

// kernel: resnet34_ssd_forward.36
= control target key start
LH: loop header
LB: loop body
LE: loop exit
PB: predicated region body
PF: predicated region fallthrough
CT: control target
= control target key end

     0   :  { %v656_v35 = vmov 0.0   ;;  %vm657_vm0 = vmmov 0   ;;  %s813_s1 = inlined_call_operand.vmem [shape: bf16[640,128], index: 1, kind: input, shape index: {}]   ;;  %s814_s0 = inlined_call_operand.vmem [shape: bf16[8,640], index: 0, kind: input, shape index: {}]   ;;  %s815_s2 = inlined_call_operand.vmem [shape: f32[1,128], index: 2, kind: input, shape index: {}]   ;;  %s816_s3 = inlined_call_operand.vmem [shape: bf16[8,128], index: 3, kind: output, shape index: {}]  }
   0x1   :  { %v611_v0 = vld [vmem:[%s813_s1 + $0x40] sm:$0xff]   ;;  %v615_v4 = vld [vmem:[%s813_s1 + $0x48] sm:$0xff]   ;;  %v619_v8 = vld [vmem:[%s813_s1 + $0x50] sm:$0xff]  }
   0x2   :  { %v612_v1 = vld [vmem:[%s813_s1] sm:$0xff]   ;;  %536 = vmatprep.subr.bf16.mxu0 %v611_v0  ;;  %v616_v5 = vld [vmem:[%s813_s1 + $0x8] sm:$0xff]   ;;  %v620_v9 = vld [vmem:[%s813_s1 + $0x10] sm:$0xff]  }
   0x3   :  { %v613_v2 = vld [vmem:[%s813_s1 + $0xc0] sm:$0xff]   ;;  %537 = vmatpush3.bf16.msra.mxu0 %v612_v1  ;;  %v617_v6 = vld [vmem:[%s813_s1 + $0xc8] sm:$0xff]   ;;  %v621_v10 = vld [vmem:[%s813_s1 + $0xd0] sm:$0xff]  }
   0x4   :  { %v614_v3 = vld [vmem:[%s813_s1 + $0x80] sm:$0xff]   ;;  %558 = vmatprep.subr.bf16.mxu1 %v613_v2  ;;  %538 = vmatprep.subr.bf16.mxu0 %v615_v4  ;;  %v618_v7 = vld [vmem:[%s813_s1 + $0x88] sm:$0xff]   ;;  %v622_v11 = vld [vmem:[%s813_s1 + $0x90] sm:$0xff]  }
   0x5   :  { %559 = vmatpush3.bf16.msra.mxu1 %v614_v3  ;;  %v623_v12 = vld [vmem:[%s813_s1 + $0x58] sm:$0xff]   ;;  %v627_v16 = vld [vmem:[%s813_s1 + $0x60] sm:$0xff]   ;;  %v631_v20 = vld [vmem:[%s813_s1 + $0x68] sm:$0xff]  }
   0x6   :  { %560 = vmatprep.subr.bf16.mxu1 %v617_v6  ;;  %v624_v13 = vld [vmem:[%s813_s1 + $0x18] sm:$0xff]   ;;  %v628_v17 = vld [vmem:[%s813_s1 + $0x20] sm:$0xff]   ;;  %v632_v21 = vld [vmem:[%s813_s1 + $0x28] sm:$0xff]  }
   0x7   :  { %539 = vmatpush3.bf16.msra.mxu0 %v616_v5  ;;  %v625_v14 = vld [vmem:[%s813_s1 + $0xd8] sm:$0xff]   ;;  %v629_v18 = vld [vmem:[%s813_s1 + $0xe0] sm:$0xff]   ;;  %v633_v22 = vld [vmem:[%s813_s1 + $0xe8] sm:$0xff]  }
   0x8   :  { %540 = vmatprep.subr.bf16.mxu0 %v619_v8  ;;  %v626_v15 = vld [vmem:[%s813_s1 + $0x98] sm:$0xff]   ;;  %v630_v19 = vld [vmem:[%s813_s1 + $0xa0] sm:$0xff]   ;;  %v634_v23 = vld [vmem:[%s813_s1 + $0xa8] sm:$0xff]  }
   0x9   :  { %561 = vmatpush3.bf16.msra.mxu1 %v618_v7  ;;  %v635_v24 = vld [vmem:[%s813_s1 + $0x70] sm:$0xff]   ;;  %v639_v28 = vld [vmem:[%s813_s1 + $0x78] sm:$0xff]   ;;  %v15_v31 = vld [vmem:[%s814_s0] sm:$0xff] }
   0xa   :  { %562 = vmatprep.subr.bf16.mxu1 %v621_v10  ;;  %v636_v25 = vld [vmem:[%s813_s1 + $0x30] sm:$0xff]   ;;  %v640_v29 = vld [vmem:[%s813_s1 + $0x38] sm:$0xff]   ;;  %v491_v32 = vcombine.low %v15_v31, %v15_v31  ;;  %v492_v33 = vcombine.high %v15_v31, %v15_v31  ;;  %v16_v36 = vld [vmem:[%s814_s0 + $0x8] sm:$0xff] }
   0xb   :  { %541 = vmatpush3.bf16.msra.mxu0 %v620_v9  ;;  %v637_v26 = vld [vmem:[%s813_s1 + $0xf0] sm:$0xff]   ;;  %v641_v30 = vld [vmem:[%s813_s1 + $0xf8] sm:$0xff]   ;;  %v493_v37 = vcombine.low %v16_v36, %v16_v36  ;;  %v494_v38 = vcombine.high %v16_v36, %v16_v36  ;;  %v648_v39 = vld [vmem:[%s813_s1 + $0x100] sm:$0xff]  }
   0xc   :  { %542 = vmatprep.subr.bf16.mxu0 %v623_v12  ;;  %v638_v27 = vld [vmem:[%s813_s1 + $0xb0] sm:$0xff]   ;;  %v645_v34 = vld [vmem:[%s813_s1 + $0xb8] sm:$0xff]   ;;  %395 = vmatprep.mubr.bf16.mxu0 %v492_v33  ;;  %v649_v40 = vld [vmem:[%s813_s1 + $0x108] sm:$0xff]  }
   0xd   :  { %563 = vmatpush3.bf16.msra.mxu1 %v622_v11  ;;  %435 = vmatprep.mubr.bf16.mxu1 %v494_v38  ;;  %v650_v41 = vld [vmem:[%s813_s1 + $0x110] sm:$0xff]   ;;  %v651_v42 = vld [vmem:[%s813_s1 + $0x118] sm:$0xff]   ;;  %v652_v43 = vld [vmem:[%s813_s1 + $0x120] sm:$0xff]  }
   0xe   :  { %564 = vmatprep.subr.bf16.mxu1 %v625_v14  ;;  %v653_v44 = vld [vmem:[%s813_s1 + $0x128] sm:$0xff]   ;;  %v654_v45 = vld [vmem:[%s813_s1 + $0x130] sm:$0xff]   ;;  %v655_v46 = vld [vmem:[%s813_s1 + $0x138] sm:$0xff]  }
   0xf   :  { %543 = vmatpush3.bf16.msra.mxu0 %v624_v13  ;;  %v644_v47 = vld [vmem:[%s814_s0 + $0x10] ss:$0 sps:$4 sm:$0xff]   ;;  %v490_v49 = vld [vmem:[%s815_s2] ss:$0 sm:$0xff] }
  0x10   :  { %544 = vmatprep.subr.bf16.mxu0 %v627_v16 }
  0x11   :  { %565 = vmatpush3.bf16.msra.mxu1 %v626_v15 }
  0x12   :  { %566 = vmatprep.subr.bf16.mxu1 %v629_v18 }
  0x13   :  { %545 = vmatpush3.bf16.msra.mxu0 %v628_v17 }
  0x14   :  { %546 = vmatprep.subr.bf16.mxu0 %v631_v20 }
  0x15   :  { %567 = vmatpush3.bf16.msra.mxu1 %v630_v19 }
  0x16   :  { %568 = vmatprep.subr.bf16.mxu1 %v633_v22 }
  0x17   :  { %547 = vmatpush3.bf16.msra.mxu0 %v632_v21 }
  0x18   :  { %548 = vmatprep.subr.bf16.mxu0 %v635_v24 }
  0x19   :  { %569 = vmatpush3.bf16.msra.mxu1 %v634_v23 }
  0x1a   :  { %570 = vmatprep.subr.bf16.mxu1 %v637_v26 }
  0x1b   :  { %549 = vmatpush3.bf16.msra.mxu0 %v636_v25 }
  0x1c   :  { %550 = vmatprep.subr.bf16.mxu0 %v639_v28 }
  0x1d   :  { %571 = vmatpush3.bf16.msra.mxu1 %v638_v27 }
  0x1e   :  { %572 = vmatprep.subr.bf16.mxu1 %v641_v30 }
  0x1f   :  { %551 = vmatpush3.bf16.msra.mxu0 %v640_v29 }
  0x20   :  { %589 = vmatprep.subr.bf16.mxu0 %v656_v35 }
  0x21   :  { %573 = vmatpush3.bf16.msra.mxu1 %v645_v34 }
  0x22   :  { %396 = vmatmul.mubr.bf16.vlgmr.msra.gmra.mrb[0].mxu0 %v491_v32 }
  0x23   :  { %590 = vmatpush3.bf16.msra.mxu0 %v648_v39  ;;  %605 = vmatprep.mubr.msk.bf16.mxu0 %vm657_vm0, %v656_v35 }
  0x24   :  { %436 = vmatmul.mubr.bf16.vlgmr.msra.gmra.mrb[0].mxu1 %v493_v37  ;;  %591 = vmatprep.subr.bf16.mxu0 %v656_v35 }
  0x27   :  { %592 = vmatpush3.bf16.msra.mxu0 %v649_v40 }
  0x28   :  { %593 = vmatprep.subr.bf16.mxu0 %v656_v35 }
  0x2b   :  { %594 = vmatpush3.bf16.msra.mxu0 %v650_v41 }
  0x2c   :  { %595 = vmatprep.subr.bf16.mxu0 %v656_v35 }
  0x2f   :  { %596 = vmatpush3.bf16.msra.mxu0 %v651_v42 }
  0x30   :  { %597 = vmatprep.subr.bf16.mxu0 %v656_v35 }
  0x33   :  { %598 = vmatpush3.bf16.msra.mxu0 %v652_v43 }
  0x34   :  { %599 = vmatprep.subr.bf16.mxu0 %v656_v35 }
  0x37   :  { %600 = vmatpush3.bf16.msra.mxu0 %v653_v44 }
  0x38   :  { %601 = vmatprep.subr.bf16.mxu0 %v656_v35 }
  0x3b   :  { %602 = vmatpush3.bf16.msra.mxu0 %v654_v45 }
  0x3c   :  { %603 = vmatprep.subr.bf16.mxu0 %v656_v35 }
  0x3f   :  { %604 = vmatpush3.bf16.msra.mxu0 %v655_v46 }
  0x42   :  { %606 = vmatmul.mubr.bf16.vlgmr.msra.gmra.mrb[4].mxu0 %v644_v47 }
  0xf5   :  { %v552_v48 = vpop.f32.mrb[0].mxu0 }
  0xf6   :  { %v553_v50 = vpop.f32.mrb[1].mxu0 }
  0xf7   :  { %v554_v51 = vadd.f32 %v553_v50, %v552_v48  ;;  %v555_v52 = vpop.f32.mrb[2].mxu0  ;;  %v574_v53 = vpop.f32.mrb[0].mxu1 }
  0xf8   :  { %v556_v54 = vpop.f32.mrb[3].mxu0  ;;  %v575_v55 = vpop.f32.mrb[1].mxu1 }
  0xf9   :  { %v398_v56 = vadd.f32 %v554_v51, %v490_v49  ;;  %v576_v57 = vadd.f32 %v575_v55, %v574_v53  ;;  %v577_v58 = vpop.f32.mrb[2].mxu1 }
  0xfa   :  { %v578_v59 = vpop.f32.mrb[3].mxu1 }
  0xfb   :  { %v438_v60 = vadd.f32 %v576_v57, %v398_v56 }
 0x115   :  { %v477_v61 = vpop.f32.mrb[4].mxu0 }
 0x116   :  { %v478_v62 = vadd.f32 %v477_v61, %v438_v60  ;;  %v607_v63 = vpop.f32.mrb[5].mxu0 }
 0x117   :  { %v480_v0 = vpop.f32.mrb[6].mxu0 }
 0x118   :  { %v483_v1 = vmax.f32 %v478_v62, 0.0  ;;  %v608_v2 = vpop.f32.mrb[7].mxu0 }
 0x11a   :  { %v484_v3 = vpack.c.bf16 %v483_v1, %v483_v1 }
 0x11c   :  { %485 = vst [vmem:[%s816_s3] sm:$0xf] %v484_v3 }

// kernel: resnet34_ssd_forward.37
= control target key start
LH: loop header
LB: loop body
LE: loop exit
PB: predicated region body
PF: predicated region fallthrough
CT: control target
= control target key end

     0   :  { %v181_v0 = vmov 0.0   ;;  %vm182_vm0 = vmmov 0   ;;  %s236_s1 = inlined_call_operand.vmem [shape: bf16[128,128], index: 1, kind: input, shape index: {}]   ;;  %s237_s0 = inlined_call_operand.vmem [shape: bf16[8,128], index: 0, kind: input, shape index: {}]   ;;  %s238_s2 = inlined_call_operand.vmem [shape: f32[1,128], index: 2, kind: input, shape index: {}]   ;;  %s239_s3 = inlined_call_operand.vmem [shape: bf16[8,128], index: 3, kind: output, shape index: {}]  }
   0x1   :  { %151 = vmatprep.subr.bf16.mxu0 %v181_v0  ;;  %v173_v1 = vld [vmem:[%s236_s1] sm:$0xff]   ;;  %167 = vmatprep.mubr.msk.bf16.mxu0 %vm182_vm0, %v181_v0  ;;  %v174_v2 = vld [vmem:[%s236_s1 + $0x8] sm:$0xff]   ;;  %v175_v3 = vld [vmem:[%s236_s1 + $0x10] sm:$0xff]  }
   0x2   :  { %152 = vmatpush3.bf16.msra.mxu0 %v173_v1  ;;  %v176_v4 = vld [vmem:[%s236_s1 + $0x18] sm:$0xff]   ;;  %v177_v5 = vld [vmem:[%s236_s1 + $0x20] sm:$0xff]   ;;  %v178_v6 = vld [vmem:[%s236_s1 + $0x28] sm:$0xff]  }
   0x3   :  { %153 = vmatprep.subr.bf16.mxu0 %v181_v0  ;;  %v179_v7 = vld [vmem:[%s236_s1 + $0x30] sm:$0xff]   ;;  %v180_v8 = vld [vmem:[%s236_s1 + $0x38] sm:$0xff]   ;;  %v15_v9 = vld [vmem:[%s237_s0] sm:$0xf] }
   0x4   :  { %v133_v10 = vld [vmem:[%s238_s2] ss:$0 sm:$0xff] }
   0x6   :  { %154 = vmatpush3.bf16.msra.mxu0 %v174_v2 }
   0x7   :  { %155 = vmatprep.subr.bf16.mxu0 %v181_v0 }
   0xa   :  { %156 = vmatpush3.bf16.msra.mxu0 %v175_v3 }
   0xb   :  { %157 = vmatprep.subr.bf16.mxu0 %v181_v0 }
   0xe   :  { %158 = vmatpush3.bf16.msra.mxu0 %v176_v4 }
   0xf   :  { %159 = vmatprep.subr.bf16.mxu0 %v181_v0 }
  0x12   :  { %160 = vmatpush3.bf16.msra.mxu0 %v177_v5 }
  0x13   :  { %161 = vmatprep.subr.bf16.mxu0 %v181_v0 }
  0x16   :  { %162 = vmatpush3.bf16.msra.mxu0 %v178_v6 }
  0x17   :  { %163 = vmatprep.subr.bf16.mxu0 %v181_v0 }
  0x1a   :  { %164 = vmatpush3.bf16.msra.mxu0 %v179_v7 }
  0x1b   :  { %165 = vmatprep.subr.bf16.mxu0 %v181_v0 }
  0x1e   :  { %166 = vmatpush3.bf16.msra.mxu0 %v180_v8 }
  0x21   :  { %168 = vmatmul.mubr.bf16.vlgmr.msra.gmra.mrb[0].mxu0 %v15_v9 }
  0xf4   :  { %v121_v11 = vpop.f32.mrb[0].mxu0 }
  0xf5   :  { %v122_v12 = vadd.f32 %v133_v10, %v121_v11  ;;  %v169_v13 = vpop.f32.mrb[1].mxu0 }
  0xf6   :  { %v124_v14 = vpop.f32.mrb[2].mxu0 }
  0xf7   :  { %v127_v15 = vpack.c.bf16 %v122_v12, %v122_v12  ;;  %v170_v16 = vpop.f32.mrb[3].mxu0 }
  0xf9   :  { %128 = vst [vmem:[%s239_s3] sm:$0xf] %v127_v15 }

// kernel: resnet34_ssd_forward.38
= control target key start
LH: loop header
LB: loop body
LE: loop exit
PB: predicated region body
PF: predicated region fallthrough
CT: control target
= control target key end

     0   :  { %s1919_s15 = smov 0   ;;  %s2269_s0 = inlined_call_operand.vmem [shape: bf16[2,20,128], index: 0, kind: input, shape index: {}]   ;;  %s2270_s1 = inlined_call_operand.vmem [shape: bf16[9,128,128], index: 1, kind: input, shape index: {}]   ;;  %s2271_s2 = inlined_call_operand.vmem [shape: f32[1,128], index: 2, kind: input, shape index: {}]   ;;  %s2272_s3 = inlined_call_operand.vmem [shape: bf16[2,8,128], index: 3, kind: input, shape index: {}]   ;;  %s2273_s4 = inlined_call_operand.vmem [shape: bf16[2,8,128], index: 4, kind: output, shape index: {}]  }
   0x1 LB: > { %s1315_s16 = sadd.s32 4294967295, %s1890_s15   ;;  %p1319_p0 = scmp.ge.s32.totalorder %s1890_s15, 1  ;;  %s1890_s15 = sphi %s1919_s15, %s14_s15  }
   0x2   : > { %p171_p1 = scmp.lt.s32.totalorder %s1890_s15, 3 }
   0x4   : > { %p172_p2 = pnand %p1319_p0, %p171_p1 }
   0x5   : > { %v1805_v0 = vld [vmem:[%s2270_s1 + $0x40] sm:$0xff] (!%p172_p2)   ;;  %v1892_v1 = vmov (!%p172_p2), 0.0   ;;  %v1807_v3 = vld [vmem:[%s2270_s1 + $0x48] sm:$0xff] (!%p172_p2)   ;;  %vm1893_vm0 = vmmov (!%p172_p2), 0   ;;  %p200_p3 = scmp.lt.s32.totalorder (!%p172_p2), %s1315_s16, 1  ;;  %v1809_v5 = vld [vmem:[%s2270_s1 + $0x50] sm:$0xff] (!%p172_p2)  }
   0x6   : > { %175 = sbr.rel (%p172_p2) target bundleno = 389 (0x185), region = 36  ;;  %1614 = vmatprep.subr.bf16.mxu0 (!%p172_p2), %v1892_v1  ;;  %1634 = vmatprep.subr.bf16.mxu1 (!%p172_p2), %v1892_v1  ;;  %v1806_v2 = vld [vmem:[%s2270_s1] sm:$0xff] (!%p172_p2)   ;;  %v1808_v4 = vld [vmem:[%s2270_s1 + $0x8] sm:$0xff] (!%p172_p2)   ;;  %v1810_v6 = vld [vmem:[%s2270_s1 + $0x10] sm:$0xff] (!%p172_p2)  }
   0x7   : > { %1615 = vmatpush3.bf16.msra.mxu0 (!%p172_p2), %v1805_v0  ;;  %1630 = vmatprep.mubr.msk.bf16.mxu0 (!%p172_p2), %vm1893_vm0, %v1892_v1  ;;  %v1811_v7 = vld [vmem:[%s2270_s1 + $0x58] sm:$0xff] (!%p172_p2)   ;;  %v1813_v9 = vld [vmem:[%s2270_s1 + $0x60] sm:$0xff] (!%p172_p2)   ;;  %v1815_v14 = vld [vmem:[%s2270_s1 + $0x68] sm:$0xff] (!%p172_p2)  }
   0x8   : > { %1635 = vmatpush3.bf16.msra.mxu1 (!%p172_p2), %v1806_v2  ;;  %1616 = vmatprep.subr.bf16.mxu0 (!%p172_p2), %v1892_v1  ;;  %v1812_v8 = vld [vmem:[%s2270_s1 + $0x18] sm:$0xff] (!%p172_p2)   ;;  %v1814_v10 = vld [vmem:[%s2270_s1 + $0x20] sm:$0xff] (!%p172_p2)   ;;  %v1816_v15 = vld [vmem:[%s2270_s1 + $0x28] sm:$0xff] (!%p172_p2)  }
   0x9   : > { %1636 = vmatprep.subr.bf16.mxu1 (!%p172_p2), %v1892_v1  ;;  %1650 = vmatprep.mubr.msk.bf16.mxu1 (!%p172_p2), %vm1893_vm0, %v1892_v1  ;;  %v1817_v17 = vld [vmem:[%s2270_s1 + $0x70] sm:$0xff] (!%p172_p2)   ;;  %v1819_v21 = vld [vmem:[%s2270_s1 + $0x78] sm:$0xff] (!%p172_p2)   ;;  %v1822_v24 = vld [vmem:[%s2270_s1 + $0x80] sm:$0xff] (!%p172_p2)  }
   0xa   : > { %v1818_v18 = vld [vmem:[%s2270_s1 + $0x30] sm:$0xff] (!%p172_p2)   ;;  %v1820_v22 = vld [vmem:[%s2270_s1 + $0x38] sm:$0xff] (!%p172_p2)   ;;  %v1823_v25 = vld [vmem:[%s2270_s1 + $0xc0] sm:$0xff] (!%p172_p2)  }
   0xb   : > { %1617 = vmatpush3.bf16.msra.mxu0 (!%p172_p2), %v1807_v3  ;;  %v1824_v26 = vld [vmem:[%s2270_s1 + $0x88] sm:$0xff] (!%p172_p2)   ;;  %v1826_v28 = vld [vmem:[%s2270_s1 + $0x90] sm:$0xff] (!%p172_p2)   ;;  %v1828_v30 = vld [vmem:[%s2270_s1 + $0x98] sm:$0xff] (!%p172_p2)  }
   0xc   : > { %1637 = vmatpush3.bf16.msra.mxu1 (!%p172_p2), %v1808_v4  ;;  %1618 = vmatprep.subr.bf16.mxu0 (!%p172_p2), %v1892_v1  ;;  %v1825_v27 = vld [vmem:[%s2270_s1 + $0xc8] sm:$0xff] (!%p172_p2)   ;;  %v1827_v29 = vld [vmem:[%s2270_s1 + $0xd0] sm:$0xff] (!%p172_p2)   ;;  %v1829_v31 = vld [vmem:[%s2270_s1 + $0xd8] sm:$0xff] (!%p172_p2)  }
   0xd   : > { %s2275_s16 = smov (!%p200_p3, %s1315_s16), 1  ;;  %1638 = vmatprep.subr.bf16.mxu1 %v1892_v1  ;;  %v1830_v32 = vld [vmem:[%s2270_s1 + $0xa0] sm:$0xff]   ;;  %v1832_v34 = vld [vmem:[%s2270_s1 + $0xa8] sm:$0xff]   ;;  %v1834_v36 = vld [vmem:[%s2270_s1 + $0xb0] sm:$0xff]  }
   0xe   : > { %s1794_s29 = smul.u32 12, %s2275_s16  ;;  %v1831_v33 = vld [vmem:[%s2270_s1 + $0xe0] sm:$0xff]   ;;  %v1833_v35 = vld [vmem:[%s2270_s1 + $0xe8] sm:$0xff]   ;;  %v1835_v37 = vld [vmem:[%s2270_s1 + $0xf0] sm:$0xff]  }
   0xf   : > { %1619 = vmatpush3.bf16.msra.mxu0 %v1809_v5  ;;  %v1836_v42 = vld [vmem:[%s2270_s1 + $0xb8] sm:$0xff]   ;;  %v1839_v46 = vld [vmem:[%s2270_s1 + $0x100] sm:$0xff]   ;;  %v1843_v49 = vld [vmem:[%s2270_s1 + $0x108] sm:$0xff]  }
  0x10   : > { %1639 = vmatpush3.bf16.msra.mxu1 %v1810_v6  ;;  %1620 = vmatprep.subr.bf16.mxu0 %v1892_v1  ;;  %s1969_s10 = scalar_lea.vmem %s2269_s0, %s1794_s29  ;;  %v1837_v44 = vld [vmem:[%s2270_s1 + $0xf8] sm:$0xff]   ;;  %v1842_v48 = vld [vmem:[%s2270_s1 + $0x140] sm:$0xff]   ;;  %v1844_v50 = vld [vmem:[%s2270_s1 + $0x148] sm:$0xff]  }
  0x11   : > { %1640 = vmatprep.subr.bf16.mxu1 %v1892_v1  ;;  %v215_v11 = vld [vmem:[%s1969_s10] sm:$0xf]  ;;  %v1981_v12 = vld [vmem:[%s1969_s10 + $0x4] sm:$0x1]  ;;  %v1845_v51 = vld [vmem:[%s2270_s1 + $0x110] sm:$0xff]  }
  0x12   : > { %v1339_v13 = vcombine.low %v215_v11, %v1981_v12  ;;  %v439_v38 = vld [vmem:[%s1969_s10] sm:$0xe]  ;;  %v552_v40 = vld [vmem:[%s1969_s10 + $0x4] sm:$0x3]  ;;  %v1846_v52 = vld [vmem:[%s2270_s1 + $0x150] sm:$0xff]  }
  0x13   : > { %1621 = vmatpush3.bf16.msra.mxu0 %v1811_v7  ;;  %v551_v39 = vld [vmem:[%s1969_s10] sm:$0xc]  ;;  %v1372_v41 = vcombine.low %v439_v38, %v1981_v12  ;;  %v1847_v53 = vld [vmem:[%s2270_s1 + $0x118] sm:$0xff]   ;;  %v666_v55 = vld [vmem:[%s1969_s10 + $0x4] sm:$0x7] }
  0x14   : > { %1641 = vmatpush3.bf16.msra.mxu1 %v1812_v8  ;;  %1622 = vmatprep.subr.bf16.mxu0 %v1892_v1  ;;  %v258_v16 = vshll.u32 %v1339_v13, 16  ;;  %v256_v19 = vshrl.u32 %v1339_v13, 16  ;;  %v1397_v43 = vcombine.low %v551_v39, %v552_v40  ;;  %v1848_v54 = vld [vmem:[%s2270_s1 + $0x158] sm:$0xff]   ;;  %v1849_v56 = vld [vmem:[%s2270_s1 + $0x120] sm:$0xff]   ;;  %v1422_v58 = vcombine.low %v551_v39, %v666_v55  ;;  %v1851_v59 = vld [vmem:[%s2270_s1 + $0x128] sm:$0xff]  }
  0x15   : > { %1642 = vmatprep.subr.bf16.mxu1 %v1892_v1  ;;  %v460_v45 = vrot.slane %v1372_v41, 1  ;;  %v1850_v57 = vld [vmem:[%s2270_s1 + $0x160] sm:$0xff]   ;;  %v1852_v60 = vld [vmem:[%s2270_s1 + $0x168] sm:$0xff]   ;;  %v1853_v63 = vld [vmem:[%s2270_s1 + $0x130] sm:$0xff]  }
  0x16   : > { %v260_v20 = vrot.slane %v258_v16, 1  ;;  %v575_v47 = vrot.slane %v1397_v43, 2  ;;  %v688_v61 = vshrl.u32 %v1422_v58, 16  ;;  %v691_v62 = vshll.u32 %v1422_v58, 16  ;;  %v1854_v0 = vld [vmem:[%s2270_s1 + $0x170] sm:$0xff]   ;;  %v1855_v5 = vld [vmem:[%s2270_s1 + $0x138] sm:$0xff]  }
  0x17   : > { %1623 = vmatpush3.bf16.msra.mxu0 %v1813_v9  ;;  %v785_v2 = vld [vmem:[%s1969_s10] sm:$0x8]  ;;  %v1856_v7 = vld [vmem:[%s2270_s1 + $0x178] sm:$0xff]   ;;  %v1860_v12 = vld [vmem:[%s2270_s1 + $0x188] sm:$0xff]  }
  0x18   : > { %1643 = vmatpush3.bf16.msra.mxu1 %v1814_v10  ;;  %1624 = vmatprep.subr.bf16.mxu0 %v1892_v1  ;;  %v261_v23 = vor.u32 %v260_v20, %v256_v19  ;;  %v690_v3 = vrot.slane %v688_v61, 2  ;;  %v693_v4 = vrot.slane %v691_v62, 3  ;;  %v1447_v6 = vcombine.low %v785_v2, %v666_v55  ;;  %v1857_v9 = vld [vmem:[%s2270_s1 + $0x180] sm:$0xff]   ;;  %v1861_v13 = vld [vmem:[%s2270_s1 + $0x1c8] sm:$0xff]   ;;  %v1864_v16 = vld [vmem:[%s2270_s1 + $0x198] sm:$0xff]  }
  0x19   : > { %1644 = vmatprep.subr.bf16.mxu1 %v1892_v1  ;;  %v1867_v19 = vld [vmem:[%s2270_s1 + $0x1e0] sm:$0xff]   ;;  %v1880_v39 = vld [vmem:[%s2270_s1 + $0x228] sm:$0xff]   ;;  %v1881_v40 = vld [vmem:[%s2270_s1 + $0x230] sm:$0xff]  }
  0x1a   : > { %v694_v8 = vor.u32 %v693_v4, %v690_v3  ;;  %v806_v10 = vrot.slane %v1447_v6, 3  ;;  %v1004_v20 = vld [vmem:[%s1969_s10 + $0x4] sm:$0xf]  ;;  %v1882_v43 = vld [vmem:[%s2270_s1 + $0x238] sm:$0xff]  }
  0x1b   : > { %1625 = vmatpush3.bf16.msra.mxu0 %v1815_v14  ;;  %v1862_v14 = vld [vmem:[%s2270_s1 + $0x190] sm:$0xff]   ;;  %v1879_v38 = vld [vmem:[%s2270_s1 + $0x220] sm:$0xff]  }
  0x1c   : > { %1645 = vmatpush3.bf16.msra.mxu1 %v1816_v15  ;;  %1626 = vmatprep.subr.bf16.mxu0 %v1892_v1  ;;  %v1863_v15 = vld [vmem:[%s2270_s1 + $0x1d0] sm:$0xff]   ;;  %v1125_v41 = vld [vmem:[%s1969_s10 + $0x4] sm:$0xe] }
  0x1d   : > { %1646 = vmatprep.subr.bf16.mxu1 %v1892_v1 }
  0x1f   : > { %1627 = vmatpush3.bf16.msra.mxu0 %v1817_v17  ;;  %v1865_v17 = vld [vmem:[%s2270_s1 + $0x1d8] sm:$0xff]  }
  0x20   : > { %1647 = vmatpush3.bf16.msra.mxu1 %v1818_v18  ;;  %1628 = vmatprep.subr.bf16.mxu0 %v1892_v1  ;;  %v1866_v18 = vld [vmem:[%s2270_s1 + $0x1a0] sm:$0xff]  }
  0x21   : > { %1648 = vmatprep.subr.bf16.mxu1 %v1892_v1 }
  0x23   : > { %1629 = vmatpush3.bf16.msra.mxu0 %v1819_v21  ;;  %v1005_v21 = vld [vmem:[%s1969_s10 + $0x8] sm:$0x1] }
  0x24   : > { %1649 = vmatpush3.bf16.msra.mxu1 %v1820_v22  ;;  %1654 = vmatprep.subr.bf16.mxu0 %v1892_v1  ;;  %v1868_v22 = vld [vmem:[%s2270_s1 + $0x1a8] sm:$0xff]  }
  0x25   : > { %1674 = vmatprep.subr.bf16.mxu1 %v1892_v1 }
  0x26   : > { %1631 = vmatmul.mubr.bf16.vlgmr.msra.gmra.mrb[0].mxu0 %v261_v23  ;;  %v1496_v23 = vcombine.low %v1004_v20, %v1005_v21 }
  0x27   : > { %1651 = vmatmul.mubr.bf16.vlgmr.msra.gmra.mrb[0].mxu1 %v215_v11  ;;  %1655 = vmatpush3.bf16.msra.mxu0 %v1822_v24  ;;  %v1859_v11 = vld [vmem:[%s2270_s1 + $0x1c0] sm:$0xff]   ;;  %v1869_v24 = vld [vmem:[%s2270_s1 + $0x1e8] sm:$0xff]  }
  0x28   : > { %1675 = vmatpush3.bf16.msra.mxu1 %v1823_v25  ;;  %1656 = vmatprep.subr.bf16.mxu0 %v1892_v1  ;;  %v1870_v25 = vld [vmem:[%s2270_s1 + $0x1b0] sm:$0xff]  }
  0x29   : > { %1676 = vmatprep.subr.bf16.mxu1 %v1892_v1  ;;  %1670 = vmatprep.mubr.msk.bf16.mxu0 %vm1893_vm0, %v1892_v1 }
  0x2a   : > { %1690 = vmatprep.mubr.msk.bf16.mxu1 %vm1893_vm0, %v1892_v1 }
  0x2b   : > { %1657 = vmatpush3.bf16.msra.mxu0 %v1824_v26  ;;  %v1031_v26 = vshll.u32 %v1496_v23, 16 }
  0x2c   : > { %1677 = vmatpush3.bf16.msra.mxu1 %v1825_v27  ;;  %1658 = vmatprep.subr.bf16.mxu0 %v1892_v1  ;;  %v1871_v27 = vld [vmem:[%s2270_s1 + $0x1f0] sm:$0xff]  }
  0x2d   : > { %1678 = vmatprep.subr.bf16.mxu1 %v1892_v1 }
  0x2f   : > { %1659 = vmatpush3.bf16.msra.mxu0 %v1826_v28  ;;  %v1872_v28 = vld [vmem:[%s2270_s1 + $0x1b8] sm:$0xff]  }
  0x30   : > { %1679 = vmatpush3.bf16.msra.mxu1 %v1827_v29  ;;  %1660 = vmatprep.subr.bf16.mxu0 %v1892_v1  ;;  %v1029_v29 = vshrl.u32 %v1496_v23, 16 }
  0x31   : > { %1680 = vmatprep.subr.bf16.mxu1 %v1892_v1 }
  0x33   : > { %1661 = vmatpush3.bf16.msra.mxu0 %v1828_v30  ;;  %v1033_v30 = vrot.slane %v1031_v26, 1 }
  0x34   : > { %1681 = vmatpush3.bf16.msra.mxu1 %v1829_v31  ;;  %1662 = vmatprep.subr.bf16.mxu0 %v1892_v1  ;;  %v1873_v31 = vld [vmem:[%s2270_s1 + $0x1f8] sm:$0xff]  }
  0x35   : > { %1682 = vmatprep.subr.bf16.mxu1 %v1892_v1 }
  0x37   : > { %1663 = vmatpush3.bf16.msra.mxu0 %v1830_v32  ;;  %v897_v32 = vld [vmem:[%s1969_s10 + $0x4] sm:$0xf]  ;;  %s1321_s10 = sshll.u32 %s2275_s16, 2 }
  0x38   : > { %1683 = vmatpush3.bf16.msra.mxu1 %v1831_v33  ;;  %1664 = vmatprep.subr.bf16.mxu0 %v1892_v1  ;;  %v1874_v33 = vld [vmem:[%s2270_s1 + $0x200] sm:$0xff]   ;;  %s208_s28 = scalar_lea.vmem %s2272_s3, %s1321_s10  ;;  %s212_s6 = scalar_lea.vmem %s2273_s4, %s1321_s10 }
  0x39   : > { %1684 = vmatprep.subr.bf16.mxu1 %v1892_v1  ;;  %v1244_v20 = vld [vmem:[%s208_s28] sm:$0xf] }
  0x3b   : > { %1665 = vmatpush3.bf16.msra.mxu0 %v1832_v34  ;;  %v1034_v34 = vor.u32 %v1033_v30, %v1029_v29 }
  0x3c   : > { %1685 = vmatpush3.bf16.msra.mxu1 %v1833_v35  ;;  %1666 = vmatprep.subr.bf16.mxu0 %v1892_v1  ;;  %v1876_v35 = vld [vmem:[%s2270_s1 + $0x208] sm:$0xff]  }
  0x3d   : > { %1686 = vmatprep.subr.bf16.mxu1 %v1892_v1 }
  0x3f   : > { %1667 = vmatpush3.bf16.msra.mxu0 %v1834_v36  ;;  %v1877_v36 = vld [vmem:[%s2270_s1 + $0x210] sm:$0xff]  }
  0x40   : > { %1687 = vmatpush3.bf16.msra.mxu1 %v1835_v37  ;;  %1668 = vmatprep.subr.bf16.mxu0 %v1892_v1  ;;  %v1878_v37 = vld [vmem:[%s2270_s1 + $0x218] sm:$0xff]  }
  0x41   : > { %1688 = vmatprep.subr.bf16.mxu1 %v1892_v1 }
  0x43   : > { %1669 = vmatpush3.bf16.msra.mxu0 %v1836_v42  ;;  %v1521_v42 = vcombine.low %v1125_v41, %v1005_v21  ;;  %v1530_v21 = vld [vmem:[%s2271_s2] ss:$0 sm:$0xff] }
  0x44   : > { %1689 = vmatpush3.bf16.msra.mxu1 %v1837_v44  ;;  %1694 = vmatprep.subr.bf16.mxu0 %v1892_v1 }
  0x45   : > { %1714 = vmatprep.subr.bf16.mxu1 %v1892_v1  ;;  %v1146_v44 = vrot.slane %v1521_v42, 1 }
  0x46   : > { %1671 = vmatmul.mubr.bf16.vlgmr.msra.gmra.mrb[4].mxu0 %v460_v45 }
  0x47   : > { %1695 = vmatpush3.bf16.msra.mxu0 %v1839_v46  ;;  %1691 = vmatmul.mubr.bf16.vlgmr.msra.gmra.mrb[4].mxu1 %v575_v47 }
  0x48   : > { %1715 = vmatpush3.bf16.msra.mxu1 %v1842_v48  ;;  %1696 = vmatprep.subr.bf16.mxu0 %v1892_v1 }
  0x49   : > { %1716 = vmatprep.subr.bf16.mxu1 %v1892_v1  ;;  %1710 = vmatprep.mubr.msk.bf16.mxu0 %vm1893_vm0, %v1892_v1 }
  0x4a   : > { %1730 = vmatprep.mubr.msk.bf16.mxu1 %vm1893_vm0, %v1892_v1 }
  0x4b   : > { %1697 = vmatpush3.bf16.msra.mxu0 %v1843_v49 }
  0x4c   : > { %1717 = vmatpush3.bf16.msra.mxu1 %v1844_v50  ;;  %1698 = vmatprep.subr.bf16.mxu0 %v1892_v1 }
  0x4d   : > { %1718 = vmatprep.subr.bf16.mxu1 %v1892_v1 }
  0x4f   : > { %1699 = vmatpush3.bf16.msra.mxu0 %v1845_v51 }
  0x50   : > { %1719 = vmatpush3.bf16.msra.mxu1 %v1846_v52  ;;  %1700 = vmatprep.subr.bf16.mxu0 %v1892_v1 }
  0x51   : > { %1720 = vmatprep.subr.bf16.mxu1 %v1892_v1 }
  0x53   : > { %1701 = vmatpush3.bf16.msra.mxu0 %v1847_v53 }
  0x54   : > { %1721 = vmatpush3.bf16.msra.mxu1 %v1848_v54  ;;  %1702 = vmatprep.subr.bf16.mxu0 %v1892_v1 }
  0x55   : > { %1722 = vmatprep.subr.bf16.mxu1 %v1892_v1 }
  0x57   : > { %1703 = vmatpush3.bf16.msra.mxu0 %v1849_v56 }
  0x58   : > { %1723 = vmatpush3.bf16.msra.mxu1 %v1850_v57  ;;  %1704 = vmatprep.subr.bf16.mxu0 %v1892_v1 }
  0x59   : > { %1724 = vmatprep.subr.bf16.mxu1 %v1892_v1 }
  0x5b   : > { %1705 = vmatpush3.bf16.msra.mxu0 %v1851_v59 }
  0x5c   : > { %1725 = vmatpush3.bf16.msra.mxu1 %v1852_v60  ;;  %1706 = vmatprep.subr.bf16.mxu0 %v1892_v1 }
  0x5d   : > { %1726 = vmatprep.subr.bf16.mxu1 %v1892_v1 }
  0x5f   : > { %1707 = vmatpush3.bf16.msra.mxu0 %v1853_v63 }
  0x60   : > { %1727 = vmatpush3.bf16.msra.mxu1 %v1854_v0  ;;  %1708 = vmatprep.subr.bf16.mxu0 %v1892_v1 }
  0x61   : > { %1728 = vmatprep.subr.bf16.mxu1 %v1892_v1 }
  0x63   : > { %1709 = vmatpush3.bf16.msra.mxu0 %v1855_v5 }
  0x64   : > { %1729 = vmatpush3.bf16.msra.mxu1 %v1856_v7  ;;  %1734 = vmatprep.subr.bf16.mxu0 %v1892_v1 }
  0x65   : > { %1754 = vmatprep.subr.bf16.mxu1 %v1892_v1 }
  0x66   : > { %1711 = vmatmul.mubr.bf16.vlgmr.msra.gmra.mrb[8].mxu0 %v694_v8 }
  0x67   : > { %1735 = vmatpush3.bf16.msra.mxu0 %v1857_v9  ;;  %1731 = vmatmul.mubr.bf16.vlgmr.msra.gmra.mrb[8].mxu1 %v806_v10 }
  0x68   : > { %1755 = vmatpush3.bf16.msra.mxu1 %v1859_v11  ;;  %1736 = vmatprep.subr.bf16.mxu0 %v1892_v1 }
  0x69   : > { %1756 = vmatprep.subr.bf16.mxu1 %v1892_v1  ;;  %1750 = vmatprep.mubr.msk.bf16.mxu0 %vm1893_vm0, %v1892_v1 }
  0x6a   : > { %1770 = vmatprep.mubr.msk.bf16.mxu1 %vm1893_vm0, %v1892_v1 }
  0x6b   : > { %1737 = vmatpush3.bf16.msra.mxu0 %v1860_v12 }
  0x6c   : > { %1757 = vmatpush3.bf16.msra.mxu1 %v1861_v13  ;;  %1738 = vmatprep.subr.bf16.mxu0 %v1892_v1 }
  0x6d   : > { %1758 = vmatprep.subr.bf16.mxu1 %v1892_v1 }
  0x6f   : > { %1739 = vmatpush3.bf16.msra.mxu0 %v1862_v14 }
  0x70   : > { %1759 = vmatpush3.bf16.msra.mxu1 %v1863_v15  ;;  %1740 = vmatprep.subr.bf16.mxu0 %v1892_v1 }
  0x71   : > { %1760 = vmatprep.subr.bf16.mxu1 %v1892_v1 }
  0x73   : > { %1741 = vmatpush3.bf16.msra.mxu0 %v1864_v16 }
  0x74   : > { %1761 = vmatpush3.bf16.msra.mxu1 %v1865_v17  ;;  %1742 = vmatprep.subr.bf16.mxu0 %v1892_v1 }
  0x75   : > { %1762 = vmatprep.subr.bf16.mxu1 %v1892_v1 }
  0x77   : > { %1743 = vmatpush3.bf16.msra.mxu0 %v1866_v18 }
  0x78   : > { %1763 = vmatpush3.bf16.msra.mxu1 %v1867_v19  ;;  %1744 = vmatprep.subr.bf16.mxu0 %v1892_v1 }
  0x79   : > { %1764 = vmatprep.subr.bf16.mxu1 %v1892_v1 }
  0x7b   : > { %1745 = vmatpush3.bf16.msra.mxu0 %v1868_v22 }
  0x7c   : > { %1765 = vmatpush3.bf16.msra.mxu1 %v1869_v24  ;;  %1746 = vmatprep.subr.bf16.mxu0 %v1892_v1  ;;  %v1245_v24 = vunpack.c.l.bf16 %v1244_v20 }
  0x7d   : > { %1766 = vmatprep.subr.bf16.mxu1 %v1892_v1 }
  0x7f   : > { %1747 = vmatpush3.bf16.msra.mxu0 %v1870_v25 }
  0x80   : > { %1767 = vmatpush3.bf16.msra.mxu1 %v1871_v27  ;;  %1748 = vmatprep.subr.bf16.mxu0 %v1892_v1 }
  0x81   : > { %1768 = vmatprep.subr.bf16.mxu1 %v1892_v1 }
  0x83   : > { %1749 = vmatpush3.bf16.msra.mxu0 %v1872_v28 }
  0x84   : > { %1769 = vmatpush3.bf16.msra.mxu1 %v1873_v31  ;;  %1774 = vmatprep.subr.bf16.mxu0 %v1892_v1 }
  0x86   : > { %1751 = vmatmul.mubr.bf16.vlgmr.msra.gmra.mrb[12].mxu0 %v897_v32 }
  0x87   : > { %1775 = vmatpush3.bf16.msra.mxu0 %v1874_v33  ;;  %1771 = vmatmul.mubr.bf16.vlgmr.msra.gmra.mrb[12].mxu1 %v1034_v34 }
  0x88   : > { %1776 = vmatprep.subr.bf16.mxu0 %v1892_v1  ;;  %1790 = vmatprep.mubr.msk.bf16.mxu0 %vm1893_vm0, %v1892_v1 }
  0x8b   : > { %1777 = vmatpush3.bf16.msra.mxu0 %v1876_v35 }
  0x8c   : > { %1778 = vmatprep.subr.bf16.mxu0 %v1892_v1 }
  0x8f   : > { %1779 = vmatpush3.bf16.msra.mxu0 %v1877_v36 }
  0x90   : > { %1780 = vmatprep.subr.bf16.mxu0 %v1892_v1 }
  0x93   : > { %1781 = vmatpush3.bf16.msra.mxu0 %v1878_v37 }
  0x94   : > { %1782 = vmatprep.subr.bf16.mxu0 %v1892_v1 }
  0x97   : > { %1783 = vmatpush3.bf16.msra.mxu0 %v1879_v38 }
  0x98   : > { %1784 = vmatprep.subr.bf16.mxu0 %v1892_v1 }
  0x9b   : > { %1785 = vmatpush3.bf16.msra.mxu0 %v1880_v39 }
  0x9c   : > { %1786 = vmatprep.subr.bf16.mxu0 %v1892_v1 }
  0x9f   : > { %1787 = vmatpush3.bf16.msra.mxu0 %v1881_v40 }
  0xa0   : > { %1788 = vmatprep.subr.bf16.mxu0 %v1892_v1 }
  0xa3   : > { %1789 = vmatpush3.bf16.msra.mxu0 %v1882_v43 }
  0xa6   : > { %1791 = vmatmul.mubr.bf16.vlgmr.msra.gmra.mrb[16].mxu0 %v1146_v44 }
  0xf9   : > { %v345_v45 = vpop.f32.mrb[0].mxu0 }
  0xfa   : > { %v1632_v46 = vpop.f32.mrb[1].mxu0  ;;  %v433_v47 = vpop.f32.mrb[0].mxu1 }
  0xfb   : > { %v434_v48 = vadd.f32 %v433_v47, %v345_v45  ;;  %v348_v49 = vpop.f32.mrb[2].mxu0  ;;  %v1652_v50 = vpop.f32.mrb[1].mxu1 }
  0xfc   : > { %v1633_v51 = vpop.f32.mrb[3].mxu0  ;;  %v436_v52 = vpop.f32.mrb[2].mxu1 }
  0xfd   : > { %v1653_v53 = vpop.f32.mrb[3].mxu1 }
 0x119   : > { %v544_v54 = vpop.f32.mrb[4].mxu0 }
 0x11a   : > { %v550_v55 = vadd.f32 %v544_v54, %v434_v48  ;;  %v1672_v56 = vpop.f32.mrb[5].mxu0  ;;  %v659_v57 = vpop.f32.mrb[4].mxu1 }
 0x11b   : > { %v547_v58 = vpop.f32.mrb[6].mxu0  ;;  %v1692_v59 = vpop.f32.mrb[5].mxu1 }
 0x11c   : > { %v665_v60 = vadd.f32 %v659_v57, %v550_v55  ;;  %v1673_v1 = vpop.f32.mrb[7].mxu0  ;;  %v662_v61 = vpop.f32.mrb[6].mxu1 }
 0x11d   : > { %v1693_v62 = vpop.f32.mrb[7].mxu1 }
 0x139   : > { %v778_v63 = vpop.f32.mrb[8].mxu0 }
 0x13a   : > { %v784_v0 = vadd.f32 %v778_v63, %v665_v60  ;;  %v1712_v2 = vpop.f32.mrb[9].mxu0  ;;  %v890_v3 = vpop.f32.mrb[8].mxu1 }
 0x13b   : > { %v781_v4 = vpop.f32.mrb[10].mxu0  ;;  %v1732_v5 = vpop.f32.mrb[9].mxu1 }
 0x13c   : > { %v896_v6 = vadd.f32 %v890_v3, %v784_v0  ;;  %v1713_v7 = vpop.f32.mrb[11].mxu0  ;;  %v893_v8 = vpop.f32.mrb[10].mxu1 }
 0x13d   : > { %v1733_v9 = vpop.f32.mrb[11].mxu1 }
 0x159   : > { %v997_v10 = vpop.f32.mrb[12].mxu0 }
 0x15a   : > { %v1003_v11 = vadd.f32 %v997_v10, %v896_v6  ;;  %v1752_v12 = vpop.f32.mrb[13].mxu0  ;;  %v1118_v13 = vpop.f32.mrb[12].mxu1 }
 0x15b   : > { %v1000_v14 = vpop.f32.mrb[14].mxu0  ;;  %v1772_v15 = vpop.f32.mrb[13].mxu1 }
 0x15c   : > { %v1124_v16 = vadd.f32 %v1118_v13, %v1003_v11  ;;  %v1753_v17 = vpop.f32.mrb[15].mxu0  ;;  %v1121_v18 = vpop.f32.mrb[14].mxu1 }
 0x15d   : > { %v1773_v19 = vpop.f32.mrb[15].mxu1 }
 0x179   : > { %v1230_v22 = vpop.f32.mrb[16].mxu0 }
 0x17a   : > { %v1236_v23 = vadd.f32 %v1230_v22, %v1124_v16  ;;  %v1792_v25 = vpop.f32.mrb[17].mxu0 }
 0x17b   : > { %v1233_v26 = vpop.f32.mrb[18].mxu0 }
 0x17c   : > { %v1243_v27 = vadd.f32 %v1530_v21, %v1236_v23  ;;  %v1793_v28 = vpop.f32.mrb[19].mxu0 }
 0x17e   : > { %v1246_v29 = vadd.f32 %v1245_v24, %v1243_v27 }
 0x180   : > { %v1247_v30 = vmax.f32 %v1246_v29, 0.0 }
 0x182   : > { %v1248_v31 = vpack.c.bf16 %v1247_v30, %v1247_v30 }
 0x184   : > { %1249 = vst [vmem:[%s212_s6] sm:$0xf] %v1248_v31 }
 0x185 PF: > { %s14_s15 = sadd.s32 1, %s1890_s15  }
 0x186   : > { %p11_p4 = scmp.ge.s32.totalorder %s14_s15, 4  }
 0x188   :  { %13 = sbr.rel (!%p11_p4) target bundleno = 1 (0x1), region = 77 }

// kernel: resnet34_ssd_forward.39
= control target key start
LH: loop header
LB: loop body
LE: loop exit
PB: predicated region body
PF: predicated region fallthrough
CT: control target
= control target key end

     0   :  { %s1854_s12 = smov 0   ;;  %s2201_s0 = inlined_call_operand.vmem [shape: bf16[2,20,128], index: 0, kind: input, shape index: {}]   ;;  %s2202_s1 = inlined_call_operand.vmem [shape: bf16[9,128,128], index: 1, kind: input, shape index: {}]   ;;  %s2203_s2 = inlined_call_operand.vmem [shape: f32[1,128], index: 2, kind: input, shape index: {}]   ;;  %s2204_s3 = inlined_call_operand.vmem [shape: bf16[2,8,128], index: 3, kind: output, shape index: {}]  }
   0x1 LB: > { %s1256_s13 = sadd.s32 4294967295, %s1830_s12   ;;  %p1260_p0 = scmp.ge.s32.totalorder %s1830_s12, 1  ;;  %s1830_s12 = sphi %s1854_s12, %s13_s12  }
   0x2   : > { %p137_p1 = scmp.lt.s32.totalorder %s1830_s12, 3 }
   0x4   : > { %p138_p2 = pnand %p1260_p0, %p137_p1 }
   0x5   : > { %v1745_v0 = vld [vmem:[%s2202_s1 + $0x40] sm:$0xff] (!%p138_p2)   ;;  %v1832_v1 = vmov (!%p138_p2), 0.0   ;;  %v1747_v3 = vld [vmem:[%s2202_s1 + $0x48] sm:$0xff] (!%p138_p2)   ;;  %vm1833_vm0 = vmmov (!%p138_p2), 0   ;;  %p160_p3 = scmp.lt.s32.totalorder (!%p138_p2), %s1256_s13, 1  ;;  %v1749_v5 = vld [vmem:[%s2202_s1 + $0x50] sm:$0xff] (!%p138_p2)  }
   0x6   : > { %141 = sbr.rel (%p138_p2) target bundleno = 387 (0x183), region = 32  ;;  %1554 = vmatprep.subr.bf16.mxu0 (!%p138_p2), %v1832_v1  ;;  %1574 = vmatprep.subr.bf16.mxu1 (!%p138_p2), %v1832_v1  ;;  %v1746_v2 = vld [vmem:[%s2202_s1] sm:$0xff] (!%p138_p2)   ;;  %v1748_v4 = vld [vmem:[%s2202_s1 + $0x8] sm:$0xff] (!%p138_p2)   ;;  %v1750_v6 = vld [vmem:[%s2202_s1 + $0x10] sm:$0xff] (!%p138_p2)  }
   0x7   : > { %1555 = vmatpush3.bf16.msra.mxu0 (!%p138_p2), %v1745_v0  ;;  %1570 = vmatprep.mubr.msk.bf16.mxu0 (!%p138_p2), %vm1833_vm0, %v1832_v1  ;;  %v1751_v7 = vld [vmem:[%s2202_s1 + $0x58] sm:$0xff] (!%p138_p2)   ;;  %v1753_v9 = vld [vmem:[%s2202_s1 + $0x60] sm:$0xff] (!%p138_p2)   ;;  %v1755_v14 = vld [vmem:[%s2202_s1 + $0x68] sm:$0xff] (!%p138_p2)  }
   0x8   : > { %1575 = vmatpush3.bf16.msra.mxu1 (!%p138_p2), %v1746_v2  ;;  %1556 = vmatprep.subr.bf16.mxu0 (!%p138_p2), %v1832_v1  ;;  %v1752_v8 = vld [vmem:[%s2202_s1 + $0x18] sm:$0xff] (!%p138_p2)   ;;  %v1754_v10 = vld [vmem:[%s2202_s1 + $0x20] sm:$0xff] (!%p138_p2)   ;;  %v1756_v15 = vld [vmem:[%s2202_s1 + $0x28] sm:$0xff] (!%p138_p2)  }
   0x9   : > { %1576 = vmatprep.subr.bf16.mxu1 (!%p138_p2), %v1832_v1  ;;  %1590 = vmatprep.mubr.msk.bf16.mxu1 (!%p138_p2), %vm1833_vm0, %v1832_v1  ;;  %v1757_v17 = vld [vmem:[%s2202_s1 + $0x70] sm:$0xff] (!%p138_p2)   ;;  %v1759_v21 = vld [vmem:[%s2202_s1 + $0x78] sm:$0xff] (!%p138_p2)   ;;  %v1762_v24 = vld [vmem:[%s2202_s1 + $0x80] sm:$0xff] (!%p138_p2)  }
   0xa   : > { %v1758_v18 = vld [vmem:[%s2202_s1 + $0x30] sm:$0xff] (!%p138_p2)   ;;  %v1760_v22 = vld [vmem:[%s2202_s1 + $0x38] sm:$0xff] (!%p138_p2)   ;;  %v1763_v25 = vld [vmem:[%s2202_s1 + $0xc0] sm:$0xff] (!%p138_p2)  }
   0xb   : > { %1557 = vmatpush3.bf16.msra.mxu0 (!%p138_p2), %v1747_v3  ;;  %v1764_v26 = vld [vmem:[%s2202_s1 + $0x88] sm:$0xff] (!%p138_p2)   ;;  %v1766_v28 = vld [vmem:[%s2202_s1 + $0x90] sm:$0xff] (!%p138_p2)   ;;  %v1768_v30 = vld [vmem:[%s2202_s1 + $0x98] sm:$0xff] (!%p138_p2)  }
   0xc   : > { %1577 = vmatpush3.bf16.msra.mxu1 (!%p138_p2), %v1748_v4  ;;  %1558 = vmatprep.subr.bf16.mxu0 (!%p138_p2), %v1832_v1  ;;  %v1765_v27 = vld [vmem:[%s2202_s1 + $0xc8] sm:$0xff] (!%p138_p2)   ;;  %v1767_v29 = vld [vmem:[%s2202_s1 + $0xd0] sm:$0xff] (!%p138_p2)   ;;  %v1769_v31 = vld [vmem:[%s2202_s1 + $0xd8] sm:$0xff] (!%p138_p2)  }
   0xd   : > { %s2206_s13 = smov (!%p160_p3, %s1256_s13), 1  ;;  %1578 = vmatprep.subr.bf16.mxu1 %v1832_v1  ;;  %v1770_v32 = vld [vmem:[%s2202_s1 + $0xa0] sm:$0xff]   ;;  %v1772_v34 = vld [vmem:[%s2202_s1 + $0xa8] sm:$0xff]   ;;  %v1774_v36 = vld [vmem:[%s2202_s1 + $0xb0] sm:$0xff]  }
   0xe   : > { %s1734_s26 = smul.u32 12, %s2206_s13  ;;  %v1771_v33 = vld [vmem:[%s2202_s1 + $0xe0] sm:$0xff]   ;;  %v1773_v35 = vld [vmem:[%s2202_s1 + $0xe8] sm:$0xff]   ;;  %v1775_v37 = vld [vmem:[%s2202_s1 + $0xf0] sm:$0xff]   ;;  %s1262_s18 = sshll.u32 %s2206_s13, 2 }
   0xf   : > { %1559 = vmatpush3.bf16.msra.mxu0 %v1749_v5  ;;  %v1776_v42 = vld [vmem:[%s2202_s1 + $0xb8] sm:$0xff]   ;;  %v1779_v46 = vld [vmem:[%s2202_s1 + $0x100] sm:$0xff]   ;;  %v1783_v49 = vld [vmem:[%s2202_s1 + $0x108] sm:$0xff]   ;;  %s168_s21 = scalar_lea.vmem %s2204_s3, %s1262_s18 }
  0x10   : > { %1579 = vmatpush3.bf16.msra.mxu1 %v1750_v6  ;;  %1560 = vmatprep.subr.bf16.mxu0 %v1832_v1  ;;  %s1904_s6 = scalar_lea.vmem %s2201_s0, %s1734_s26  ;;  %v1777_v44 = vld [vmem:[%s2202_s1 + $0xf8] sm:$0xff]   ;;  %v1782_v48 = vld [vmem:[%s2202_s1 + $0x140] sm:$0xff]   ;;  %v1784_v50 = vld [vmem:[%s2202_s1 + $0x148] sm:$0xff]  }
  0x11   : > { %1580 = vmatprep.subr.bf16.mxu1 %v1832_v1  ;;  %v171_v11 = vld [vmem:[%s1904_s6] sm:$0xf]  ;;  %v1916_v12 = vld [vmem:[%s1904_s6 + $0x4] sm:$0x1]  ;;  %v1785_v51 = vld [vmem:[%s2202_s1 + $0x110] sm:$0xff]  }
  0x12   : > { %v1279_v13 = vcombine.low %v171_v11, %v1916_v12  ;;  %v395_v38 = vld [vmem:[%s1904_s6] sm:$0xe]  ;;  %v508_v40 = vld [vmem:[%s1904_s6 + $0x4] sm:$0x3]  ;;  %v1786_v52 = vld [vmem:[%s2202_s1 + $0x150] sm:$0xff]  }
  0x13   : > { %1561 = vmatpush3.bf16.msra.mxu0 %v1751_v7  ;;  %v507_v39 = vld [vmem:[%s1904_s6] sm:$0xc]  ;;  %v1312_v41 = vcombine.low %v395_v38, %v1916_v12  ;;  %v1787_v53 = vld [vmem:[%s2202_s1 + $0x118] sm:$0xff]   ;;  %v622_v55 = vld [vmem:[%s1904_s6 + $0x4] sm:$0x7] }
  0x14   : > { %1581 = vmatpush3.bf16.msra.mxu1 %v1752_v8  ;;  %1562 = vmatprep.subr.bf16.mxu0 %v1832_v1  ;;  %v214_v16 = vshll.u32 %v1279_v13, 16  ;;  %v212_v19 = vshrl.u32 %v1279_v13, 16  ;;  %v1337_v43 = vcombine.low %v507_v39, %v508_v40  ;;  %v1788_v54 = vld [vmem:[%s2202_s1 + $0x158] sm:$0xff]   ;;  %v1789_v56 = vld [vmem:[%s2202_s1 + $0x120] sm:$0xff]   ;;  %v1362_v58 = vcombine.low %v507_v39, %v622_v55  ;;  %v1791_v59 = vld [vmem:[%s2202_s1 + $0x128] sm:$0xff]  }
  0x15   : > { %1582 = vmatprep.subr.bf16.mxu1 %v1832_v1  ;;  %v416_v45 = vrot.slane %v1312_v41, 1  ;;  %v1790_v57 = vld [vmem:[%s2202_s1 + $0x160] sm:$0xff]   ;;  %v1792_v60 = vld [vmem:[%s2202_s1 + $0x168] sm:$0xff]   ;;  %v1793_v63 = vld [vmem:[%s2202_s1 + $0x130] sm:$0xff]  }
  0x16   : > { %v216_v20 = vrot.slane %v214_v16, 1  ;;  %v531_v47 = vrot.slane %v1337_v43, 2  ;;  %v644_v61 = vshrl.u32 %v1362_v58, 16  ;;  %v647_v62 = vshll.u32 %v1362_v58, 16  ;;  %v1794_v0 = vld [vmem:[%s2202_s1 + $0x170] sm:$0xff]   ;;  %v1795_v5 = vld [vmem:[%s2202_s1 + $0x138] sm:$0xff]  }
  0x17   : > { %1563 = vmatpush3.bf16.msra.mxu0 %v1753_v9  ;;  %v741_v2 = vld [vmem:[%s1904_s6] sm:$0x8]  ;;  %v1796_v7 = vld [vmem:[%s2202_s1 + $0x178] sm:$0xff]   ;;  %v1800_v12 = vld [vmem:[%s2202_s1 + $0x188] sm:$0xff]  }
  0x18   : > { %1583 = vmatpush3.bf16.msra.mxu1 %v1754_v10  ;;  %1564 = vmatprep.subr.bf16.mxu0 %v1832_v1  ;;  %v217_v23 = vor.u32 %v216_v20, %v212_v19  ;;  %v646_v3 = vrot.slane %v644_v61, 2  ;;  %v649_v4 = vrot.slane %v647_v62, 3  ;;  %v1387_v6 = vcombine.low %v741_v2, %v622_v55  ;;  %v1797_v9 = vld [vmem:[%s2202_s1 + $0x180] sm:$0xff]   ;;  %v1801_v13 = vld [vmem:[%s2202_s1 + $0x1c8] sm:$0xff]   ;;  %v1804_v16 = vld [vmem:[%s2202_s1 + $0x198] sm:$0xff]  }
  0x19   : > { %1584 = vmatprep.subr.bf16.mxu1 %v1832_v1  ;;  %v1807_v19 = vld [vmem:[%s2202_s1 + $0x1e0] sm:$0xff]   ;;  %v1820_v39 = vld [vmem:[%s2202_s1 + $0x228] sm:$0xff]   ;;  %v1821_v40 = vld [vmem:[%s2202_s1 + $0x230] sm:$0xff]  }
  0x1a   : > { %v650_v8 = vor.u32 %v649_v4, %v646_v3  ;;  %v762_v10 = vrot.slane %v1387_v6, 3  ;;  %v960_v20 = vld [vmem:[%s1904_s6 + $0x4] sm:$0xf]  ;;  %v1822_v43 = vld [vmem:[%s2202_s1 + $0x238] sm:$0xff]  }
  0x1b   : > { %1565 = vmatpush3.bf16.msra.mxu0 %v1755_v14  ;;  %v1802_v14 = vld [vmem:[%s2202_s1 + $0x190] sm:$0xff]   ;;  %v1819_v38 = vld [vmem:[%s2202_s1 + $0x220] sm:$0xff]  }
  0x1c   : > { %1585 = vmatpush3.bf16.msra.mxu1 %v1756_v15  ;;  %1566 = vmatprep.subr.bf16.mxu0 %v1832_v1  ;;  %v1803_v15 = vld [vmem:[%s2202_s1 + $0x1d0] sm:$0xff]   ;;  %v1081_v41 = vld [vmem:[%s1904_s6 + $0x4] sm:$0xe] }
  0x1d   : > { %1586 = vmatprep.subr.bf16.mxu1 %v1832_v1 }
  0x1f   : > { %1567 = vmatpush3.bf16.msra.mxu0 %v1757_v17  ;;  %v1805_v17 = vld [vmem:[%s2202_s1 + $0x1d8] sm:$0xff]  }
  0x20   : > { %1587 = vmatpush3.bf16.msra.mxu1 %v1758_v18  ;;  %1568 = vmatprep.subr.bf16.mxu0 %v1832_v1  ;;  %v1806_v18 = vld [vmem:[%s2202_s1 + $0x1a0] sm:$0xff]  }
  0x21   : > { %1588 = vmatprep.subr.bf16.mxu1 %v1832_v1 }
  0x23   : > { %1569 = vmatpush3.bf16.msra.mxu0 %v1759_v21  ;;  %v961_v21 = vld [vmem:[%s1904_s6 + $0x8] sm:$0x1] }
  0x24   : > { %1589 = vmatpush3.bf16.msra.mxu1 %v1760_v22  ;;  %1594 = vmatprep.subr.bf16.mxu0 %v1832_v1  ;;  %v1808_v22 = vld [vmem:[%s2202_s1 + $0x1a8] sm:$0xff]  }
  0x25   : > { %1614 = vmatprep.subr.bf16.mxu1 %v1832_v1 }
  0x26   : > { %1571 = vmatmul.mubr.bf16.vlgmr.msra.gmra.mrb[0].mxu0 %v217_v23  ;;  %v1436_v23 = vcombine.low %v960_v20, %v961_v21  ;;  %v1470_v20 = vld [vmem:[%s2203_s2] ss:$0 sm:$0xff] }
  0x27   : > { %1591 = vmatmul.mubr.bf16.vlgmr.msra.gmra.mrb[0].mxu1 %v171_v11  ;;  %1595 = vmatpush3.bf16.msra.mxu0 %v1762_v24  ;;  %v1799_v11 = vld [vmem:[%s2202_s1 + $0x1c0] sm:$0xff]   ;;  %v1809_v24 = vld [vmem:[%s2202_s1 + $0x1e8] sm:$0xff]  }
  0x28   : > { %1615 = vmatpush3.bf16.msra.mxu1 %v1763_v25  ;;  %1596 = vmatprep.subr.bf16.mxu0 %v1832_v1  ;;  %v1810_v25 = vld [vmem:[%s2202_s1 + $0x1b0] sm:$0xff]  }
  0x29   : > { %1616 = vmatprep.subr.bf16.mxu1 %v1832_v1  ;;  %1610 = vmatprep.mubr.msk.bf16.mxu0 %vm1833_vm0, %v1832_v1 }
  0x2a   : > { %1630 = vmatprep.mubr.msk.bf16.mxu1 %vm1833_vm0, %v1832_v1 }
  0x2b   : > { %1597 = vmatpush3.bf16.msra.mxu0 %v1764_v26  ;;  %v987_v26 = vshll.u32 %v1436_v23, 16 }
  0x2c   : > { %1617 = vmatpush3.bf16.msra.mxu1 %v1765_v27  ;;  %1598 = vmatprep.subr.bf16.mxu0 %v1832_v1  ;;  %v1811_v27 = vld [vmem:[%s2202_s1 + $0x1f0] sm:$0xff]  }
  0x2d   : > { %1618 = vmatprep.subr.bf16.mxu1 %v1832_v1 }
  0x2f   : > { %1599 = vmatpush3.bf16.msra.mxu0 %v1766_v28  ;;  %v1812_v28 = vld [vmem:[%s2202_s1 + $0x1b8] sm:$0xff]  }
  0x30   : > { %1619 = vmatpush3.bf16.msra.mxu1 %v1767_v29  ;;  %1600 = vmatprep.subr.bf16.mxu0 %v1832_v1  ;;  %v985_v29 = vshrl.u32 %v1436_v23, 16 }
  0x31   : > { %1620 = vmatprep.subr.bf16.mxu1 %v1832_v1 }
  0x33   : > { %1601 = vmatpush3.bf16.msra.mxu0 %v1768_v30  ;;  %v989_v30 = vrot.slane %v987_v26, 1 }
  0x34   : > { %1621 = vmatpush3.bf16.msra.mxu1 %v1769_v31  ;;  %1602 = vmatprep.subr.bf16.mxu0 %v1832_v1  ;;  %v1813_v31 = vld [vmem:[%s2202_s1 + $0x1f8] sm:$0xff]  }
  0x35   : > { %1622 = vmatprep.subr.bf16.mxu1 %v1832_v1 }
  0x37   : > { %1603 = vmatpush3.bf16.msra.mxu0 %v1770_v32  ;;  %v853_v32 = vld [vmem:[%s1904_s6 + $0x4] sm:$0xf] }
  0x38   : > { %1623 = vmatpush3.bf16.msra.mxu1 %v1771_v33  ;;  %1604 = vmatprep.subr.bf16.mxu0 %v1832_v1  ;;  %v1814_v33 = vld [vmem:[%s2202_s1 + $0x200] sm:$0xff]  }
  0x39   : > { %1624 = vmatprep.subr.bf16.mxu1 %v1832_v1 }
  0x3b   : > { %1605 = vmatpush3.bf16.msra.mxu0 %v1772_v34  ;;  %v990_v34 = vor.u32 %v989_v30, %v985_v29 }
  0x3c   : > { %1625 = vmatpush3.bf16.msra.mxu1 %v1773_v35  ;;  %1606 = vmatprep.subr.bf16.mxu0 %v1832_v1  ;;  %v1816_v35 = vld [vmem:[%s2202_s1 + $0x208] sm:$0xff]  }
  0x3d   : > { %1626 = vmatprep.subr.bf16.mxu1 %v1832_v1 }
  0x3f   : > { %1607 = vmatpush3.bf16.msra.mxu0 %v1774_v36  ;;  %v1817_v36 = vld [vmem:[%s2202_s1 + $0x210] sm:$0xff]  }
  0x40   : > { %1627 = vmatpush3.bf16.msra.mxu1 %v1775_v37  ;;  %1608 = vmatprep.subr.bf16.mxu0 %v1832_v1  ;;  %v1818_v37 = vld [vmem:[%s2202_s1 + $0x218] sm:$0xff]  }
  0x41   : > { %1628 = vmatprep.subr.bf16.mxu1 %v1832_v1 }
  0x43   : > { %1609 = vmatpush3.bf16.msra.mxu0 %v1776_v42  ;;  %v1461_v42 = vcombine.low %v1081_v41, %v961_v21 }
  0x44   : > { %1629 = vmatpush3.bf16.msra.mxu1 %v1777_v44  ;;  %1634 = vmatprep.subr.bf16.mxu0 %v1832_v1 }
  0x45   : > { %1654 = vmatprep.subr.bf16.mxu1 %v1832_v1  ;;  %v1102_v44 = vrot.slane %v1461_v42, 1 }
  0x46   : > { %1611 = vmatmul.mubr.bf16.vlgmr.msra.gmra.mrb[4].mxu0 %v416_v45 }
  0x47   : > { %1635 = vmatpush3.bf16.msra.mxu0 %v1779_v46  ;;  %1631 = vmatmul.mubr.bf16.vlgmr.msra.gmra.mrb[4].mxu1 %v531_v47 }
  0x48   : > { %1655 = vmatpush3.bf16.msra.mxu1 %v1782_v48  ;;  %1636 = vmatprep.subr.bf16.mxu0 %v1832_v1 }
  0x49   : > { %1656 = vmatprep.subr.bf16.mxu1 %v1832_v1  ;;  %1650 = vmatprep.mubr.msk.bf16.mxu0 %vm1833_vm0, %v1832_v1 }
  0x4a   : > { %1670 = vmatprep.mubr.msk.bf16.mxu1 %vm1833_vm0, %v1832_v1 }
  0x4b   : > { %1637 = vmatpush3.bf16.msra.mxu0 %v1783_v49 }
  0x4c   : > { %1657 = vmatpush3.bf16.msra.mxu1 %v1784_v50  ;;  %1638 = vmatprep.subr.bf16.mxu0 %v1832_v1 }
  0x4d   : > { %1658 = vmatprep.subr.bf16.mxu1 %v1832_v1 }
  0x4f   : > { %1639 = vmatpush3.bf16.msra.mxu0 %v1785_v51 }
  0x50   : > { %1659 = vmatpush3.bf16.msra.mxu1 %v1786_v52  ;;  %1640 = vmatprep.subr.bf16.mxu0 %v1832_v1 }
  0x51   : > { %1660 = vmatprep.subr.bf16.mxu1 %v1832_v1 }
  0x53   : > { %1641 = vmatpush3.bf16.msra.mxu0 %v1787_v53 }
  0x54   : > { %1661 = vmatpush3.bf16.msra.mxu1 %v1788_v54  ;;  %1642 = vmatprep.subr.bf16.mxu0 %v1832_v1 }
  0x55   : > { %1662 = vmatprep.subr.bf16.mxu1 %v1832_v1 }
  0x57   : > { %1643 = vmatpush3.bf16.msra.mxu0 %v1789_v56 }
  0x58   : > { %1663 = vmatpush3.bf16.msra.mxu1 %v1790_v57  ;;  %1644 = vmatprep.subr.bf16.mxu0 %v1832_v1 }
  0x59   : > { %1664 = vmatprep.subr.bf16.mxu1 %v1832_v1 }
  0x5b   : > { %1645 = vmatpush3.bf16.msra.mxu0 %v1791_v59 }
  0x5c   : > { %1665 = vmatpush3.bf16.msra.mxu1 %v1792_v60  ;;  %1646 = vmatprep.subr.bf16.mxu0 %v1832_v1 }
  0x5d   : > { %1666 = vmatprep.subr.bf16.mxu1 %v1832_v1 }
  0x5f   : > { %1647 = vmatpush3.bf16.msra.mxu0 %v1793_v63 }
  0x60   : > { %1667 = vmatpush3.bf16.msra.mxu1 %v1794_v0  ;;  %1648 = vmatprep.subr.bf16.mxu0 %v1832_v1 }
  0x61   : > { %1668 = vmatprep.subr.bf16.mxu1 %v1832_v1 }
  0x63   : > { %1649 = vmatpush3.bf16.msra.mxu0 %v1795_v5 }
  0x64   : > { %1669 = vmatpush3.bf16.msra.mxu1 %v1796_v7  ;;  %1674 = vmatprep.subr.bf16.mxu0 %v1832_v1 }
  0x65   : > { %1694 = vmatprep.subr.bf16.mxu1 %v1832_v1 }
  0x66   : > { %1651 = vmatmul.mubr.bf16.vlgmr.msra.gmra.mrb[8].mxu0 %v650_v8 }
  0x67   : > { %1675 = vmatpush3.bf16.msra.mxu0 %v1797_v9  ;;  %1671 = vmatmul.mubr.bf16.vlgmr.msra.gmra.mrb[8].mxu1 %v762_v10 }
  0x68   : > { %1695 = vmatpush3.bf16.msra.mxu1 %v1799_v11  ;;  %1676 = vmatprep.subr.bf16.mxu0 %v1832_v1 }
  0x69   : > { %1696 = vmatprep.subr.bf16.mxu1 %v1832_v1  ;;  %1690 = vmatprep.mubr.msk.bf16.mxu0 %vm1833_vm0, %v1832_v1 }
  0x6a   : > { %1710 = vmatprep.mubr.msk.bf16.mxu1 %vm1833_vm0, %v1832_v1 }
  0x6b   : > { %1677 = vmatpush3.bf16.msra.mxu0 %v1800_v12 }
  0x6c   : > { %1697 = vmatpush3.bf16.msra.mxu1 %v1801_v13  ;;  %1678 = vmatprep.subr.bf16.mxu0 %v1832_v1 }
  0x6d   : > { %1698 = vmatprep.subr.bf16.mxu1 %v1832_v1 }
  0x6f   : > { %1679 = vmatpush3.bf16.msra.mxu0 %v1802_v14 }
  0x70   : > { %1699 = vmatpush3.bf16.msra.mxu1 %v1803_v15  ;;  %1680 = vmatprep.subr.bf16.mxu0 %v1832_v1 }
  0x71   : > { %1700 = vmatprep.subr.bf16.mxu1 %v1832_v1 }
  0x73   : > { %1681 = vmatpush3.bf16.msra.mxu0 %v1804_v16 }
  0x74   : > { %1701 = vmatpush3.bf16.msra.mxu1 %v1805_v17  ;;  %1682 = vmatprep.subr.bf16.mxu0 %v1832_v1 }
  0x75   : > { %1702 = vmatprep.subr.bf16.mxu1 %v1832_v1 }
  0x77   : > { %1683 = vmatpush3.bf16.msra.mxu0 %v1806_v18 }
  0x78   : > { %1703 = vmatpush3.bf16.msra.mxu1 %v1807_v19  ;;  %1684 = vmatprep.subr.bf16.mxu0 %v1832_v1 }
  0x79   : > { %1704 = vmatprep.subr.bf16.mxu1 %v1832_v1 }
  0x7b   : > { %1685 = vmatpush3.bf16.msra.mxu0 %v1808_v22 }
  0x7c   : > { %1705 = vmatpush3.bf16.msra.mxu1 %v1809_v24  ;;  %1686 = vmatprep.subr.bf16.mxu0 %v1832_v1 }
  0x7d   : > { %1706 = vmatprep.subr.bf16.mxu1 %v1832_v1 }
  0x7f   : > { %1687 = vmatpush3.bf16.msra.mxu0 %v1810_v25 }
  0x80   : > { %1707 = vmatpush3.bf16.msra.mxu1 %v1811_v27  ;;  %1688 = vmatprep.subr.bf16.mxu0 %v1832_v1 }
  0x81   : > { %1708 = vmatprep.subr.bf16.mxu1 %v1832_v1 }
  0x83   : > { %1689 = vmatpush3.bf16.msra.mxu0 %v1812_v28 }
  0x84   : > { %1709 = vmatpush3.bf16.msra.mxu1 %v1813_v31  ;;  %1714 = vmatprep.subr.bf16.mxu0 %v1832_v1 }
  0x86   : > { %1691 = vmatmul.mubr.bf16.vlgmr.msra.gmra.mrb[12].mxu0 %v853_v32 }
  0x87   : > { %1715 = vmatpush3.bf16.msra.mxu0 %v1814_v33  ;;  %1711 = vmatmul.mubr.bf16.vlgmr.msra.gmra.mrb[12].mxu1 %v990_v34 }
  0x88   : > { %1716 = vmatprep.subr.bf16.mxu0 %v1832_v1  ;;  %1730 = vmatprep.mubr.msk.bf16.mxu0 %vm1833_vm0, %v1832_v1 }
  0x8b   : > { %1717 = vmatpush3.bf16.msra.mxu0 %v1816_v35 }
  0x8c   : > { %1718 = vmatprep.subr.bf16.mxu0 %v1832_v1 }
  0x8f   : > { %1719 = vmatpush3.bf16.msra.mxu0 %v1817_v36 }
  0x90   : > { %1720 = vmatprep.subr.bf16.mxu0 %v1832_v1 }
  0x93   : > { %1721 = vmatpush3.bf16.msra.mxu0 %v1818_v37 }
  0x94   : > { %1722 = vmatprep.subr.bf16.mxu0 %v1832_v1 }
  0x97   : > { %1723 = vmatpush3.bf16.msra.mxu0 %v1819_v38 }
  0x98   : > { %1724 = vmatprep.subr.bf16.mxu0 %v1832_v1 }
  0x9b   : > { %1725 = vmatpush3.bf16.msra.mxu0 %v1820_v39 }
  0x9c   : > { %1726 = vmatprep.subr.bf16.mxu0 %v1832_v1 }
  0x9f   : > { %1727 = vmatpush3.bf16.msra.mxu0 %v1821_v40 }
  0xa0   : > { %1728 = vmatprep.subr.bf16.mxu0 %v1832_v1 }
  0xa3   : > { %1729 = vmatpush3.bf16.msra.mxu0 %v1822_v43 }
  0xa6   : > { %1731 = vmatmul.mubr.bf16.vlgmr.msra.gmra.mrb[16].mxu0 %v1102_v44 }
  0xf9   : > { %v301_v45 = vpop.f32.mrb[0].mxu0 }
  0xfa   : > { %v1572_v46 = vpop.f32.mrb[1].mxu0  ;;  %v389_v47 = vpop.f32.mrb[0].mxu1 }
  0xfb   : > { %v390_v48 = vadd.f32 %v389_v47, %v301_v45  ;;  %v304_v49 = vpop.f32.mrb[2].mxu0  ;;  %v1592_v50 = vpop.f32.mrb[1].mxu1 }
  0xfc   : > { %v1573_v51 = vpop.f32.mrb[3].mxu0  ;;  %v392_v52 = vpop.f32.mrb[2].mxu1 }
  0xfd   : > { %v1593_v53 = vpop.f32.mrb[3].mxu1 }
 0x119   : > { %v500_v54 = vpop.f32.mrb[4].mxu0 }
 0x11a   : > { %v506_v55 = vadd.f32 %v500_v54, %v390_v48  ;;  %v1612_v56 = vpop.f32.mrb[5].mxu0  ;;  %v615_v57 = vpop.f32.mrb[4].mxu1 }
 0x11b   : > { %v503_v58 = vpop.f32.mrb[6].mxu0  ;;  %v1632_v59 = vpop.f32.mrb[5].mxu1 }
 0x11c   : > { %v621_v60 = vadd.f32 %v615_v57, %v506_v55  ;;  %v1613_v1 = vpop.f32.mrb[7].mxu0  ;;  %v618_v61 = vpop.f32.mrb[6].mxu1 }
 0x11d   : > { %v1633_v62 = vpop.f32.mrb[7].mxu1 }
 0x139   : > { %v734_v63 = vpop.f32.mrb[8].mxu0 }
 0x13a   : > { %v740_v0 = vadd.f32 %v734_v63, %v621_v60  ;;  %v1652_v2 = vpop.f32.mrb[9].mxu0  ;;  %v846_v3 = vpop.f32.mrb[8].mxu1 }
 0x13b   : > { %v737_v4 = vpop.f32.mrb[10].mxu0  ;;  %v1672_v5 = vpop.f32.mrb[9].mxu1 }
 0x13c   : > { %v852_v6 = vadd.f32 %v846_v3, %v740_v0  ;;  %v1653_v7 = vpop.f32.mrb[11].mxu0  ;;  %v849_v8 = vpop.f32.mrb[10].mxu1 }
 0x13d   : > { %v1673_v9 = vpop.f32.mrb[11].mxu1 }
 0x159   : > { %v953_v10 = vpop.f32.mrb[12].mxu0 }
 0x15a   : > { %v959_v11 = vadd.f32 %v953_v10, %v852_v6  ;;  %v1692_v12 = vpop.f32.mrb[13].mxu0  ;;  %v1074_v13 = vpop.f32.mrb[12].mxu1 }
 0x15b   : > { %v956_v14 = vpop.f32.mrb[14].mxu0  ;;  %v1712_v15 = vpop.f32.mrb[13].mxu1 }
 0x15c   : > { %v1080_v16 = vadd.f32 %v1074_v13, %v959_v11  ;;  %v1693_v17 = vpop.f32.mrb[15].mxu0  ;;  %v1077_v18 = vpop.f32.mrb[14].mxu1 }
 0x15d   : > { %v1713_v19 = vpop.f32.mrb[15].mxu1 }
 0x179   : > { %v1186_v21 = vpop.f32.mrb[16].mxu0 }
 0x17a   : > { %v1192_v22 = vadd.f32 %v1186_v21, %v1080_v16  ;;  %v1732_v23 = vpop.f32.mrb[17].mxu0 }
 0x17b   : > { %v1189_v24 = vpop.f32.mrb[18].mxu0 }
 0x17c   : > { %v1199_v25 = vadd.f32 %v1470_v20, %v1192_v22  ;;  %v1733_v26 = vpop.f32.mrb[19].mxu0 }
 0x17e   : > { %v1200_v27 = vmax.f32 %v1199_v25, 0.0 }
 0x180   : > { %v1201_v28 = vpack.c.bf16 %v1200_v27, %v1200_v27 }
 0x182   : > { %1202 = vst [vmem:[%s168_s21] sm:$0xf] %v1201_v28 }
 0x183 PF: > { %s13_s12 = sadd.s32 1, %s1830_s12  }
 0x184   : > { %p10_p4 = scmp.ge.s32.totalorder %s13_s12, 4  }
 0x186   :  { %12 = sbr.rel (!%p10_p4) target bundleno = 1 (0x1), region = 70 }

// kernel: resnet34_ssd_forward.45
= control target key start
LH: loop header
LB: loop body
LE: loop exit
PB: predicated region body
PF: predicated region fallthrough
CT: control target
= control target key end

     0   :  { %s2132_s12 = smov 0   ;;  %s2622_s0 = inlined_call_operand.vmem [shape: bf16[2,20,128], index: 0, kind: input, shape index: {}]   ;;  %s2623_s1 = inlined_call_operand.vmem [shape: bf16[9,128,256], index: 1, kind: input, shape index: {}]   ;;  %s2624_s2 = inlined_call_operand.vmem [shape: f32[1,256], index: 2, kind: input, shape index: {}]   ;;  %s2625_s3 = inlined_call_operand.vmem [shape: bf16[2,8,256], index: 3, kind: output, shape index: {}]  }
   0x1 LB: > { %s1578_s13 = sadd.s32 4294967295, %s2109_s12   ;;  %p1582_p0 = scmp.ge.s32.totalorder %s2109_s12, 1  ;;  %s2109_s12 = sphi %s2132_s12, %s13_s12  }
   0x2   : > { %p137_p1 = scmp.lt.s32.totalorder %s2109_s12, 3 }
   0x4   : > { %p138_p2 = pnand %p1582_p0, %p137_p1 }
   0x5   : > { %v1880_v0 = vld [vmem:[%s2623_s1 + $0x84] ss:$8 sps:$4 sm:$0xff] (!%p138_p2)   ;;  %v2111_v2 = vmov (!%p138_p2), 0   ;;  %v1884_v3 = vld [vmem:[%s2623_s1 + $0x80] ss:$8 sps:$4 sm:$0xff] (!%p138_p2)   ;;  %p161_p3 = scmp.lt.s32.totalorder (!%p138_p2), %s1578_s13, 1 }
   0x6   : > { %141 = sbr.rel (%p138_p2) target bundleno = 389 (0x185), region = 32  ;;  %v1882_v1 = vld [vmem:[%s2623_s1 + $0x4] ss:$8 sps:$4 sm:$0xff] (!%p138_p2)   ;;  %333 = vmatprep.mubr.bf16.mxu0 (!%p138_p2), %v2111_v2  ;;  %454 = vmatprep.mubr.bf16.mxu1 (!%p138_p2), %v2111_v2  ;;  %v1885_v4 = vld [vmem:[%s2623_s1] ss:$8 sps:$4 sm:$0xff] (!%p138_p2)  }
   0x7   : > { %301 = vmatprep.subr.bf16.mxu0 (!%p138_p2), %v1880_v0  ;;  %422 = vmatprep.subr.bf16.mxu1 (!%p138_p2), %v1882_v1  ;;  %v1886_v5 = vld [vmem:[%s2623_s1 + $0x94] ss:$8 sps:$4 sm:$0xff] (!%p138_p2)   ;;  %v1890_v7 = vld [vmem:[%s2623_s1 + $0x90] ss:$8 sps:$4 sm:$0xff] (!%p138_p2)   ;;  %v1892_v9 = vld [vmem:[%s2623_s1 + $0xa4] ss:$8 sps:$4 sm:$0xff] (!%p138_p2)  }
   0x8   : > { %302 = vmatpush1.bf16.msra.mxu0 (!%p138_p2), %v1884_v3  ;;  %423 = vmatpush1.bf16.msra.mxu1 (!%p138_p2), %v1885_v4  ;;  %v1888_v6 = vld [vmem:[%s2623_s1 + $0x14] ss:$8 sps:$4 sm:$0xff] (!%p138_p2)   ;;  %v1891_v8 = vld [vmem:[%s2623_s1 + $0x10] ss:$8 sps:$4 sm:$0xff] (!%p138_p2)   ;;  %v1894_v10 = vld [vmem:[%s2623_s1 + $0x24] ss:$8 sps:$4 sm:$0xff] (!%p138_p2)  }
   0x9   : > { %303 = vmatprep.subr.bf16.mxu0 (!%p138_p2), %v1886_v5  ;;  %424 = vmatprep.subr.bf16.mxu1 (!%p138_p2), %v1888_v6  ;;  %v1896_v11 = vld [vmem:[%s2623_s1 + $0xa0] ss:$8 sps:$4 sm:$0xff] (!%p138_p2)   ;;  %v1898_v13 = vld [vmem:[%s2623_s1 + $0xb4] ss:$8 sps:$4 sm:$0xff] (!%p138_p2)   ;;  %v1902_v15 = vld [vmem:[%s2623_s1 + $0xb0] ss:$8 sps:$4 sm:$0xff] (!%p138_p2)  }
   0xa   : > { %v1897_v12 = vld [vmem:[%s2623_s1 + $0x20] ss:$8 sps:$4 sm:$0xff] (!%p138_p2)   ;;  %v1900_v14 = vld [vmem:[%s2623_s1 + $0x34] ss:$8 sps:$4 sm:$0xff] (!%p138_p2)   ;;  %v1903_v16 = vld [vmem:[%s2623_s1 + $0x30] ss:$8 sps:$4 sm:$0xff] (!%p138_p2)  }
   0xb   : > { %v1904_v17 = vld [vmem:[%s2623_s1 + $0xc4] ss:$8 sps:$4 sm:$0xff] (!%p138_p2)   ;;  %v1908_v19 = vld [vmem:[%s2623_s1 + $0xc0] ss:$8 sps:$4 sm:$0xff] (!%p138_p2)   ;;  %v1910_v21 = vld [vmem:[%s2623_s1 + $0xd4] ss:$8 sps:$4 sm:$0xff] (!%p138_p2)  }
   0xc   : > { %304 = vmatpush1.bf16.msra.mxu0 (!%p138_p2), %v1890_v7  ;;  %425 = vmatpush1.bf16.msra.mxu1 (!%p138_p2), %v1891_v8  ;;  %v1906_v18 = vld [vmem:[%s2623_s1 + $0x44] ss:$8 sps:$4 sm:$0xff] (!%p138_p2)   ;;  %v1909_v20 = vld [vmem:[%s2623_s1 + $0x40] ss:$8 sps:$4 sm:$0xff] (!%p138_p2)   ;;  %v1912_v22 = vld [vmem:[%s2623_s1 + $0x54] ss:$8 sps:$4 sm:$0xff] (!%p138_p2)  }
   0xd   : > { %305 = vmatprep.subr.bf16.mxu0 %v1892_v9  ;;  %426 = vmatprep.subr.bf16.mxu1 %v1894_v10  ;;  %s2627_s13 = smov (!%p161_p3, %s1578_s13), 1  ;;  %v1914_v23 = vld [vmem:[%s2623_s1 + $0xd0] ss:$8 sps:$4 sm:$0xff]   ;;  %v1916_v25 = vld [vmem:[%s2623_s1 + $0xe4] ss:$8 sps:$4 sm:$0xff]  }
   0xe   : > { %s1870_s25 = smul.u32 12, %s2627_s13  ;;  %v1915_v24 = vld [vmem:[%s2623_s1 + $0x50] ss:$8 sps:$4 sm:$0xff]   ;;  %v1918_v26 = vld [vmem:[%s2623_s1 + $0x64] ss:$8 sps:$4 sm:$0xff]   ;;  %s1868_s17 = sshll.u32 %s2627_s13, 3 }
   0xf   : > { %v1920_v30 = vld [vmem:[%s2623_s1 + $0xe0] ss:$8 sps:$4 sm:$0xff]   ;;  %v1922_v32 = vld [vmem:[%s2623_s1 + $0xf4] ss:$8 sps:$4 sm:$0xff]   ;;  %v1926_v35 = vld [vmem:[%s2623_s1 + $0xf0] ss:$8 sps:$4 sm:$0xff]   ;;  %s170_s20 = scalar_lea.vmem %s2625_s3, %s1868_s17 }
  0x10   : > { %306 = vmatpush1.bf16.msra.mxu0 %v1896_v11  ;;  %427 = vmatpush1.bf16.msra.mxu1 %v1897_v12  ;;  %s2218_s9 = scalar_lea.vmem %s2622_s0, %s1870_s25  ;;  %v1921_v31 = vld [vmem:[%s2623_s1 + $0x60] ss:$8 sps:$4 sm:$0xff]   ;;  %v1924_v34 = vld [vmem:[%s2623_s1 + $0x74] ss:$8 sps:$4 sm:$0xff]   ;;  %v1927_v38 = vld [vmem:[%s2623_s1 + $0x70] ss:$8 sps:$4 sm:$0xff]  }
  0x11   : > { %307 = vmatprep.subr.bf16.mxu0 %v1898_v13  ;;  %428 = vmatprep.subr.bf16.mxu1 %v1900_v14  ;;  %v173_v27 = vld [vmem:[%s2218_s9] sm:$0xf]  ;;  %v2234_v28 = vld [vmem:[%s2218_s9 + $0x4] sm:$0x1]  ;;  %v1937_v44 = vld [vmem:[%s2623_s1 + $0x114] ss:$8 sps:$4 sm:$0xff]  }
  0x12   : > { %v1602_v29 = vcombine.low %v173_v27, %v2234_v28  ;;  %v1931_v39 = vld [vmem:[%s2623_s1 + $0x104] ss:$8 sps:$4 sm:$0xff]   ;;  %v1929_v42 = vld [vmem:[%s2623_s1 + $0x100] ss:$8 sps:$4 sm:$0xff]   ;;  %v1940_v45 = vld [vmem:[%s2623_s1 + $0x194] ss:$8 sps:$4 sm:$0xff]  }
  0x13   : > { %v1934_v40 = vld [vmem:[%s2623_s1 + $0x184] ss:$8 sps:$4 sm:$0xff]   ;;  %v1932_v43 = vld [vmem:[%s2623_s1 + $0x180] ss:$8 sps:$4 sm:$0xff]   ;;  %v1935_v46 = vld [vmem:[%s2623_s1 + $0x110] ss:$8 sps:$4 sm:$0xff]  }
  0x14   : > { %308 = vmatpush1.bf16.msra.mxu0 %v1902_v15  ;;  %429 = vmatpush1.bf16.msra.mxu1 %v1903_v16  ;;  %v216_v33 = vshll.u32 %v1602_v29, 16  ;;  %v214_v36 = vshrl.u32 %v1602_v29, 16  ;;  %v1938_v47 = vld [vmem:[%s2623_s1 + $0x190] ss:$8 sps:$4 sm:$0xff]   ;;  %v1943_v48 = vld [vmem:[%s2623_s1 + $0x124] ss:$8 sps:$4 sm:$0xff]  }
  0x15   : > { %309 = vmatprep.subr.bf16.mxu0 %v1904_v17  ;;  %430 = vmatprep.subr.bf16.mxu1 %v1906_v18  ;;  %v1946_v49 = vld [vmem:[%s2623_s1 + $0x1a4] ss:$8 sps:$4 sm:$0xff]   ;;  %v1941_v50 = vld [vmem:[%s2623_s1 + $0x120] ss:$8 sps:$4 sm:$0xff]   ;;  %v1949_v52 = vld [vmem:[%s2623_s1 + $0x134] ss:$8 sps:$4 sm:$0xff]  }
  0x16   : > { %v218_v37 = vrot.slane %v216_v33, 1  ;;  %v1944_v51 = vld [vmem:[%s2623_s1 + $0x1a0] ss:$8 sps:$4 sm:$0xff]   ;;  %v1952_v53 = vld [vmem:[%s2623_s1 + $0x1b4] ss:$8 sps:$4 sm:$0xff]  }
  0x17   : > { %v1947_v54 = vld [vmem:[%s2623_s1 + $0x130] ss:$8 sps:$4 sm:$0xff]   ;;  %v1955_v56 = vld [vmem:[%s2623_s1 + $0x144] ss:$8 sps:$4 sm:$0xff]   ;;  %v1953_v58 = vld [vmem:[%s2623_s1 + $0x140] ss:$8 sps:$4 sm:$0xff]  }
  0x18   : > { %310 = vmatpush1.bf16.msra.mxu0 %v1908_v19  ;;  %431 = vmatpush1.bf16.msra.mxu1 %v1909_v20  ;;  %v219_v41 = vor.u32 %v218_v37, %v214_v36  ;;  %v1950_v55 = vld [vmem:[%s2623_s1 + $0x1b0] ss:$8 sps:$4 sm:$0xff]   ;;  %v1958_v57 = vld [vmem:[%s2623_s1 + $0x1c4] ss:$8 sps:$4 sm:$0xff]   ;;  %v1956_v59 = vld [vmem:[%s2623_s1 + $0x1c0] ss:$8 sps:$4 sm:$0xff]  }
  0x19   : > { %311 = vmatprep.subr.bf16.mxu0 %v1910_v21  ;;  %432 = vmatprep.subr.bf16.mxu1 %v1912_v22  ;;  %v1961_v60 = vld [vmem:[%s2623_s1 + $0x154] ss:$8 sps:$4 sm:$0xff]   ;;  %v1959_v62 = vld [vmem:[%s2623_s1 + $0x150] ss:$8 sps:$4 sm:$0xff]   ;;  %v1967_v0 = vld [vmem:[%s2623_s1 + $0x164] ss:$8 sps:$4 sm:$0xff]  }
  0x1a   : > { %v1964_v61 = vld [vmem:[%s2623_s1 + $0x1d4] ss:$8 sps:$4 sm:$0xff]   ;;  %v1962_v63 = vld [vmem:[%s2623_s1 + $0x1d0] ss:$8 sps:$4 sm:$0xff]   ;;  %v1970_v1 = vld [vmem:[%s2623_s1 + $0x1e4] ss:$8 sps:$4 sm:$0xff]  }
  0x1b   : > { %v1965_v3 = vld [vmem:[%s2623_s1 + $0x160] ss:$8 sps:$4 sm:$0xff]   ;;  %v1973_v5 = vld [vmem:[%s2623_s1 + $0x174] ss:$8 sps:$4 sm:$0xff]   ;;  %v610_v8 = vld [vmem:[%s2218_s9 + $0x4] sm:$0x3] }
  0x1c   : > { %312 = vmatpush1.bf16.msra.mxu0 %v1914_v23  ;;  %433 = vmatpush1.bf16.msra.mxu1 %v1915_v24  ;;  %v1968_v4 = vld [vmem:[%s2623_s1 + $0x1e0] ss:$8 sps:$4 sm:$0xff]   ;;  %v1976_v9 = vld [vmem:[%s2623_s1 + $0x1f4] ss:$8 sps:$4 sm:$0xff]   ;;  %v1971_v10 = vld [vmem:[%s2623_s1 + $0x170] ss:$8 sps:$4 sm:$0xff]  }
  0x1d   : > { %313 = vmatprep.subr.bf16.mxu0 %v1916_v25  ;;  %434 = vmatprep.subr.bf16.mxu1 %v1918_v26  ;;  %v463_v6 = vld [vmem:[%s2218_s9] sm:$0xe]  ;;  %v1974_v13 = vld [vmem:[%s2623_s1 + $0x1f0] ss:$8 sps:$4 sm:$0xff]   ;;  %v1980_v14 = vld [vmem:[%s2623_s1 + $0x204] ss:$8 sps:$4 sm:$0xff]  }
  0x1e   : > { %v609_v7 = vld [vmem:[%s2218_s9] sm:$0xc]  ;;  %v1651_v11 = vcombine.low %v463_v6, %v2234_v28  ;;  %v1985_v15 = vld [vmem:[%s2623_s1 + $0x284] ss:$8 sps:$4 sm:$0xff]   ;;  %v1988_v20 = vld [vmem:[%s2623_s1 + $0x214] ss:$8 sps:$4 sm:$0xff]  }
  0x1f   : > { %v1684_v12 = vcombine.low %v609_v7, %v610_v8  ;;  %v1978_v17 = vld [vmem:[%s2623_s1 + $0x200] ss:$8 sps:$4 sm:$0xff]   ;;  %v1991_v21 = vld [vmem:[%s2623_s1 + $0x294] ss:$8 sps:$4 sm:$0xff]   ;;  %v1986_v22 = vld [vmem:[%s2623_s1 + $0x210] ss:$8 sps:$4 sm:$0xff]  }
  0x20   : > { %314 = vmatpush1.bf16.msra.mxu0 %v1920_v30  ;;  %435 = vmatpush1.bf16.msra.mxu1 %v1921_v31  ;;  %v484_v16 = vrot.slane %v1651_v11, 1  ;;  %v1983_v19 = vld [vmem:[%s2623_s1 + $0x280] ss:$8 sps:$4 sm:$0xff]   ;;  %v1989_v23 = vld [vmem:[%s2623_s1 + $0x290] ss:$8 sps:$4 sm:$0xff]  }
  0x21   : > { %315 = vmatprep.subr.bf16.mxu0 %v1922_v32  ;;  %436 = vmatprep.subr.bf16.mxu1 %v1924_v34  ;;  %v633_v18 = vrot.slane %v1684_v12, 2  ;;  %v1994_v24 = vld [vmem:[%s2623_s1 + $0x224] ss:$8 sps:$4 sm:$0xff]   ;;  %v1992_v26 = vld [vmem:[%s2623_s1 + $0x220] ss:$8 sps:$4 sm:$0xff]  }
  0x22   : > { %v1997_v25 = vld [vmem:[%s2623_s1 + $0x2a4] ss:$8 sps:$4 sm:$0xff]   ;;  %v2000_v28 = vld [vmem:[%s2623_s1 + $0x234] ss:$8 sps:$4 sm:$0xff]   ;;  %v1998_v30 = vld [vmem:[%s2623_s1 + $0x230] ss:$8 sps:$4 sm:$0xff]  }
  0x23   : > { %v2003_v29 = vld [vmem:[%s2623_s1 + $0x2b4] ss:$8 sps:$4 sm:$0xff]   ;;  %v2001_v31 = vld [vmem:[%s2623_s1 + $0x2b0] ss:$8 sps:$4 sm:$0xff]   ;;  %v2006_v32 = vld [vmem:[%s2623_s1 + $0x244] ss:$8 sps:$4 sm:$0xff]  }
  0x24   : > { %316 = vmatpush1.bf16.msra.mxu0 %v1926_v35  ;;  %437 = vmatpush1.bf16.msra.mxu1 %v1927_v38  ;;  %v2009_v33 = vld [vmem:[%s2623_s1 + $0x2c4] ss:$8 sps:$4 sm:$0xff]   ;;  %v2004_v35 = vld [vmem:[%s2623_s1 + $0x240] ss:$8 sps:$4 sm:$0xff]   ;;  %v2012_v37 = vld [vmem:[%s2623_s1 + $0x254] ss:$8 sps:$4 sm:$0xff]  }
  0x25   : > { %566 = vmatprep.subr.bf16.mxu0 %v1931_v39  ;;  %715 = vmatprep.subr.bf16.mxu1 %v1934_v40  ;;  %v758_v34 = vld [vmem:[%s2218_s9 + $0x4] sm:$0x7]  ;;  %v2007_v36 = vld [vmem:[%s2623_s1 + $0x2c0] ss:$8 sps:$4 sm:$0xff]   ;;  %v2015_v38 = vld [vmem:[%s2623_s1 + $0x2d4] ss:$8 sps:$4 sm:$0xff]  }
  0x26   : > { %v1717_v39 = vcombine.low %v609_v7, %v758_v34  ;;  %v2010_v40 = vld [vmem:[%s2623_s1 + $0x250] ss:$8 sps:$4 sm:$0xff]   ;;  %v2044_v6 = vld [vmem:[%s2623_s1 + $0x3a0] ss:$8 sps:$4 sm:$0xff]   ;;  %v2049_v7 = vld [vmem:[%s2623_s1 + $0x334] ss:$8 sps:$4 sm:$0xff]  }
  0x27   : > { %334 = vmatmul.mubr.bf16.vlgmr.msra.gmra.mrb[0].mxu0 %v219_v41  ;;  %455 = vmatmul.mubr.bf16.vlgmr.msra.gmra.mrb[0].mxu1 %v173_v27  ;;  %v1995_v27 = vld [vmem:[%s2623_s1 + $0x2a0] ss:$8 sps:$4 sm:$0xff]   ;;  %v2013_v41 = vld [vmem:[%s2623_s1 + $0x2d0] ss:$8 sps:$4 sm:$0xff]   ;;  %v2052_v8 = vld [vmem:[%s2623_s1 + $0x3b4] ss:$8 sps:$4 sm:$0xff]  }
  0x28   : > { %567 = vmatpush1.bf16.msra.mxu0 %v1929_v42  ;;  %716 = vmatpush1.bf16.msra.mxu1 %v1932_v43  ;;  %v2018_v42 = vld [vmem:[%s2623_s1 + $0x264] ss:$8 sps:$4 sm:$0xff]  }
  0x29   : > { %568 = vmatprep.subr.bf16.mxu0 %v1937_v44  ;;  %717 = vmatprep.subr.bf16.mxu1 %v1940_v45  ;;  %v2021_v43 = vld [vmem:[%s2623_s1 + $0x2e4] ss:$8 sps:$4 sm:$0xff]   ;;  %v780_v44 = vshrl.u32 %v1717_v39, 16  ;;  %v2016_v45 = vld [vmem:[%s2623_s1 + $0x260] ss:$8 sps:$4 sm:$0xff]  }
  0x2a   : > { %598 = vmatprep.mubr.bf16.mxu0 %v2111_v2  ;;  %747 = vmatprep.mubr.bf16.mxu1 %v2111_v2  ;;  %v2055_v11 = vld [vmem:[%s2623_s1 + $0x344] ss:$8 sps:$4 sm:$0xff]  }
  0x2b   : > { %v2058_v12 = vld [vmem:[%s2623_s1 + $0x3c4] ss:$8 sps:$4 sm:$0xff]  }
  0x2c   : > { %569 = vmatpush1.bf16.msra.mxu0 %v1935_v46  ;;  %718 = vmatpush1.bf16.msra.mxu1 %v1938_v47  ;;  %v2019_v46 = vld [vmem:[%s2623_s1 + $0x2e0] ss:$8 sps:$4 sm:$0xff]   ;;  %v783_v47 = vshll.u32 %v1717_v39, 16  ;;  %v2086_v39 = vld [vmem:[%s2623_s1 + $0x424] ss:$8 sps:$4 sm:$0xff]  }
  0x2d   : > { %570 = vmatprep.subr.bf16.mxu0 %v1943_v48  ;;  %719 = vmatprep.subr.bf16.mxu1 %v1946_v49  ;;  %v911_v48 = vld [vmem:[%s2218_s9] sm:$0x8]  ;;  %v2024_v49 = vld [vmem:[%s2623_s1 + $0x274] ss:$8 sps:$4 sm:$0xff]  }
  0x30   : > { %571 = vmatpush1.bf16.msra.mxu0 %v1941_v50  ;;  %720 = vmatpush1.bf16.msra.mxu1 %v1944_v51  ;;  %v2027_v50 = vld [vmem:[%s2623_s1 + $0x2f4] ss:$8 sps:$4 sm:$0xff]   ;;  %v2022_v51 = vld [vmem:[%s2623_s1 + $0x270] ss:$8 sps:$4 sm:$0xff]  }
  0x31   : > { %572 = vmatprep.subr.bf16.mxu0 %v1949_v52  ;;  %721 = vmatprep.subr.bf16.mxu1 %v1952_v53  ;;  %v782_v52 = vrot.slane %v780_v44, 2  ;;  %v785_v53 = vrot.slane %v783_v47, 3  ;;  %v2095_v44 = vld [vmem:[%s2623_s1 + $0x454] ss:$8 sps:$4 sm:$0xff]   ;;  %v2096_v47 = vld [vmem:[%s2623_s1 + $0x460] ss:$8 sps:$4 sm:$0xff]  }
  0x34   : > { %573 = vmatpush1.bf16.msra.mxu0 %v1947_v54  ;;  %722 = vmatpush1.bf16.msra.mxu1 %v1950_v55  ;;  %v1750_v54 = vcombine.low %v911_v48, %v758_v34  ;;  %v2025_v55 = vld [vmem:[%s2623_s1 + $0x2f0] ss:$8 sps:$4 sm:$0xff]   ;;  %v1353_v48 = vld [vmem:[%s2218_s9 + $0x4] sm:$0xe] }
  0x35   : > { %574 = vmatprep.subr.bf16.mxu0 %v1955_v56  ;;  %723 = vmatprep.subr.bf16.mxu1 %v1958_v57  ;;  %v2030_v56 = vld [vmem:[%s2623_s1 + $0x304] ss:$8 sps:$4 sm:$0xff]  }
  0x36   : > { %v2034_v57 = vld [vmem:[%s2623_s1 + $0x384] ss:$8 sps:$4 sm:$0xff]  }
  0x38   : > { %575 = vmatpush1.bf16.msra.mxu0 %v1953_v58  ;;  %724 = vmatpush1.bf16.msra.mxu1 %v1956_v59  ;;  %v786_v58 = vor.u32 %v785_v53, %v782_v52  ;;  %v2028_v59 = vld [vmem:[%s2623_s1 + $0x300] ss:$8 sps:$4 sm:$0xff]  }
  0x39   : > { %576 = vmatprep.subr.bf16.mxu0 %v1961_v60  ;;  %725 = vmatprep.subr.bf16.mxu1 %v1964_v61  ;;  %v932_v60 = vrot.slane %v1750_v54, 3  ;;  %v2032_v61 = vld [vmem:[%s2623_s1 + $0x380] ss:$8 sps:$4 sm:$0xff]  }
  0x3c   : > { %577 = vmatpush1.bf16.msra.mxu0 %v1959_v62  ;;  %726 = vmatpush1.bf16.msra.mxu1 %v1962_v63  ;;  %v2037_v62 = vld [vmem:[%s2623_s1 + $0x314] ss:$8 sps:$4 sm:$0xff]  }
  0x3d   : > { %578 = vmatprep.subr.bf16.mxu0 %v1967_v0  ;;  %727 = vmatprep.subr.bf16.mxu1 %v1970_v1  ;;  %v2040_v63 = vld [vmem:[%s2623_s1 + $0x394] ss:$8 sps:$4 sm:$0xff]   ;;  %v2035_v0 = vld [vmem:[%s2623_s1 + $0x310] ss:$8 sps:$4 sm:$0xff]  }
  0x3e   : > { %v2038_v1 = vld [vmem:[%s2623_s1 + $0x390] ss:$8 sps:$4 sm:$0xff]  }
  0x40   : > { %579 = vmatpush1.bf16.msra.mxu0 %v1965_v3  ;;  %728 = vmatpush1.bf16.msra.mxu1 %v1968_v4  ;;  %v2043_v3 = vld [vmem:[%s2623_s1 + $0x324] ss:$8 sps:$4 sm:$0xff]  }
  0x41   : > { %580 = vmatprep.subr.bf16.mxu0 %v1973_v5  ;;  %729 = vmatprep.subr.bf16.mxu1 %v1976_v9  ;;  %v2046_v4 = vld [vmem:[%s2623_s1 + $0x3a4] ss:$8 sps:$4 sm:$0xff]   ;;  %v2041_v5 = vld [vmem:[%s2623_s1 + $0x320] ss:$8 sps:$4 sm:$0xff]   ;;  %v2047_v9 = vld [vmem:[%s2623_s1 + $0x330] ss:$8 sps:$4 sm:$0xff]  }
  0x44   : > { %581 = vmatpush1.bf16.msra.mxu0 %v1971_v10  ;;  %730 = vmatpush1.bf16.msra.mxu1 %v1974_v13  ;;  %v2050_v10 = vld [vmem:[%s2623_s1 + $0x3b0] ss:$8 sps:$4 sm:$0xff]   ;;  %v2053_v13 = vld [vmem:[%s2623_s1 + $0x340] ss:$8 sps:$4 sm:$0xff]  }
  0x45   : > { %868 = vmatprep.subr.bf16.mxu0 %v1980_v14  ;;  %1014 = vmatprep.subr.bf16.mxu1 %v1985_v15  ;;  %v2056_v14 = vld [vmem:[%s2623_s1 + $0x3c0] ss:$8 sps:$4 sm:$0xff]   ;;  %v1198_v15 = vld [vmem:[%s2218_s9 + $0x4] sm:$0xf] }
  0x47   : > { %599 = vmatmul.mubr.bf16.vlgmr.msra.gmra.mrb[4].mxu0 %v484_v16  ;;  %748 = vmatmul.mubr.bf16.vlgmr.msra.gmra.mrb[4].mxu1 %v633_v18  ;;  %v2521_v16 = vld [vmem:[%s2218_s9 + $0x8] sm:$0x1]  ;;  %v2064_v18 = vld [vmem:[%s2623_s1 + $0x3d4] ss:$8 sps:$4 sm:$0xff]  }
  0x48   : > { %869 = vmatpush1.bf16.msra.mxu0 %v1978_v17  ;;  %1015 = vmatpush1.bf16.msra.mxu1 %v1983_v19  ;;  %v2061_v17 = vld [vmem:[%s2623_s1 + $0x354] ss:$8 sps:$4 sm:$0xff]   ;;  %v1815_v19 = vcombine.low %v1198_v15, %v2521_v16 }
  0x49   : > { %870 = vmatprep.subr.bf16.mxu0 %v1988_v20  ;;  %1016 = vmatprep.subr.bf16.mxu1 %v1991_v21  ;;  %v2059_v20 = vld [vmem:[%s2623_s1 + $0x350] ss:$8 sps:$4 sm:$0xff]  }
  0x4a   : > { %900 = vmatprep.mubr.bf16.mxu0 %v2111_v2  ;;  %1046 = vmatprep.mubr.bf16.mxu1 %v2111_v2  ;;  %v2062_v21 = vld [vmem:[%s2623_s1 + $0x3d0] ss:$8 sps:$4 sm:$0xff]  }
  0x4c   : > { %871 = vmatpush1.bf16.msra.mxu0 %v1986_v22  ;;  %1017 = vmatpush1.bf16.msra.mxu1 %v1989_v23  ;;  %v2067_v22 = vld [vmem:[%s2623_s1 + $0x364] ss:$8 sps:$4 sm:$0xff]  }
  0x4d   : > { %872 = vmatprep.subr.bf16.mxu0 %v1994_v24  ;;  %1018 = vmatprep.subr.bf16.mxu1 %v1997_v25  ;;  %v2070_v23 = vld [vmem:[%s2623_s1 + $0x3e4] ss:$8 sps:$4 sm:$0xff]   ;;  %v1225_v24 = vshll.u32 %v1815_v19, 16  ;;  %v2065_v25 = vld [vmem:[%s2623_s1 + $0x360] ss:$8 sps:$4 sm:$0xff]  }
  0x50   : > { %873 = vmatpush1.bf16.msra.mxu0 %v1992_v26  ;;  %1019 = vmatpush1.bf16.msra.mxu1 %v1995_v27  ;;  %v2068_v26 = vld [vmem:[%s2623_s1 + $0x3e0] ss:$8 sps:$4 sm:$0xff]   ;;  %v2073_v27 = vld [vmem:[%s2623_s1 + $0x374] ss:$8 sps:$4 sm:$0xff]  }
  0x51   : > { %874 = vmatprep.subr.bf16.mxu0 %v2000_v28  ;;  %1020 = vmatprep.subr.bf16.mxu1 %v2003_v29  ;;  %v2076_v28 = vld [vmem:[%s2623_s1 + $0x3f4] ss:$8 sps:$4 sm:$0xff]   ;;  %v1223_v29 = vshrl.u32 %v1815_v19, 16 }
  0x54   : > { %875 = vmatpush1.bf16.msra.mxu0 %v1998_v30  ;;  %1021 = vmatpush1.bf16.msra.mxu1 %v2001_v31  ;;  %v1227_v30 = vrot.slane %v1225_v24, 1  ;;  %v2071_v31 = vld [vmem:[%s2623_s1 + $0x370] ss:$8 sps:$4 sm:$0xff]  }
  0x55   : > { %876 = vmatprep.subr.bf16.mxu0 %v2006_v32  ;;  %1022 = vmatprep.subr.bf16.mxu1 %v2009_v33  ;;  %v2074_v32 = vld [vmem:[%s2623_s1 + $0x3f0] ss:$8 sps:$4 sm:$0xff]   ;;  %v2079_v33 = vld [vmem:[%s2623_s1 + $0x404] ss:$8 sps:$4 sm:$0xff]  }
  0x56   : > { %v1228_v34 = vor.u32 %v1227_v30, %v1223_v29 }
  0x58   : > { %877 = vmatpush1.bf16.msra.mxu0 %v2004_v35  ;;  %1023 = vmatpush1.bf16.msra.mxu1 %v2007_v36  ;;  %v1057_v35 = vld [vmem:[%s2218_s9 + $0x4] sm:$0xf]  ;;  %v2077_v36 = vld [vmem:[%s2623_s1 + $0x400] ss:$8 sps:$4 sm:$0xff]  }
  0x59   : > { %878 = vmatprep.subr.bf16.mxu0 %v2012_v37  ;;  %1024 = vmatprep.subr.bf16.mxu1 %v2015_v38  ;;  %v2083_v37 = vld [vmem:[%s2623_s1 + $0x414] ss:$8 sps:$4 sm:$0xff]   ;;  %v2081_v38 = vld [vmem:[%s2623_s1 + $0x410] ss:$8 sps:$4 sm:$0xff]  }
  0x5c   : > { %879 = vmatpush1.bf16.msra.mxu0 %v2010_v40  ;;  %1025 = vmatpush1.bf16.msra.mxu1 %v2013_v41  ;;  %v2084_v40 = vld [vmem:[%s2623_s1 + $0x420] ss:$8 sps:$4 sm:$0xff]   ;;  %v2089_v41 = vld [vmem:[%s2623_s1 + $0x434] ss:$8 sps:$4 sm:$0xff]  }
  0x5d   : > { %880 = vmatprep.subr.bf16.mxu0 %v2018_v42  ;;  %1026 = vmatprep.subr.bf16.mxu1 %v2021_v43  ;;  %v2092_v42 = vld [vmem:[%s2623_s1 + $0x444] ss:$8 sps:$4 sm:$0xff]   ;;  %v2090_v43 = vld [vmem:[%s2623_s1 + $0x440] ss:$8 sps:$4 sm:$0xff]  }
  0x60   : > { %881 = vmatpush1.bf16.msra.mxu0 %v2016_v45  ;;  %1027 = vmatpush1.bf16.msra.mxu1 %v2019_v46  ;;  %v2093_v45 = vld [vmem:[%s2623_s1 + $0x450] ss:$8 sps:$4 sm:$0xff]   ;;  %v2098_v46 = vld [vmem:[%s2623_s1 + $0x464] ss:$8 sps:$4 sm:$0xff]  }
  0x61   : > { %882 = vmatprep.subr.bf16.mxu0 %v2024_v49  ;;  %1028 = vmatprep.subr.bf16.mxu1 %v2027_v50  ;;  %v2101_v49 = vld [vmem:[%s2623_s1 + $0x474] ss:$8 sps:$4 sm:$0xff]   ;;  %v1848_v50 = vcombine.low %v1353_v48, %v2521_v16 }
  0x63   : > { %v1374_v52 = vrot.slane %v1848_v50, 1 }
  0x64   : > { %883 = vmatpush1.bf16.msra.mxu0 %v2022_v51  ;;  %1029 = vmatpush1.bf16.msra.mxu1 %v2025_v55  ;;  %v2099_v51 = vld [vmem:[%s2623_s1 + $0x470] ss:$8 sps:$4 sm:$0xff]  }
  0x65   : > { %1155 = vmatprep.subr.bf16.mxu0 %v2030_v56  ;;  %1310 = vmatprep.subr.bf16.mxu1 %v2034_v57 }
  0x67   : > { %901 = vmatmul.mubr.bf16.vlgmr.msra.gmra.mrb[8].mxu0 %v786_v58  ;;  %1047 = vmatmul.mubr.bf16.vlgmr.msra.gmra.mrb[8].mxu1 %v932_v60 }
  0x68   : > { %1156 = vmatpush1.bf16.msra.mxu0 %v2028_v59  ;;  %1311 = vmatpush1.bf16.msra.mxu1 %v2032_v61 }
  0x69   : > { %1157 = vmatprep.subr.bf16.mxu0 %v2037_v62  ;;  %1312 = vmatprep.subr.bf16.mxu1 %v2040_v63 }
  0x6a   : > { %1187 = vmatprep.mubr.bf16.mxu0 %v2111_v2  ;;  %1342 = vmatprep.mubr.bf16.mxu1 %v2111_v2 }
  0x6c   : > { %1158 = vmatpush1.bf16.msra.mxu0 %v2035_v0  ;;  %1313 = vmatpush1.bf16.msra.mxu1 %v2038_v1 }
  0x6d   : > { %1159 = vmatprep.subr.bf16.mxu0 %v2043_v3  ;;  %1314 = vmatprep.subr.bf16.mxu1 %v2046_v4 }
  0x70   : > { %1160 = vmatpush1.bf16.msra.mxu0 %v2041_v5  ;;  %1315 = vmatpush1.bf16.msra.mxu1 %v2044_v6 }
  0x71   : > { %1161 = vmatprep.subr.bf16.mxu0 %v2049_v7  ;;  %1316 = vmatprep.subr.bf16.mxu1 %v2052_v8 }
  0x74   : > { %1162 = vmatpush1.bf16.msra.mxu0 %v2047_v9  ;;  %1317 = vmatpush1.bf16.msra.mxu1 %v2050_v10 }
  0x75   : > { %1163 = vmatprep.subr.bf16.mxu0 %v2055_v11  ;;  %1318 = vmatprep.subr.bf16.mxu1 %v2058_v12 }
  0x78   : > { %1164 = vmatpush1.bf16.msra.mxu0 %v2053_v13  ;;  %1319 = vmatpush1.bf16.msra.mxu1 %v2056_v14 }
  0x79   : > { %1165 = vmatprep.subr.bf16.mxu0 %v2061_v17  ;;  %1320 = vmatprep.subr.bf16.mxu1 %v2064_v18 }
  0x7c   : > { %1166 = vmatpush1.bf16.msra.mxu0 %v2059_v20  ;;  %1321 = vmatpush1.bf16.msra.mxu1 %v2062_v21 }
  0x7d   : > { %1167 = vmatprep.subr.bf16.mxu0 %v2067_v22  ;;  %1322 = vmatprep.subr.bf16.mxu1 %v2070_v23 }
  0x80   : > { %1168 = vmatpush1.bf16.msra.mxu0 %v2065_v25  ;;  %1323 = vmatpush1.bf16.msra.mxu1 %v2068_v26 }
  0x81   : > { %1169 = vmatprep.subr.bf16.mxu0 %v2073_v27  ;;  %1324 = vmatprep.subr.bf16.mxu1 %v2076_v28 }
  0x84   : > { %1170 = vmatpush1.bf16.msra.mxu0 %v2071_v31  ;;  %1325 = vmatpush1.bf16.msra.mxu1 %v2074_v32 }
  0x85   : > { %1456 = vmatprep.subr.bf16.mxu0 %v2079_v33 }
  0x87   : > { %1188 = vmatmul.mubr.bf16.vlgmr.msra.gmra.mrb[12].mxu0 %v1057_v35  ;;  %1343 = vmatmul.mubr.bf16.vlgmr.msra.gmra.mrb[12].mxu1 %v1228_v34 }
  0x88   : > { %1457 = vmatpush1.bf16.msra.mxu0 %v2077_v36  ;;  %1488 = vmatprep.mubr.bf16.mxu0 %v2111_v2  ;;  %v2087_v2 = vld [vmem:[%s2623_s1 + $0x430] ss:$8 sps:$4 sm:$0xff]   ;;  %v1500_v36 = vlaneseq }
  0x89   : > { %1458 = vmatprep.subr.bf16.mxu0 %v2083_v37 }
  0x8a   : > { %v1501_v37 = vshrl.u32 %v1500_v36, 7 }
  0x8c   : > { %1459 = vmatpush1.bf16.msra.mxu0 %v2081_v38  ;;  %v1502_v38 = vsub.s32 0, %v1501_v37 }
  0x8d   : > { %1460 = vmatprep.subr.bf16.mxu0 %v2086_v39  ;;  %v172_v39 = vld [vmem:[%s2624_s2] sm:$0x3] }
  0x90   : > { %1461 = vmatpush1.bf16.msra.mxu0 %v2084_v40  ;;  %v1506_v40 = vsub.s32 1, %v1501_v37 }
  0x91   : > { %1462 = vmatprep.subr.bf16.mxu0 %v2089_v41  ;;  %v1503_v41 = vrot.slane %v172_v39, %v1502_v38 }
  0x94   : > { %1463 = vmatpush1.bf16.msra.mxu0 %v2087_v2 }
  0x95   : > { %1464 = vmatprep.subr.bf16.mxu0 %v2092_v42  ;;  %v1507_v42 = vrot.slane %v172_v39, %v1506_v40 }
  0x98   : > { %1465 = vmatpush1.bf16.msra.mxu0 %v2090_v43 }
  0x99   : > { %1466 = vmatprep.subr.bf16.mxu0 %v2095_v44 }
  0x9c   : > { %1467 = vmatpush1.bf16.msra.mxu0 %v2093_v45 }
  0x9d   : > { %1468 = vmatprep.subr.bf16.mxu0 %v2098_v46 }
  0xa0   : > { %1469 = vmatpush1.bf16.msra.mxu0 %v2096_v47 }
  0xa1   : > { %1470 = vmatprep.subr.bf16.mxu0 %v2101_v49 }
  0xa4   : > { %1471 = vmatpush1.bf16.msra.mxu0 %v2099_v51 }
  0xa7   : > { %1489 = vmatmul.mubr.bf16.vlgmr.msra.gmra.mrb[16].mxu0 %v1374_v52 }
  0xfa   : > { %v335_v53 = vpop.f32.mrb[0].mxu0  ;;  %v456_v54 = vpop.f32.mrb[0].mxu1 }
  0xfb   : > { %v457_v55 = vadd.f32 %v456_v54, %v335_v53  ;;  %v337_v56 = vpop.f32.mrb[1].mxu0  ;;  %v458_v57 = vpop.f32.mrb[1].mxu1 }
  0xfc   : > { %v459_v58 = vadd.f32 %v458_v57, %v337_v56  ;;  %v339_v59 = vpop.f32.mrb[2].mxu0  ;;  %v460_v60 = vpop.f32.mrb[2].mxu1 }
  0xfd   : > { %v340_v61 = vpop.f32.mrb[3].mxu0  ;;  %v461_v62 = vpop.f32.mrb[3].mxu1 }
 0x11a   : > { %v600_v63 = vpop.f32.mrb[4].mxu0  ;;  %v749_v0 = vpop.f32.mrb[4].mxu1 }
 0x11b   : > { %v607_v1 = vadd.f32 %v600_v63, %v457_v55  ;;  %v602_v3 = vpop.f32.mrb[5].mxu0  ;;  %v751_v4 = vpop.f32.mrb[5].mxu1 }
 0x11c   : > { %v608_v5 = vadd.f32 %v602_v3, %v459_v58  ;;  %v604_v6 = vpop.f32.mrb[6].mxu0  ;;  %v753_v7 = vpop.f32.mrb[6].mxu1 }
 0x11d   : > { %v756_v8 = vadd.f32 %v749_v0, %v607_v1  ;;  %v605_v9 = vpop.f32.mrb[7].mxu0  ;;  %v754_v10 = vpop.f32.mrb[7].mxu1 }
 0x11e   : > { %v757_v11 = vadd.f32 %v751_v4, %v608_v5 }
 0x13a   : > { %v902_v12 = vpop.f32.mrb[8].mxu0  ;;  %v1048_v13 = vpop.f32.mrb[8].mxu1 }
 0x13b   : > { %v909_v14 = vadd.f32 %v902_v12, %v756_v8  ;;  %v904_v15 = vpop.f32.mrb[9].mxu0  ;;  %v1050_v16 = vpop.f32.mrb[9].mxu1 }
 0x13c   : > { %v910_v17 = vadd.f32 %v904_v15, %v757_v11  ;;  %v906_v18 = vpop.f32.mrb[10].mxu0  ;;  %v1052_v19 = vpop.f32.mrb[10].mxu1 }
 0x13d   : > { %v1055_v20 = vadd.f32 %v1048_v13, %v909_v14  ;;  %v907_v21 = vpop.f32.mrb[11].mxu0  ;;  %v1053_v22 = vpop.f32.mrb[11].mxu1 }
 0x13e   : > { %v1056_v23 = vadd.f32 %v1050_v16, %v910_v17 }
 0x15a   : > { %v1189_v24 = vpop.f32.mrb[12].mxu0  ;;  %v1344_v25 = vpop.f32.mrb[12].mxu1 }
 0x15b   : > { %v1196_v26 = vadd.f32 %v1189_v24, %v1055_v20  ;;  %v1191_v27 = vpop.f32.mrb[13].mxu0  ;;  %v1346_v28 = vpop.f32.mrb[13].mxu1 }
 0x15c   : > { %v1197_v29 = vadd.f32 %v1191_v27, %v1056_v23  ;;  %v1193_v30 = vpop.f32.mrb[14].mxu0  ;;  %v1348_v31 = vpop.f32.mrb[14].mxu1 }
 0x15d   : > { %v1351_v32 = vadd.f32 %v1344_v25, %v1196_v26  ;;  %v1194_v33 = vpop.f32.mrb[15].mxu0  ;;  %v1349_v34 = vpop.f32.mrb[15].mxu1 }
 0x15e   : > { %v1352_v35 = vadd.f32 %v1346_v28, %v1197_v29 }
 0x17a   : > { %v1490_v2 = vpop.f32.mrb[16].mxu0 }
 0x17b   : > { %v1497_v43 = vadd.f32 %v1490_v2, %v1351_v32  ;;  %v1492_v44 = vpop.f32.mrb[17].mxu0 }
 0x17c   : > { %v1498_v45 = vadd.f32 %v1492_v44, %v1352_v35  ;;  %v1494_v46 = vpop.f32.mrb[18].mxu0 }
 0x17d   : > { %v1510_v47 = vadd.f32 %v1503_v41, %v1497_v43  ;;  %v1495_v48 = vpop.f32.mrb[19].mxu0 }
 0x17e   : > { %v1511_v49 = vadd.f32 %v1507_v42, %v1498_v45 }
 0x17f   : > { %v1512_v50 = vmax.f32 %v1510_v47, 0.0 }
 0x180   : > { %v1513_v51 = vmax.f32 %v1511_v49, 0.0 }
 0x182   : > { %v1869_v52 = vpack.c.bf16 %v1513_v51, %v1512_v50 }
 0x184   : > { %1522 = vst [vmem:[%s170_s20] sm:$0xff] %v1869_v52 }
 0x185 PF: > { %s13_s12 = sadd.s32 1, %s2109_s12  }
 0x186   : > { %p10_p4 = scmp.ge.s32.totalorder %s13_s12, 4  }
 0x188   :  { %12 = sbr.rel (!%p10_p4) target bundleno = 1 (0x1), region = 70 }

// kernel: resnet34_ssd_forward.46
= control target key start
LH: loop header
LB: loop body
LE: loop exit
PB: predicated region body
PF: predicated region fallthrough
CT: control target
= control target key end

     0   :  { %v221_v1 = vmov 0   ;;  %v34_v18 = vlaneseq  ;;  %s299_s1 = inlined_call_operand.vmem [shape: bf16[128,256], index: 1, kind: input, shape index: {}]   ;;  %s300_s0 = inlined_call_operand.vmem [shape: bf16[8,128], index: 0, kind: input, shape index: {}]   ;;  %s301_s2 = inlined_call_operand.vmem [shape: f32[1,256], index: 2, kind: input, shape index: {}]   ;;  %s302_s3 = inlined_call_operand.vmem [shape: bf16[8,256], index: 3, kind: output, shape index: {}]  }
   0x1   :  { %v197_v0 = vld [vmem:[%s299_s1 + $0x4] ss:$8 sps:$4 sm:$0xff]   ;;  %156 = vmatprep.mubr.bf16.mxu0 %v221_v1  ;;  %v199_v2 = vld [vmem:[%s299_s1] ss:$8 sps:$4 sm:$0xff]   ;;  %v200_v3 = vld [vmem:[%s299_s1 + $0x14] ss:$8 sps:$4 sm:$0xff]  }
   0x2   :  { %124 = vmatprep.subr.bf16.mxu0 %v197_v0  ;;  %v202_v4 = vld [vmem:[%s299_s1 + $0x10] ss:$8 sps:$4 sm:$0xff]   ;;  %v203_v5 = vld [vmem:[%s299_s1 + $0x24] ss:$8 sps:$4 sm:$0xff]   ;;  %v205_v6 = vld [vmem:[%s299_s1 + $0x20] ss:$8 sps:$4 sm:$0xff]  }
   0x3   :  { %125 = vmatpush1.bf16.msra.mxu0 %v199_v2  ;;  %v206_v7 = vld [vmem:[%s299_s1 + $0x34] ss:$8 sps:$4 sm:$0xff]   ;;  %v208_v8 = vld [vmem:[%s299_s1 + $0x30] ss:$8 sps:$4 sm:$0xff]   ;;  %v209_v9 = vld [vmem:[%s299_s1 + $0x44] ss:$8 sps:$4 sm:$0xff]  }
   0x4   :  { %126 = vmatprep.subr.bf16.mxu0 %v200_v3  ;;  %v211_v10 = vld [vmem:[%s299_s1 + $0x40] ss:$8 sps:$4 sm:$0xff]   ;;  %v212_v11 = vld [vmem:[%s299_s1 + $0x54] ss:$8 sps:$4 sm:$0xff]   ;;  %v214_v12 = vld [vmem:[%s299_s1 + $0x50] ss:$8 sps:$4 sm:$0xff]  }
   0x5   :  { %v215_v13 = vld [vmem:[%s299_s1 + $0x64] ss:$8 sps:$4 sm:$0xff]   ;;  %v217_v14 = vld [vmem:[%s299_s1 + $0x60] ss:$8 sps:$4 sm:$0xff]   ;;  %v218_v15 = vld [vmem:[%s299_s1 + $0x74] ss:$8 sps:$4 sm:$0xff]  }
   0x6   :  { %v220_v16 = vld [vmem:[%s299_s1 + $0x70] ss:$8 sps:$4 sm:$0xff]   ;;  %v15_v17 = vld [vmem:[%s300_s0] sm:$0xf]  ;;  %v35_v19 = vshrl.u32 %v34_v18, 7 }
   0x7   :  { %127 = vmatpush1.bf16.msra.mxu0 %v202_v4  ;;  %v32_v21 = vld [vmem:[%s301_s2] sm:$0x3] }
   0x8   :  { %128 = vmatprep.subr.bf16.mxu0 %v203_v5  ;;  %v36_v20 = vsub.s32 0, %v35_v19  ;;  %v40_v22 = vsub.s32 1, %v35_v19 }
   0xa   :  { %v37_v23 = vrot.slane %v32_v21, %v36_v20  ;;  %v41_v24 = vrot.slane %v32_v21, %v40_v22 }
   0xb   :  { %129 = vmatpush1.bf16.msra.mxu0 %v205_v6 }
   0xc   :  { %130 = vmatprep.subr.bf16.mxu0 %v206_v7 }
   0xf   :  { %131 = vmatpush1.bf16.msra.mxu0 %v208_v8 }
  0x10   :  { %132 = vmatprep.subr.bf16.mxu0 %v209_v9 }
  0x13   :  { %133 = vmatpush1.bf16.msra.mxu0 %v211_v10 }
  0x14   :  { %134 = vmatprep.subr.bf16.mxu0 %v212_v11 }
  0x17   :  { %135 = vmatpush1.bf16.msra.mxu0 %v214_v12 }
  0x18   :  { %136 = vmatprep.subr.bf16.mxu0 %v215_v13 }
  0x1b   :  { %137 = vmatpush1.bf16.msra.mxu0 %v217_v14 }
  0x1c   :  { %138 = vmatprep.subr.bf16.mxu0 %v218_v15 }
  0x1f   :  { %139 = vmatpush1.bf16.msra.mxu0 %v220_v16 }
  0x22   :  { %157 = vmatmul.mubr.bf16.vlgmr.msra.gmra.mrb[0].mxu0 %v15_v17 }
  0xf5   :  { %v158_v25 = vpop.f32.mrb[0].mxu0 }
  0xf6   :  { %v159_v26 = vadd.f32 %v158_v25, %v37_v23  ;;  %v160_v27 = vpop.f32.mrb[1].mxu0 }
  0xf7   :  { %v161_v28 = vadd.f32 %v160_v27, %v41_v24  ;;  %v162_v29 = vpop.f32.mrb[2].mxu0 }
  0xf8   :  { %v163_v30 = vpop.f32.mrb[3].mxu0 }
  0xf9   :  { %v195_v31 = vpack.c.bf16 %v161_v28, %v159_v26 }
  0xfb   :  { %173 = vst [vmem:[%s302_s3] sm:$0xff] %v195_v31 }

// kernel: resnet34_ssd_forward.47
= control target key start
LH: loop header
LB: loop body
LE: loop exit
PB: predicated region body
PF: predicated region fallthrough
CT: control target
= control target key end

     0   :  { %s3636_s15 = smov 0   ;;  %s4599_s0 = inlined_call_operand.vmem [shape: bf16[2,20,256], index: 0, kind: input, shape index: {}]   ;;  %s4600_s1 = inlined_call_operand.vmem [shape: bf16[9,256,256], index: 1, kind: input, shape index: {}]   ;;  %s4601_s2 = inlined_call_operand.vmem [shape: f32[1,256], index: 2, kind: input, shape index: {}]   ;;  %s4602_s3 = inlined_call_operand.vmem [shape: bf16[2,8,256], index: 3, kind: input, shape index: {}]   ;;  %s4603_s4 = inlined_call_operand.vmem [shape: bf16[2,8,256], index: 4, kind: output, shape index: {}]  }
   0x1 LB: > { %s2566_s16 = sadd.s32 4294967295, %s3609_s15   ;;  %p2570_p0 = scmp.ge.s32.totalorder %s3609_s15, 1  ;;  %s3609_s15 = sphi %s3636_s15, %s14_s15  }
   0x2   : > { %p172_p1 = scmp.lt.s32.totalorder %s3609_s15, 3 }
   0x4   : > { %p173_p2 = pnand %p2570_p0, %p172_p1 }
   0x5   : > { %v3153_v0 = vld [vmem:[%s4600_s1 + $0x104] ss:$8 sps:$4 sm:$0xff] (!%p173_p2)   ;;  %v3157_v2 = vld [vmem:[%s4600_s1 + $0x100] ss:$8 sps:$4 sm:$0xff] (!%p173_p2)   ;;  %v3159_v4 = vld [vmem:[%s4600_s1 + $0x114] ss:$8 sps:$4 sm:$0xff] (!%p173_p2)  }
   0x6   : > { %176 = sbr.rel (%p173_p2) target bundleno = 550 (0x226), region = 36  ;;  %v3155_v1 = vld [vmem:[%s4600_s1 + $0x4] ss:$8 sps:$4 sm:$0xff] (!%p173_p2)   ;;  %470 = vmatprep.subr.bf16.mxu0 (!%p173_p2), %v3153_v0  ;;  %v3158_v3 = vld [vmem:[%s4600_s1] ss:$8 sps:$4 sm:$0xff] (!%p173_p2)   ;;  %p203_p3 = scmp.lt.s32.totalorder (!%p173_p2), %s2566_s16, 1 }
   0x7   : > { %675 = vmatprep.subr.bf16.mxu1 (!%p173_p2), %v3155_v1  ;;  %471 = vmatpush1.bf16.msra.mxu0 (!%p173_p2), %v3157_v2  ;;  %v3161_v5 = vld [vmem:[%s4600_s1 + $0x14] ss:$8 sps:$4 sm:$0xff] (!%p173_p2)   ;;  %v3163_v6 = vld [vmem:[%s4600_s1 + $0x110] ss:$8 sps:$4 sm:$0xff] (!%p173_p2)   ;;  %v3165_v8 = vld [vmem:[%s4600_s1 + $0x124] ss:$8 sps:$4 sm:$0xff] (!%p173_p2)  }
   0x8   : > { %676 = vmatpush1.bf16.msra.mxu1 (!%p173_p2), %v3158_v3  ;;  %472 = vmatprep.subr.bf16.mxu0 (!%p173_p2), %v3159_v4  ;;  %v3164_v7 = vld [vmem:[%s4600_s1 + $0x10] ss:$8 sps:$4 sm:$0xff] (!%p173_p2)   ;;  %v3167_v9 = vld [vmem:[%s4600_s1 + $0x24] ss:$8 sps:$4 sm:$0xff] (!%p173_p2)   ;;  %v3169_v10 = vld [vmem:[%s4600_s1 + $0x120] ss:$8 sps:$4 sm:$0xff] (!%p173_p2)  }
   0x9   : > { %677 = vmatprep.subr.bf16.mxu1 (!%p173_p2), %v3161_v5  ;;  %v3170_v11 = vld [vmem:[%s4600_s1 + $0x20] ss:$8 sps:$4 sm:$0xff] (!%p173_p2)   ;;  %v3171_v12 = vld [vmem:[%s4600_s1 + $0x134] ss:$8 sps:$4 sm:$0xff] (!%p173_p2)   ;;  %v3175_v14 = vld [vmem:[%s4600_s1 + $0x130] ss:$8 sps:$4 sm:$0xff] (!%p173_p2)  }
   0xa   : > { %v3173_v13 = vld [vmem:[%s4600_s1 + $0x34] ss:$8 sps:$4 sm:$0xff] (!%p173_p2)   ;;  %v3176_v15 = vld [vmem:[%s4600_s1 + $0x30] ss:$8 sps:$4 sm:$0xff] (!%p173_p2)   ;;  %v3177_v16 = vld [vmem:[%s4600_s1 + $0x144] ss:$8 sps:$4 sm:$0xff] (!%p173_p2)  }
   0xb   : > { %473 = vmatpush1.bf16.msra.mxu0 (!%p173_p2), %v3163_v6  ;;  %v3179_v17 = vld [vmem:[%s4600_s1 + $0x44] ss:$8 sps:$4 sm:$0xff] (!%p173_p2)   ;;  %v3181_v18 = vld [vmem:[%s4600_s1 + $0x140] ss:$8 sps:$4 sm:$0xff] (!%p173_p2)   ;;  %v3183_v20 = vld [vmem:[%s4600_s1 + $0x154] ss:$8 sps:$4 sm:$0xff] (!%p173_p2)  }
   0xc   : > { %678 = vmatpush1.bf16.msra.mxu1 (!%p173_p2), %v3164_v7  ;;  %474 = vmatprep.subr.bf16.mxu0 (!%p173_p2), %v3165_v8  ;;  %v3182_v19 = vld [vmem:[%s4600_s1 + $0x40] ss:$8 sps:$4 sm:$0xff] (!%p173_p2)   ;;  %v3185_v21 = vld [vmem:[%s4600_s1 + $0x54] ss:$8 sps:$4 sm:$0xff] (!%p173_p2)   ;;  %v3187_v22 = vld [vmem:[%s4600_s1 + $0x150] ss:$8 sps:$4 sm:$0xff] (!%p173_p2)  }
   0xd   : > { %679 = vmatprep.subr.bf16.mxu1 %v3167_v9  ;;  %v3188_v23 = vld [vmem:[%s4600_s1 + $0x50] ss:$8 sps:$4 sm:$0xff]   ;;  %v3189_v24 = vld [vmem:[%s4600_s1 + $0x164] ss:$8 sps:$4 sm:$0xff]   ;;  %v3193_v26 = vld [vmem:[%s4600_s1 + $0x160] ss:$8 sps:$4 sm:$0xff]  }
   0xe   : > { %v3191_v25 = vld [vmem:[%s4600_s1 + $0x64] ss:$8 sps:$4 sm:$0xff]   ;;  %v3194_v27 = vld [vmem:[%s4600_s1 + $0x60] ss:$8 sps:$4 sm:$0xff]   ;;  %v3195_v28 = vld [vmem:[%s4600_s1 + $0x174] ss:$8 sps:$4 sm:$0xff]  }
   0xf   : > { %475 = vmatpush1.bf16.msra.mxu0 %v3169_v10  ;;  %v3197_v29 = vld [vmem:[%s4600_s1 + $0x74] ss:$8 sps:$4 sm:$0xff]   ;;  %v3199_v30 = vld [vmem:[%s4600_s1 + $0x170] ss:$8 sps:$4 sm:$0xff]   ;;  %v3201_v32 = vld [vmem:[%s4600_s1 + $0x184] ss:$8 sps:$4 sm:$0xff]  }
  0x10   : > { %680 = vmatpush1.bf16.msra.mxu1 %v3170_v11  ;;  %476 = vmatprep.subr.bf16.mxu0 %v3171_v12  ;;  %v3200_v31 = vld [vmem:[%s4600_s1 + $0x70] ss:$8 sps:$4 sm:$0xff]   ;;  %v3203_v33 = vld [vmem:[%s4600_s1 + $0x84] ss:$8 sps:$4 sm:$0xff]   ;;  %v3205_v34 = vld [vmem:[%s4600_s1 + $0x180] ss:$8 sps:$4 sm:$0xff]  }
  0x11   : > { %681 = vmatprep.subr.bf16.mxu1 %v3173_v13  ;;  %v3206_v35 = vld [vmem:[%s4600_s1 + $0x80] ss:$8 sps:$4 sm:$0xff]   ;;  %s4605_s16 = smov (!%p203_p3, %s2566_s16), 1  ;;  %v3207_v36 = vld [vmem:[%s4600_s1 + $0x194] ss:$8 sps:$4 sm:$0xff]  }
  0x12   : > { %v3209_v37 = vld [vmem:[%s4600_s1 + $0x94] ss:$8 sps:$4 sm:$0xff]   ;;  %v3211_v38 = vld [vmem:[%s4600_s1 + $0x190] ss:$8 sps:$4 sm:$0xff]   ;;  %s3144_s23 = smul.u32 24, %s4605_s16  ;;  %s3141_s13 = sshll.u32 %s4605_s16, 3 }
  0x13   : > { %477 = vmatpush1.bf16.msra.mxu0 %v3175_v14  ;;  %v3212_v39 = vld [vmem:[%s4600_s1 + $0x90] ss:$8 sps:$4 sm:$0xff]   ;;  %v3213_v40 = vld [vmem:[%s4600_s1 + $0x1a4] ss:$8 sps:$4 sm:$0xff]   ;;  %v3217_v42 = vld [vmem:[%s4600_s1 + $0x1a0] ss:$8 sps:$4 sm:$0xff]   ;;  %s212_s18 = scalar_lea.vmem %s4602_s3, %s3141_s13  ;;  %s217_s22 = scalar_lea.vmem %s4603_s4, %s3141_s13 }
  0x14   : > { %682 = vmatpush1.bf16.msra.mxu1 %v3176_v15  ;;  %478 = vmatprep.subr.bf16.mxu0 %v3177_v16  ;;  %v3215_v41 = vld [vmem:[%s4600_s1 + $0xa4] ss:$8 sps:$4 sm:$0xff]   ;;  %v3218_v43 = vld [vmem:[%s4600_s1 + $0xa0] ss:$8 sps:$4 sm:$0xff]   ;;  %s3786_s10 = scalar_lea.vmem %s4599_s0, %s3144_s23  ;;  %v3219_v44 = vld [vmem:[%s4600_s1 + $0x1b4] ss:$8 sps:$4 sm:$0xff]  }
  0x15   : > { %683 = vmatprep.subr.bf16.mxu1 %v3179_v17  ;;  %v3221_v45 = vld [vmem:[%s4600_s1 + $0xb4] ss:$8 sps:$4 sm:$0xff]   ;;  %v3795_v46 = vld [vmem:[%s3786_s10] sm:$0xff]  ;;  %v3798_v47 = vld [vmem:[%s3786_s10 + $0x8] sm:$0x11] }
  0x16   : > { %v2643_v48 = vcombine.high %v3795_v46, %v3795_v46  ;;  %v3223_v49 = vld [vmem:[%s4600_s1 + $0x1b0] ss:$8 sps:$4 sm:$0xff]   ;;  %v2609_v51 = vcombine.high %v3795_v46, %v3798_v47  ;;  %v3225_v52 = vld [vmem:[%s4600_s1 + $0x1c4] ss:$8 sps:$4 sm:$0xff]   ;;  %v3229_v56 = vld [vmem:[%s4600_s1 + $0x1c0] ss:$8 sps:$4 sm:$0xff]   ;;  %v2608_v63 = vcombine.low %v3795_v46, %v3798_v47  ;;  %v2642_v15 = vcombine.low %v3795_v46, %v3795_v46 }
  0x17   : > { %479 = vmatpush1.bf16.msra.mxu0 %v3181_v18  ;;  %v3224_v50 = vld [vmem:[%s4600_s1 + $0xb0] ss:$8 sps:$4 sm:$0xff]   ;;  %v3227_v53 = vld [vmem:[%s4600_s1 + $0xc4] ss:$8 sps:$4 sm:$0xff]   ;;  %v3230_v57 = vld [vmem:[%s4600_s1 + $0xc0] ss:$8 sps:$4 sm:$0xff]  }
  0x18   : > { %684 = vmatpush1.bf16.msra.mxu1 %v3182_v19  ;;  %480 = vmatprep.subr.bf16.mxu0 %v3183_v20  ;;  %v302_v54 = vshrl.u32 %v2609_v51, 16  ;;  %v304_v55 = vshll.u32 %v2609_v51, 16  ;;  %v3231_v59 = vld [vmem:[%s4600_s1 + $0x1d4] ss:$8 sps:$4 sm:$0xff]   ;;  %v3235_v62 = vld [vmem:[%s4600_s1 + $0x1d0] ss:$8 sps:$4 sm:$0xff]  }
  0x19   : > { %685 = vmatprep.subr.bf16.mxu1 %v3185_v21  ;;  %707 = vmatprep.mubr.bf16.mxu1 %v2643_v48  ;;  %v3233_v60 = vld [vmem:[%s4600_s1 + $0xd4] ss:$8 sps:$4 sm:$0xff]   ;;  %v3236_v0 = vld [vmem:[%s4600_s1 + $0xd0] ss:$8 sps:$4 sm:$0xff]   ;;  %v3237_v1 = vld [vmem:[%s4600_s1 + $0x1e4] ss:$8 sps:$4 sm:$0xff]  }
  0x1a   : > { %v306_v58 = vrot.slane %v304_v55, 1  ;;  %v3239_v2 = vld [vmem:[%s4600_s1 + $0xe4] ss:$8 sps:$4 sm:$0xff]   ;;  %v3241_v3 = vld [vmem:[%s4600_s1 + $0x1e0] ss:$8 sps:$4 sm:$0xff]   ;;  %v297_v4 = vshll.u32 %v2608_v63, 16 }
  0x1b   : > { %481 = vmatpush1.bf16.msra.mxu0 %v3187_v22  ;;  %v3242_v5 = vld [vmem:[%s4600_s1 + $0xe0] ss:$8 sps:$4 sm:$0xff]   ;;  %v3243_v6 = vld [vmem:[%s4600_s1 + $0x1f4] ss:$8 sps:$4 sm:$0xff]   ;;  %v3247_v8 = vld [vmem:[%s4600_s1 + $0x1f0] ss:$8 sps:$4 sm:$0xff]  }
  0x1c   : > { %686 = vmatpush1.bf16.msra.mxu1 %v3188_v23  ;;  %482 = vmatprep.subr.bf16.mxu0 %v3189_v24  ;;  %v307_v61 = vor.u32 %v306_v58, %v302_v54  ;;  %v3245_v7 = vld [vmem:[%s4600_s1 + $0xf4] ss:$8 sps:$4 sm:$0xff]   ;;  %v295_v9 = vshrl.u32 %v2608_v63, 16  ;;  %v299_v10 = vrot.slane %v297_v4, 1  ;;  %v3248_v11 = vld [vmem:[%s4600_s1 + $0xf0] ss:$8 sps:$4 sm:$0xff]  }
  0x1d   : > { %687 = vmatprep.subr.bf16.mxu1 %v3191_v25  ;;  %v3255_v12 = vld [vmem:[%s4600_s1 + $0x204] ss:$8 sps:$4 sm:$0xff]   ;;  %v3253_v16 = vld [vmem:[%s4600_s1 + $0x200] ss:$8 sps:$4 sm:$0xff]   ;;  %v3261_v18 = vld [vmem:[%s4600_s1 + $0x214] ss:$8 sps:$4 sm:$0xff]  }
  0x1e   : > { %502 = vmatprep.mubr.bf16.mxu0 %v307_v61  ;;  %v3258_v13 = vld [vmem:[%s4600_s1 + $0x304] ss:$8 sps:$4 sm:$0xff]   ;;  %v300_v14 = vor.u32 %v299_v10, %v295_v9  ;;  %v3256_v17 = vld [vmem:[%s4600_s1 + $0x300] ss:$8 sps:$4 sm:$0xff]   ;;  %v3264_v19 = vld [vmem:[%s4600_s1 + $0x314] ss:$8 sps:$4 sm:$0xff]  }
  0x1f   : > { %483 = vmatpush1.bf16.msra.mxu0 %v3193_v26  ;;  %v3259_v20 = vld [vmem:[%s4600_s1 + $0x210] ss:$8 sps:$4 sm:$0xff]   ;;  %v3267_v22 = vld [vmem:[%s4600_s1 + $0x224] ss:$8 sps:$4 sm:$0xff]   ;;  %v3265_v24 = vld [vmem:[%s4600_s1 + $0x220] ss:$8 sps:$4 sm:$0xff]  }
  0x20   : > { %688 = vmatpush1.bf16.msra.mxu1 %v3194_v27  ;;  %484 = vmatprep.subr.bf16.mxu0 %v3195_v28  ;;  %v3262_v21 = vld [vmem:[%s4600_s1 + $0x310] ss:$8 sps:$4 sm:$0xff]   ;;  %v3270_v23 = vld [vmem:[%s4600_s1 + $0x324] ss:$8 sps:$4 sm:$0xff]   ;;  %v3268_v25 = vld [vmem:[%s4600_s1 + $0x320] ss:$8 sps:$4 sm:$0xff]  }
  0x21   : > { %689 = vmatprep.subr.bf16.mxu1 %v3197_v29  ;;  %v3273_v26 = vld [vmem:[%s4600_s1 + $0x234] ss:$8 sps:$4 sm:$0xff]   ;;  %v3271_v28 = vld [vmem:[%s4600_s1 + $0x230] ss:$8 sps:$4 sm:$0xff]   ;;  %v3958_v46 = vld [vmem:[%s3786_s10 + $0x8] sm:$0x33] }
  0x22   : > { %v3276_v27 = vld [vmem:[%s4600_s1 + $0x334] ss:$8 sps:$4 sm:$0xff]   ;;  %v3274_v29 = vld [vmem:[%s4600_s1 + $0x330] ss:$8 sps:$4 sm:$0xff]   ;;  %v3303_v54 = vld [vmem:[%s4600_s1 + $0x284] ss:$8 sps:$4 sm:$0xff]  }
  0x23   : > { %485 = vmatpush1.bf16.msra.mxu0 %v3199_v30  ;;  %v3279_v30 = vld [vmem:[%s4600_s1 + $0x244] ss:$8 sps:$4 sm:$0xff]   ;;  %v3300_v48 = vld [vmem:[%s4600_s1 + $0x374] ss:$8 sps:$4 sm:$0xff]   ;;  %v3310_v61 = vld [vmem:[%s4600_s1 + $0x390] ss:$8 sps:$4 sm:$0xff]  }
  0x24   : > { %690 = vmatpush1.bf16.msra.mxu1 %v3200_v31  ;;  %486 = vmatprep.subr.bf16.mxu0 %v3201_v32  ;;  %v3282_v31 = vld [vmem:[%s4600_s1 + $0x344] ss:$8 sps:$4 sm:$0xff]   ;;  %v3277_v32 = vld [vmem:[%s4600_s1 + $0x240] ss:$8 sps:$4 sm:$0xff]   ;;  %v3309_v58 = vld [vmem:[%s4600_s1 + $0x294] ss:$8 sps:$4 sm:$0xff]  }
  0x25   : > { %691 = vmatprep.subr.bf16.mxu1 %v3203_v33  ;;  %v3280_v33 = vld [vmem:[%s4600_s1 + $0x340] ss:$8 sps:$4 sm:$0xff]   ;;  %v3306_v55 = vld [vmem:[%s4600_s1 + $0x384] ss:$8 sps:$4 sm:$0xff]   ;;  %v3319_v4 = vld [vmem:[%s4600_s1 + $0x2b0] ss:$8 sps:$4 sm:$0xff]  }
  0x26   : > { %v3318_v63 = vld [vmem:[%s4600_s1 + $0x3a4] ss:$8 sps:$4 sm:$0xff]   ;;  %v3328_v9 = vld [vmem:[%s4600_s1 + $0x3c0] ss:$8 sps:$4 sm:$0xff]   ;;  %v3333_v10 = vld [vmem:[%s4600_s1 + $0x2d4] ss:$8 sps:$4 sm:$0xff]  }
  0x27   : > { %487 = vmatpush1.bf16.msra.mxu0 %v3205_v34  ;;  %v3285_v34 = vld [vmem:[%s4600_s1 + $0x254] ss:$8 sps:$4 sm:$0xff]  }
  0x28   : > { %692 = vmatpush1.bf16.msra.mxu1 %v3206_v35  ;;  %488 = vmatprep.subr.bf16.mxu0 %v3207_v36  ;;  %v3288_v35 = vld [vmem:[%s4600_s1 + $0x354] ss:$8 sps:$4 sm:$0xff]   ;;  %v3283_v36 = vld [vmem:[%s4600_s1 + $0x250] ss:$8 sps:$4 sm:$0xff]  }
  0x29   : > { %693 = vmatprep.subr.bf16.mxu1 %v3209_v37  ;;  %v3286_v37 = vld [vmem:[%s4600_s1 + $0x350] ss:$8 sps:$4 sm:$0xff]  }
  0x2b   : > { %489 = vmatpush1.bf16.msra.mxu0 %v3211_v38  ;;  %v3291_v38 = vld [vmem:[%s4600_s1 + $0x264] ss:$8 sps:$4 sm:$0xff]  }
  0x2c   : > { %694 = vmatpush1.bf16.msra.mxu1 %v3212_v39  ;;  %490 = vmatprep.subr.bf16.mxu0 %v3213_v40  ;;  %v3294_v39 = vld [vmem:[%s4600_s1 + $0x364] ss:$8 sps:$4 sm:$0xff]   ;;  %v3289_v40 = vld [vmem:[%s4600_s1 + $0x260] ss:$8 sps:$4 sm:$0xff]  }
  0x2d   : > { %695 = vmatprep.subr.bf16.mxu1 %v3215_v41  ;;  %v3944_v41 = vld [vmem:[%s3786_s10] sm:$0xee] }
  0x2f   : > { %491 = vmatpush1.bf16.msra.mxu0 %v3217_v42  ;;  %v3292_v42 = vld [vmem:[%s4600_s1 + $0x360] ss:$8 sps:$4 sm:$0xff]  }
  0x30   : > { %696 = vmatpush1.bf16.msra.mxu1 %v3218_v43  ;;  %492 = vmatprep.subr.bf16.mxu0 %v3219_v44  ;;  %v3297_v43 = vld [vmem:[%s4600_s1 + $0x274] ss:$8 sps:$4 sm:$0xff]   ;;  %v2709_v44 = vcombine.high %v3944_v41, %v3798_v47 }
  0x31   : > { %697 = vmatprep.subr.bf16.mxu1 %v3221_v45  ;;  %v3955_v45 = vld [vmem:[%s3786_s10] sm:$0xcc] }
  0x33   : > { %493 = vmatpush1.bf16.msra.mxu0 %v3223_v49  ;;  %v756_v49 = vrot.slane %v2709_v44, 1 }
  0x34   : > { %698 = vmatpush1.bf16.msra.mxu1 %v3224_v50  ;;  %494 = vmatprep.subr.bf16.mxu0 %v3225_v52  ;;  %v2775_v50 = vcombine.high %v3955_v45, %v3958_v46  ;;  %v3295_v52 = vld [vmem:[%s4600_s1 + $0x270] ss:$8 sps:$4 sm:$0xff]  }
  0x35   : > { %699 = vmatprep.subr.bf16.mxu1 %v3227_v53  ;;  %v3298_v53 = vld [vmem:[%s4600_s1 + $0x370] ss:$8 sps:$4 sm:$0xff]  }
  0x36   : > { %v1006_v51 = vrot.slane %v2775_v50, 2 }
  0x37   : > { %495 = vmatpush1.bf16.msra.mxu0 %v3229_v56  ;;  %v3301_v56 = vld [vmem:[%s4600_s1 + $0x280] ss:$8 sps:$4 sm:$0xff]  }
  0x38   : > { %700 = vmatpush1.bf16.msra.mxu1 %v3230_v57  ;;  %496 = vmatprep.subr.bf16.mxu0 %v3231_v59  ;;  %v3304_v57 = vld [vmem:[%s4600_s1 + $0x380] ss:$8 sps:$4 sm:$0xff]   ;;  %v3312_v59 = vld [vmem:[%s4600_s1 + $0x394] ss:$8 sps:$4 sm:$0xff]  }
  0x39   : > { %701 = vmatprep.subr.bf16.mxu1 %v3233_v60  ;;  %v3307_v60 = vld [vmem:[%s4600_s1 + $0x290] ss:$8 sps:$4 sm:$0xff]  }
  0x3b   : > { %497 = vmatpush1.bf16.msra.mxu0 %v3235_v62  ;;  %v3315_v62 = vld [vmem:[%s4600_s1 + $0x2a4] ss:$8 sps:$4 sm:$0xff]  }
  0x3c   : > { %702 = vmatpush1.bf16.msra.mxu1 %v3236_v0  ;;  %498 = vmatprep.subr.bf16.mxu0 %v3237_v1  ;;  %v3313_v0 = vld [vmem:[%s4600_s1 + $0x2a0] ss:$8 sps:$4 sm:$0xff]  }
  0x3d   : > { %703 = vmatprep.subr.bf16.mxu1 %v3239_v2  ;;  %v3316_v1 = vld [vmem:[%s4600_s1 + $0x3a0] ss:$8 sps:$4 sm:$0xff]   ;;  %v3321_v2 = vld [vmem:[%s4600_s1 + $0x2b4] ss:$8 sps:$4 sm:$0xff]  }
  0x3f   : > { %499 = vmatpush1.bf16.msra.mxu0 %v3241_v3  ;;  %v3324_v3 = vld [vmem:[%s4600_s1 + $0x3b4] ss:$8 sps:$4 sm:$0xff]  }
  0x40   : > { %704 = vmatpush1.bf16.msra.mxu1 %v3242_v5  ;;  %500 = vmatprep.subr.bf16.mxu0 %v3243_v6  ;;  %v3322_v5 = vld [vmem:[%s4600_s1 + $0x3b0] ss:$8 sps:$4 sm:$0xff]   ;;  %v3327_v6 = vld [vmem:[%s4600_s1 + $0x2c4] ss:$8 sps:$4 sm:$0xff]  }
  0x41   : > { %705 = vmatprep.subr.bf16.mxu1 %v3245_v7  ;;  %v3330_v7 = vld [vmem:[%s4600_s1 + $0x3c4] ss:$8 sps:$4 sm:$0xff]  }
  0x43   : > { %501 = vmatpush1.bf16.msra.mxu0 %v3247_v8  ;;  %v3325_v8 = vld [vmem:[%s4600_s1 + $0x2c0] ss:$8 sps:$4 sm:$0xff]  }
  0x44   : > { %706 = vmatpush1.bf16.msra.mxu1 %v3248_v11  ;;  %919 = vmatprep.subr.bf16.mxu0 %v3255_v12  ;;  %v3336_v11 = vld [vmem:[%s4600_s1 + $0x3d4] ss:$8 sps:$4 sm:$0xff]   ;;  %v3331_v12 = vld [vmem:[%s4600_s1 + $0x2d0] ss:$8 sps:$4 sm:$0xff]  }
  0x45   : > { %1169 = vmatprep.subr.bf16.mxu1 %v3258_v13  ;;  %v3334_v13 = vld [vmem:[%s4600_s1 + $0x3d0] ss:$8 sps:$4 sm:$0xff]  }
  0x46   : > { %503 = vmatmul.mubr.bf16.vlgmr.msra.gmra.mrb[0].mxu0 %v300_v14  ;;  %v3339_v14 = vld [vmem:[%s4600_s1 + $0x2e4] ss:$8 sps:$4 sm:$0xff]  }
  0x47   : > { %708 = vmatmul.mubr.bf16.vlgmr.msra.gmra.mrb[0].mxu1 %v2642_v15  ;;  %920 = vmatpush1.bf16.msra.mxu0 %v3253_v16  ;;  %v3342_v15 = vld [vmem:[%s4600_s1 + $0x3e4] ss:$8 sps:$4 sm:$0xff]   ;;  %v3337_v16 = vld [vmem:[%s4600_s1 + $0x2e0] ss:$8 sps:$4 sm:$0xff]  }
  0x48   : > { %1170 = vmatpush1.bf16.msra.mxu1 %v3256_v17  ;;  %921 = vmatprep.subr.bf16.mxu0 %v3261_v18  ;;  %v3340_v17 = vld [vmem:[%s4600_s1 + $0x3e0] ss:$8 sps:$4 sm:$0xff]   ;;  %v3345_v18 = vld [vmem:[%s4600_s1 + $0x2f4] ss:$8 sps:$4 sm:$0xff]  }
  0x49   : > { %1171 = vmatprep.subr.bf16.mxu1 %v3264_v19  ;;  %951 = vmatprep.mubr.bf16.mxu0 %v756_v49  ;;  %v3348_v19 = vld [vmem:[%s4600_s1 + $0x3f4] ss:$8 sps:$4 sm:$0xff]  }
  0x4a   : > { %1201 = vmatprep.mubr.bf16.mxu1 %v1006_v51  ;;  %v3376_v49 = vld [vmem:[%s4600_s1 + $0x534] ss:$8 sps:$4 sm:$0xff]   ;;  %v3371_v51 = vld [vmem:[%s4600_s1 + $0x430] ss:$8 sps:$4 sm:$0xff]  }
  0x4b   : > { %922 = vmatpush1.bf16.msra.mxu0 %v3259_v20  ;;  %v2708_v20 = vcombine.low %v3944_v41, %v3798_v47  ;;  %v3353_v47 = vld [vmem:[%s4600_s1 + $0x404] ss:$8 sps:$4 sm:$0xff]  }
  0x4c   : > { %1172 = vmatpush1.bf16.msra.mxu1 %v3262_v21  ;;  %923 = vmatprep.subr.bf16.mxu0 %v3267_v22  ;;  %v2774_v21 = vcombine.low %v3955_v45, %v3958_v46  ;;  %v3343_v22 = vld [vmem:[%s4600_s1 + $0x2f0] ss:$8 sps:$4 sm:$0xff]  }
  0x4d   : > { %1173 = vmatprep.subr.bf16.mxu1 %v3270_v23  ;;  %v3346_v23 = vld [vmem:[%s4600_s1 + $0x3f0] ss:$8 sps:$4 sm:$0xff]  }
  0x4f   : > { %924 = vmatpush1.bf16.msra.mxu0 %v3265_v24  ;;  %v3358_v24 = vld [vmem:[%s4600_s1 + $0x504] ss:$8 sps:$4 sm:$0xff]  }
  0x50   : > { %1174 = vmatpush1.bf16.msra.mxu1 %v3268_v25  ;;  %925 = vmatprep.subr.bf16.mxu0 %v3273_v26  ;;  %v755_v25 = vrot.slane %v2708_v20, 1  ;;  %v1005_v26 = vrot.slane %v2774_v21, 2  ;;  %v3422_v20 = vld [vmem:[%s4600_s1 + $0x5b0] ss:$8 sps:$4 sm:$0xff]   ;;  %v3427_v21 = vld [vmem:[%s4600_s1 + $0x4c4] ss:$8 sps:$4 sm:$0xff]  }
  0x51   : > { %1175 = vmatprep.subr.bf16.mxu1 %v3276_v27  ;;  %v3351_v27 = vld [vmem:[%s4600_s1 + $0x400] ss:$8 sps:$4 sm:$0xff]  }
  0x53   : > { %926 = vmatpush1.bf16.msra.mxu0 %v3271_v28  ;;  %v3356_v28 = vld [vmem:[%s4600_s1 + $0x500] ss:$8 sps:$4 sm:$0xff]  }
  0x54   : > { %1176 = vmatpush1.bf16.msra.mxu1 %v3274_v29  ;;  %927 = vmatprep.subr.bf16.mxu0 %v3279_v30  ;;  %v3361_v29 = vld [vmem:[%s4600_s1 + $0x414] ss:$8 sps:$4 sm:$0xff]  }
  0x55   : > { %1177 = vmatprep.subr.bf16.mxu1 %v3282_v31  ;;  %v3364_v30 = vld [vmem:[%s4600_s1 + $0x514] ss:$8 sps:$4 sm:$0xff]   ;;  %v4090_v31 = vld [vmem:[%s3786_s10 + $0x8] sm:$0x77] }
  0x57   : > { %928 = vmatpush1.bf16.msra.mxu0 %v3277_v32  ;;  %v3359_v32 = vld [vmem:[%s4600_s1 + $0x410] ss:$8 sps:$4 sm:$0xff]  }
  0x58   : > { %1178 = vmatpush1.bf16.msra.mxu1 %v3280_v33  ;;  %929 = vmatprep.subr.bf16.mxu0 %v3285_v34  ;;  %v2841_v33 = vcombine.high %v3955_v45, %v4090_v31  ;;  %v4098_v34 = vld [vmem:[%s3786_s10] sm:$0x88] }
  0x59   : > { %1179 = vmatprep.subr.bf16.mxu1 %v3288_v35  ;;  %v3362_v35 = vld [vmem:[%s4600_s1 + $0x510] ss:$8 sps:$4 sm:$0xff]  }
  0x5b   : > { %930 = vmatpush1.bf16.msra.mxu0 %v3283_v36  ;;  %v2907_v36 = vcombine.high %v4098_v34, %v4090_v31 }
  0x5c   : > { %1180 = vmatpush1.bf16.msra.mxu1 %v3286_v37  ;;  %931 = vmatprep.subr.bf16.mxu0 %v3291_v38  ;;  %v3367_v37 = vld [vmem:[%s4600_s1 + $0x424] ss:$8 sps:$4 sm:$0xff]  }
  0x5d   : > { %1181 = vmatprep.subr.bf16.mxu1 %v3294_v39  ;;  %v3370_v38 = vld [vmem:[%s4600_s1 + $0x524] ss:$8 sps:$4 sm:$0xff]   ;;  %v1260_v39 = vshrl.u32 %v2841_v33, 16  ;;  %v1512_v41 = vrot.slane %v2907_v36, 3  ;;  %v3440_v36 = vld [vmem:[%s4600_s1 + $0x5e0] ss:$8 sps:$4 sm:$0xff]  }
  0x5f   : > { %932 = vmatpush1.bf16.msra.mxu0 %v3289_v40  ;;  %v1263_v40 = vshll.u32 %v2841_v33, 16  ;;  %v1262_v44 = vrot.slane %v1260_v39, 2  ;;  %v3442_v33 = vld [vmem:[%s4600_s1 + $0x5e4] ss:$8 sps:$4 sm:$0xff]   ;;  %v3445_v39 = vld [vmem:[%s4600_s1 + $0x4f4] ss:$8 sps:$4 sm:$0xff]  }
  0x60   : > { %1182 = vmatpush1.bf16.msra.mxu1 %v3292_v42  ;;  %933 = vmatprep.subr.bf16.mxu0 %v3297_v43  ;;  %v3365_v42 = vld [vmem:[%s4600_s1 + $0x420] ss:$8 sps:$4 sm:$0xff]  }
  0x61   : > { %1183 = vmatprep.subr.bf16.mxu1 %v3300_v48  ;;  %v3368_v43 = vld [vmem:[%s4600_s1 + $0x520] ss:$8 sps:$4 sm:$0xff]   ;;  %v1265_v46 = vrot.slane %v1263_v40, 3  ;;  %v3373_v48 = vld [vmem:[%s4600_s1 + $0x434] ss:$8 sps:$4 sm:$0xff]  }
  0x62   : > { %v3448_v40 = vld [vmem:[%s4600_s1 + $0x5f4] ss:$8 sps:$4 sm:$0xff]  }
  0x63   : > { %934 = vmatpush1.bf16.msra.mxu0 %v3295_v52  ;;  %v1266_v50 = vor.u32 %v1265_v46, %v1262_v44  ;;  %v3374_v52 = vld [vmem:[%s4600_s1 + $0x530] ss:$8 sps:$4 sm:$0xff]  }
  0x64   : > { %1184 = vmatpush1.bf16.msra.mxu1 %v3298_v53  ;;  %935 = vmatprep.subr.bf16.mxu0 %v3303_v54  ;;  %v3379_v53 = vld [vmem:[%s4600_s1 + $0x444] ss:$8 sps:$4 sm:$0xff]  }
  0x65   : > { %1185 = vmatprep.subr.bf16.mxu1 %v3306_v55  ;;  %v3382_v54 = vld [vmem:[%s4600_s1 + $0x544] ss:$8 sps:$4 sm:$0xff]   ;;  %v3377_v55 = vld [vmem:[%s4600_s1 + $0x440] ss:$8 sps:$4 sm:$0xff]  }
  0x67   : > { %936 = vmatpush1.bf16.msra.mxu0 %v3301_v56  ;;  %v3380_v56 = vld [vmem:[%s4600_s1 + $0x540] ss:$8 sps:$4 sm:$0xff]  }
  0x68   : > { %1186 = vmatpush1.bf16.msra.mxu1 %v3304_v57  ;;  %937 = vmatprep.subr.bf16.mxu0 %v3309_v58  ;;  %v3385_v57 = vld [vmem:[%s4600_s1 + $0x454] ss:$8 sps:$4 sm:$0xff]  }
  0x69   : > { %1187 = vmatprep.subr.bf16.mxu1 %v3312_v59  ;;  %v3388_v58 = vld [vmem:[%s4600_s1 + $0x554] ss:$8 sps:$4 sm:$0xff]   ;;  %v3383_v59 = vld [vmem:[%s4600_s1 + $0x450] ss:$8 sps:$4 sm:$0xff]  }
  0x6b   : > { %938 = vmatpush1.bf16.msra.mxu0 %v3307_v60  ;;  %v3386_v60 = vld [vmem:[%s4600_s1 + $0x550] ss:$8 sps:$4 sm:$0xff]  }
  0x6c   : > { %1188 = vmatpush1.bf16.msra.mxu1 %v3310_v61  ;;  %939 = vmatprep.subr.bf16.mxu0 %v3315_v62  ;;  %v3391_v61 = vld [vmem:[%s4600_s1 + $0x464] ss:$8 sps:$4 sm:$0xff]  }
  0x6d   : > { %1189 = vmatprep.subr.bf16.mxu1 %v3318_v63  ;;  %v3394_v62 = vld [vmem:[%s4600_s1 + $0x564] ss:$8 sps:$4 sm:$0xff]   ;;  %v3389_v63 = vld [vmem:[%s4600_s1 + $0x460] ss:$8 sps:$4 sm:$0xff]  }
  0x6f   : > { %940 = vmatpush1.bf16.msra.mxu0 %v3313_v0  ;;  %v3392_v0 = vld [vmem:[%s4600_s1 + $0x560] ss:$8 sps:$4 sm:$0xff]  }
  0x70   : > { %1190 = vmatpush1.bf16.msra.mxu1 %v3316_v1  ;;  %941 = vmatprep.subr.bf16.mxu0 %v3321_v2  ;;  %v3397_v1 = vld [vmem:[%s4600_s1 + $0x474] ss:$8 sps:$4 sm:$0xff]  }
  0x71   : > { %1191 = vmatprep.subr.bf16.mxu1 %v3324_v3  ;;  %v3400_v2 = vld [vmem:[%s4600_s1 + $0x574] ss:$8 sps:$4 sm:$0xff]   ;;  %v3395_v3 = vld [vmem:[%s4600_s1 + $0x470] ss:$8 sps:$4 sm:$0xff]  }
  0x73   : > { %942 = vmatpush1.bf16.msra.mxu0 %v3319_v4  ;;  %v3398_v4 = vld [vmem:[%s4600_s1 + $0x570] ss:$8 sps:$4 sm:$0xff]  }
  0x74   : > { %1192 = vmatpush1.bf16.msra.mxu1 %v3322_v5  ;;  %943 = vmatprep.subr.bf16.mxu0 %v3327_v6  ;;  %v3403_v5 = vld [vmem:[%s4600_s1 + $0x484] ss:$8 sps:$4 sm:$0xff]  }
  0x75   : > { %1193 = vmatprep.subr.bf16.mxu1 %v3330_v7  ;;  %v3406_v6 = vld [vmem:[%s4600_s1 + $0x584] ss:$8 sps:$4 sm:$0xff]   ;;  %v3401_v7 = vld [vmem:[%s4600_s1 + $0x480] ss:$8 sps:$4 sm:$0xff]  }
  0x77   : > { %944 = vmatpush1.bf16.msra.mxu0 %v3325_v8  ;;  %v3404_v8 = vld [vmem:[%s4600_s1 + $0x580] ss:$8 sps:$4 sm:$0xff]  }
  0x78   : > { %1194 = vmatpush1.bf16.msra.mxu1 %v3328_v9  ;;  %945 = vmatprep.subr.bf16.mxu0 %v3333_v10  ;;  %v3409_v9 = vld [vmem:[%s4600_s1 + $0x494] ss:$8 sps:$4 sm:$0xff]  }
  0x79   : > { %1195 = vmatprep.subr.bf16.mxu1 %v3336_v11  ;;  %v3412_v10 = vld [vmem:[%s4600_s1 + $0x594] ss:$8 sps:$4 sm:$0xff]   ;;  %v3407_v11 = vld [vmem:[%s4600_s1 + $0x490] ss:$8 sps:$4 sm:$0xff]  }
  0x7b   : > { %946 = vmatpush1.bf16.msra.mxu0 %v3331_v12  ;;  %v3410_v12 = vld [vmem:[%s4600_s1 + $0x590] ss:$8 sps:$4 sm:$0xff]  }
  0x7c   : > { %1196 = vmatpush1.bf16.msra.mxu1 %v3334_v13  ;;  %947 = vmatprep.subr.bf16.mxu0 %v3339_v14  ;;  %v3415_v13 = vld [vmem:[%s4600_s1 + $0x4a4] ss:$8 sps:$4 sm:$0xff]  }
  0x7d   : > { %1197 = vmatprep.subr.bf16.mxu1 %v3342_v15  ;;  %v3418_v14 = vld [vmem:[%s4600_s1 + $0x5a4] ss:$8 sps:$4 sm:$0xff]   ;;  %v3413_v15 = vld [vmem:[%s4600_s1 + $0x4a0] ss:$8 sps:$4 sm:$0xff]  }
  0x7f   : > { %948 = vmatpush1.bf16.msra.mxu0 %v3337_v16  ;;  %v3416_v16 = vld [vmem:[%s4600_s1 + $0x5a0] ss:$8 sps:$4 sm:$0xff]  }
  0x80   : > { %1198 = vmatpush1.bf16.msra.mxu1 %v3340_v17  ;;  %949 = vmatprep.subr.bf16.mxu0 %v3345_v18  ;;  %v3421_v17 = vld [vmem:[%s4600_s1 + $0x4b4] ss:$8 sps:$4 sm:$0xff]  }
  0x81   : > { %1199 = vmatprep.subr.bf16.mxu1 %v3348_v19  ;;  %v3424_v18 = vld [vmem:[%s4600_s1 + $0x5b4] ss:$8 sps:$4 sm:$0xff]   ;;  %v3419_v19 = vld [vmem:[%s4600_s1 + $0x4b0] ss:$8 sps:$4 sm:$0xff]  }
  0x83   : > { %950 = vmatpush1.bf16.msra.mxu0 %v3343_v22  ;;  %v3430_v22 = vld [vmem:[%s4600_s1 + $0x5c4] ss:$8 sps:$4 sm:$0xff]  }
  0x84   : > { %1200 = vmatpush1.bf16.msra.mxu1 %v3346_v23  ;;  %1429 = vmatprep.subr.bf16.mxu0 %v3353_v47  ;;  %v3425_v23 = vld [vmem:[%s4600_s1 + $0x4c0] ss:$8 sps:$4 sm:$0xff]  }
  0x85   : > { %1675 = vmatprep.subr.bf16.mxu1 %v3358_v24  ;;  %v3428_v47 = vld [vmem:[%s4600_s1 + $0x5c0] ss:$8 sps:$4 sm:$0xff]   ;;  %v3433_v24 = vld [vmem:[%s4600_s1 + $0x4d4] ss:$8 sps:$4 sm:$0xff]  }
  0x86   : > { %952 = vmatmul.mubr.bf16.vlgmr.msra.gmra.mrb[4].mxu0 %v755_v25  ;;  %v3436_v25 = vld [vmem:[%s4600_s1 + $0x5d4] ss:$8 sps:$4 sm:$0xff]  }
  0x87   : > { %1202 = vmatmul.mubr.bf16.vlgmr.msra.gmra.mrb[4].mxu1 %v1005_v26  ;;  %1430 = vmatpush1.bf16.msra.mxu0 %v3351_v27  ;;  %v3431_v26 = vld [vmem:[%s4600_s1 + $0x4d0] ss:$8 sps:$4 sm:$0xff]  }
  0x88   : > { %1676 = vmatpush1.bf16.msra.mxu1 %v3356_v28  ;;  %1431 = vmatprep.subr.bf16.mxu0 %v3361_v29  ;;  %v3434_v27 = vld [vmem:[%s4600_s1 + $0x5d0] ss:$8 sps:$4 sm:$0xff]   ;;  %v2840_v28 = vcombine.low %v3955_v45, %v4090_v31  ;;  %v4252_v29 = vld [vmem:[%s3786_s10 + $0x8] sm:$0xff] }
  0x89   : > { %1677 = vmatprep.subr.bf16.mxu1 %v3364_v30  ;;  %1707 = vmatprep.mubr.bf16.mxu1 %v1512_v41  ;;  %v4255_v30 = vld [vmem:[%s3786_s10 + $0x10] sm:$0x11]  ;;  %v3437_v45 = vld [vmem:[%s4600_s1 + $0x4e0] ss:$8 sps:$4 sm:$0xff]  }
  0x8a   : > { %1461 = vmatprep.mubr.bf16.mxu0 %v1266_v50  ;;  %v3443_v41 = vld [vmem:[%s4600_s1 + $0x4f0] ss:$8 sps:$4 sm:$0xff]   ;;  %v3458_v50 = vld [vmem:[%s4600_s1 + $0x704] ss:$8 sps:$4 sm:$0xff]  }
  0x8b   : > { %1432 = vmatpush1.bf16.msra.mxu0 %v3359_v32  ;;  %v3439_v32 = vld [vmem:[%s4600_s1 + $0x4e4] ss:$8 sps:$4 sm:$0xff]  }
  0x8c   : > { %1678 = vmatpush1.bf16.msra.mxu1 %v3362_v35  ;;  %1433 = vmatprep.subr.bf16.mxu0 %v3367_v37  ;;  %v3039_v35 = vcombine.high %v4252_v29, %v4255_v30  ;;  %v1252_v37 = vshrl.u32 %v2840_v28, 16 }
  0x8d   : > { %1679 = vmatprep.subr.bf16.mxu1 %v3370_v38  ;;  %v1255_v38 = vshll.u32 %v2840_v28, 16  ;;  %v3515_v28 = vld [vmem:[%s4600_s1 + $0x6a4] ss:$8 sps:$4 sm:$0xff]  }
  0x8e   : > { %v1254_v44 = vrot.slane %v1252_v37, 2  ;;  %v3519_v37 = vld [vmem:[%s4600_s1 + $0x6b0] ss:$8 sps:$4 sm:$0xff]  }
  0x8f   : > { %1434 = vmatpush1.bf16.msra.mxu0 %v3365_v42  ;;  %v2015_v42 = vshll.u32 %v3039_v35, 16  ;;  %v1257_v46 = vrot.slane %v1255_v38, 3  ;;  %v3522_v38 = vld [vmem:[%s4600_s1 + $0x7b0] ss:$8 sps:$4 sm:$0xff]  }
  0x90   : > { %1680 = vmatpush1.bf16.msra.mxu1 %v3368_v43  ;;  %1435 = vmatprep.subr.bf16.mxu0 %v3373_v48  ;;  %v3446_v43 = vld [vmem:[%s4600_s1 + $0x5f0] ss:$8 sps:$4 sm:$0xff]   ;;  %v2906_v48 = vcombine.low %v4098_v34, %v4090_v31  ;;  %v3456_v34 = vld [vmem:[%s4600_s1 + $0x700] ss:$8 sps:$4 sm:$0xff]  }
  0x91   : > { %1681 = vmatprep.subr.bf16.mxu1 %v3376_v49  ;;  %v3453_v49 = vld [vmem:[%s4600_s1 + $0x604] ss:$8 sps:$4 sm:$0xff]  }
  0x92   : > { %v1511_v31 = vrot.slane %v2906_v48, 3  ;;  %v3531_v48 = vld [vmem:[%s4600_s1 + $0x6d0] ss:$8 sps:$4 sm:$0xff]  }
  0x93   : > { %1436 = vmatpush1.bf16.msra.mxu0 %v3371_v51  ;;  %v2013_v51 = vshrl.u32 %v3039_v35, 16  ;;  %v3521_v35 = vld [vmem:[%s4600_s1 + $0x6b4] ss:$8 sps:$4 sm:$0xff]  }
  0x94   : > { %1682 = vmatpush1.bf16.msra.mxu1 %v3374_v52  ;;  %1437 = vmatprep.subr.bf16.mxu0 %v3379_v53  ;;  %v2017_v52 = vrot.slane %v2015_v42, 1  ;;  %v1258_v53 = vor.u32 %v1257_v46, %v1254_v44  ;;  %v3528_v42 = vld [vmem:[%s4600_s1 + $0x7c0] ss:$8 sps:$4 sm:$0xff]   ;;  %v3536_v44 = vld [vmem:[%s4600_s1 + $0x7d4] ss:$8 sps:$4 sm:$0xff]   ;;  %v3038_v46 = vcombine.low %v4252_v29, %v4255_v30 }
  0x95   : > { %1683 = vmatprep.subr.bf16.mxu1 %v3382_v54  ;;  %v3451_v54 = vld [vmem:[%s4600_s1 + $0x600] ss:$8 sps:$4 sm:$0xff]  }
  0x97   : > { %1438 = vmatpush1.bf16.msra.mxu0 %v3377_v55  ;;  %v3461_v55 = vld [vmem:[%s4600_s1 + $0x614] ss:$8 sps:$4 sm:$0xff]  }
  0x98   : > { %1684 = vmatpush1.bf16.msra.mxu1 %v3380_v56  ;;  %1439 = vmatprep.subr.bf16.mxu0 %v3385_v57  ;;  %v3464_v56 = vld [vmem:[%s4600_s1 + $0x714] ss:$8 sps:$4 sm:$0xff]   ;;  %v2973_v57 = vcombine.high %v4252_v29, %v4252_v29 }
  0x99   : > { %1685 = vmatprep.subr.bf16.mxu1 %v3388_v58  ;;  %v2018_v58 = vor.u32 %v2017_v52, %v2013_v51  ;;  %v3542_v51 = vld [vmem:[%s4600_s1 + $0x7e4] ss:$8 sps:$4 sm:$0xff]   ;;  %v2008_v52 = vshll.u32 %v3038_v46, 16 }
  0x9b   : > { %1440 = vmatpush1.bf16.msra.mxu0 %v3383_v59  ;;  %v3459_v59 = vld [vmem:[%s4600_s1 + $0x610] ss:$8 sps:$4 sm:$0xff]  }
  0x9c   : > { %1686 = vmatpush1.bf16.msra.mxu1 %v3386_v60  ;;  %1441 = vmatprep.subr.bf16.mxu0 %v3391_v61  ;;  %v3462_v60 = vld [vmem:[%s4600_s1 + $0x710] ss:$8 sps:$4 sm:$0xff]   ;;  %v3467_v61 = vld [vmem:[%s4600_s1 + $0x624] ss:$8 sps:$4 sm:$0xff]  }
  0x9d   : > { %1687 = vmatprep.subr.bf16.mxu1 %v3394_v62  ;;  %v3470_v62 = vld [vmem:[%s4600_s1 + $0x724] ss:$8 sps:$4 sm:$0xff]  }
  0x9f   : > { %1442 = vmatpush1.bf16.msra.mxu0 %v3389_v63  ;;  %v3465_v63 = vld [vmem:[%s4600_s1 + $0x620] ss:$8 sps:$4 sm:$0xff]  }
  0xa0   : > { %1688 = vmatpush1.bf16.msra.mxu1 %v3392_v0  ;;  %1443 = vmatprep.subr.bf16.mxu0 %v3397_v1  ;;  %v3468_v0 = vld [vmem:[%s4600_s1 + $0x720] ss:$8 sps:$4 sm:$0xff]   ;;  %v3473_v1 = vld [vmem:[%s4600_s1 + $0x634] ss:$8 sps:$4 sm:$0xff]  }
  0xa1   : > { %1689 = vmatprep.subr.bf16.mxu1 %v3400_v2  ;;  %v3476_v2 = vld [vmem:[%s4600_s1 + $0x734] ss:$8 sps:$4 sm:$0xff]  }
  0xa3   : > { %1444 = vmatpush1.bf16.msra.mxu0 %v3395_v3  ;;  %v3471_v3 = vld [vmem:[%s4600_s1 + $0x630] ss:$8 sps:$4 sm:$0xff]  }
  0xa4   : > { %1690 = vmatpush1.bf16.msra.mxu1 %v3398_v4  ;;  %1445 = vmatprep.subr.bf16.mxu0 %v3403_v5  ;;  %v3474_v4 = vld [vmem:[%s4600_s1 + $0x730] ss:$8 sps:$4 sm:$0xff]   ;;  %v3479_v5 = vld [vmem:[%s4600_s1 + $0x644] ss:$8 sps:$4 sm:$0xff]  }
  0xa5   : > { %1691 = vmatprep.subr.bf16.mxu1 %v3406_v6  ;;  %v3482_v6 = vld [vmem:[%s4600_s1 + $0x744] ss:$8 sps:$4 sm:$0xff]  }
  0xa7   : > { %1446 = vmatpush1.bf16.msra.mxu0 %v3401_v7  ;;  %v3477_v7 = vld [vmem:[%s4600_s1 + $0x640] ss:$8 sps:$4 sm:$0xff]  }
  0xa8   : > { %1692 = vmatpush1.bf16.msra.mxu1 %v3404_v8  ;;  %1447 = vmatprep.subr.bf16.mxu0 %v3409_v9  ;;  %v3480_v8 = vld [vmem:[%s4600_s1 + $0x740] ss:$8 sps:$4 sm:$0xff]   ;;  %v3485_v9 = vld [vmem:[%s4600_s1 + $0x654] ss:$8 sps:$4 sm:$0xff]  }
  0xa9   : > { %1693 = vmatprep.subr.bf16.mxu1 %v3412_v10  ;;  %v3488_v10 = vld [vmem:[%s4600_s1 + $0x754] ss:$8 sps:$4 sm:$0xff]  }
  0xab   : > { %1448 = vmatpush1.bf16.msra.mxu0 %v3407_v11  ;;  %v3483_v11 = vld [vmem:[%s4600_s1 + $0x650] ss:$8 sps:$4 sm:$0xff]  }
  0xac   : > { %1694 = vmatpush1.bf16.msra.mxu1 %v3410_v12  ;;  %1449 = vmatprep.subr.bf16.mxu0 %v3415_v13  ;;  %v3486_v12 = vld [vmem:[%s4600_s1 + $0x750] ss:$8 sps:$4 sm:$0xff]   ;;  %v3491_v13 = vld [vmem:[%s4600_s1 + $0x664] ss:$8 sps:$4 sm:$0xff]  }
  0xad   : > { %1695 = vmatprep.subr.bf16.mxu1 %v3418_v14  ;;  %v3494_v14 = vld [vmem:[%s4600_s1 + $0x764] ss:$8 sps:$4 sm:$0xff]  }
  0xaf   : > { %1450 = vmatpush1.bf16.msra.mxu0 %v3413_v15  ;;  %v3489_v15 = vld [vmem:[%s4600_s1 + $0x660] ss:$8 sps:$4 sm:$0xff]  }
  0xb0   : > { %1696 = vmatpush1.bf16.msra.mxu1 %v3416_v16  ;;  %1451 = vmatprep.subr.bf16.mxu0 %v3421_v17  ;;  %v3492_v16 = vld [vmem:[%s4600_s1 + $0x760] ss:$8 sps:$4 sm:$0xff]   ;;  %v3497_v17 = vld [vmem:[%s4600_s1 + $0x674] ss:$8 sps:$4 sm:$0xff]  }
  0xb1   : > { %1697 = vmatprep.subr.bf16.mxu1 %v3424_v18  ;;  %v3500_v18 = vld [vmem:[%s4600_s1 + $0x774] ss:$8 sps:$4 sm:$0xff]  }
  0xb3   : > { %1452 = vmatpush1.bf16.msra.mxu0 %v3419_v19  ;;  %v3495_v19 = vld [vmem:[%s4600_s1 + $0x670] ss:$8 sps:$4 sm:$0xff]  }
  0xb4   : > { %1698 = vmatpush1.bf16.msra.mxu1 %v3422_v20  ;;  %1453 = vmatprep.subr.bf16.mxu0 %v3427_v21  ;;  %v3498_v20 = vld [vmem:[%s4600_s1 + $0x770] ss:$8 sps:$4 sm:$0xff]   ;;  %v3503_v21 = vld [vmem:[%s4600_s1 + $0x684] ss:$8 sps:$4 sm:$0xff]  }
  0xb5   : > { %1699 = vmatprep.subr.bf16.mxu1 %v3430_v22  ;;  %v3506_v22 = vld [vmem:[%s4600_s1 + $0x784] ss:$8 sps:$4 sm:$0xff]  }
  0xb7   : > { %1454 = vmatpush1.bf16.msra.mxu0 %v3425_v23  ;;  %v3501_v23 = vld [vmem:[%s4600_s1 + $0x680] ss:$8 sps:$4 sm:$0xff]  }
  0xb8   : > { %1700 = vmatpush1.bf16.msra.mxu1 %v3428_v47  ;;  %1455 = vmatprep.subr.bf16.mxu0 %v3433_v24  ;;  %v3504_v47 = vld [vmem:[%s4600_s1 + $0x780] ss:$8 sps:$4 sm:$0xff]   ;;  %v3509_v24 = vld [vmem:[%s4600_s1 + $0x694] ss:$8 sps:$4 sm:$0xff]  }
  0xb9   : > { %1701 = vmatprep.subr.bf16.mxu1 %v3436_v25  ;;  %v3512_v25 = vld [vmem:[%s4600_s1 + $0x794] ss:$8 sps:$4 sm:$0xff]  }
  0xbb   : > { %1456 = vmatpush1.bf16.msra.mxu0 %v3431_v26  ;;  %v3507_v26 = vld [vmem:[%s4600_s1 + $0x690] ss:$8 sps:$4 sm:$0xff]  }
  0xbc   : > { %1702 = vmatpush1.bf16.msra.mxu1 %v3434_v27  ;;  %1457 = vmatprep.subr.bf16.mxu0 %v3439_v32  ;;  %v3510_v27 = vld [vmem:[%s4600_s1 + $0x790] ss:$8 sps:$4 sm:$0xff]   ;;  %v3518_v32 = vld [vmem:[%s4600_s1 + $0x7a4] ss:$8 sps:$4 sm:$0xff]  }
  0xbd   : > { %1703 = vmatprep.subr.bf16.mxu1 %v3442_v33  ;;  %v3513_v33 = vld [vmem:[%s4600_s1 + $0x6a0] ss:$8 sps:$4 sm:$0xff]  }
  0xbf   : > { %1458 = vmatpush1.bf16.msra.mxu0 %v3437_v45  ;;  %v3516_v45 = vld [vmem:[%s4600_s1 + $0x7a0] ss:$8 sps:$4 sm:$0xff]  }
  0xc0   : > { %1704 = vmatpush1.bf16.msra.mxu1 %v3440_v36  ;;  %1459 = vmatprep.subr.bf16.mxu0 %v3445_v39  ;;  %v3524_v36 = vld [vmem:[%s4600_s1 + $0x7b4] ss:$8 sps:$4 sm:$0xff]   ;;  %v3527_v39 = vld [vmem:[%s4600_s1 + $0x6c4] ss:$8 sps:$4 sm:$0xff]  }
  0xc1   : > { %1705 = vmatprep.subr.bf16.mxu1 %v3448_v40  ;;  %v3530_v40 = vld [vmem:[%s4600_s1 + $0x7c4] ss:$8 sps:$4 sm:$0xff]  }
  0xc3   : > { %1460 = vmatpush1.bf16.msra.mxu0 %v3443_v41  ;;  %v3525_v41 = vld [vmem:[%s4600_s1 + $0x6c0] ss:$8 sps:$4 sm:$0xff]  }
  0xc4   : > { %1706 = vmatpush1.bf16.msra.mxu1 %v3446_v43  ;;  %1919 = vmatprep.subr.bf16.mxu0 %v3453_v49  ;;  %v3533_v43 = vld [vmem:[%s4600_s1 + $0x6d4] ss:$8 sps:$4 sm:$0xff]   ;;  %v3534_v49 = vld [vmem:[%s4600_s1 + $0x7d0] ss:$8 sps:$4 sm:$0xff]  }
  0xc5   : > { %2181 = vmatprep.subr.bf16.mxu1 %v3458_v50  ;;  %v3539_v50 = vld [vmem:[%s4600_s1 + $0x6e4] ss:$8 sps:$4 sm:$0xff]  }
  0xc6   : > { %1462 = vmatmul.mubr.bf16.vlgmr.msra.gmra.mrb[8].mxu0 %v1258_v53  ;;  %v3537_v53 = vld [vmem:[%s4600_s1 + $0x6e0] ss:$8 sps:$4 sm:$0xff]  }
  0xc7   : > { %1708 = vmatmul.mubr.bf16.vlgmr.msra.gmra.mrb[8].mxu1 %v1511_v31  ;;  %1920 = vmatpush1.bf16.msra.mxu0 %v3451_v54  ;;  %v3540_v54 = vld [vmem:[%s4600_s1 + $0x7e0] ss:$8 sps:$4 sm:$0xff]   ;;  %v3545_v31 = vld [vmem:[%s4600_s1 + $0x6f4] ss:$8 sps:$4 sm:$0xff]  }
  0xc8   : > { %2182 = vmatpush1.bf16.msra.mxu1 %v3456_v34  ;;  %1921 = vmatprep.subr.bf16.mxu0 %v3461_v55  ;;  %v3548_v34 = vld [vmem:[%s4600_s1 + $0x7f4] ss:$8 sps:$4 sm:$0xff]   ;;  %v4476_v55 = vld [vmem:[%s3786_s10 + $0x8] sm:$0xee] }
  0xc9   : > { %2183 = vmatprep.subr.bf16.mxu1 %v3464_v56  ;;  %1951 = vmatprep.mubr.bf16.mxu0 %v2973_v57  ;;  %v2006_v56 = vshrl.u32 %v3038_v46, 16  ;;  %v2010_v57 = vrot.slane %v2008_v52, 1 }
  0xca   : > { %2213 = vmatprep.mubr.bf16.mxu1 %v2018_v58  ;;  %v3543_v58 = vld [vmem:[%s4600_s1 + $0x6f0] ss:$8 sps:$4 sm:$0xff]  }
  0xcb   : > { %1922 = vmatpush1.bf16.msra.mxu0 %v3459_v59  ;;  %v3546_v59 = vld [vmem:[%s4600_s1 + $0x7f0] ss:$8 sps:$4 sm:$0xff]  }
  0xcc   : > { %2184 = vmatpush1.bf16.msra.mxu1 %v3462_v60  ;;  %1923 = vmatprep.subr.bf16.mxu0 %v3467_v61  ;;  %v3105_v60 = vcombine.high %v4476_v55, %v4255_v30  ;;  %v3553_v61 = vld [vmem:[%s4600_s1 + $0x804] ss:$8 sps:$4 sm:$0xff]  }
  0xcd   : > { %2185 = vmatprep.subr.bf16.mxu1 %v3470_v62  ;;  %v2972_v62 = vcombine.low %v4252_v29, %v4252_v29  ;;  %v3556_v29 = vld [vmem:[%s4600_s1 + $0x810] ss:$8 sps:$4 sm:$0xff]  }
  0xcf   : > { %1924 = vmatpush1.bf16.msra.mxu0 %v3465_v63  ;;  %v2011_v63 = vor.u32 %v2010_v57, %v2006_v56 }
  0xd0   : > { %2186 = vmatpush1.bf16.msra.mxu1 %v3468_v0  ;;  %1925 = vmatprep.subr.bf16.mxu0 %v3473_v1  ;;  %v3551_v0 = vld [vmem:[%s4600_s1 + $0x800] ss:$8 sps:$4 sm:$0xff]   ;;  %v2264_v1 = vrot.slane %v3105_v60, 1 }
  0xd1   : > { %2187 = vmatprep.subr.bf16.mxu1 %v3476_v2  ;;  %v3558_v2 = vld [vmem:[%s4600_s1 + $0x814] ss:$8 sps:$4 sm:$0xff]  }
  0xd3   : > { %1926 = vmatpush1.bf16.msra.mxu0 %v3471_v3  ;;  %v3561_v3 = vld [vmem:[%s4600_s1 + $0x824] ss:$8 sps:$4 sm:$0xff]  }
  0xd4   : > { %2188 = vmatpush1.bf16.msra.mxu1 %v3474_v4  ;;  %1927 = vmatprep.subr.bf16.mxu0 %v3479_v5  ;;  %v3559_v4 = vld [vmem:[%s4600_s1 + $0x820] ss:$8 sps:$4 sm:$0xff]   ;;  %v3564_v5 = vld [vmem:[%s4600_s1 + $0x834] ss:$8 sps:$4 sm:$0xff]  }
  0xd5   : > { %2189 = vmatprep.subr.bf16.mxu1 %v3482_v6  ;;  %v3562_v6 = vld [vmem:[%s4600_s1 + $0x830] ss:$8 sps:$4 sm:$0xff]  }
  0xd7   : > { %1928 = vmatpush1.bf16.msra.mxu0 %v3477_v7  ;;  %v3567_v7 = vld [vmem:[%s4600_s1 + $0x844] ss:$8 sps:$4 sm:$0xff]  }
  0xd8   : > { %2190 = vmatpush1.bf16.msra.mxu1 %v3480_v8  ;;  %1929 = vmatprep.subr.bf16.mxu0 %v3485_v9  ;;  %v3565_v8 = vld [vmem:[%s4600_s1 + $0x840] ss:$8 sps:$4 sm:$0xff]   ;;  %v3570_v9 = vld [vmem:[%s4600_s1 + $0x854] ss:$8 sps:$4 sm:$0xff]  }
  0xd9   : > { %2191 = vmatprep.subr.bf16.mxu1 %v3488_v10  ;;  %v3568_v10 = vld [vmem:[%s4600_s1 + $0x850] ss:$8 sps:$4 sm:$0xff]  }
  0xdb   : > { %1930 = vmatpush1.bf16.msra.mxu0 %v3483_v11  ;;  %v3573_v11 = vld [vmem:[%s4600_s1 + $0x864] ss:$8 sps:$4 sm:$0xff]  }
  0xdc   : > { %2192 = vmatpush1.bf16.msra.mxu1 %v3486_v12  ;;  %1931 = vmatprep.subr.bf16.mxu0 %v3491_v13 }
  0xdd   : > { %2193 = vmatprep.subr.bf16.mxu1 %v3494_v14 }
  0xdf   : > { %1932 = vmatpush1.bf16.msra.mxu0 %v3489_v15 }
  0xe0   : > { %2194 = vmatpush1.bf16.msra.mxu1 %v3492_v16  ;;  %1933 = vmatprep.subr.bf16.mxu0 %v3497_v17 }
  0xe1   : > { %2195 = vmatprep.subr.bf16.mxu1 %v3500_v18 }
  0xe3   : > { %1934 = vmatpush1.bf16.msra.mxu0 %v3495_v19  ;;  %v3571_v19 = vld [vmem:[%s4600_s1 + $0x860] ss:$8 sps:$4 sm:$0xff]  }
  0xe4   : > { %2196 = vmatpush1.bf16.msra.mxu1 %v3498_v20  ;;  %1935 = vmatprep.subr.bf16.mxu0 %v3503_v21 }
  0xe5   : > { %2197 = vmatprep.subr.bf16.mxu1 %v3506_v22  ;;  %v3576_v22 = vld [vmem:[%s4600_s1 + $0x874] ss:$8 sps:$4 sm:$0xff]  }
  0xe7   : > { %1936 = vmatpush1.bf16.msra.mxu0 %v3501_v23 }
  0xe8   : > { %2198 = vmatpush1.bf16.msra.mxu1 %v3504_v47  ;;  %1937 = vmatprep.subr.bf16.mxu0 %v3509_v24  ;;  %v3574_v47 = vld [vmem:[%s4600_s1 + $0x870] ss:$8 sps:$4 sm:$0xff]   ;;  %v3579_v24 = vld [vmem:[%s4600_s1 + $0x884] ss:$8 sps:$4 sm:$0xff]  }
  0xe9   : > { %2199 = vmatprep.subr.bf16.mxu1 %v3512_v25  ;;  %v3577_v25 = vld [vmem:[%s4600_s1 + $0x880] ss:$8 sps:$4 sm:$0xff]  }
  0xeb   : > { %1938 = vmatpush1.bf16.msra.mxu0 %v3507_v26  ;;  %v3582_v26 = vld [vmem:[%s4600_s1 + $0x894] ss:$8 sps:$4 sm:$0xff]  }
  0xec   : > { %2200 = vmatpush1.bf16.msra.mxu1 %v3510_v27  ;;  %1939 = vmatprep.subr.bf16.mxu0 %v3515_v28  ;;  %v3580_v27 = vld [vmem:[%s4600_s1 + $0x890] ss:$8 sps:$4 sm:$0xff]   ;;  %v3585_v28 = vld [vmem:[%s4600_s1 + $0x8a4] ss:$8 sps:$4 sm:$0xff]  }
  0xed   : > { %2201 = vmatprep.subr.bf16.mxu1 %v3518_v32  ;;  %v3583_v32 = vld [vmem:[%s4600_s1 + $0x8a0] ss:$8 sps:$4 sm:$0xff]  }
  0xef   : > { %1940 = vmatpush1.bf16.msra.mxu0 %v3513_v33  ;;  %v3588_v33 = vld [vmem:[%s4600_s1 + $0x8b4] ss:$8 sps:$4 sm:$0xff]  }
  0xf0   : > { %2202 = vmatpush1.bf16.msra.mxu1 %v3516_v45  ;;  %1941 = vmatprep.subr.bf16.mxu0 %v3521_v35  ;;  %v3586_v45 = vld [vmem:[%s4600_s1 + $0x8b0] ss:$8 sps:$4 sm:$0xff]   ;;  %v3591_v35 = vld [vmem:[%s4600_s1 + $0x8c4] ss:$8 sps:$4 sm:$0xff]  }
  0xf1   : > { %2203 = vmatprep.subr.bf16.mxu1 %v3524_v36  ;;  %v3589_v36 = vld [vmem:[%s4600_s1 + $0x8c0] ss:$8 sps:$4 sm:$0xff]  }
  0xf3   : > { %1942 = vmatpush1.bf16.msra.mxu0 %v3519_v37  ;;  %v3594_v37 = vld [vmem:[%s4600_s1 + $0x8d4] ss:$8 sps:$4 sm:$0xff]  }
  0xf4   : > { %2204 = vmatpush1.bf16.msra.mxu1 %v3522_v38  ;;  %1943 = vmatprep.subr.bf16.mxu0 %v3527_v39  ;;  %v3592_v38 = vld [vmem:[%s4600_s1 + $0x8d0] ss:$8 sps:$4 sm:$0xff]   ;;  %v3597_v39 = vld [vmem:[%s4600_s1 + $0x8e4] ss:$8 sps:$4 sm:$0xff]  }
  0xf5   : > { %2205 = vmatprep.subr.bf16.mxu1 %v3530_v40  ;;  %v3595_v40 = vld [vmem:[%s4600_s1 + $0x8e0] ss:$8 sps:$4 sm:$0xff]  }
  0xf7   : > { %1944 = vmatpush1.bf16.msra.mxu0 %v3525_v41  ;;  %v3600_v41 = vld [vmem:[%s4600_s1 + $0x8f4] ss:$8 sps:$4 sm:$0xff]  }
  0xf8   : > { %2206 = vmatpush1.bf16.msra.mxu1 %v3528_v42  ;;  %1945 = vmatprep.subr.bf16.mxu0 %v3533_v43  ;;  %v3104_v42 = vcombine.low %v4476_v55, %v4255_v30  ;;  %v3598_v43 = vld [vmem:[%s4600_s1 + $0x8f0] ss:$8 sps:$4 sm:$0xff]  }
  0xf9   : > { %2207 = vmatprep.subr.bf16.mxu1 %v3536_v44 }
  0xfa   : > { %v2263_v44 = vrot.slane %v3104_v42, 1 }
  0xfb   : > { %1946 = vmatpush1.bf16.msra.mxu0 %v3531_v48 }
  0xfc   : > { %2208 = vmatpush1.bf16.msra.mxu1 %v3534_v49  ;;  %1947 = vmatprep.subr.bf16.mxu0 %v3539_v50 }
  0xfd   : > { %2209 = vmatprep.subr.bf16.mxu1 %v3542_v51 }
  0xff   : > { %1948 = vmatpush1.bf16.msra.mxu0 %v3537_v53 }
 0x100   : > { %2210 = vmatpush1.bf16.msra.mxu1 %v3540_v54  ;;  %1949 = vmatprep.subr.bf16.mxu0 %v3545_v31 }
 0x101   : > { %2211 = vmatprep.subr.bf16.mxu1 %v3548_v34 }
 0x103   : > { %1950 = vmatpush1.bf16.msra.mxu0 %v3543_v58 }
 0x104   : > { %2212 = vmatpush1.bf16.msra.mxu1 %v3546_v59  ;;  %2427 = vmatprep.subr.bf16.mxu0 %v3553_v61 }
 0x106   : > { %1952 = vmatmul.mubr.bf16.vlgmr.msra.gmra.mrb[12].mxu0 %v2972_v62 }
 0x107   : > { %2214 = vmatmul.mubr.bf16.vlgmr.msra.gmra.mrb[12].mxu1 %v2011_v63  ;;  %2428 = vmatpush1.bf16.msra.mxu0 %v3551_v0 }
 0x108   : > { %2459 = vmatprep.mubr.bf16.mxu0 %v2264_v1  ;;  %2429 = vmatprep.subr.bf16.mxu0 %v3558_v2 }
 0x10b   : > { %2430 = vmatpush1.bf16.msra.mxu0 %v3556_v29 }
 0x10c   : > { %2431 = vmatprep.subr.bf16.mxu0 %v3561_v3 }
 0x10f   : > { %2432 = vmatpush1.bf16.msra.mxu0 %v3559_v4 }
 0x110   : > { %2433 = vmatprep.subr.bf16.mxu0 %v3564_v5 }
 0x113   : > { %2434 = vmatpush1.bf16.msra.mxu0 %v3562_v6 }
 0x114   : > { %2435 = vmatprep.subr.bf16.mxu0 %v3567_v7 }
 0x117   : > { %2436 = vmatpush1.bf16.msra.mxu0 %v3565_v8 }
 0x118   : > { %2437 = vmatprep.subr.bf16.mxu0 %v3570_v9 }
 0x119   : > { %v504_v12 = vpop.f32.mrb[0].mxu0 }
 0x11a   : > { %v709_v13 = vpop.f32.mrb[0].mxu1  ;;  %v506_v15 = vpop.f32.mrb[1].mxu0 }
 0x11b   : > { %v710_v14 = vadd.f32 %v709_v13, %v504_v12  ;;  %v711_v16 = vpop.f32.mrb[1].mxu1  ;;  %v508_v18 = vpop.f32.mrb[2].mxu0  ;;  %2438 = vmatpush1.bf16.msra.mxu0 %v3568_v10 }
 0x11c   : > { %v712_v17 = vadd.f32 %v711_v16, %v506_v15  ;;  %v713_v20 = vpop.f32.mrb[2].mxu1  ;;  %v509_v21 = vpop.f32.mrb[3].mxu0  ;;  %2439 = vmatprep.subr.bf16.mxu0 %v3573_v11  ;;  %v2471_v15 = vlaneseq  ;;  %v218_v18 = vld [vmem:[%s4601_s2] sm:$0x3] }
 0x11d   : > { %v714_v23 = vpop.f32.mrb[3].mxu1  ;;  %v2483_v20 = vld [vmem:[%s212_s18] sm:$0xff] }
 0x11e   : > { %v2472_v16 = vshrl.u32 %v2471_v15, 7 }
 0x11f   : > { %2440 = vmatpush1.bf16.msra.mxu0 %v3571_v19 }
 0x120   : > { %2441 = vmatprep.subr.bf16.mxu0 %v3576_v22  ;;  %v2477_v19 = vsub.s32 1, %v2472_v16 }
 0x122   : > { %v2478_v23 = vrot.slane %v218_v18, %v2477_v19 }
 0x123   : > { %2442 = vmatpush1.bf16.msra.mxu0 %v3574_v47 }
 0x124   : > { %2443 = vmatprep.subr.bf16.mxu0 %v3579_v24  ;;  %v2484_v24 = vunpack.c.l.bf16 %v2483_v20 }
 0x127   : > { %2444 = vmatpush1.bf16.msra.mxu0 %v3577_v25 }
 0x128   : > { %2445 = vmatprep.subr.bf16.mxu0 %v3582_v26 }
 0x12b   : > { %2446 = vmatpush1.bf16.msra.mxu0 %v3580_v27  ;;  %v2485_v27 = vunpack.c.h.bf16 %v2483_v20 }
 0x12c   : > { %2447 = vmatprep.subr.bf16.mxu0 %v3585_v28 }
 0x12f   : > { %2448 = vmatpush1.bf16.msra.mxu0 %v3583_v32 }
 0x130   : > { %2449 = vmatprep.subr.bf16.mxu0 %v3588_v33 }
 0x133   : > { %2450 = vmatpush1.bf16.msra.mxu0 %v3586_v45 }
 0x134   : > { %2451 = vmatprep.subr.bf16.mxu0 %v3591_v35 }
 0x137   : > { %2452 = vmatpush1.bf16.msra.mxu0 %v3589_v36 }
 0x138   : > { %2453 = vmatprep.subr.bf16.mxu0 %v3594_v37 }
 0x13b   : > { %2454 = vmatpush1.bf16.msra.mxu0 %v3592_v38 }
 0x13c   : > { %2455 = vmatprep.subr.bf16.mxu0 %v3597_v39 }
 0x13f   : > { %2456 = vmatpush1.bf16.msra.mxu0 %v3595_v40 }
 0x140   : > { %2457 = vmatprep.subr.bf16.mxu0 %v3600_v41 }
 0x143   : > { %2458 = vmatpush1.bf16.msra.mxu0 %v3598_v43 }
 0x146   : > { %2460 = vmatmul.mubr.bf16.vlgmr.msra.gmra.mrb[16].mxu0 %v2263_v44 }
 0x159   : > { %v953_v46 = vpop.f32.mrb[4].mxu0 }
 0x15a   : > { %v1203_v48 = vpop.f32.mrb[4].mxu1  ;;  %v960_v49 = vadd.f32 %v953_v46, %v710_v14  ;;  %v955_v50 = vpop.f32.mrb[5].mxu0 }
 0x15b   : > { %v1205_v51 = vpop.f32.mrb[5].mxu1  ;;  %v961_v52 = vadd.f32 %v955_v50, %v712_v17  ;;  %v957_v53 = vpop.f32.mrb[6].mxu0  ;;  %v2473_v17 = vsub.s32 0, %v2472_v16 }
 0x15c   : > { %v1207_v54 = vpop.f32.mrb[6].mxu1  ;;  %v1210_v31 = vadd.f32 %v1203_v48, %v960_v49  ;;  %v958_v34 = vpop.f32.mrb[7].mxu0 }
 0x15d   : > { %v1208_v30 = vpop.f32.mrb[7].mxu1  ;;  %v1211_v55 = vadd.f32 %v1205_v51, %v961_v52  ;;  %v2474_v21 = vrot.slane %v218_v18, %v2473_v17 }
 0x199   : > { %v1463_v56 = vpop.f32.mrb[8].mxu0 }
 0x19a   : > { %v1709_v57 = vpop.f32.mrb[8].mxu1  ;;  %v1470_v58 = vadd.f32 %v1463_v56, %v1210_v31  ;;  %v1465_v59 = vpop.f32.mrb[9].mxu0 }
 0x19b   : > { %v1711_v60 = vpop.f32.mrb[9].mxu1  ;;  %v1471_v61 = vadd.f32 %v1465_v59, %v1211_v55  ;;  %v1467_v62 = vpop.f32.mrb[10].mxu0 }
 0x19c   : > { %v1713_v63 = vpop.f32.mrb[10].mxu1  ;;  %v1716_v0 = vadd.f32 %v1709_v57, %v1470_v58  ;;  %v1468_v1 = vpop.f32.mrb[11].mxu0 }
 0x19d   : > { %v1714_v2 = vpop.f32.mrb[11].mxu1  ;;  %v1717_v29 = vadd.f32 %v1711_v60, %v1471_v61 }
 0x1d9   : > { %v1953_v3 = vpop.f32.mrb[12].mxu0 }
 0x1da   : > { %v2215_v4 = vpop.f32.mrb[12].mxu1  ;;  %v1960_v5 = vadd.f32 %v1953_v3, %v1716_v0  ;;  %v1955_v6 = vpop.f32.mrb[13].mxu0 }
 0x1db   : > { %v2217_v7 = vpop.f32.mrb[13].mxu1  ;;  %v1961_v8 = vadd.f32 %v1955_v6, %v1717_v29  ;;  %v1957_v9 = vpop.f32.mrb[14].mxu0 }
 0x1dc   : > { %v2219_v10 = vpop.f32.mrb[14].mxu1  ;;  %v2222_v11 = vadd.f32 %v2215_v4, %v1960_v5  ;;  %v1958_v12 = vpop.f32.mrb[15].mxu0 }
 0x1dd   : > { %v2220_v13 = vpop.f32.mrb[15].mxu1  ;;  %v2223_v14 = vadd.f32 %v2217_v7, %v1961_v8 }
 0x219   : > { %v2461_v22 = vpop.f32.mrb[16].mxu0 }
 0x21a   : > { %v2468_v47 = vadd.f32 %v2461_v22, %v2222_v11  ;;  %v2463_v25 = vpop.f32.mrb[17].mxu0 }
 0x21b   : > { %v2469_v26 = vadd.f32 %v2463_v25, %v2223_v14  ;;  %v2465_v28 = vpop.f32.mrb[18].mxu0 }
 0x21c   : > { %v2481_v32 = vadd.f32 %v2474_v21, %v2468_v47  ;;  %v2466_v33 = vpop.f32.mrb[19].mxu0 }
 0x21d   : > { %v2482_v45 = vadd.f32 %v2478_v23, %v2469_v26 }
 0x21e   : > { %v2486_v35 = vadd.f32 %v2484_v24, %v2481_v32 }
 0x21f   : > { %v2487_v36 = vadd.f32 %v2485_v27, %v2482_v45 }
 0x220   : > { %v2488_v37 = vmax.f32 %v2486_v35, 0.0 }
 0x221   : > { %v2489_v38 = vmax.f32 %v2487_v36, 0.0 }
 0x223   : > { %v3143_v39 = vpack.c.bf16 %v2489_v38, %v2488_v37 }
 0x225   : > { %2498 = vst [vmem:[%s217_s22] sm:$0xff] %v3143_v39 }
 0x226 PF: > { %s14_s15 = sadd.s32 1, %s3609_s15  }
 0x227   : > { %p11_p4 = scmp.ge.s32.totalorder %s14_s15, 4  }
 0x229   :  { %13 = sbr.rel (!%p11_p4) target bundleno = 1 (0x1), region = 77 }

// kernel: resnet34_ssd_forward.48
= control target key start
LH: loop header
LB: loop body
LE: loop exit
PB: predicated region body
PF: predicated region fallthrough
CT: control target
= control target key end

     0   :  { %s3564_s12 = smov 0   ;;  %s4524_s0 = inlined_call_operand.vmem [shape: bf16[2,20,256], index: 0, kind: input, shape index: {}]   ;;  %s4525_s1 = inlined_call_operand.vmem [shape: bf16[9,256,256], index: 1, kind: input, shape index: {}]   ;;  %s4526_s2 = inlined_call_operand.vmem [shape: f32[1,256], index: 2, kind: input, shape index: {}]   ;;  %s4527_s3 = inlined_call_operand.vmem [shape: bf16[2,8,256], index: 3, kind: output, shape index: {}]  }
   0x1 LB: > { %s2502_s13 = sadd.s32 4294967295, %s3542_s12   ;;  %p2506_p0 = scmp.ge.s32.totalorder %s3542_s12, 1  ;;  %s3542_s12 = sphi %s3564_s12, %s13_s12  }
   0x2   : > { %p137_p1 = scmp.lt.s32.totalorder %s3542_s12, 3 }
   0x4   : > { %p138_p2 = pnand %p2506_p0, %p137_p1 }
   0x5   : > { %v3086_v0 = vld [vmem:[%s4525_s1 + $0x104] ss:$8 sps:$4 sm:$0xff] (!%p138_p2)   ;;  %v3090_v2 = vld [vmem:[%s4525_s1 + $0x100] ss:$8 sps:$4 sm:$0xff] (!%p138_p2)   ;;  %v3092_v4 = vld [vmem:[%s4525_s1 + $0x114] ss:$8 sps:$4 sm:$0xff] (!%p138_p2)  }
   0x6   : > { %141 = sbr.rel (%p138_p2) target bundleno = 548 (0x224), region = 32  ;;  %v3088_v1 = vld [vmem:[%s4525_s1 + $0x4] ss:$8 sps:$4 sm:$0xff] (!%p138_p2)   ;;  %423 = vmatprep.subr.bf16.mxu0 (!%p138_p2), %v3086_v0  ;;  %v3091_v3 = vld [vmem:[%s4525_s1] ss:$8 sps:$4 sm:$0xff] (!%p138_p2)   ;;  %p161_p3 = scmp.lt.s32.totalorder (!%p138_p2), %s2502_s13, 1 }
   0x7   : > { %628 = vmatprep.subr.bf16.mxu1 (!%p138_p2), %v3088_v1  ;;  %424 = vmatpush1.bf16.msra.mxu0 (!%p138_p2), %v3090_v2  ;;  %v3094_v5 = vld [vmem:[%s4525_s1 + $0x14] ss:$8 sps:$4 sm:$0xff] (!%p138_p2)   ;;  %v3096_v6 = vld [vmem:[%s4525_s1 + $0x110] ss:$8 sps:$4 sm:$0xff] (!%p138_p2)   ;;  %v3098_v8 = vld [vmem:[%s4525_s1 + $0x124] ss:$8 sps:$4 sm:$0xff] (!%p138_p2)  }
   0x8   : > { %629 = vmatpush1.bf16.msra.mxu1 (!%p138_p2), %v3091_v3  ;;  %425 = vmatprep.subr.bf16.mxu0 (!%p138_p2), %v3092_v4  ;;  %v3097_v7 = vld [vmem:[%s4525_s1 + $0x10] ss:$8 sps:$4 sm:$0xff] (!%p138_p2)   ;;  %v3100_v9 = vld [vmem:[%s4525_s1 + $0x24] ss:$8 sps:$4 sm:$0xff] (!%p138_p2)   ;;  %v3102_v10 = vld [vmem:[%s4525_s1 + $0x120] ss:$8 sps:$4 sm:$0xff] (!%p138_p2)  }
   0x9   : > { %630 = vmatprep.subr.bf16.mxu1 (!%p138_p2), %v3094_v5  ;;  %v3103_v11 = vld [vmem:[%s4525_s1 + $0x20] ss:$8 sps:$4 sm:$0xff] (!%p138_p2)   ;;  %v3104_v12 = vld [vmem:[%s4525_s1 + $0x134] ss:$8 sps:$4 sm:$0xff] (!%p138_p2)   ;;  %v3108_v14 = vld [vmem:[%s4525_s1 + $0x130] ss:$8 sps:$4 sm:$0xff] (!%p138_p2)  }
   0xa   : > { %v3106_v13 = vld [vmem:[%s4525_s1 + $0x34] ss:$8 sps:$4 sm:$0xff] (!%p138_p2)   ;;  %v3109_v15 = vld [vmem:[%s4525_s1 + $0x30] ss:$8 sps:$4 sm:$0xff] (!%p138_p2)   ;;  %v3110_v16 = vld [vmem:[%s4525_s1 + $0x144] ss:$8 sps:$4 sm:$0xff] (!%p138_p2)  }
   0xb   : > { %426 = vmatpush1.bf16.msra.mxu0 (!%p138_p2), %v3096_v6  ;;  %v3112_v17 = vld [vmem:[%s4525_s1 + $0x44] ss:$8 sps:$4 sm:$0xff] (!%p138_p2)   ;;  %v3114_v18 = vld [vmem:[%s4525_s1 + $0x140] ss:$8 sps:$4 sm:$0xff] (!%p138_p2)   ;;  %v3116_v20 = vld [vmem:[%s4525_s1 + $0x154] ss:$8 sps:$4 sm:$0xff] (!%p138_p2)  }
   0xc   : > { %631 = vmatpush1.bf16.msra.mxu1 (!%p138_p2), %v3097_v7  ;;  %427 = vmatprep.subr.bf16.mxu0 (!%p138_p2), %v3098_v8  ;;  %v3115_v19 = vld [vmem:[%s4525_s1 + $0x40] ss:$8 sps:$4 sm:$0xff] (!%p138_p2)   ;;  %v3118_v21 = vld [vmem:[%s4525_s1 + $0x54] ss:$8 sps:$4 sm:$0xff] (!%p138_p2)   ;;  %v3120_v22 = vld [vmem:[%s4525_s1 + $0x150] ss:$8 sps:$4 sm:$0xff] (!%p138_p2)  }
   0xd   : > { %632 = vmatprep.subr.bf16.mxu1 %v3100_v9  ;;  %v3121_v23 = vld [vmem:[%s4525_s1 + $0x50] ss:$8 sps:$4 sm:$0xff]   ;;  %v3122_v24 = vld [vmem:[%s4525_s1 + $0x164] ss:$8 sps:$4 sm:$0xff]   ;;  %v3126_v26 = vld [vmem:[%s4525_s1 + $0x160] ss:$8 sps:$4 sm:$0xff]  }
   0xe   : > { %v3124_v25 = vld [vmem:[%s4525_s1 + $0x64] ss:$8 sps:$4 sm:$0xff]   ;;  %v3127_v27 = vld [vmem:[%s4525_s1 + $0x60] ss:$8 sps:$4 sm:$0xff]   ;;  %v3128_v28 = vld [vmem:[%s4525_s1 + $0x174] ss:$8 sps:$4 sm:$0xff]  }
   0xf   : > { %428 = vmatpush1.bf16.msra.mxu0 %v3102_v10  ;;  %v3130_v29 = vld [vmem:[%s4525_s1 + $0x74] ss:$8 sps:$4 sm:$0xff]   ;;  %v3132_v30 = vld [vmem:[%s4525_s1 + $0x170] ss:$8 sps:$4 sm:$0xff]   ;;  %v3134_v32 = vld [vmem:[%s4525_s1 + $0x184] ss:$8 sps:$4 sm:$0xff]  }
  0x10   : > { %633 = vmatpush1.bf16.msra.mxu1 %v3103_v11  ;;  %429 = vmatprep.subr.bf16.mxu0 %v3104_v12  ;;  %v3133_v31 = vld [vmem:[%s4525_s1 + $0x70] ss:$8 sps:$4 sm:$0xff]   ;;  %v3136_v33 = vld [vmem:[%s4525_s1 + $0x84] ss:$8 sps:$4 sm:$0xff]   ;;  %v3138_v34 = vld [vmem:[%s4525_s1 + $0x180] ss:$8 sps:$4 sm:$0xff]  }
  0x11   : > { %634 = vmatprep.subr.bf16.mxu1 %v3106_v13  ;;  %v3139_v35 = vld [vmem:[%s4525_s1 + $0x80] ss:$8 sps:$4 sm:$0xff]   ;;  %s4529_s13 = smov (!%p161_p3, %s2502_s13), 1  ;;  %v3140_v36 = vld [vmem:[%s4525_s1 + $0x194] ss:$8 sps:$4 sm:$0xff]  }
  0x12   : > { %v3142_v37 = vld [vmem:[%s4525_s1 + $0x94] ss:$8 sps:$4 sm:$0xff]   ;;  %v3144_v38 = vld [vmem:[%s4525_s1 + $0x190] ss:$8 sps:$4 sm:$0xff]   ;;  %s3077_s17 = smul.u32 24, %s4529_s13  ;;  %s3075_s11 = sshll.u32 %s4529_s13, 3 }
  0x13   : > { %430 = vmatpush1.bf16.msra.mxu0 %v3108_v14  ;;  %v3145_v39 = vld [vmem:[%s4525_s1 + $0x90] ss:$8 sps:$4 sm:$0xff]   ;;  %v3146_v40 = vld [vmem:[%s4525_s1 + $0x1a4] ss:$8 sps:$4 sm:$0xff]   ;;  %v3150_v42 = vld [vmem:[%s4525_s1 + $0x1a0] ss:$8 sps:$4 sm:$0xff]   ;;  %s170_s16 = scalar_lea.vmem %s4527_s3, %s3075_s11 }
  0x14   : > { %635 = vmatpush1.bf16.msra.mxu1 %v3109_v15  ;;  %431 = vmatprep.subr.bf16.mxu0 %v3110_v16  ;;  %v3148_v41 = vld [vmem:[%s4525_s1 + $0xa4] ss:$8 sps:$4 sm:$0xff]   ;;  %v3151_v43 = vld [vmem:[%s4525_s1 + $0xa0] ss:$8 sps:$4 sm:$0xff]   ;;  %s3714_s30 = scalar_lea.vmem %s4524_s0, %s3077_s17  ;;  %v3152_v44 = vld [vmem:[%s4525_s1 + $0x1b4] ss:$8 sps:$4 sm:$0xff]  }
  0x15   : > { %636 = vmatprep.subr.bf16.mxu1 %v3112_v17  ;;  %v3154_v45 = vld [vmem:[%s4525_s1 + $0xb4] ss:$8 sps:$4 sm:$0xff]   ;;  %v3723_v46 = vld [vmem:[%s3714_s30] sm:$0xff]  ;;  %v3726_v47 = vld [vmem:[%s3714_s30 + $0x8] sm:$0x11] }
  0x16   : > { %v2577_v48 = vcombine.high %v3723_v46, %v3723_v46  ;;  %v3156_v49 = vld [vmem:[%s4525_s1 + $0x1b0] ss:$8 sps:$4 sm:$0xff]   ;;  %v2543_v51 = vcombine.high %v3723_v46, %v3726_v47  ;;  %v3158_v52 = vld [vmem:[%s4525_s1 + $0x1c4] ss:$8 sps:$4 sm:$0xff]   ;;  %v3162_v56 = vld [vmem:[%s4525_s1 + $0x1c0] ss:$8 sps:$4 sm:$0xff]   ;;  %v2542_v63 = vcombine.low %v3723_v46, %v3726_v47  ;;  %v2576_v15 = vcombine.low %v3723_v46, %v3723_v46 }
  0x17   : > { %432 = vmatpush1.bf16.msra.mxu0 %v3114_v18  ;;  %v3157_v50 = vld [vmem:[%s4525_s1 + $0xb0] ss:$8 sps:$4 sm:$0xff]   ;;  %v3160_v53 = vld [vmem:[%s4525_s1 + $0xc4] ss:$8 sps:$4 sm:$0xff]   ;;  %v3163_v57 = vld [vmem:[%s4525_s1 + $0xc0] ss:$8 sps:$4 sm:$0xff]  }
  0x18   : > { %637 = vmatpush1.bf16.msra.mxu1 %v3115_v19  ;;  %433 = vmatprep.subr.bf16.mxu0 %v3116_v20  ;;  %v255_v54 = vshrl.u32 %v2543_v51, 16  ;;  %v257_v55 = vshll.u32 %v2543_v51, 16  ;;  %v3164_v59 = vld [vmem:[%s4525_s1 + $0x1d4] ss:$8 sps:$4 sm:$0xff]   ;;  %v3168_v62 = vld [vmem:[%s4525_s1 + $0x1d0] ss:$8 sps:$4 sm:$0xff]  }
  0x19   : > { %638 = vmatprep.subr.bf16.mxu1 %v3118_v21  ;;  %660 = vmatprep.mubr.bf16.mxu1 %v2577_v48  ;;  %v3166_v60 = vld [vmem:[%s4525_s1 + $0xd4] ss:$8 sps:$4 sm:$0xff]   ;;  %v3169_v0 = vld [vmem:[%s4525_s1 + $0xd0] ss:$8 sps:$4 sm:$0xff]   ;;  %v3170_v1 = vld [vmem:[%s4525_s1 + $0x1e4] ss:$8 sps:$4 sm:$0xff]  }
  0x1a   : > { %v259_v58 = vrot.slane %v257_v55, 1  ;;  %v3172_v2 = vld [vmem:[%s4525_s1 + $0xe4] ss:$8 sps:$4 sm:$0xff]   ;;  %v3174_v3 = vld [vmem:[%s4525_s1 + $0x1e0] ss:$8 sps:$4 sm:$0xff]   ;;  %v250_v4 = vshll.u32 %v2542_v63, 16 }
  0x1b   : > { %434 = vmatpush1.bf16.msra.mxu0 %v3120_v22  ;;  %v3175_v5 = vld [vmem:[%s4525_s1 + $0xe0] ss:$8 sps:$4 sm:$0xff]   ;;  %v3176_v6 = vld [vmem:[%s4525_s1 + $0x1f4] ss:$8 sps:$4 sm:$0xff]   ;;  %v3180_v8 = vld [vmem:[%s4525_s1 + $0x1f0] ss:$8 sps:$4 sm:$0xff]  }
  0x1c   : > { %639 = vmatpush1.bf16.msra.mxu1 %v3121_v23  ;;  %435 = vmatprep.subr.bf16.mxu0 %v3122_v24  ;;  %v260_v61 = vor.u32 %v259_v58, %v255_v54  ;;  %v3178_v7 = vld [vmem:[%s4525_s1 + $0xf4] ss:$8 sps:$4 sm:$0xff]   ;;  %v248_v9 = vshrl.u32 %v2542_v63, 16  ;;  %v252_v10 = vrot.slane %v250_v4, 1  ;;  %v3181_v11 = vld [vmem:[%s4525_s1 + $0xf0] ss:$8 sps:$4 sm:$0xff]  }
  0x1d   : > { %640 = vmatprep.subr.bf16.mxu1 %v3124_v25  ;;  %v3188_v12 = vld [vmem:[%s4525_s1 + $0x204] ss:$8 sps:$4 sm:$0xff]   ;;  %v3186_v16 = vld [vmem:[%s4525_s1 + $0x200] ss:$8 sps:$4 sm:$0xff]   ;;  %v3194_v18 = vld [vmem:[%s4525_s1 + $0x214] ss:$8 sps:$4 sm:$0xff]  }
  0x1e   : > { %455 = vmatprep.mubr.bf16.mxu0 %v260_v61  ;;  %v3191_v13 = vld [vmem:[%s4525_s1 + $0x304] ss:$8 sps:$4 sm:$0xff]   ;;  %v253_v14 = vor.u32 %v252_v10, %v248_v9  ;;  %v3189_v17 = vld [vmem:[%s4525_s1 + $0x300] ss:$8 sps:$4 sm:$0xff]   ;;  %v3197_v19 = vld [vmem:[%s4525_s1 + $0x314] ss:$8 sps:$4 sm:$0xff]  }
  0x1f   : > { %436 = vmatpush1.bf16.msra.mxu0 %v3126_v26  ;;  %v3192_v20 = vld [vmem:[%s4525_s1 + $0x210] ss:$8 sps:$4 sm:$0xff]   ;;  %v3200_v22 = vld [vmem:[%s4525_s1 + $0x224] ss:$8 sps:$4 sm:$0xff]   ;;  %v3198_v24 = vld [vmem:[%s4525_s1 + $0x220] ss:$8 sps:$4 sm:$0xff]  }
  0x20   : > { %641 = vmatpush1.bf16.msra.mxu1 %v3127_v27  ;;  %437 = vmatprep.subr.bf16.mxu0 %v3128_v28  ;;  %v3195_v21 = vld [vmem:[%s4525_s1 + $0x310] ss:$8 sps:$4 sm:$0xff]   ;;  %v3203_v23 = vld [vmem:[%s4525_s1 + $0x324] ss:$8 sps:$4 sm:$0xff]   ;;  %v3201_v25 = vld [vmem:[%s4525_s1 + $0x320] ss:$8 sps:$4 sm:$0xff]  }
  0x21   : > { %642 = vmatprep.subr.bf16.mxu1 %v3130_v29  ;;  %v3206_v26 = vld [vmem:[%s4525_s1 + $0x234] ss:$8 sps:$4 sm:$0xff]   ;;  %v3204_v28 = vld [vmem:[%s4525_s1 + $0x230] ss:$8 sps:$4 sm:$0xff]   ;;  %v3886_v46 = vld [vmem:[%s3714_s30 + $0x8] sm:$0x33] }
  0x22   : > { %v3209_v27 = vld [vmem:[%s4525_s1 + $0x334] ss:$8 sps:$4 sm:$0xff]   ;;  %v3207_v29 = vld [vmem:[%s4525_s1 + $0x330] ss:$8 sps:$4 sm:$0xff]   ;;  %v3236_v54 = vld [vmem:[%s4525_s1 + $0x284] ss:$8 sps:$4 sm:$0xff]  }
  0x23   : > { %438 = vmatpush1.bf16.msra.mxu0 %v3132_v30  ;;  %v3212_v30 = vld [vmem:[%s4525_s1 + $0x244] ss:$8 sps:$4 sm:$0xff]   ;;  %v3233_v48 = vld [vmem:[%s4525_s1 + $0x374] ss:$8 sps:$4 sm:$0xff]   ;;  %v3243_v61 = vld [vmem:[%s4525_s1 + $0x390] ss:$8 sps:$4 sm:$0xff]  }
  0x24   : > { %643 = vmatpush1.bf16.msra.mxu1 %v3133_v31  ;;  %439 = vmatprep.subr.bf16.mxu0 %v3134_v32  ;;  %v3215_v31 = vld [vmem:[%s4525_s1 + $0x344] ss:$8 sps:$4 sm:$0xff]   ;;  %v3210_v32 = vld [vmem:[%s4525_s1 + $0x240] ss:$8 sps:$4 sm:$0xff]   ;;  %v3242_v58 = vld [vmem:[%s4525_s1 + $0x294] ss:$8 sps:$4 sm:$0xff]  }
  0x25   : > { %644 = vmatprep.subr.bf16.mxu1 %v3136_v33  ;;  %v3213_v33 = vld [vmem:[%s4525_s1 + $0x340] ss:$8 sps:$4 sm:$0xff]   ;;  %v3239_v55 = vld [vmem:[%s4525_s1 + $0x384] ss:$8 sps:$4 sm:$0xff]   ;;  %v3252_v4 = vld [vmem:[%s4525_s1 + $0x2b0] ss:$8 sps:$4 sm:$0xff]  }
  0x26   : > { %v3251_v63 = vld [vmem:[%s4525_s1 + $0x3a4] ss:$8 sps:$4 sm:$0xff]   ;;  %v3261_v9 = vld [vmem:[%s4525_s1 + $0x3c0] ss:$8 sps:$4 sm:$0xff]   ;;  %v3266_v10 = vld [vmem:[%s4525_s1 + $0x2d4] ss:$8 sps:$4 sm:$0xff]  }
  0x27   : > { %440 = vmatpush1.bf16.msra.mxu0 %v3138_v34  ;;  %v3218_v34 = vld [vmem:[%s4525_s1 + $0x254] ss:$8 sps:$4 sm:$0xff]  }
  0x28   : > { %645 = vmatpush1.bf16.msra.mxu1 %v3139_v35  ;;  %441 = vmatprep.subr.bf16.mxu0 %v3140_v36  ;;  %v3221_v35 = vld [vmem:[%s4525_s1 + $0x354] ss:$8 sps:$4 sm:$0xff]   ;;  %v3216_v36 = vld [vmem:[%s4525_s1 + $0x250] ss:$8 sps:$4 sm:$0xff]  }
  0x29   : > { %646 = vmatprep.subr.bf16.mxu1 %v3142_v37  ;;  %v3219_v37 = vld [vmem:[%s4525_s1 + $0x350] ss:$8 sps:$4 sm:$0xff]  }
  0x2b   : > { %442 = vmatpush1.bf16.msra.mxu0 %v3144_v38  ;;  %v3224_v38 = vld [vmem:[%s4525_s1 + $0x264] ss:$8 sps:$4 sm:$0xff]  }
  0x2c   : > { %647 = vmatpush1.bf16.msra.mxu1 %v3145_v39  ;;  %443 = vmatprep.subr.bf16.mxu0 %v3146_v40  ;;  %v3227_v39 = vld [vmem:[%s4525_s1 + $0x364] ss:$8 sps:$4 sm:$0xff]   ;;  %v3222_v40 = vld [vmem:[%s4525_s1 + $0x260] ss:$8 sps:$4 sm:$0xff]  }
  0x2d   : > { %648 = vmatprep.subr.bf16.mxu1 %v3148_v41  ;;  %v3872_v41 = vld [vmem:[%s3714_s30] sm:$0xee] }
  0x2f   : > { %444 = vmatpush1.bf16.msra.mxu0 %v3150_v42  ;;  %v3225_v42 = vld [vmem:[%s4525_s1 + $0x360] ss:$8 sps:$4 sm:$0xff]  }
  0x30   : > { %649 = vmatpush1.bf16.msra.mxu1 %v3151_v43  ;;  %445 = vmatprep.subr.bf16.mxu0 %v3152_v44  ;;  %v3230_v43 = vld [vmem:[%s4525_s1 + $0x274] ss:$8 sps:$4 sm:$0xff]   ;;  %v2643_v44 = vcombine.high %v3872_v41, %v3726_v47 }
  0x31   : > { %650 = vmatprep.subr.bf16.mxu1 %v3154_v45  ;;  %v3883_v45 = vld [vmem:[%s3714_s30] sm:$0xcc] }
  0x33   : > { %446 = vmatpush1.bf16.msra.mxu0 %v3156_v49  ;;  %v709_v49 = vrot.slane %v2643_v44, 1 }
  0x34   : > { %651 = vmatpush1.bf16.msra.mxu1 %v3157_v50  ;;  %447 = vmatprep.subr.bf16.mxu0 %v3158_v52  ;;  %v2709_v50 = vcombine.high %v3883_v45, %v3886_v46  ;;  %v3228_v52 = vld [vmem:[%s4525_s1 + $0x270] ss:$8 sps:$4 sm:$0xff]  }
  0x35   : > { %652 = vmatprep.subr.bf16.mxu1 %v3160_v53  ;;  %v3231_v53 = vld [vmem:[%s4525_s1 + $0x370] ss:$8 sps:$4 sm:$0xff]  }
  0x36   : > { %v959_v51 = vrot.slane %v2709_v50, 2 }
  0x37   : > { %448 = vmatpush1.bf16.msra.mxu0 %v3162_v56  ;;  %v3234_v56 = vld [vmem:[%s4525_s1 + $0x280] ss:$8 sps:$4 sm:$0xff]  }
  0x38   : > { %653 = vmatpush1.bf16.msra.mxu1 %v3163_v57  ;;  %449 = vmatprep.subr.bf16.mxu0 %v3164_v59  ;;  %v3237_v57 = vld [vmem:[%s4525_s1 + $0x380] ss:$8 sps:$4 sm:$0xff]   ;;  %v3245_v59 = vld [vmem:[%s4525_s1 + $0x394] ss:$8 sps:$4 sm:$0xff]  }
  0x39   : > { %654 = vmatprep.subr.bf16.mxu1 %v3166_v60  ;;  %v3240_v60 = vld [vmem:[%s4525_s1 + $0x290] ss:$8 sps:$4 sm:$0xff]  }
  0x3b   : > { %450 = vmatpush1.bf16.msra.mxu0 %v3168_v62  ;;  %v3248_v62 = vld [vmem:[%s4525_s1 + $0x2a4] ss:$8 sps:$4 sm:$0xff]  }
  0x3c   : > { %655 = vmatpush1.bf16.msra.mxu1 %v3169_v0  ;;  %451 = vmatprep.subr.bf16.mxu0 %v3170_v1  ;;  %v3246_v0 = vld [vmem:[%s4525_s1 + $0x2a0] ss:$8 sps:$4 sm:$0xff]  }
  0x3d   : > { %656 = vmatprep.subr.bf16.mxu1 %v3172_v2  ;;  %v3249_v1 = vld [vmem:[%s4525_s1 + $0x3a0] ss:$8 sps:$4 sm:$0xff]   ;;  %v3254_v2 = vld [vmem:[%s4525_s1 + $0x2b4] ss:$8 sps:$4 sm:$0xff]  }
  0x3f   : > { %452 = vmatpush1.bf16.msra.mxu0 %v3174_v3  ;;  %v3257_v3 = vld [vmem:[%s4525_s1 + $0x3b4] ss:$8 sps:$4 sm:$0xff]  }
  0x40   : > { %657 = vmatpush1.bf16.msra.mxu1 %v3175_v5  ;;  %453 = vmatprep.subr.bf16.mxu0 %v3176_v6  ;;  %v3255_v5 = vld [vmem:[%s4525_s1 + $0x3b0] ss:$8 sps:$4 sm:$0xff]   ;;  %v3260_v6 = vld [vmem:[%s4525_s1 + $0x2c4] ss:$8 sps:$4 sm:$0xff]  }
  0x41   : > { %658 = vmatprep.subr.bf16.mxu1 %v3178_v7  ;;  %v3263_v7 = vld [vmem:[%s4525_s1 + $0x3c4] ss:$8 sps:$4 sm:$0xff]  }
  0x43   : > { %454 = vmatpush1.bf16.msra.mxu0 %v3180_v8  ;;  %v3258_v8 = vld [vmem:[%s4525_s1 + $0x2c0] ss:$8 sps:$4 sm:$0xff]  }
  0x44   : > { %659 = vmatpush1.bf16.msra.mxu1 %v3181_v11  ;;  %872 = vmatprep.subr.bf16.mxu0 %v3188_v12  ;;  %v3269_v11 = vld [vmem:[%s4525_s1 + $0x3d4] ss:$8 sps:$4 sm:$0xff]   ;;  %v3264_v12 = vld [vmem:[%s4525_s1 + $0x2d0] ss:$8 sps:$4 sm:$0xff]  }
  0x45   : > { %1122 = vmatprep.subr.bf16.mxu1 %v3191_v13  ;;  %v3267_v13 = vld [vmem:[%s4525_s1 + $0x3d0] ss:$8 sps:$4 sm:$0xff]  }
  0x46   : > { %456 = vmatmul.mubr.bf16.vlgmr.msra.gmra.mrb[0].mxu0 %v253_v14  ;;  %v3272_v14 = vld [vmem:[%s4525_s1 + $0x2e4] ss:$8 sps:$4 sm:$0xff]  }
  0x47   : > { %661 = vmatmul.mubr.bf16.vlgmr.msra.gmra.mrb[0].mxu1 %v2576_v15  ;;  %873 = vmatpush1.bf16.msra.mxu0 %v3186_v16  ;;  %v3275_v15 = vld [vmem:[%s4525_s1 + $0x3e4] ss:$8 sps:$4 sm:$0xff]   ;;  %v3270_v16 = vld [vmem:[%s4525_s1 + $0x2e0] ss:$8 sps:$4 sm:$0xff]  }
  0x48   : > { %1123 = vmatpush1.bf16.msra.mxu1 %v3189_v17  ;;  %874 = vmatprep.subr.bf16.mxu0 %v3194_v18  ;;  %v3273_v17 = vld [vmem:[%s4525_s1 + $0x3e0] ss:$8 sps:$4 sm:$0xff]   ;;  %v3278_v18 = vld [vmem:[%s4525_s1 + $0x2f4] ss:$8 sps:$4 sm:$0xff]  }
  0x49   : > { %1124 = vmatprep.subr.bf16.mxu1 %v3197_v19  ;;  %904 = vmatprep.mubr.bf16.mxu0 %v709_v49  ;;  %v3281_v19 = vld [vmem:[%s4525_s1 + $0x3f4] ss:$8 sps:$4 sm:$0xff]  }
  0x4a   : > { %1154 = vmatprep.mubr.bf16.mxu1 %v959_v51  ;;  %v3309_v49 = vld [vmem:[%s4525_s1 + $0x534] ss:$8 sps:$4 sm:$0xff]   ;;  %v3304_v51 = vld [vmem:[%s4525_s1 + $0x430] ss:$8 sps:$4 sm:$0xff]  }
  0x4b   : > { %875 = vmatpush1.bf16.msra.mxu0 %v3192_v20  ;;  %v2642_v20 = vcombine.low %v3872_v41, %v3726_v47  ;;  %v3286_v47 = vld [vmem:[%s4525_s1 + $0x404] ss:$8 sps:$4 sm:$0xff]  }
  0x4c   : > { %1125 = vmatpush1.bf16.msra.mxu1 %v3195_v21  ;;  %876 = vmatprep.subr.bf16.mxu0 %v3200_v22  ;;  %v2708_v21 = vcombine.low %v3883_v45, %v3886_v46  ;;  %v3276_v22 = vld [vmem:[%s4525_s1 + $0x2f0] ss:$8 sps:$4 sm:$0xff]  }
  0x4d   : > { %1126 = vmatprep.subr.bf16.mxu1 %v3203_v23  ;;  %v3279_v23 = vld [vmem:[%s4525_s1 + $0x3f0] ss:$8 sps:$4 sm:$0xff]  }
  0x4f   : > { %877 = vmatpush1.bf16.msra.mxu0 %v3198_v24  ;;  %v3291_v24 = vld [vmem:[%s4525_s1 + $0x504] ss:$8 sps:$4 sm:$0xff]  }
  0x50   : > { %1127 = vmatpush1.bf16.msra.mxu1 %v3201_v25  ;;  %878 = vmatprep.subr.bf16.mxu0 %v3206_v26  ;;  %v708_v25 = vrot.slane %v2642_v20, 1  ;;  %v958_v26 = vrot.slane %v2708_v21, 2  ;;  %v3355_v20 = vld [vmem:[%s4525_s1 + $0x5b0] ss:$8 sps:$4 sm:$0xff]   ;;  %v3360_v21 = vld [vmem:[%s4525_s1 + $0x4c4] ss:$8 sps:$4 sm:$0xff]  }
  0x51   : > { %1128 = vmatprep.subr.bf16.mxu1 %v3209_v27  ;;  %v3284_v27 = vld [vmem:[%s4525_s1 + $0x400] ss:$8 sps:$4 sm:$0xff]  }
  0x53   : > { %879 = vmatpush1.bf16.msra.mxu0 %v3204_v28  ;;  %v3289_v28 = vld [vmem:[%s4525_s1 + $0x500] ss:$8 sps:$4 sm:$0xff]  }
  0x54   : > { %1129 = vmatpush1.bf16.msra.mxu1 %v3207_v29  ;;  %880 = vmatprep.subr.bf16.mxu0 %v3212_v30  ;;  %v3294_v29 = vld [vmem:[%s4525_s1 + $0x414] ss:$8 sps:$4 sm:$0xff]  }
  0x55   : > { %1130 = vmatprep.subr.bf16.mxu1 %v3215_v31  ;;  %v3297_v30 = vld [vmem:[%s4525_s1 + $0x514] ss:$8 sps:$4 sm:$0xff]   ;;  %v4018_v31 = vld [vmem:[%s3714_s30 + $0x8] sm:$0x77] }
  0x57   : > { %881 = vmatpush1.bf16.msra.mxu0 %v3210_v32  ;;  %v3292_v32 = vld [vmem:[%s4525_s1 + $0x410] ss:$8 sps:$4 sm:$0xff]  }
  0x58   : > { %1131 = vmatpush1.bf16.msra.mxu1 %v3213_v33  ;;  %882 = vmatprep.subr.bf16.mxu0 %v3218_v34  ;;  %v2775_v33 = vcombine.high %v3883_v45, %v4018_v31  ;;  %v4026_v34 = vld [vmem:[%s3714_s30] sm:$0x88] }
  0x59   : > { %1132 = vmatprep.subr.bf16.mxu1 %v3221_v35  ;;  %v3295_v35 = vld [vmem:[%s4525_s1 + $0x510] ss:$8 sps:$4 sm:$0xff]  }
  0x5b   : > { %883 = vmatpush1.bf16.msra.mxu0 %v3216_v36  ;;  %v2841_v36 = vcombine.high %v4026_v34, %v4018_v31 }
  0x5c   : > { %1133 = vmatpush1.bf16.msra.mxu1 %v3219_v37  ;;  %884 = vmatprep.subr.bf16.mxu0 %v3224_v38  ;;  %v3300_v37 = vld [vmem:[%s4525_s1 + $0x424] ss:$8 sps:$4 sm:$0xff]  }
  0x5d   : > { %1134 = vmatprep.subr.bf16.mxu1 %v3227_v39  ;;  %v3303_v38 = vld [vmem:[%s4525_s1 + $0x524] ss:$8 sps:$4 sm:$0xff]   ;;  %v1213_v39 = vshrl.u32 %v2775_v33, 16  ;;  %v1465_v41 = vrot.slane %v2841_v36, 3  ;;  %v3373_v36 = vld [vmem:[%s4525_s1 + $0x5e0] ss:$8 sps:$4 sm:$0xff]  }
  0x5f   : > { %885 = vmatpush1.bf16.msra.mxu0 %v3222_v40  ;;  %v1216_v40 = vshll.u32 %v2775_v33, 16  ;;  %v1215_v44 = vrot.slane %v1213_v39, 2  ;;  %v3375_v33 = vld [vmem:[%s4525_s1 + $0x5e4] ss:$8 sps:$4 sm:$0xff]   ;;  %v3378_v39 = vld [vmem:[%s4525_s1 + $0x4f4] ss:$8 sps:$4 sm:$0xff]  }
  0x60   : > { %1135 = vmatpush1.bf16.msra.mxu1 %v3225_v42  ;;  %886 = vmatprep.subr.bf16.mxu0 %v3230_v43  ;;  %v3298_v42 = vld [vmem:[%s4525_s1 + $0x420] ss:$8 sps:$4 sm:$0xff]  }
  0x61   : > { %1136 = vmatprep.subr.bf16.mxu1 %v3233_v48  ;;  %v3301_v43 = vld [vmem:[%s4525_s1 + $0x520] ss:$8 sps:$4 sm:$0xff]   ;;  %v1218_v46 = vrot.slane %v1216_v40, 3  ;;  %v3306_v48 = vld [vmem:[%s4525_s1 + $0x434] ss:$8 sps:$4 sm:$0xff]  }
  0x62   : > { %v3381_v40 = vld [vmem:[%s4525_s1 + $0x5f4] ss:$8 sps:$4 sm:$0xff]  }
  0x63   : > { %887 = vmatpush1.bf16.msra.mxu0 %v3228_v52  ;;  %v1219_v50 = vor.u32 %v1218_v46, %v1215_v44  ;;  %v3307_v52 = vld [vmem:[%s4525_s1 + $0x530] ss:$8 sps:$4 sm:$0xff]  }
  0x64   : > { %1137 = vmatpush1.bf16.msra.mxu1 %v3231_v53  ;;  %888 = vmatprep.subr.bf16.mxu0 %v3236_v54  ;;  %v3312_v53 = vld [vmem:[%s4525_s1 + $0x444] ss:$8 sps:$4 sm:$0xff]  }
  0x65   : > { %1138 = vmatprep.subr.bf16.mxu1 %v3239_v55  ;;  %v3315_v54 = vld [vmem:[%s4525_s1 + $0x544] ss:$8 sps:$4 sm:$0xff]   ;;  %v3310_v55 = vld [vmem:[%s4525_s1 + $0x440] ss:$8 sps:$4 sm:$0xff]  }
  0x67   : > { %889 = vmatpush1.bf16.msra.mxu0 %v3234_v56  ;;  %v3313_v56 = vld [vmem:[%s4525_s1 + $0x540] ss:$8 sps:$4 sm:$0xff]  }
  0x68   : > { %1139 = vmatpush1.bf16.msra.mxu1 %v3237_v57  ;;  %890 = vmatprep.subr.bf16.mxu0 %v3242_v58  ;;  %v3318_v57 = vld [vmem:[%s4525_s1 + $0x454] ss:$8 sps:$4 sm:$0xff]  }
  0x69   : > { %1140 = vmatprep.subr.bf16.mxu1 %v3245_v59  ;;  %v3321_v58 = vld [vmem:[%s4525_s1 + $0x554] ss:$8 sps:$4 sm:$0xff]   ;;  %v3316_v59 = vld [vmem:[%s4525_s1 + $0x450] ss:$8 sps:$4 sm:$0xff]  }
  0x6b   : > { %891 = vmatpush1.bf16.msra.mxu0 %v3240_v60  ;;  %v3319_v60 = vld [vmem:[%s4525_s1 + $0x550] ss:$8 sps:$4 sm:$0xff]  }
  0x6c   : > { %1141 = vmatpush1.bf16.msra.mxu1 %v3243_v61  ;;  %892 = vmatprep.subr.bf16.mxu0 %v3248_v62  ;;  %v3324_v61 = vld [vmem:[%s4525_s1 + $0x464] ss:$8 sps:$4 sm:$0xff]  }
  0x6d   : > { %1142 = vmatprep.subr.bf16.mxu1 %v3251_v63  ;;  %v3327_v62 = vld [vmem:[%s4525_s1 + $0x564] ss:$8 sps:$4 sm:$0xff]   ;;  %v3322_v63 = vld [vmem:[%s4525_s1 + $0x460] ss:$8 sps:$4 sm:$0xff]  }
  0x6f   : > { %893 = vmatpush1.bf16.msra.mxu0 %v3246_v0  ;;  %v3325_v0 = vld [vmem:[%s4525_s1 + $0x560] ss:$8 sps:$4 sm:$0xff]  }
  0x70   : > { %1143 = vmatpush1.bf16.msra.mxu1 %v3249_v1  ;;  %894 = vmatprep.subr.bf16.mxu0 %v3254_v2  ;;  %v3330_v1 = vld [vmem:[%s4525_s1 + $0x474] ss:$8 sps:$4 sm:$0xff]  }
  0x71   : > { %1144 = vmatprep.subr.bf16.mxu1 %v3257_v3  ;;  %v3333_v2 = vld [vmem:[%s4525_s1 + $0x574] ss:$8 sps:$4 sm:$0xff]   ;;  %v3328_v3 = vld [vmem:[%s4525_s1 + $0x470] ss:$8 sps:$4 sm:$0xff]  }
  0x73   : > { %895 = vmatpush1.bf16.msra.mxu0 %v3252_v4  ;;  %v3331_v4 = vld [vmem:[%s4525_s1 + $0x570] ss:$8 sps:$4 sm:$0xff]  }
  0x74   : > { %1145 = vmatpush1.bf16.msra.mxu1 %v3255_v5  ;;  %896 = vmatprep.subr.bf16.mxu0 %v3260_v6  ;;  %v3336_v5 = vld [vmem:[%s4525_s1 + $0x484] ss:$8 sps:$4 sm:$0xff]  }
  0x75   : > { %1146 = vmatprep.subr.bf16.mxu1 %v3263_v7  ;;  %v3339_v6 = vld [vmem:[%s4525_s1 + $0x584] ss:$8 sps:$4 sm:$0xff]   ;;  %v3334_v7 = vld [vmem:[%s4525_s1 + $0x480] ss:$8 sps:$4 sm:$0xff]  }
  0x77   : > { %897 = vmatpush1.bf16.msra.mxu0 %v3258_v8  ;;  %v3337_v8 = vld [vmem:[%s4525_s1 + $0x580] ss:$8 sps:$4 sm:$0xff]  }
  0x78   : > { %1147 = vmatpush1.bf16.msra.mxu1 %v3261_v9  ;;  %898 = vmatprep.subr.bf16.mxu0 %v3266_v10  ;;  %v3342_v9 = vld [vmem:[%s4525_s1 + $0x494] ss:$8 sps:$4 sm:$0xff]  }
  0x79   : > { %1148 = vmatprep.subr.bf16.mxu1 %v3269_v11  ;;  %v3345_v10 = vld [vmem:[%s4525_s1 + $0x594] ss:$8 sps:$4 sm:$0xff]   ;;  %v3340_v11 = vld [vmem:[%s4525_s1 + $0x490] ss:$8 sps:$4 sm:$0xff]  }
  0x7b   : > { %899 = vmatpush1.bf16.msra.mxu0 %v3264_v12  ;;  %v3343_v12 = vld [vmem:[%s4525_s1 + $0x590] ss:$8 sps:$4 sm:$0xff]  }
  0x7c   : > { %1149 = vmatpush1.bf16.msra.mxu1 %v3267_v13  ;;  %900 = vmatprep.subr.bf16.mxu0 %v3272_v14  ;;  %v3348_v13 = vld [vmem:[%s4525_s1 + $0x4a4] ss:$8 sps:$4 sm:$0xff]  }
  0x7d   : > { %1150 = vmatprep.subr.bf16.mxu1 %v3275_v15  ;;  %v3351_v14 = vld [vmem:[%s4525_s1 + $0x5a4] ss:$8 sps:$4 sm:$0xff]   ;;  %v3346_v15 = vld [vmem:[%s4525_s1 + $0x4a0] ss:$8 sps:$4 sm:$0xff]  }
  0x7f   : > { %901 = vmatpush1.bf16.msra.mxu0 %v3270_v16  ;;  %v3349_v16 = vld [vmem:[%s4525_s1 + $0x5a0] ss:$8 sps:$4 sm:$0xff]  }
  0x80   : > { %1151 = vmatpush1.bf16.msra.mxu1 %v3273_v17  ;;  %902 = vmatprep.subr.bf16.mxu0 %v3278_v18  ;;  %v3354_v17 = vld [vmem:[%s4525_s1 + $0x4b4] ss:$8 sps:$4 sm:$0xff]  }
  0x81   : > { %1152 = vmatprep.subr.bf16.mxu1 %v3281_v19  ;;  %v3357_v18 = vld [vmem:[%s4525_s1 + $0x5b4] ss:$8 sps:$4 sm:$0xff]   ;;  %v3352_v19 = vld [vmem:[%s4525_s1 + $0x4b0] ss:$8 sps:$4 sm:$0xff]  }
  0x83   : > { %903 = vmatpush1.bf16.msra.mxu0 %v3276_v22  ;;  %v3363_v22 = vld [vmem:[%s4525_s1 + $0x5c4] ss:$8 sps:$4 sm:$0xff]  }
  0x84   : > { %1153 = vmatpush1.bf16.msra.mxu1 %v3279_v23  ;;  %1382 = vmatprep.subr.bf16.mxu0 %v3286_v47  ;;  %v3358_v23 = vld [vmem:[%s4525_s1 + $0x4c0] ss:$8 sps:$4 sm:$0xff]  }
  0x85   : > { %1628 = vmatprep.subr.bf16.mxu1 %v3291_v24  ;;  %v3361_v47 = vld [vmem:[%s4525_s1 + $0x5c0] ss:$8 sps:$4 sm:$0xff]   ;;  %v3366_v24 = vld [vmem:[%s4525_s1 + $0x4d4] ss:$8 sps:$4 sm:$0xff]  }
  0x86   : > { %905 = vmatmul.mubr.bf16.vlgmr.msra.gmra.mrb[4].mxu0 %v708_v25  ;;  %v3369_v25 = vld [vmem:[%s4525_s1 + $0x5d4] ss:$8 sps:$4 sm:$0xff]  }
  0x87   : > { %1155 = vmatmul.mubr.bf16.vlgmr.msra.gmra.mrb[4].mxu1 %v958_v26  ;;  %1383 = vmatpush1.bf16.msra.mxu0 %v3284_v27  ;;  %v3364_v26 = vld [vmem:[%s4525_s1 + $0x4d0] ss:$8 sps:$4 sm:$0xff]  }
  0x88   : > { %1629 = vmatpush1.bf16.msra.mxu1 %v3289_v28  ;;  %1384 = vmatprep.subr.bf16.mxu0 %v3294_v29  ;;  %v3367_v27 = vld [vmem:[%s4525_s1 + $0x5d0] ss:$8 sps:$4 sm:$0xff]   ;;  %v2774_v28 = vcombine.low %v3883_v45, %v4018_v31  ;;  %v4180_v29 = vld [vmem:[%s3714_s30 + $0x8] sm:$0xff] }
  0x89   : > { %1630 = vmatprep.subr.bf16.mxu1 %v3297_v30  ;;  %1660 = vmatprep.mubr.bf16.mxu1 %v1465_v41  ;;  %v4183_v30 = vld [vmem:[%s3714_s30 + $0x10] sm:$0x11]  ;;  %v3370_v45 = vld [vmem:[%s4525_s1 + $0x4e0] ss:$8 sps:$4 sm:$0xff]  }
  0x8a   : > { %1414 = vmatprep.mubr.bf16.mxu0 %v1219_v50  ;;  %v3376_v41 = vld [vmem:[%s4525_s1 + $0x4f0] ss:$8 sps:$4 sm:$0xff]   ;;  %v3391_v50 = vld [vmem:[%s4525_s1 + $0x704] ss:$8 sps:$4 sm:$0xff]  }
  0x8b   : > { %1385 = vmatpush1.bf16.msra.mxu0 %v3292_v32  ;;  %v3372_v32 = vld [vmem:[%s4525_s1 + $0x4e4] ss:$8 sps:$4 sm:$0xff]  }
  0x8c   : > { %1631 = vmatpush1.bf16.msra.mxu1 %v3295_v35  ;;  %1386 = vmatprep.subr.bf16.mxu0 %v3300_v37  ;;  %v2973_v35 = vcombine.high %v4180_v29, %v4183_v30  ;;  %v1205_v37 = vshrl.u32 %v2774_v28, 16 }
  0x8d   : > { %1632 = vmatprep.subr.bf16.mxu1 %v3303_v38  ;;  %v1208_v38 = vshll.u32 %v2774_v28, 16  ;;  %v3448_v28 = vld [vmem:[%s4525_s1 + $0x6a4] ss:$8 sps:$4 sm:$0xff]  }
  0x8e   : > { %v1207_v44 = vrot.slane %v1205_v37, 2  ;;  %v3452_v37 = vld [vmem:[%s4525_s1 + $0x6b0] ss:$8 sps:$4 sm:$0xff]  }
  0x8f   : > { %1387 = vmatpush1.bf16.msra.mxu0 %v3298_v42  ;;  %v1968_v42 = vshll.u32 %v2973_v35, 16  ;;  %v1210_v46 = vrot.slane %v1208_v38, 3  ;;  %v3455_v38 = vld [vmem:[%s4525_s1 + $0x7b0] ss:$8 sps:$4 sm:$0xff]  }
  0x90   : > { %1633 = vmatpush1.bf16.msra.mxu1 %v3301_v43  ;;  %1388 = vmatprep.subr.bf16.mxu0 %v3306_v48  ;;  %v3379_v43 = vld [vmem:[%s4525_s1 + $0x5f0] ss:$8 sps:$4 sm:$0xff]   ;;  %v2840_v48 = vcombine.low %v4026_v34, %v4018_v31  ;;  %v3389_v34 = vld [vmem:[%s4525_s1 + $0x700] ss:$8 sps:$4 sm:$0xff]  }
  0x91   : > { %1634 = vmatprep.subr.bf16.mxu1 %v3309_v49  ;;  %v3386_v49 = vld [vmem:[%s4525_s1 + $0x604] ss:$8 sps:$4 sm:$0xff]  }
  0x92   : > { %v1464_v31 = vrot.slane %v2840_v48, 3  ;;  %v3464_v48 = vld [vmem:[%s4525_s1 + $0x6d0] ss:$8 sps:$4 sm:$0xff]  }
  0x93   : > { %1389 = vmatpush1.bf16.msra.mxu0 %v3304_v51  ;;  %v1966_v51 = vshrl.u32 %v2973_v35, 16  ;;  %v3454_v35 = vld [vmem:[%s4525_s1 + $0x6b4] ss:$8 sps:$4 sm:$0xff]  }
  0x94   : > { %1635 = vmatpush1.bf16.msra.mxu1 %v3307_v52  ;;  %1390 = vmatprep.subr.bf16.mxu0 %v3312_v53  ;;  %v1970_v52 = vrot.slane %v1968_v42, 1  ;;  %v1211_v53 = vor.u32 %v1210_v46, %v1207_v44  ;;  %v3461_v42 = vld [vmem:[%s4525_s1 + $0x7c0] ss:$8 sps:$4 sm:$0xff]   ;;  %v3469_v44 = vld [vmem:[%s4525_s1 + $0x7d4] ss:$8 sps:$4 sm:$0xff]   ;;  %v2972_v46 = vcombine.low %v4180_v29, %v4183_v30 }
  0x95   : > { %1636 = vmatprep.subr.bf16.mxu1 %v3315_v54  ;;  %v3384_v54 = vld [vmem:[%s4525_s1 + $0x600] ss:$8 sps:$4 sm:$0xff]  }
  0x97   : > { %1391 = vmatpush1.bf16.msra.mxu0 %v3310_v55  ;;  %v3394_v55 = vld [vmem:[%s4525_s1 + $0x614] ss:$8 sps:$4 sm:$0xff]  }
  0x98   : > { %1637 = vmatpush1.bf16.msra.mxu1 %v3313_v56  ;;  %1392 = vmatprep.subr.bf16.mxu0 %v3318_v57  ;;  %v3397_v56 = vld [vmem:[%s4525_s1 + $0x714] ss:$8 sps:$4 sm:$0xff]   ;;  %v2907_v57 = vcombine.high %v4180_v29, %v4180_v29 }
  0x99   : > { %1638 = vmatprep.subr.bf16.mxu1 %v3321_v58  ;;  %v1971_v58 = vor.u32 %v1970_v52, %v1966_v51  ;;  %v3475_v51 = vld [vmem:[%s4525_s1 + $0x7e4] ss:$8 sps:$4 sm:$0xff]   ;;  %v1961_v52 = vshll.u32 %v2972_v46, 16 }
  0x9b   : > { %1393 = vmatpush1.bf16.msra.mxu0 %v3316_v59  ;;  %v3392_v59 = vld [vmem:[%s4525_s1 + $0x610] ss:$8 sps:$4 sm:$0xff]  }
  0x9c   : > { %1639 = vmatpush1.bf16.msra.mxu1 %v3319_v60  ;;  %1394 = vmatprep.subr.bf16.mxu0 %v3324_v61  ;;  %v3395_v60 = vld [vmem:[%s4525_s1 + $0x710] ss:$8 sps:$4 sm:$0xff]   ;;  %v3400_v61 = vld [vmem:[%s4525_s1 + $0x624] ss:$8 sps:$4 sm:$0xff]  }
  0x9d   : > { %1640 = vmatprep.subr.bf16.mxu1 %v3327_v62  ;;  %v3403_v62 = vld [vmem:[%s4525_s1 + $0x724] ss:$8 sps:$4 sm:$0xff]  }
  0x9f   : > { %1395 = vmatpush1.bf16.msra.mxu0 %v3322_v63  ;;  %v3398_v63 = vld [vmem:[%s4525_s1 + $0x620] ss:$8 sps:$4 sm:$0xff]  }
  0xa0   : > { %1641 = vmatpush1.bf16.msra.mxu1 %v3325_v0  ;;  %1396 = vmatprep.subr.bf16.mxu0 %v3330_v1  ;;  %v3401_v0 = vld [vmem:[%s4525_s1 + $0x720] ss:$8 sps:$4 sm:$0xff]   ;;  %v3406_v1 = vld [vmem:[%s4525_s1 + $0x634] ss:$8 sps:$4 sm:$0xff]  }
  0xa1   : > { %1642 = vmatprep.subr.bf16.mxu1 %v3333_v2  ;;  %v3409_v2 = vld [vmem:[%s4525_s1 + $0x734] ss:$8 sps:$4 sm:$0xff]  }
  0xa3   : > { %1397 = vmatpush1.bf16.msra.mxu0 %v3328_v3  ;;  %v3404_v3 = vld [vmem:[%s4525_s1 + $0x630] ss:$8 sps:$4 sm:$0xff]  }
  0xa4   : > { %1643 = vmatpush1.bf16.msra.mxu1 %v3331_v4  ;;  %1398 = vmatprep.subr.bf16.mxu0 %v3336_v5  ;;  %v3407_v4 = vld [vmem:[%s4525_s1 + $0x730] ss:$8 sps:$4 sm:$0xff]   ;;  %v3412_v5 = vld [vmem:[%s4525_s1 + $0x644] ss:$8 sps:$4 sm:$0xff]  }
  0xa5   : > { %1644 = vmatprep.subr.bf16.mxu1 %v3339_v6  ;;  %v3415_v6 = vld [vmem:[%s4525_s1 + $0x744] ss:$8 sps:$4 sm:$0xff]  }
  0xa7   : > { %1399 = vmatpush1.bf16.msra.mxu0 %v3334_v7  ;;  %v3410_v7 = vld [vmem:[%s4525_s1 + $0x640] ss:$8 sps:$4 sm:$0xff]  }
  0xa8   : > { %1645 = vmatpush1.bf16.msra.mxu1 %v3337_v8  ;;  %1400 = vmatprep.subr.bf16.mxu0 %v3342_v9  ;;  %v3413_v8 = vld [vmem:[%s4525_s1 + $0x740] ss:$8 sps:$4 sm:$0xff]   ;;  %v3418_v9 = vld [vmem:[%s4525_s1 + $0x654] ss:$8 sps:$4 sm:$0xff]  }
  0xa9   : > { %1646 = vmatprep.subr.bf16.mxu1 %v3345_v10  ;;  %v3421_v10 = vld [vmem:[%s4525_s1 + $0x754] ss:$8 sps:$4 sm:$0xff]  }
  0xab   : > { %1401 = vmatpush1.bf16.msra.mxu0 %v3340_v11  ;;  %v3416_v11 = vld [vmem:[%s4525_s1 + $0x650] ss:$8 sps:$4 sm:$0xff]  }
  0xac   : > { %1647 = vmatpush1.bf16.msra.mxu1 %v3343_v12  ;;  %1402 = vmatprep.subr.bf16.mxu0 %v3348_v13  ;;  %v3419_v12 = vld [vmem:[%s4525_s1 + $0x750] ss:$8 sps:$4 sm:$0xff]   ;;  %v3424_v13 = vld [vmem:[%s4525_s1 + $0x664] ss:$8 sps:$4 sm:$0xff]  }
  0xad   : > { %1648 = vmatprep.subr.bf16.mxu1 %v3351_v14  ;;  %v3427_v14 = vld [vmem:[%s4525_s1 + $0x764] ss:$8 sps:$4 sm:$0xff]  }
  0xaf   : > { %1403 = vmatpush1.bf16.msra.mxu0 %v3346_v15  ;;  %v3422_v15 = vld [vmem:[%s4525_s1 + $0x660] ss:$8 sps:$4 sm:$0xff]  }
  0xb0   : > { %1649 = vmatpush1.bf16.msra.mxu1 %v3349_v16  ;;  %1404 = vmatprep.subr.bf16.mxu0 %v3354_v17  ;;  %v3425_v16 = vld [vmem:[%s4525_s1 + $0x760] ss:$8 sps:$4 sm:$0xff]   ;;  %v3430_v17 = vld [vmem:[%s4525_s1 + $0x674] ss:$8 sps:$4 sm:$0xff]  }
  0xb1   : > { %1650 = vmatprep.subr.bf16.mxu1 %v3357_v18  ;;  %v3433_v18 = vld [vmem:[%s4525_s1 + $0x774] ss:$8 sps:$4 sm:$0xff]  }
  0xb3   : > { %1405 = vmatpush1.bf16.msra.mxu0 %v3352_v19  ;;  %v3428_v19 = vld [vmem:[%s4525_s1 + $0x670] ss:$8 sps:$4 sm:$0xff]  }
  0xb4   : > { %1651 = vmatpush1.bf16.msra.mxu1 %v3355_v20  ;;  %1406 = vmatprep.subr.bf16.mxu0 %v3360_v21  ;;  %v3431_v20 = vld [vmem:[%s4525_s1 + $0x770] ss:$8 sps:$4 sm:$0xff]   ;;  %v3436_v21 = vld [vmem:[%s4525_s1 + $0x684] ss:$8 sps:$4 sm:$0xff]  }
  0xb5   : > { %1652 = vmatprep.subr.bf16.mxu1 %v3363_v22  ;;  %v3439_v22 = vld [vmem:[%s4525_s1 + $0x784] ss:$8 sps:$4 sm:$0xff]  }
  0xb7   : > { %1407 = vmatpush1.bf16.msra.mxu0 %v3358_v23  ;;  %v3434_v23 = vld [vmem:[%s4525_s1 + $0x680] ss:$8 sps:$4 sm:$0xff]  }
  0xb8   : > { %1653 = vmatpush1.bf16.msra.mxu1 %v3361_v47  ;;  %1408 = vmatprep.subr.bf16.mxu0 %v3366_v24  ;;  %v3437_v47 = vld [vmem:[%s4525_s1 + $0x780] ss:$8 sps:$4 sm:$0xff]   ;;  %v3442_v24 = vld [vmem:[%s4525_s1 + $0x694] ss:$8 sps:$4 sm:$0xff]  }
  0xb9   : > { %1654 = vmatprep.subr.bf16.mxu1 %v3369_v25  ;;  %v3445_v25 = vld [vmem:[%s4525_s1 + $0x794] ss:$8 sps:$4 sm:$0xff]  }
  0xbb   : > { %1409 = vmatpush1.bf16.msra.mxu0 %v3364_v26  ;;  %v3440_v26 = vld [vmem:[%s4525_s1 + $0x690] ss:$8 sps:$4 sm:$0xff]  }
  0xbc   : > { %1655 = vmatpush1.bf16.msra.mxu1 %v3367_v27  ;;  %1410 = vmatprep.subr.bf16.mxu0 %v3372_v32  ;;  %v3443_v27 = vld [vmem:[%s4525_s1 + $0x790] ss:$8 sps:$4 sm:$0xff]   ;;  %v3451_v32 = vld [vmem:[%s4525_s1 + $0x7a4] ss:$8 sps:$4 sm:$0xff]  }
  0xbd   : > { %1656 = vmatprep.subr.bf16.mxu1 %v3375_v33  ;;  %v3446_v33 = vld [vmem:[%s4525_s1 + $0x6a0] ss:$8 sps:$4 sm:$0xff]  }
  0xbf   : > { %1411 = vmatpush1.bf16.msra.mxu0 %v3370_v45  ;;  %v3449_v45 = vld [vmem:[%s4525_s1 + $0x7a0] ss:$8 sps:$4 sm:$0xff]  }
  0xc0   : > { %1657 = vmatpush1.bf16.msra.mxu1 %v3373_v36  ;;  %1412 = vmatprep.subr.bf16.mxu0 %v3378_v39  ;;  %v3457_v36 = vld [vmem:[%s4525_s1 + $0x7b4] ss:$8 sps:$4 sm:$0xff]   ;;  %v3460_v39 = vld [vmem:[%s4525_s1 + $0x6c4] ss:$8 sps:$4 sm:$0xff]  }
  0xc1   : > { %1658 = vmatprep.subr.bf16.mxu1 %v3381_v40  ;;  %v3463_v40 = vld [vmem:[%s4525_s1 + $0x7c4] ss:$8 sps:$4 sm:$0xff]  }
  0xc3   : > { %1413 = vmatpush1.bf16.msra.mxu0 %v3376_v41  ;;  %v3458_v41 = vld [vmem:[%s4525_s1 + $0x6c0] ss:$8 sps:$4 sm:$0xff]  }
  0xc4   : > { %1659 = vmatpush1.bf16.msra.mxu1 %v3379_v43  ;;  %1872 = vmatprep.subr.bf16.mxu0 %v3386_v49  ;;  %v3466_v43 = vld [vmem:[%s4525_s1 + $0x6d4] ss:$8 sps:$4 sm:$0xff]   ;;  %v3467_v49 = vld [vmem:[%s4525_s1 + $0x7d0] ss:$8 sps:$4 sm:$0xff]  }
  0xc5   : > { %2134 = vmatprep.subr.bf16.mxu1 %v3391_v50  ;;  %v3472_v50 = vld [vmem:[%s4525_s1 + $0x6e4] ss:$8 sps:$4 sm:$0xff]  }
  0xc6   : > { %1415 = vmatmul.mubr.bf16.vlgmr.msra.gmra.mrb[8].mxu0 %v1211_v53  ;;  %v3470_v53 = vld [vmem:[%s4525_s1 + $0x6e0] ss:$8 sps:$4 sm:$0xff]  }
  0xc7   : > { %1661 = vmatmul.mubr.bf16.vlgmr.msra.gmra.mrb[8].mxu1 %v1464_v31  ;;  %1873 = vmatpush1.bf16.msra.mxu0 %v3384_v54  ;;  %v3473_v54 = vld [vmem:[%s4525_s1 + $0x7e0] ss:$8 sps:$4 sm:$0xff]   ;;  %v3478_v31 = vld [vmem:[%s4525_s1 + $0x6f4] ss:$8 sps:$4 sm:$0xff]  }
  0xc8   : > { %2135 = vmatpush1.bf16.msra.mxu1 %v3389_v34  ;;  %1874 = vmatprep.subr.bf16.mxu0 %v3394_v55  ;;  %v3481_v34 = vld [vmem:[%s4525_s1 + $0x7f4] ss:$8 sps:$4 sm:$0xff]   ;;  %v4404_v55 = vld [vmem:[%s3714_s30 + $0x8] sm:$0xee] }
  0xc9   : > { %2136 = vmatprep.subr.bf16.mxu1 %v3397_v56  ;;  %1904 = vmatprep.mubr.bf16.mxu0 %v2907_v57  ;;  %v1959_v56 = vshrl.u32 %v2972_v46, 16  ;;  %v1963_v57 = vrot.slane %v1961_v52, 1 }
  0xca   : > { %2166 = vmatprep.mubr.bf16.mxu1 %v1971_v58  ;;  %v3476_v58 = vld [vmem:[%s4525_s1 + $0x6f0] ss:$8 sps:$4 sm:$0xff]  }
  0xcb   : > { %1875 = vmatpush1.bf16.msra.mxu0 %v3392_v59  ;;  %v3479_v59 = vld [vmem:[%s4525_s1 + $0x7f0] ss:$8 sps:$4 sm:$0xff]  }
  0xcc   : > { %2137 = vmatpush1.bf16.msra.mxu1 %v3395_v60  ;;  %1876 = vmatprep.subr.bf16.mxu0 %v3400_v61  ;;  %v3039_v60 = vcombine.high %v4404_v55, %v4183_v30  ;;  %v3486_v61 = vld [vmem:[%s4525_s1 + $0x804] ss:$8 sps:$4 sm:$0xff]  }
  0xcd   : > { %2138 = vmatprep.subr.bf16.mxu1 %v3403_v62  ;;  %v2906_v62 = vcombine.low %v4180_v29, %v4180_v29  ;;  %v3489_v29 = vld [vmem:[%s4525_s1 + $0x810] ss:$8 sps:$4 sm:$0xff]  }
  0xcf   : > { %1877 = vmatpush1.bf16.msra.mxu0 %v3398_v63  ;;  %v1964_v63 = vor.u32 %v1963_v57, %v1959_v56 }
  0xd0   : > { %2139 = vmatpush1.bf16.msra.mxu1 %v3401_v0  ;;  %1878 = vmatprep.subr.bf16.mxu0 %v3406_v1  ;;  %v3484_v0 = vld [vmem:[%s4525_s1 + $0x800] ss:$8 sps:$4 sm:$0xff]   ;;  %v2217_v1 = vrot.slane %v3039_v60, 1 }
  0xd1   : > { %2140 = vmatprep.subr.bf16.mxu1 %v3409_v2  ;;  %v3491_v2 = vld [vmem:[%s4525_s1 + $0x814] ss:$8 sps:$4 sm:$0xff]  }
  0xd3   : > { %1879 = vmatpush1.bf16.msra.mxu0 %v3404_v3  ;;  %v3494_v3 = vld [vmem:[%s4525_s1 + $0x824] ss:$8 sps:$4 sm:$0xff]  }
  0xd4   : > { %2141 = vmatpush1.bf16.msra.mxu1 %v3407_v4  ;;  %1880 = vmatprep.subr.bf16.mxu0 %v3412_v5  ;;  %v3492_v4 = vld [vmem:[%s4525_s1 + $0x820] ss:$8 sps:$4 sm:$0xff]   ;;  %v3497_v5 = vld [vmem:[%s4525_s1 + $0x834] ss:$8 sps:$4 sm:$0xff]  }
  0xd5   : > { %2142 = vmatprep.subr.bf16.mxu1 %v3415_v6  ;;  %v3495_v6 = vld [vmem:[%s4525_s1 + $0x830] ss:$8 sps:$4 sm:$0xff]  }
  0xd7   : > { %1881 = vmatpush1.bf16.msra.mxu0 %v3410_v7  ;;  %v3500_v7 = vld [vmem:[%s4525_s1 + $0x844] ss:$8 sps:$4 sm:$0xff]  }
  0xd8   : > { %2143 = vmatpush1.bf16.msra.mxu1 %v3413_v8  ;;  %1882 = vmatprep.subr.bf16.mxu0 %v3418_v9  ;;  %v3498_v8 = vld [vmem:[%s4525_s1 + $0x840] ss:$8 sps:$4 sm:$0xff]   ;;  %v3503_v9 = vld [vmem:[%s4525_s1 + $0x854] ss:$8 sps:$4 sm:$0xff]  }
  0xd9   : > { %2144 = vmatprep.subr.bf16.mxu1 %v3421_v10  ;;  %v3501_v10 = vld [vmem:[%s4525_s1 + $0x850] ss:$8 sps:$4 sm:$0xff]  }
  0xdb   : > { %1883 = vmatpush1.bf16.msra.mxu0 %v3416_v11  ;;  %v3506_v11 = vld [vmem:[%s4525_s1 + $0x864] ss:$8 sps:$4 sm:$0xff]  }
  0xdc   : > { %2145 = vmatpush1.bf16.msra.mxu1 %v3419_v12  ;;  %1884 = vmatprep.subr.bf16.mxu0 %v3424_v13 }
  0xdd   : > { %2146 = vmatprep.subr.bf16.mxu1 %v3427_v14 }
  0xdf   : > { %1885 = vmatpush1.bf16.msra.mxu0 %v3422_v15 }
  0xe0   : > { %2147 = vmatpush1.bf16.msra.mxu1 %v3425_v16  ;;  %1886 = vmatprep.subr.bf16.mxu0 %v3430_v17 }
  0xe1   : > { %2148 = vmatprep.subr.bf16.mxu1 %v3433_v18 }
  0xe3   : > { %1887 = vmatpush1.bf16.msra.mxu0 %v3428_v19  ;;  %v3504_v19 = vld [vmem:[%s4525_s1 + $0x860] ss:$8 sps:$4 sm:$0xff]  }
  0xe4   : > { %2149 = vmatpush1.bf16.msra.mxu1 %v3431_v20  ;;  %1888 = vmatprep.subr.bf16.mxu0 %v3436_v21 }
  0xe5   : > { %2150 = vmatprep.subr.bf16.mxu1 %v3439_v22  ;;  %v3509_v22 = vld [vmem:[%s4525_s1 + $0x874] ss:$8 sps:$4 sm:$0xff]  }
  0xe7   : > { %1889 = vmatpush1.bf16.msra.mxu0 %v3434_v23 }
  0xe8   : > { %2151 = vmatpush1.bf16.msra.mxu1 %v3437_v47  ;;  %1890 = vmatprep.subr.bf16.mxu0 %v3442_v24  ;;  %v3507_v47 = vld [vmem:[%s4525_s1 + $0x870] ss:$8 sps:$4 sm:$0xff]   ;;  %v3512_v24 = vld [vmem:[%s4525_s1 + $0x884] ss:$8 sps:$4 sm:$0xff]  }
  0xe9   : > { %2152 = vmatprep.subr.bf16.mxu1 %v3445_v25  ;;  %v3510_v25 = vld [vmem:[%s4525_s1 + $0x880] ss:$8 sps:$4 sm:$0xff]  }
  0xeb   : > { %1891 = vmatpush1.bf16.msra.mxu0 %v3440_v26  ;;  %v3515_v26 = vld [vmem:[%s4525_s1 + $0x894] ss:$8 sps:$4 sm:$0xff]  }
  0xec   : > { %2153 = vmatpush1.bf16.msra.mxu1 %v3443_v27  ;;  %1892 = vmatprep.subr.bf16.mxu0 %v3448_v28  ;;  %v3513_v27 = vld [vmem:[%s4525_s1 + $0x890] ss:$8 sps:$4 sm:$0xff]   ;;  %v3518_v28 = vld [vmem:[%s4525_s1 + $0x8a4] ss:$8 sps:$4 sm:$0xff]  }
  0xed   : > { %2154 = vmatprep.subr.bf16.mxu1 %v3451_v32  ;;  %v3516_v32 = vld [vmem:[%s4525_s1 + $0x8a0] ss:$8 sps:$4 sm:$0xff]  }
  0xef   : > { %1893 = vmatpush1.bf16.msra.mxu0 %v3446_v33  ;;  %v3521_v33 = vld [vmem:[%s4525_s1 + $0x8b4] ss:$8 sps:$4 sm:$0xff]  }
  0xf0   : > { %2155 = vmatpush1.bf16.msra.mxu1 %v3449_v45  ;;  %1894 = vmatprep.subr.bf16.mxu0 %v3454_v35  ;;  %v3519_v45 = vld [vmem:[%s4525_s1 + $0x8b0] ss:$8 sps:$4 sm:$0xff]   ;;  %v3524_v35 = vld [vmem:[%s4525_s1 + $0x8c4] ss:$8 sps:$4 sm:$0xff]  }
  0xf1   : > { %2156 = vmatprep.subr.bf16.mxu1 %v3457_v36  ;;  %v3522_v36 = vld [vmem:[%s4525_s1 + $0x8c0] ss:$8 sps:$4 sm:$0xff]  }
  0xf3   : > { %1895 = vmatpush1.bf16.msra.mxu0 %v3452_v37  ;;  %v3527_v37 = vld [vmem:[%s4525_s1 + $0x8d4] ss:$8 sps:$4 sm:$0xff]  }
  0xf4   : > { %2157 = vmatpush1.bf16.msra.mxu1 %v3455_v38  ;;  %1896 = vmatprep.subr.bf16.mxu0 %v3460_v39  ;;  %v3525_v38 = vld [vmem:[%s4525_s1 + $0x8d0] ss:$8 sps:$4 sm:$0xff]   ;;  %v3530_v39 = vld [vmem:[%s4525_s1 + $0x8e4] ss:$8 sps:$4 sm:$0xff]  }
  0xf5   : > { %2158 = vmatprep.subr.bf16.mxu1 %v3463_v40  ;;  %v3528_v40 = vld [vmem:[%s4525_s1 + $0x8e0] ss:$8 sps:$4 sm:$0xff]  }
  0xf7   : > { %1897 = vmatpush1.bf16.msra.mxu0 %v3458_v41  ;;  %v3533_v41 = vld [vmem:[%s4525_s1 + $0x8f4] ss:$8 sps:$4 sm:$0xff]  }
  0xf8   : > { %2159 = vmatpush1.bf16.msra.mxu1 %v3461_v42  ;;  %1898 = vmatprep.subr.bf16.mxu0 %v3466_v43  ;;  %v3038_v42 = vcombine.low %v4404_v55, %v4183_v30  ;;  %v3531_v43 = vld [vmem:[%s4525_s1 + $0x8f0] ss:$8 sps:$4 sm:$0xff]  }
  0xf9   : > { %2160 = vmatprep.subr.bf16.mxu1 %v3469_v44 }
  0xfa   : > { %v2216_v44 = vrot.slane %v3038_v42, 1 }
  0xfb   : > { %1899 = vmatpush1.bf16.msra.mxu0 %v3464_v48 }
  0xfc   : > { %2161 = vmatpush1.bf16.msra.mxu1 %v3467_v49  ;;  %1900 = vmatprep.subr.bf16.mxu0 %v3472_v50 }
  0xfd   : > { %2162 = vmatprep.subr.bf16.mxu1 %v3475_v51 }
  0xff   : > { %1901 = vmatpush1.bf16.msra.mxu0 %v3470_v53 }
 0x100   : > { %2163 = vmatpush1.bf16.msra.mxu1 %v3473_v54  ;;  %1902 = vmatprep.subr.bf16.mxu0 %v3478_v31 }
 0x101   : > { %2164 = vmatprep.subr.bf16.mxu1 %v3481_v34 }
 0x103   : > { %1903 = vmatpush1.bf16.msra.mxu0 %v3476_v58 }
 0x104   : > { %2165 = vmatpush1.bf16.msra.mxu1 %v3479_v59  ;;  %2380 = vmatprep.subr.bf16.mxu0 %v3486_v61 }
 0x106   : > { %1905 = vmatmul.mubr.bf16.vlgmr.msra.gmra.mrb[12].mxu0 %v2906_v62 }
 0x107   : > { %2167 = vmatmul.mubr.bf16.vlgmr.msra.gmra.mrb[12].mxu1 %v1964_v63  ;;  %2381 = vmatpush1.bf16.msra.mxu0 %v3484_v0 }
 0x108   : > { %2412 = vmatprep.mubr.bf16.mxu0 %v2217_v1  ;;  %2382 = vmatprep.subr.bf16.mxu0 %v3491_v2 }
 0x10b   : > { %2383 = vmatpush1.bf16.msra.mxu0 %v3489_v29 }
 0x10c   : > { %2384 = vmatprep.subr.bf16.mxu0 %v3494_v3 }
 0x10f   : > { %2385 = vmatpush1.bf16.msra.mxu0 %v3492_v4 }
 0x110   : > { %2386 = vmatprep.subr.bf16.mxu0 %v3497_v5 }
 0x113   : > { %2387 = vmatpush1.bf16.msra.mxu0 %v3495_v6 }
 0x114   : > { %2388 = vmatprep.subr.bf16.mxu0 %v3500_v7 }
 0x117   : > { %2389 = vmatpush1.bf16.msra.mxu0 %v3498_v8 }
 0x118   : > { %2390 = vmatprep.subr.bf16.mxu0 %v3503_v9 }
 0x119   : > { %v457_v12 = vpop.f32.mrb[0].mxu0 }
 0x11a   : > { %v662_v13 = vpop.f32.mrb[0].mxu1  ;;  %v459_v15 = vpop.f32.mrb[1].mxu0 }
 0x11b   : > { %v663_v14 = vadd.f32 %v662_v13, %v457_v12  ;;  %v664_v16 = vpop.f32.mrb[1].mxu1  ;;  %v461_v18 = vpop.f32.mrb[2].mxu0  ;;  %2391 = vmatpush1.bf16.msra.mxu0 %v3501_v10 }
 0x11c   : > { %v665_v17 = vadd.f32 %v664_v16, %v459_v15  ;;  %v666_v20 = vpop.f32.mrb[2].mxu1  ;;  %v462_v21 = vpop.f32.mrb[3].mxu0  ;;  %2392 = vmatprep.subr.bf16.mxu0 %v3506_v11  ;;  %v2424_v15 = vlaneseq  ;;  %v171_v18 = vld [vmem:[%s4526_s2] sm:$0x3] }
 0x11d   : > { %v667_v23 = vpop.f32.mrb[3].mxu1 }
 0x11e   : > { %v2425_v16 = vshrl.u32 %v2424_v15, 7 }
 0x11f   : > { %2393 = vmatpush1.bf16.msra.mxu0 %v3504_v19 }
 0x120   : > { %2394 = vmatprep.subr.bf16.mxu0 %v3509_v22  ;;  %v2430_v19 = vsub.s32 1, %v2425_v16 }
 0x122   : > { %v2431_v22 = vrot.slane %v171_v18, %v2430_v19 }
 0x123   : > { %2395 = vmatpush1.bf16.msra.mxu0 %v3507_v47 }
 0x124   : > { %2396 = vmatprep.subr.bf16.mxu0 %v3512_v24 }
 0x127   : > { %2397 = vmatpush1.bf16.msra.mxu0 %v3510_v25 }
 0x128   : > { %2398 = vmatprep.subr.bf16.mxu0 %v3515_v26 }
 0x12b   : > { %2399 = vmatpush1.bf16.msra.mxu0 %v3513_v27 }
 0x12c   : > { %2400 = vmatprep.subr.bf16.mxu0 %v3518_v28 }
 0x12f   : > { %2401 = vmatpush1.bf16.msra.mxu0 %v3516_v32 }
 0x130   : > { %2402 = vmatprep.subr.bf16.mxu0 %v3521_v33 }
 0x133   : > { %2403 = vmatpush1.bf16.msra.mxu0 %v3519_v45 }
 0x134   : > { %2404 = vmatprep.subr.bf16.mxu0 %v3524_v35 }
 0x137   : > { %2405 = vmatpush1.bf16.msra.mxu0 %v3522_v36 }
 0x138   : > { %2406 = vmatprep.subr.bf16.mxu0 %v3527_v37 }
 0x13b   : > { %2407 = vmatpush1.bf16.msra.mxu0 %v3525_v38 }
 0x13c   : > { %2408 = vmatprep.subr.bf16.mxu0 %v3530_v39 }
 0x13f   : > { %2409 = vmatpush1.bf16.msra.mxu0 %v3528_v40 }
 0x140   : > { %2410 = vmatprep.subr.bf16.mxu0 %v3533_v41 }
 0x143   : > { %2411 = vmatpush1.bf16.msra.mxu0 %v3531_v43 }
 0x146   : > { %2413 = vmatmul.mubr.bf16.vlgmr.msra.gmra.mrb[16].mxu0 %v2216_v44 }
 0x159   : > { %v906_v46 = vpop.f32.mrb[4].mxu0 }
 0x15a   : > { %v1156_v48 = vpop.f32.mrb[4].mxu1  ;;  %v913_v49 = vadd.f32 %v906_v46, %v663_v14  ;;  %v908_v50 = vpop.f32.mrb[5].mxu0 }
 0x15b   : > { %v1158_v51 = vpop.f32.mrb[5].mxu1  ;;  %v914_v52 = vadd.f32 %v908_v50, %v665_v17  ;;  %v910_v53 = vpop.f32.mrb[6].mxu0  ;;  %v2426_v17 = vsub.s32 0, %v2425_v16 }
 0x15c   : > { %v1160_v54 = vpop.f32.mrb[6].mxu1  ;;  %v1163_v31 = vadd.f32 %v1156_v48, %v913_v49  ;;  %v911_v34 = vpop.f32.mrb[7].mxu0 }
 0x15d   : > { %v1161_v30 = vpop.f32.mrb[7].mxu1  ;;  %v1164_v55 = vadd.f32 %v1158_v51, %v914_v52  ;;  %v2427_v20 = vrot.slane %v171_v18, %v2426_v17 }
 0x199   : > { %v1416_v56 = vpop.f32.mrb[8].mxu0 }
 0x19a   : > { %v1662_v57 = vpop.f32.mrb[8].mxu1  ;;  %v1423_v58 = vadd.f32 %v1416_v56, %v1163_v31  ;;  %v1418_v59 = vpop.f32.mrb[9].mxu0 }
 0x19b   : > { %v1664_v60 = vpop.f32.mrb[9].mxu1  ;;  %v1424_v61 = vadd.f32 %v1418_v59, %v1164_v55  ;;  %v1420_v62 = vpop.f32.mrb[10].mxu0 }
 0x19c   : > { %v1666_v63 = vpop.f32.mrb[10].mxu1  ;;  %v1669_v0 = vadd.f32 %v1662_v57, %v1423_v58  ;;  %v1421_v1 = vpop.f32.mrb[11].mxu0 }
 0x19d   : > { %v1667_v2 = vpop.f32.mrb[11].mxu1  ;;  %v1670_v29 = vadd.f32 %v1664_v60, %v1424_v61 }
 0x1d9   : > { %v1906_v3 = vpop.f32.mrb[12].mxu0 }
 0x1da   : > { %v2168_v4 = vpop.f32.mrb[12].mxu1  ;;  %v1913_v5 = vadd.f32 %v1906_v3, %v1669_v0  ;;  %v1908_v6 = vpop.f32.mrb[13].mxu0 }
 0x1db   : > { %v2170_v7 = vpop.f32.mrb[13].mxu1  ;;  %v1914_v8 = vadd.f32 %v1908_v6, %v1670_v29  ;;  %v1910_v9 = vpop.f32.mrb[14].mxu0 }
 0x1dc   : > { %v2172_v10 = vpop.f32.mrb[14].mxu1  ;;  %v2175_v11 = vadd.f32 %v2168_v4, %v1913_v5  ;;  %v1911_v12 = vpop.f32.mrb[15].mxu0 }
 0x1dd   : > { %v2173_v13 = vpop.f32.mrb[15].mxu1  ;;  %v2176_v14 = vadd.f32 %v2170_v7, %v1914_v8 }
 0x219   : > { %v2414_v21 = vpop.f32.mrb[16].mxu0 }
 0x21a   : > { %v2421_v23 = vadd.f32 %v2414_v21, %v2175_v11  ;;  %v2416_v47 = vpop.f32.mrb[17].mxu0 }
 0x21b   : > { %v2422_v24 = vadd.f32 %v2416_v47, %v2176_v14  ;;  %v2418_v25 = vpop.f32.mrb[18].mxu0 }
 0x21c   : > { %v2434_v26 = vadd.f32 %v2427_v20, %v2421_v23  ;;  %v2419_v27 = vpop.f32.mrb[19].mxu0 }
 0x21d   : > { %v2435_v28 = vadd.f32 %v2431_v22, %v2422_v24 }
 0x21e   : > { %v2436_v32 = vmax.f32 %v2434_v26, 0.0 }
 0x21f   : > { %v2437_v33 = vmax.f32 %v2435_v28, 0.0 }
 0x221   : > { %v3076_v45 = vpack.c.bf16 %v2437_v33, %v2436_v32 }
 0x223   : > { %2446 = vst [vmem:[%s170_s16] sm:$0xff] %v3076_v45 }
 0x224 PF: > { %s13_s12 = sadd.s32 1, %s3542_s12  }
 0x225   : > { %p10_p4 = scmp.ge.s32.totalorder %s13_s12, 4  }
 0x227   :  { %12 = sbr.rel (!%p10_p4) target bundleno = 1 (0x1), region = 70 }

</bundles_post_ra>
